<compile_context>
chip_gen: v7x
topology: tpu7x:2x2x1
jax: 0.10.0
libtpu: 0.0.40
codegen_flags: <defaults>
</compile_context>

<pallas_src>
import functools

import numpy as np
import jax
import jax.numpy as jnp
from jax import lax
from jax.experimental import pallas as pl
from jax.experimental.pallas import tpu as pltpu


C1, C2, C3 = 16, 32, 64        # conv output channels (fixed by the module)
FC_HIDDEN = 128


# ----------------------------------------------------------------------------
# Fused kernel
# ----------------------------------------------------------------------------
def _conv_relu_pool_layer(pad_ref, conv_ref, w_ref, b_ref, *, H, W, Cin, Cout):
    """conv3x3(pad=1) + bias + ReLU + maxpool2x2 for one image.

    pad_ref : (H+2, W+2, Cin) VMEM scratch already holding the zero-padded input.
    conv_ref: (H, W, Cout)    VMEM scratch; written ONCE with the ReLU'd conv output.
    w_ref   : (9, Cin, Cout)  one (Cin, Cout) matrix per 3x3 tap.
    b_ref   : (1, 1, Cout)    bias.
    Returns the pooled activation as an (H//2, W//2, Cout) value.
    """
    HW = H * W
    acc = None
    for ky in range(3):
        for kx in range(3):
            xs = pad_ref[ky:ky + H, kx:kx + W, :]                    # (H, W, Cin)
            part = jnp.dot(xs.reshape(HW, Cin), w_ref[ky * 3 + kx],
                           preferred_element_type=jnp.float32)       # (HW, Cout)
            acc = part if acc is None else acc + part                # register accum
    y = acc.reshape(H, W, Cout) + b_ref[...]
    conv_ref[...] = jnp.maximum(y, 0.0)                              # single store

    Ho, Wo = H // 2, W // 2
    # W direction: stride-2 sublane reads of the conv scratch.
    wmax = jnp.maximum(conv_ref[:, pl.ds(0, Wo, 2), :],
                       conv_ref[:, pl.ds(1, Wo, 2), :])              # (H, Wo, Cout)
    # H direction: layout-preserving split of the leading dim + 2-way max.
    wmax = wmax.reshape(Ho, 2, Wo, Cout)
    return jnp.maximum(wmax[:, 0], wmax[:, 1])                       # (Ho, Wo, Cout)


def _audio_cnn_kernel(x_ref, w1_ref, b1_ref, w2_ref, b2_ref, w3_ref, b3_ref,
                      wf1_ref, bf1_ref, wf2_ref, bf2_ref, o_ref,
                      pad1, conv1, pad2, conv2, pad3, conv3, *, H, W, C0):
    H1, W1 = H // 2, W // 2
    H2, W2 = H // 4, W // 4
    S = (H // 8) * (W // 8)

    # --- layer 1 (spatial pad=1 and channel zero-pad 1 -> C0 done here, in VMEM) ---
    pad1[...] = jnp.zeros_like(pad1)
    pad1[1:H + 1, 1:W + 1, 0:1] = x_ref[0]                           # (H, W, 1)
    p1 = _conv_relu_pool_layer(pad1, conv1, w1_ref, b1_ref,
                               H=H, W=W, Cin=C0, Cout=C1)

    # --- layer 2 ---
    pad2[...] = jnp.zeros_like(pad2)
    pad2[1:H1 + 1, 1:W1 + 1, :] = p1
    p2 = _conv_relu_pool_layer(pad2, conv2, w2_ref, b2_ref,
                               H=H1, W=W1, Cin=C1, Cout=C2)

    # --- layer 3 ---
    pad3[...] = jnp.zeros_like(pad3)
    pad3[1:H2 + 1, 1:W2 + 1, :] = p2
    p3 = _conv_relu_pool_layer(pad3, conv3, w3_ref, b3_ref,
                               H=H2, W=W2, Cin=C2, Cout=C3)

    # --- MLP head (fc1 weights pre-permuted so the NHWC flatten feeds it directly) ---
    x2d = p3.reshape(S, C3)                                          # (S, 64)
    h = bf1_ref[...]                                                 # (1, 128)
    for s in range(S):
        h = h + jnp.dot(x2d[s:s + 1, :], wf1_ref[s],
                        preferred_element_type=jnp.float32)
    h = jnp.maximum(h, 0.0)
    o_ref[0] = (jnp.dot(h, wf2_ref[...], preferred_element_type=jnp.float32)
                + bf2_ref[...])                                      # (1, num_classes)


# ----------------------------------------------------------------------------
# Host-side parameter preparation (done once, outside jit)
# ----------------------------------------------------------------------------
def _prepare_params(p, cin_pad=8):
    f32 = jnp.float32

    def conv_w(w, pad_to=None):
        cout, cin = w.shape[0], w.shape[1]
        wk = jnp.transpose(w, (2, 3, 1, 0)).reshape(9, cin, cout).astype(f32)
        if pad_to is not None and pad_to > cin:      # zero-pad contraction dim
            wk = jnp.pad(wk, ((0, 0), (0, pad_to - cin), (0, 0)))
        return wk

    def conv_b(b):
        return b.reshape(1, 1, -1).astype(f32)

    # torch flattens NCHW: column index = c * S + (h*W3 + w).  Re-order to
    # [s, c, j] so the kernel's NHWC flatten needs no runtime permute.
    S = p["fc1_w"].shape[1] // C3
    wf1 = p["fc1_w"].reshape(FC_HIDDEN, C3, S)            # [j, c, s]
    wf1 = jnp.transpose(wf1, (2, 1, 0)).astype(f32)       # [s, c, j] -> (S, 64, 128)

    return {
        "w1": conv_w(p["conv1_w"], pad_to=cin_pad), "b1": conv_b(p["conv1_b"]),
        "w2": conv_w(p["conv2_w"]),                 "b2": conv_b(p["conv2_b"]),
        "w3": conv_w(p["conv3_w"]),                 "b3": conv_b(p["conv3_b"]),
        "wf1": wf1,
        "bf1": p["fc1_b"].reshape(1, -1).astype(f32),
        "wf2": jnp.transpose(p["fc2_w"]).astype(f32),
        "bf2": p["fc2_b"].reshape(1, -1).astype(f32),
    }


# ----------------------------------------------------------------------------
# Forward wrapper
# ----------------------------------------------------------------------------
def audio_cnn_forward(x_nchw, prep):
    """Fused Pallas forward; matches AudioCNN.forward (NCHW in, (B, classes) out)."""
    B, Cin, H, W = x_nchw.shape
    assert Cin == 1 and H % 8 == 0 and W % 8 == 0, (Cin, H, W)
    H1, W1 = H // 2, W // 2
    H2, W2 = H // 4, W // 4
    C0 = prep["w1"].shape[1]
    num_classes = prep["wf2"].shape[1]
    assert prep["wf1"].shape[0] == (H // 8) * (W // 8), "fc1 size vs input mismatch"

    # NCHW -> NHWC is a pure (free) reshape for a single input channel.
    x = x_nchw.reshape(B, H, W, 1).astype(jnp.float32)

    def full(arr):  # whole-array block, resident across the batch grid
        if arr.ndim == 2:
            return pl.BlockSpec(arr.shape, lambda b: (0, 0))
        return pl.BlockSpec(arr.shape, lambda b: (0, 0, 0))

    in_specs = [
        pl.BlockSpec((1, H, W, 1), lambda b: (b, 0, 0, 0)),
        full(prep["w1"]), full(prep["b1"]),
        full(prep["w2"]), full(prep["b2"]),
        full(prep["w3"]), full(prep["b3"]),
        full(prep["wf1"]), full(prep["bf1"]),
        full(prep["wf2"]), full(prep["bf2"]),
    ]
    out_specs = pl.BlockSpec((1, 1, num_classes), lambda b: (b, 0, 0))
    scratch_shapes = [
        pltpu.VMEM((H + 2, W + 2, C0), jnp.float32),    # padded layer-1 input
        pltpu.VMEM((H, W, C1), jnp.float32),            # layer-1 conv output
        pltpu.VMEM((H1 + 2, W1 + 2, C1), jnp.float32),  # padded layer-2 input
        pltpu.VMEM((H1, W1, C2), jnp.float32),          # layer-2 conv output
        pltpu.VMEM((H2 + 2, W2 + 2, C2), jnp.float32),  # padded layer-3 input
        pltpu.VMEM((H2, W2, C3), jnp.float32),          # layer-3 conv output
    ]

    def cflops(h, w, ci, co):
        return 2 * 9 * h * w * ci * co
    flops = B * (cflops(H, W, C0, C1) + cflops(H1, W1, C1, C2)
                 + cflops(H2, W2, C2, C3)
                 + 2 * ((H // 8) * (W // 8) * C3 * FC_HIDDEN
                        + FC_HIDDEN * num_classes))
    bytes_accessed = int(x.size * 4
                         + sum(int(v.size) for v in prep.values()) * 4
                         + B * num_classes * 4)

    out = pl.pallas_call(
        functools.partial(_audio_cnn_kernel, H=H, W=W, C0=C0),
        out_shape=jax.ShapeDtypeStruct((B, 1, num_classes), jnp.float32),
        grid_spec=pltpu.PrefetchScalarGridSpec(
            num_scalar_prefetch=0,
            grid=(B,),
            in_specs=in_specs,
            out_specs=out_specs,
            scratch_shapes=scratch_shapes,
        ),
        compiler_params=pltpu.CompilerParams(
            dimension_semantics=("parallel",)),   # uses both v7x TCs; no-op on v5e/v6e
        cost_estimate=pl.CostEstimate(flops=int(flops), transcendentals=0,
                                      bytes_accessed=bytes_accessed),
    )(x, prep["w1"], prep["b1"], prep["w2"], prep["b2"], prep["w3"], prep["b3"],
      prep["wf1"], prep["bf1"], prep["wf2"], prep["bf2"])
    return out.reshape(B, num_classes)


# ----------------------------------------------------------------------------
# Pure-JAX reference (mirrors the PyTorch module exactly, NCHW)
# ----------------------------------------------------------------------------
def reference_forward(x_nchw, p):
    def conv(x, w, b):
        y = lax.conv_general_dilated(
            x, w, window_strides=(1, 1), padding=((1, 1), (1, 1)),
            dimension_numbers=("NCHW", "OIHW", "NCHW"))
        return y + b.reshape(1, -1, 1, 1)

    def pool(x):
        B, C, H, W = x.shape
        return x.reshape(B, C, H // 2, 2, W // 2, 2).max(axis=(3, 5))

    x = pool(jax.nn.relu(conv(x_nchw, p["conv1_w"], p["conv1_b"])))
    x = pool(jax.nn.relu(conv(x, p["conv2_w"], p["conv2_b"])))
    x = pool(jax.nn.relu(conv(x, p["conv3_w"], p["conv3_b"])))
    flat = x.reshape(x.shape[0], -1)
    h = jax.nn.relu(flat @ p["fc1_w"].T + p["fc1_b"])
    return h @ p["fc2_w"].T + p["fc2_b"]


# ----------------------------------------------------------------------------
# Main
# ----------------------------------------------------------------------------
if __name__ == "__main__":
    # Small shapes consistent with the module: input_shape=(32, 32), num_classes=2.
    # flattened_size = 64 * (32/8) * (32/8) = 1024.
    B, num_classes = 2, 2
    Hin = Win = 32
    flattened = C3 * (Hin // 8) * (Win // 8)

    key = jax.random.PRNGKey(0)
    ks = jax.random.split(key, 11)
    params = {
        "conv1_w": 0.1 * jax.random.normal(ks[0], (16, 1, 3, 3), jnp.float32),
        "conv1_b": 0.1 * jax.random.normal(ks[1], (16,), jnp.float32),
        "conv2_w": 0.1 * jax.random.normal(ks[2], (32, 16, 3, 3), jnp.float32),
        "conv2_b": 0.1 * jax.random.normal(ks[3], (32,), jnp.float32),
        "conv3_w": 0.1 * jax.random.normal(ks[4], (64, 32, 3, 3), jnp.float32),
        "conv3_b": 0.1 * jax.random.normal(ks[5], (64,), jnp.float32),
        "fc1_w": 0.1 * jax.random.normal(ks[6], (128, flattened), jnp.float32),
        "fc1_b": 0.1 * jax.random.normal(ks[7], (128,), jnp.float32),
        "fc2_w": 0.1 * jax.random.normal(ks[8], (num_classes, 128), jnp.float32),
        "fc2_b": 0.1 * jax.random.normal(ks[9], (num_classes,), jnp.float32),
    }
    x = jax.random.normal(ks[10], (B, 1, Hin, Win), jnp.float32)  # NCHW like PyTorch

    prep = _prepare_params(params)            # one-time host-side re-arrangement
    fwd = jax.jit(audio_cnn_forward)
    out = jax.block_until_ready(fwd(x, prep))

    ref = jax.block_until_ready(reference_forward(x, params))
    assert out.shape == (B, num_classes), out.shape
    assert np.allclose(np.asarray(out), np.asarray(ref), atol=2e-3, rtol=2e-3), (
        "mismatch vs reference:\n%s\n%s" % (out, ref))

    print("KERNEL_OK")
</pallas_src>

<mosaic_0001>
module attributes {stable_mosaic.version = 11 : i64} {
  func.func @_audio_cnn_kernel(%arg0: i32, %arg1: memref<1x32x32x1xf32, #tpu.memory_space<vmem>>, %arg2: memref<9x8x16xf32, #tpu.memory_space<vmem>>, %arg3: memref<1x1x16xf32, #tpu.memory_space<vmem>>, %arg4: memref<9x16x32xf32, #tpu.memory_space<vmem>>, %arg5: memref<1x1x32xf32, #tpu.memory_space<vmem>>, %arg6: memref<9x32x64xf32, #tpu.memory_space<vmem>>, %arg7: memref<1x1x64xf32, #tpu.memory_space<vmem>>, %arg8: memref<16x64x128xf32, #tpu.memory_space<vmem>>, %arg9: memref<1x128xf32, #tpu.memory_space<vmem>>, %arg10: memref<128x2xf32, #tpu.memory_space<vmem>>, %arg11: memref<1x2xf32, #tpu.memory_space<vmem>>, %arg12: memref<1x1x2xf32, #tpu.memory_space<vmem>>, %arg13: memref<34x34x8xf32, #tpu.memory_space<vmem>>, %arg14: memref<32x32x16xf32, #tpu.memory_space<vmem>>, %arg15: memref<18x18x16xf32, #tpu.memory_space<vmem>>, %arg16: memref<16x16x32xf32, #tpu.memory_space<vmem>>, %arg17: memref<10x10x32xf32, #tpu.memory_space<vmem>>, %arg18: memref<8x8x64xf32, #tpu.memory_space<vmem>>) attributes {dimension_semantics = [#tpu.dimension_semantics<parallel>], iteration_bounds = array<i64: 2>, scalar_prefetch = 0 : i64, scratch_operands = 6 : i64, tpu.core_type = #tpu.core_type<tc>, window_params = [{transform_indices = @transform_0, window_bounds = array<i64: 1, 32, 32, 1>}, {pipeline_mode = #tpu.pipeline_mode<synchronous>, transform_indices = @transform_1, window_bounds = array<i64: 9, 8, 16>}, {pipeline_mode = #tpu.pipeline_mode<synchronous>, transform_indices = @transform_2, window_bounds = array<i64: 1, 1, 16>}, {pipeline_mode = #tpu.pipeline_mode<synchronous>, transform_indices = @transform_3, window_bounds = array<i64: 9, 16, 32>}, {pipeline_mode = #tpu.pipeline_mode<synchronous>, transform_indices = @transform_4, window_bounds = array<i64: 1, 1, 32>}, {pipeline_mode = #tpu.pipeline_mode<synchronous>, transform_indices = @transform_5, window_bounds = array<i64: 9, 32, 64>}, {pipeline_mode = #tpu.pipeline_mode<synchronous>, transform_indices = @transform_6, window_bounds = array<i64: 1, 1, 64>}, {pipeline_mode = #tpu.pipeline_mode<synchronous>, transform_indices = @transform_7, window_bounds = array<i64: 16, 64, 128>}, {pipeline_mode = #tpu.pipeline_mode<synchronous>, transform_indices = @transform_8, window_bounds = array<i64: 1, 128>}, {pipeline_mode = #tpu.pipeline_mode<synchronous>, transform_indices = @transform_9, window_bounds = array<i64: 128, 2>}, {pipeline_mode = #tpu.pipeline_mode<synchronous>, transform_indices = @transform_10, window_bounds = array<i64: 1, 2>}, {transform_indices = @transform_11, window_bounds = array<i64: 1, 1, 2>}]} {
    %cst = arith.constant 0.000000e+00 : f32
    %0 = vector.broadcast %cst : f32 to vector<34x34x8xf32>
    %c0 = arith.constant 0 : index
    %c0_0 = arith.constant 0 : index
    %c0_1 = arith.constant 0 : index
    %1 = vector.load %arg13[%c0, %c0_0, %c0_1] : memref<34x34x8xf32, #tpu.memory_space<vmem>>, vector<34x34x8xf32>
    tpu.vector_store %arg13[%c0, %c0_0, %c0_1], %0 {strides = array<i32>} : memref<34x34x8xf32, #tpu.memory_space<vmem>>, vector<34x34x8xf32>,
    %c0_2 = arith.constant 0 : index
    %c0_3 = arith.constant 0 : index
    %c0_4 = arith.constant 0 : index
    %c0_5 = arith.constant 0 : index
    %2 = vector.load %arg1[%c0_2, %c0_3, %c0_4, %c0_5] : memref<1x32x32x1xf32, #tpu.memory_space<vmem>>, vector<1x32x32x1xf32>
    %3 = vector.shape_cast %2 : vector<1x32x32x1xf32> to vector<32x32x1xf32>
    %c1 = arith.constant 1 : index
    %c1_6 = arith.constant 1 : index
    %c0_7 = arith.constant 0 : index
    %4 = vector.load %arg13[%c1, %c1_6, %c0_7] : memref<34x34x8xf32, #tpu.memory_space<vmem>>, vector<32x32x1xf32>
    tpu.vector_store %arg13[%c1, %c1_6, %c0_7], %3 {strides = array<i32>} : memref<34x34x8xf32, #tpu.memory_space<vmem>>, vector<32x32x1xf32>,
    %c0_8 = arith.constant 0 : index
    %c0_9 = arith.constant 0 : index
    %c0_10 = arith.constant 0 : index
    %5 = vector.load %arg13[%c0_8, %c0_9, %c0_10] : memref<34x34x8xf32, #tpu.memory_space<vmem>>, vector<32x32x8xf32>
    %6 = vector.shape_cast %5 : vector<32x32x8xf32> to vector<1024x8xf32>
    %c0_11 = arith.constant 0 : index
    %c0_12 = arith.constant 0 : index
    %c0_13 = arith.constant 0 : index
    %7 = vector.load %arg2[%c0_11, %c0_12, %c0_13] : memref<9x8x16xf32, #tpu.memory_space<vmem>>, vector<1x8x16xf32>
    %8 = vector.shape_cast %7 : vector<1x8x16xf32> to vector<8x16xf32>
    %cst_14 = arith.constant dense<0.000000e+00> : vector<1024x16xf32>
    %9 = tpu.matmul %6, %8, %cst_14 {dimension_numbers = #tpu.dot_dimension_numbers<[1], [0], [0], [1], [0, 0, 1, 1], [], []>} : vector<1024x8xf32>, vector<8x16xf32>, vector<1024x16xf32> -> vector<1024x16xf32>
    %c0_15 = arith.constant 0 : index
    %c1_16 = arith.constant 1 : index
    %c0_17 = arith.constant 0 : index
    %10 = vector.load %arg13[%c0_15, %c1_16, %c0_17] : memref<34x34x8xf32, #tpu.memory_space<vmem>>, vector<32x32x8xf32>
    %11 = vector.shape_cast %10 : vector<32x32x8xf32> to vector<1024x8xf32>
    %c1_18 = arith.constant 1 : index
    %c0_19 = arith.constant 0 : index
    %c0_20 = arith.constant 0 : index
    %12 = vector.load %arg2[%c1_18, %c0_19, %c0_20] : memref<9x8x16xf32, #tpu.memory_space<vmem>>, vector<1x8x16xf32>
    %13 = vector.shape_cast %12 : vector<1x8x16xf32> to vector<8x16xf32>
    %cst_21 = arith.constant dense<0.000000e+00> : vector<1024x16xf32>
    %14 = tpu.matmul %11, %13, %cst_21 {dimension_numbers = #tpu.dot_dimension_numbers<[1], [0], [0], [1], [0, 0, 1, 1], [], []>} : vector<1024x8xf32>, vector<8x16xf32>, vector<1024x16xf32> -> vector<1024x16xf32>
    %15 = arith.addf %9, %14 : vector<1024x16xf32>
    %c0_22 = arith.constant 0 : index
    %c2 = arith.constant 2 : index
    %c0_23 = arith.constant 0 : index
    %16 = vector.load %arg13[%c0_22, %c2, %c0_23] : memref<34x34x8xf32, #tpu.memory_space<vmem>>, vector<32x32x8xf32>
    %17 = vector.shape_cast %16 : vector<32x32x8xf32> to vector<1024x8xf32>
    %c2_24 = arith.constant 2 : index
    %c0_25 = arith.constant 0 : index
    %c0_26 = arith.constant 0 : index
    %18 = vector.load %arg2[%c2_24, %c0_25, %c0_26] : memref<9x8x16xf32, #tpu.memory_space<vmem>>, vector<1x8x16xf32>
    %19 = vector.shape_cast %18 : vector<1x8x16xf32> to vector<8x16xf32>
    %cst_27 = arith.constant dense<0.000000e+00> : vector<1024x16xf32>
    %20 = tpu.matmul %17, %19, %cst_27 {dimension_numbers = #tpu.dot_dimension_numbers<[1], [0], [0], [1], [0, 0, 1, 1], [], []>} : vector<1024x8xf32>, vector<8x16xf32>, vector<1024x16xf32> -> vector<1024x16xf32>
    %21 = arith.addf %15, %20 : vector<1024x16xf32>
    %c1_28 = arith.constant 1 : index
    %c0_29 = arith.constant 0 : index
    %c0_30 = arith.constant 0 : index
    %22 = vector.load %arg13[%c1_28, %c0_29, %c0_30] : memref<34x34x8xf32, #tpu.memory_space<vmem>>, vector<32x32x8xf32>
    %23 = vector.shape_cast %22 : vector<32x32x8xf32> to vector<1024x8xf32>
    %c3 = arith.constant 3 : index
    %c0_31 = arith.constant 0 : index
    %c0_32 = arith.constant 0 : index
    %24 = vector.load %arg2[%c3, %c0_31, %c0_32] : memref<9x8x16xf32, #tpu.memory_space<vmem>>, vector<1x8x16xf32>
    %25 = vector.shape_cast %24 : vector<1x8x16xf32> to vector<8x16xf32>
    %cst_33 = arith.constant dense<0.000000e+00> : vector<1024x16xf32>
    %26 = tpu.matmul %23, %25, %cst_33 {dimension_numbers = #tpu.dot_dimension_numbers<[1], [0], [0], [1], [0, 0, 1, 1], [], []>} : vector<1024x8xf32>, vector<8x16xf32>, vector<1024x16xf32> -> vector<1024x16xf32>
    %27 = arith.addf %21, %26 : vector<1024x16xf32>
    %c1_34 = arith.constant 1 : index
    %c1_35 = arith.constant 1 : index
    %c0_36 = arith.constant 0 : index
    %28 = vector.load %arg13[%c1_34, %c1_35, %c0_36] : memref<34x34x8xf32, #tpu.memory_space<vmem>>, vector<32x32x8xf32>
    %29 = vector.shape_cast %28 : vector<32x32x8xf32> to vector<1024x8xf32>
    %c4 = arith.constant 4 : index
    %c0_37 = arith.constant 0 : index
    %c0_38 = arith.constant 0 : index
    %30 = vector.load %arg2[%c4, %c0_37, %c0_38] : memref<9x8x16xf32, #tpu.memory_space<vmem>>, vector<1x8x16xf32>
    %31 = vector.shape_cast %30 : vector<1x8x16xf32> to vector<8x16xf32>
    %cst_39 = arith.constant dense<0.000000e+00> : vector<1024x16xf32>
    %32 = tpu.matmul %29, %31, %cst_39 {dimension_numbers = #tpu.dot_dimension_numbers<[1], [0], [0], [1], [0, 0, 1, 1], [], []>} : vector<1024x8xf32>, vector<8x16xf32>, vector<1024x16xf32> -> vector<1024x16xf32>
    %33 = arith.addf %27, %32 : vector<1024x16xf32>
    %c1_40 = arith.constant 1 : index
    %c2_41 = arith.constant 2 : index
    %c0_42 = arith.constant 0 : index
    %34 = vector.load %arg13[%c1_40, %c2_41, %c0_42] : memref<34x34x8xf32, #tpu.memory_space<vmem>>, vector<32x32x8xf32>
    %35 = vector.shape_cast %34 : vector<32x32x8xf32> to vector<1024x8xf32>
    %c5 = arith.constant 5 : index
    %c0_43 = arith.constant 0 : index
    %c0_44 = arith.constant 0 : index
    %36 = vector.load %arg2[%c5, %c0_43, %c0_44] : memref<9x8x16xf32, #tpu.memory_space<vmem>>, vector<1x8x16xf32>
    %37 = vector.shape_cast %36 : vector<1x8x16xf32> to vector<8x16xf32>
    %cst_45 = arith.constant dense<0.000000e+00> : vector<1024x16xf32>
    %38 = tpu.matmul %35, %37, %cst_45 {dimension_numbers = #tpu.dot_dimension_numbers<[1], [0], [0], [1], [0, 0, 1, 1], [], []>} : vector<1024x8xf32>, vector<8x16xf32>, vector<1024x16xf32> -> vector<1024x16xf32>
    %39 = arith.addf %33, %38 : vector<1024x16xf32>
    %c2_46 = arith.constant 2 : index
    %c0_47 = arith.constant 0 : index
    %c0_48 = arith.constant 0 : index
    %40 = vector.load %arg13[%c2_46, %c0_47, %c0_48] : memref<34x34x8xf32, #tpu.memory_space<vmem>>, vector<32x32x8xf32>
    %41 = vector.shape_cast %40 : vector<32x32x8xf32> to vector<1024x8xf32>
    %c6 = arith.constant 6 : index
    %c0_49 = arith.constant 0 : index
    %c0_50 = arith.constant 0 : index
    %42 = vector.load %arg2[%c6, %c0_49, %c0_50] : memref<9x8x16xf32, #tpu.memory_space<vmem>>, vector<1x8x16xf32>
    %43 = vector.shape_cast %42 : vector<1x8x16xf32> to vector<8x16xf32>
    %cst_51 = arith.constant dense<0.000000e+00> : vector<1024x16xf32>
    %44 = tpu.matmul %41, %43, %cst_51 {dimension_numbers = #tpu.dot_dimension_numbers<[1], [0], [0], [1], [0, 0, 1, 1], [], []>} : vector<1024x8xf32>, vector<8x16xf32>, vector<1024x16xf32> -> vector<1024x16xf32>
    %45 = arith.addf %39, %44 : vector<1024x16xf32>
    %c2_52 = arith.constant 2 : index
    %c1_53 = arith.constant 1 : index
    %c0_54 = arith.constant 0 : index
    %46 = vector.load %arg13[%c2_52, %c1_53, %c0_54] : memref<34x34x8xf32, #tpu.memory_space<vmem>>, vector<32x32x8xf32>
    %47 = vector.shape_cast %46 : vector<32x32x8xf32> to vector<1024x8xf32>
    %c7 = arith.constant 7 : index
    %c0_55 = arith.constant 0 : index
    %c0_56 = arith.constant 0 : index
    %48 = vector.load %arg2[%c7, %c0_55, %c0_56] : memref<9x8x16xf32, #tpu.memory_space<vmem>>, vector<1x8x16xf32>
    %49 = vector.shape_cast %48 : vector<1x8x16xf32> to vector<8x16xf32>
    %cst_57 = arith.constant dense<0.000000e+00> : vector<1024x16xf32>
    %50 = tpu.matmul %47, %49, %cst_57 {dimension_numbers = #tpu.dot_dimension_numbers<[1], [0], [0], [1], [0, 0, 1, 1], [], []>} : vector<1024x8xf32>, vector<8x16xf32>, vector<1024x16xf32> -> vector<1024x16xf32>
    %51 = arith.addf %45, %50 : vector<1024x16xf32>
    %c2_58 = arith.constant 2 : index
    %c2_59 = arith.constant 2 : index
    %c0_60 = arith.constant 0 : index
    %52 = vector.load %arg13[%c2_58, %c2_59, %c0_60] : memref<34x34x8xf32, #tpu.memory_space<vmem>>, vector<32x32x8xf32>
    %53 = vector.shape_cast %52 : vector<32x32x8xf32> to vector<1024x8xf32>
    %c8 = arith.constant 8 : index
    %c0_61 = arith.constant 0 : index
    %c0_62 = arith.constant 0 : index
    %54 = vector.load %arg2[%c8, %c0_61, %c0_62] : memref<9x8x16xf32, #tpu.memory_space<vmem>>, vector<1x8x16xf32>
    %55 = vector.shape_cast %54 : vector<1x8x16xf32> to vector<8x16xf32>
    %cst_63 = arith.constant dense<0.000000e+00> : vector<1024x16xf32>
    %56 = tpu.matmul %53, %55, %cst_63 {dimension_numbers = #tpu.dot_dimension_numbers<[1], [0], [0], [1], [0, 0, 1, 1], [], []>} : vector<1024x8xf32>, vector<8x16xf32>, vector<1024x16xf32> -> vector<1024x16xf32>
    %57 = arith.addf %51, %56 : vector<1024x16xf32>
    %58 = vector.shape_cast %57 : vector<1024x16xf32> to vector<32x32x16xf32>
    %c0_64 = arith.constant 0 : index
    %c0_65 = arith.constant 0 : index
    %c0_66 = arith.constant 0 : index
    %59 = vector.load %arg3[%c0_64, %c0_65, %c0_66] : memref<1x1x16xf32, #tpu.memory_space<vmem>>, vector<1x1x16xf32>
    %60 = vector.broadcast %59 : vector<1x1x16xf32> to vector<32x32x16xf32>
    %61 = arith.addf %58, %60 : vector<32x32x16xf32>
    %cst_67 = arith.constant 0.000000e+00 : f32
    %62 = vector.broadcast %cst_67 : f32 to vector<32x32x16xf32>
    %63 = arith.maximumf %61, %62 : vector<32x32x16xf32>
    %c0_68 = arith.constant 0 : index
    %c0_69 = arith.constant 0 : index
    %c0_70 = arith.constant 0 : index
    %64 = vector.load %arg14[%c0_68, %c0_69, %c0_70] : memref<32x32x16xf32, #tpu.memory_space<vmem>>, vector<32x32x16xf32>
    tpu.vector_store %arg14[%c0_68, %c0_69, %c0_70], %63 {strides = array<i32>} : memref<32x32x16xf32, #tpu.memory_space<vmem>>, vector<32x32x16xf32>,
    %c0_71 = arith.constant 0 : index
    %c0_72 = arith.constant 0 : index
    %c0_73 = arith.constant 0 : index
    %65 = tpu.strided_load %arg14[%c0_71, %c0_72, %c0_73] {strides = array<i32: 1, 2, 1>} : memref<32x32x16xf32, #tpu.memory_space<vmem>>, vector<32x16x16xf32>
    %c0_74 = arith.constant 0 : index
    %c1_75 = arith.constant 1 : index
    %c0_76 = arith.constant 0 : index
    %66 = tpu.strided_load %arg14[%c0_74, %c1_75, %c0_76] {strides = array<i32: 1, 2, 1>} : memref<32x32x16xf32, #tpu.memory_space<vmem>>, vector<32x16x16xf32>
    %67 = arith.maximumf %65, %66 : vector<32x16x16xf32>
    %68 = vector.shape_cast %67 : vector<32x16x16xf32> to vector<16x2x16x16xf32>
    %69 = vector.extract_strided_slice %68 {offsets = [0, 0, 0, 0], sizes = [16, 1, 16, 16], strides = [1, 1, 1, 1]} : vector<16x2x16x16xf32> to vector<16x1x16x16xf32>
    %70 = vector.shape_cast %69 : vector<16x1x16x16xf32> to vector<16x16x16xf32>
    %71 = vector.extract_strided_slice %68 {offsets = [0, 1, 0, 0], sizes = [16, 1, 16, 16], strides = [1, 1, 1, 1]} : vector<16x2x16x16xf32> to vector<16x1x16x16xf32>
    %72 = vector.shape_cast %71 : vector<16x1x16x16xf32> to vector<16x16x16xf32>
    %73 = arith.maximumf %70, %72 : vector<16x16x16xf32>
    %cst_77 = arith.constant 0.000000e+00 : f32
    %74 = vector.broadcast %cst_77 : f32 to vector<18x18x16xf32>
    %c0_78 = arith.constant 0 : index
    %c0_79 = arith.constant 0 : index
    %c0_80 = arith.constant 0 : index
    %75 = vector.load %arg15[%c0_78, %c0_79, %c0_80] : memref<18x18x16xf32, #tpu.memory_space<vmem>>, vector<18x18x16xf32>
    tpu.vector_store %arg15[%c0_78, %c0_79, %c0_80], %74 {strides = array<i32>} : memref<18x18x16xf32, #tpu.memory_space<vmem>>, vector<18x18x16xf32>,
    %c1_81 = arith.constant 1 : index
    %c1_82 = arith.constant 1 : index
    %c0_83 = arith.constant 0 : index
    %76 = vector.load %arg15[%c1_81, %c1_82, %c0_83] : memref<18x18x16xf32, #tpu.memory_space<vmem>>, vector<16x16x16xf32>
    tpu.vector_store %arg15[%c1_81, %c1_82, %c0_83], %73 {strides = array<i32>} : memref<18x18x16xf32, #tpu.memory_space<vmem>>, vector<16x16x16xf32>,
    %c0_84 = arith.constant 0 : index
    %c0_85 = arith.constant 0 : index
    %c0_86 = arith.constant 0 : index
    %77 = vector.load %arg15[%c0_84, %c0_85, %c0_86] : memref<18x18x16xf32, #tpu.memory_space<vmem>>, vector<16x16x16xf32>
    %78 = vector.shape_cast %77 : vector<16x16x16xf32> to vector<256x16xf32>
    %c0_87 = arith.constant 0 : index
    %c0_88 = arith.constant 0 : index
    %c0_89 = arith.constant 0 : index
    %79 = vector.load %arg4[%c0_87, %c0_88, %c0_89] : memref<9x16x32xf32, #tpu.memory_space<vmem>>, vector<1x16x32xf32>
    %80 = vector.shape_cast %79 : vector<1x16x32xf32> to vector<16x32xf32>
    %cst_90 = arith.constant dense<0.000000e+00> : vector<256x32xf32>
    %81 = tpu.matmul %78, %80, %cst_90 {dimension_numbers = #tpu.dot_dimension_numbers<[1], [0], [0], [1], [0, 0, 1, 1], [], []>} : vector<256x16xf32>, vector<16x32xf32>, vector<256x32xf32> -> vector<256x32xf32>
    %c0_91 = arith.constant 0 : index
    %c1_92 = arith.constant 1 : index
    %c0_93 = arith.constant 0 : index
    %82 = vector.load %arg15[%c0_91, %c1_92, %c0_93] : memref<18x18x16xf32, #tpu.memory_space<vmem>>, vector<16x16x16xf32>
    %83 = vector.shape_cast %82 : vector<16x16x16xf32> to vector<256x16xf32>
    %c1_94 = arith.constant 1 : index
    %c0_95 = arith.constant 0 : index
    %c0_96 = arith.constant 0 : index
    %84 = vector.load %arg4[%c1_94, %c0_95, %c0_96] : memref<9x16x32xf32, #tpu.memory_space<vmem>>, vector<1x16x32xf32>
    %85 = vector.shape_cast %84 : vector<1x16x32xf32> to vector<16x32xf32>
    %cst_97 = arith.constant dense<0.000000e+00> : vector<256x32xf32>
    %86 = tpu.matmul %83, %85, %cst_97 {dimension_numbers = #tpu.dot_dimension_numbers<[1], [0], [0], [1], [0, 0, 1, 1], [], []>} : vector<256x16xf32>, vector<16x32xf32>, vector<256x32xf32> -> vector<256x32xf32>
    %87 = arith.addf %81, %86 : vector<256x32xf32>
    %c0_98 = arith.constant 0 : index
    %c2_99 = arith.constant 2 : index
    %c0_100 = arith.constant 0 : index
    %88 = vector.load %arg15[%c0_98, %c2_99, %c0_100] : memref<18x18x16xf32, #tpu.memory_space<vmem>>, vector<16x16x16xf32>
    %89 = vector.shape_cast %88 : vector<16x16x16xf32> to vector<256x16xf32>
    %c2_101 = arith.constant 2 : index
    %c0_102 = arith.constant 0 : index
    %c0_103 = arith.constant 0 : index
    %90 = vector.load %arg4[%c2_101, %c0_102, %c0_103] : memref<9x16x32xf32, #tpu.memory_space<vmem>>, vector<1x16x32xf32>
    %91 = vector.shape_cast %90 : vector<1x16x32xf32> to vector<16x32xf32>
    %cst_104 = arith.constant dense<0.000000e+00> : vector<256x32xf32>
    %92 = tpu.matmul %89, %91, %cst_104 {dimension_numbers = #tpu.dot_dimension_numbers<[1], [0], [0], [1], [0, 0, 1, 1], [], []>} : vector<256x16xf32>, vector<16x32xf32>, vector<256x32xf32> -> vector<256x32xf32>
    %93 = arith.addf %87, %92 : vector<256x32xf32>
    %c1_105 = arith.constant 1 : index
    %c0_106 = arith.constant 0 : index
    %c0_107 = arith.constant 0 : index
    %94 = vector.load %arg15[%c1_105, %c0_106, %c0_107] : memref<18x18x16xf32, #tpu.memory_space<vmem>>, vector<16x16x16xf32>
    %95 = vector.shape_cast %94 : vector<16x16x16xf32> to vector<256x16xf32>
    %c3_108 = arith.constant 3 : index
    %c0_109 = arith.constant 0 : index
    %c0_110 = arith.constant 0 : index
    %96 = vector.load %arg4[%c3_108, %c0_109, %c0_110] : memref<9x16x32xf32, #tpu.memory_space<vmem>>, vector<1x16x32xf32>
    %97 = vector.shape_cast %96 : vector<1x16x32xf32> to vector<16x32xf32>
    %cst_111 = arith.constant dense<0.000000e+00> : vector<256x32xf32>
    %98 = tpu.matmul %95, %97, %cst_111 {dimension_numbers = #tpu.dot_dimension_numbers<[1], [0], [0], [1], [0, 0, 1, 1], [], []>} : vector<256x16xf32>, vector<16x32xf32>, vector<256x32xf32> -> vector<256x32xf32>
    %99 = arith.addf %93, %98 : vector<256x32xf32>
    %c1_112 = arith.constant 1 : index
    %c1_113 = arith.constant 1 : index
    %c0_114 = arith.constant 0 : index
    %100 = vector.load %arg15[%c1_112, %c1_113, %c0_114] : memref<18x18x16xf32, #tpu.memory_space<vmem>>, vector<16x16x16xf32>
    %101 = vector.shape_cast %100 : vector<16x16x16xf32> to vector<256x16xf32>
    %c4_115 = arith.constant 4 : index
    %c0_116 = arith.constant 0 : index
    %c0_117 = arith.constant 0 : index
    %102 = vector.load %arg4[%c4_115, %c0_116, %c0_117] : memref<9x16x32xf32, #tpu.memory_space<vmem>>, vector<1x16x32xf32>
    %103 = vector.shape_cast %102 : vector<1x16x32xf32> to vector<16x32xf32>
    %cst_118 = arith.constant dense<0.000000e+00> : vector<256x32xf32>
    %104 = tpu.matmul %101, %103, %cst_118 {dimension_numbers = #tpu.dot_dimension_numbers<[1], [0], [0], [1], [0, 0, 1, 1], [], []>} : vector<256x16xf32>, vector<16x32xf32>, vector<256x32xf32> -> vector<256x32xf32>
    %105 = arith.addf %99, %104 : vector<256x32xf32>
    %c1_119 = arith.constant 1 : index
    %c2_120 = arith.constant 2 : index
    %c0_121 = arith.constant 0 : index
    %106 = vector.load %arg15[%c1_119, %c2_120, %c0_121] : memref<18x18x16xf32, #tpu.memory_space<vmem>>, vector<16x16x16xf32>
    %107 = vector.shape_cast %106 : vector<16x16x16xf32> to vector<256x16xf32>
    %c5_122 = arith.constant 5 : index
    %c0_123 = arith.constant 0 : index
    %c0_124 = arith.constant 0 : index
    %108 = vector.load %arg4[%c5_122, %c0_123, %c0_124] : memref<9x16x32xf32, #tpu.memory_space<vmem>>, vector<1x16x32xf32>
    %109 = vector.shape_cast %108 : vector<1x16x32xf32> to vector<16x32xf32>
    %cst_125 = arith.constant dense<0.000000e+00> : vector<256x32xf32>
    %110 = tpu.matmul %107, %109, %cst_125 {dimension_numbers = #tpu.dot_dimension_numbers<[1], [0], [0], [1], [0, 0, 1, 1], [], []>} : vector<256x16xf32>, vector<16x32xf32>, vector<256x32xf32> -> vector<256x32xf32>
    %111 = arith.addf %105, %110 : vector<256x32xf32>
    %c2_126 = arith.constant 2 : index
    %c0_127 = arith.constant 0 : index
    %c0_128 = arith.constant 0 : index
    %112 = vector.load %arg15[%c2_126, %c0_127, %c0_128] : memref<18x18x16xf32, #tpu.memory_space<vmem>>, vector<16x16x16xf32>
    %113 = vector.shape_cast %112 : vector<16x16x16xf32> to vector<256x16xf32>
    %c6_129 = arith.constant 6 : index
    %c0_130 = arith.constant 0 : index
    %c0_131 = arith.constant 0 : index
    %114 = vector.load %arg4[%c6_129, %c0_130, %c0_131] : memref<9x16x32xf32, #tpu.memory_space<vmem>>, vector<1x16x32xf32>
    %115 = vector.shape_cast %114 : vector<1x16x32xf32> to vector<16x32xf32>
    %cst_132 = arith.constant dense<0.000000e+00> : vector<256x32xf32>
    %116 = tpu.matmul %113, %115, %cst_132 {dimension_numbers = #tpu.dot_dimension_numbers<[1], [0], [0], [1], [0, 0, 1, 1], [], []>} : vector<256x16xf32>, vector<16x32xf32>, vector<256x32xf32> -> vector<256x32xf32>
    %117 = arith.addf %111, %116 : vector<256x32xf32>
    %c2_133 = arith.constant 2 : index
    %c1_134 = arith.constant 1 : index
    %c0_135 = arith.constant 0 : index
    %118 = vector.load %arg15[%c2_133, %c1_134, %c0_135] : memref<18x18x16xf32, #tpu.memory_space<vmem>>, vector<16x16x16xf32>
    %119 = vector.shape_cast %118 : vector<16x16x16xf32> to vector<256x16xf32>
    %c7_136 = arith.constant 7 : index
    %c0_137 = arith.constant 0 : index
    %c0_138 = arith.constant 0 : index
    %120 = vector.load %arg4[%c7_136, %c0_137, %c0_138] : memref<9x16x32xf32, #tpu.memory_space<vmem>>, vector<1x16x32xf32>
    %121 = vector.shape_cast %120 : vector<1x16x32xf32> to vector<16x32xf32>
    %cst_139 = arith.constant dense<0.000000e+00> : vector<256x32xf32>
    %122 = tpu.matmul %119, %121, %cst_139 {dimension_numbers = #tpu.dot_dimension_numbers<[1], [0], [0], [1], [0, 0, 1, 1], [], []>} : vector<256x16xf32>, vector<16x32xf32>, vector<256x32xf32> -> vector<256x32xf32>
    %123 = arith.addf %117, %122 : vector<256x32xf32>
    %c2_140 = arith.constant 2 : index
    %c2_141 = arith.constant 2 : index
    %c0_142 = arith.constant 0 : index
    %124 = vector.load %arg15[%c2_140, %c2_141, %c0_142] : memref<18x18x16xf32, #tpu.memory_space<vmem>>, vector<16x16x16xf32>
    %125 = vector.shape_cast %124 : vector<16x16x16xf32> to vector<256x16xf32>
    %c8_143 = arith.constant 8 : index
    %c0_144 = arith.constant 0 : index
    %c0_145 = arith.constant 0 : index
    %126 = vector.load %arg4[%c8_143, %c0_144, %c0_145] : memref<9x16x32xf32, #tpu.memory_space<vmem>>, vector<1x16x32xf32>
    %127 = vector.shape_cast %126 : vector<1x16x32xf32> to vector<16x32xf32>
    %cst_146 = arith.constant dense<0.000000e+00> : vector<256x32xf32>
    %128 = tpu.matmul %125, %127, %cst_146 {dimension_numbers = #tpu.dot_dimension_numbers<[1], [0], [0], [1], [0, 0, 1, 1], [], []>} : vector<256x16xf32>, vector<16x32xf32>, vector<256x32xf32> -> vector<256x32xf32>
    %129 = arith.addf %123, %128 : vector<256x32xf32>
    %130 = vector.shape_cast %129 : vector<256x32xf32> to vector<16x16x32xf32>
    %c0_147 = arith.constant 0 : index
    %c0_148 = arith.constant 0 : index
    %c0_149 = arith.constant 0 : index
    %131 = vector.load %arg5[%c0_147, %c0_148, %c0_149] : memref<1x1x32xf32, #tpu.memory_space<vmem>>, vector<1x1x32xf32>
    %132 = vector.broadcast %131 : vector<1x1x32xf32> to vector<16x16x32xf32>
    %133 = arith.addf %130, %132 : vector<16x16x32xf32>
    %cst_150 = arith.constant 0.000000e+00 : f32
    %134 = vector.broadcast %cst_150 : f32 to vector<16x16x32xf32>
    %135 = arith.maximumf %133, %134 : vector<16x16x32xf32>
    %c0_151 = arith.constant 0 : index
    %c0_152 = arith.constant 0 : index
    %c0_153 = arith.constant 0 : index
    %136 = vector.load %arg16[%c0_151, %c0_152, %c0_153] : memref<16x16x32xf32, #tpu.memory_space<vmem>>, vector<16x16x32xf32>
    tpu.vector_store %arg16[%c0_151, %c0_152, %c0_153], %135 {strides = array<i32>} : memref<16x16x32xf32, #tpu.memory_space<vmem>>, vector<16x16x32xf32>,
    %c0_154 = arith.constant 0 : index
    %c0_155 = arith.constant 0 : index
    %c0_156 = arith.constant 0 : index
    %137 = tpu.strided_load %arg16[%c0_154, %c0_155, %c0_156] {strides = array<i32: 1, 2, 1>} : memref<16x16x32xf32, #tpu.memory_space<vmem>>, vector<16x8x32xf32>
    %c0_157 = arith.constant 0 : index
    %c1_158 = arith.constant 1 : index
    %c0_159 = arith.constant 0 : index
    %138 = tpu.strided_load %arg16[%c0_157, %c1_158, %c0_159] {strides = array<i32: 1, 2, 1>} : memref<16x16x32xf32, #tpu.memory_space<vmem>>, vector<16x8x32xf32>
    %139 = arith.maximumf %137, %138 : vector<16x8x32xf32>
    %140 = vector.shape_cast %139 : vector<16x8x32xf32> to vector<8x2x8x32xf32>
    %141 = vector.extract_strided_slice %140 {offsets = [0, 0, 0, 0], sizes = [8, 1, 8, 32], strides = [1, 1, 1, 1]} : vector<8x2x8x32xf32> to vector<8x1x8x32xf32>
    %142 = vector.shape_cast %141 : vector<8x1x8x32xf32> to vector<8x8x32xf32>
    %143 = vector.extract_strided_slice %140 {offsets = [0, 1, 0, 0], sizes = [8, 1, 8, 32], strides = [1, 1, 1, 1]} : vector<8x2x8x32xf32> to vector<8x1x8x32xf32>
    %144 = vector.shape_cast %143 : vector<8x1x8x32xf32> to vector<8x8x32xf32>
    %145 = arith.maximumf %142, %144 : vector<8x8x32xf32>
    %cst_160 = arith.constant 0.000000e+00 : f32
    %146 = vector.broadcast %cst_160 : f32 to vector<10x10x32xf32>
    %c0_161 = arith.constant 0 : index
    %c0_162 = arith.constant 0 : index
    %c0_163 = arith.constant 0 : index
    %147 = vector.load %arg17[%c0_161, %c0_162, %c0_163] : memref<10x10x32xf32, #tpu.memory_space<vmem>>, vector<10x10x32xf32>
    tpu.vector_store %arg17[%c0_161, %c0_162, %c0_163], %146 {strides = array<i32>} : memref<10x10x32xf32, #tpu.memory_space<vmem>>, vector<10x10x32xf32>,
    %c1_164 = arith.constant 1 : index
    %c1_165 = arith.constant 1 : index
    %c0_166 = arith.constant 0 : index
    %148 = vector.load %arg17[%c1_164, %c1_165, %c0_166] : memref<10x10x32xf32, #tpu.memory_space<vmem>>, vector<8x8x32xf32>
    tpu.vector_store %arg17[%c1_164, %c1_165, %c0_166], %145 {strides = array<i32>} : memref<10x10x32xf32, #tpu.memory_space<vmem>>, vector<8x8x32xf32>,
    %c0_167 = arith.constant 0 : index
    %c0_168 = arith.constant 0 : index
    %c0_169 = arith.constant 0 : index
    %149 = vector.load %arg17[%c0_167, %c0_168, %c0_169] : memref<10x10x32xf32, #tpu.memory_space<vmem>>, vector<8x8x32xf32>
    %150 = vector.shape_cast %149 : vector<8x8x32xf32> to vector<64x32xf32>
    %c0_170 = arith.constant 0 : index
    %c0_171 = arith.constant 0 : index
    %c0_172 = arith.constant 0 : index
    %151 = vector.load %arg6[%c0_170, %c0_171, %c0_172] : memref<9x32x64xf32, #tpu.memory_space<vmem>>, vector<1x32x64xf32>
    %152 = vector.shape_cast %151 : vector<1x32x64xf32> to vector<32x64xf32>
    %cst_173 = arith.constant dense<0.000000e+00> : vector<64x64xf32>
    %153 = tpu.matmul %150, %152, %cst_173 {dimension_numbers = #tpu.dot_dimension_numbers<[1], [0], [0], [1], [0, 0, 1, 1], [], []>} : vector<64x32xf32>, vector<32x64xf32>, vector<64x64xf32> -> vector<64x64xf32>
    %c0_174 = arith.constant 0 : index
    %c1_175 = arith.constant 1 : index
    %c0_176 = arith.constant 0 : index
    %154 = vector.load %arg17[%c0_174, %c1_175, %c0_176] : memref<10x10x32xf32, #tpu.memory_space<vmem>>, vector<8x8x32xf32>
    %155 = vector.shape_cast %154 : vector<8x8x32xf32> to vector<64x32xf32>
    %c1_177 = arith.constant 1 : index
    %c0_178 = arith.constant 0 : index
    %c0_179 = arith.constant 0 : index
    %156 = vector.load %arg6[%c1_177, %c0_178, %c0_179] : memref<9x32x64xf32, #tpu.memory_space<vmem>>, vector<1x32x64xf32>
    %157 = vector.shape_cast %156 : vector<1x32x64xf32> to vector<32x64xf32>
    %cst_180 = arith.constant dense<0.000000e+00> : vector<64x64xf32>
    %158 = tpu.matmul %155, %157, %cst_180 {dimension_numbers = #tpu.dot_dimension_numbers<[1], [0], [0], [1], [0, 0, 1, 1], [], []>} : vector<64x32xf32>, vector<32x64xf32>, vector<64x64xf32> -> vector<64x64xf32>
    %159 = arith.addf %153, %158 : vector<64x64xf32>
    %c0_181 = arith.constant 0 : index
    %c2_182 = arith.constant 2 : index
    %c0_183 = arith.constant 0 : index
    %160 = vector.load %arg17[%c0_181, %c2_182, %c0_183] : memref<10x10x32xf32, #tpu.memory_space<vmem>>, vector<8x8x32xf32>
    %161 = vector.shape_cast %160 : vector<8x8x32xf32> to vector<64x32xf32>
    %c2_184 = arith.constant 2 : index
    %c0_185 = arith.constant 0 : index
    %c0_186 = arith.constant 0 : index
    %162 = vector.load %arg6[%c2_184, %c0_185, %c0_186] : memref<9x32x64xf32, #tpu.memory_space<vmem>>, vector<1x32x64xf32>
    %163 = vector.shape_cast %162 : vector<1x32x64xf32> to vector<32x64xf32>
    %cst_187 = arith.constant dense<0.000000e+00> : vector<64x64xf32>
    %164 = tpu.matmul %161, %163, %cst_187 {dimension_numbers = #tpu.dot_dimension_numbers<[1], [0], [0], [1], [0, 0, 1, 1], [], []>} : vector<64x32xf32>, vector<32x64xf32>, vector<64x64xf32> -> vector<64x64xf32>
    %165 = arith.addf %159, %164 : vector<64x64xf32>
    %c1_188 = arith.constant 1 : index
    %c0_189 = arith.constant 0 : index
    %c0_190 = arith.constant 0 : index
    %166 = vector.load %arg17[%c1_188, %c0_189, %c0_190] : memref<10x10x32xf32, #tpu.memory_space<vmem>>, vector<8x8x32xf32>
    %167 = vector.shape_cast %166 : vector<8x8x32xf32> to vector<64x32xf32>
    %c3_191 = arith.constant 3 : index
    %c0_192 = arith.constant 0 : index
    %c0_193 = arith.constant 0 : index
    %168 = vector.load %arg6[%c3_191, %c0_192, %c0_193] : memref<9x32x64xf32, #tpu.memory_space<vmem>>, vector<1x32x64xf32>
    %169 = vector.shape_cast %168 : vector<1x32x64xf32> to vector<32x64xf32>
    %cst_194 = arith.constant dense<0.000000e+00> : vector<64x64xf32>
    %170 = tpu.matmul %167, %169, %cst_194 {dimension_numbers = #tpu.dot_dimension_numbers<[1], [0], [0], [1], [0, 0, 1, 1], [], []>} : vector<64x32xf32>, vector<32x64xf32>, vector<64x64xf32> -> vector<64x64xf32>
    %171 = arith.addf %165, %170 : vector<64x64xf32>
    %c1_195 = arith.constant 1 : index
    %c1_196 = arith.constant 1 : index
    %c0_197 = arith.constant 0 : index
    %172 = vector.load %arg17[%c1_195, %c1_196, %c0_197] : memref<10x10x32xf32, #tpu.memory_space<vmem>>, vector<8x8x32xf32>
    %173 = vector.shape_cast %172 : vector<8x8x32xf32> to vector<64x32xf32>
    %c4_198 = arith.constant 4 : index
    %c0_199 = arith.constant 0 : index
    %c0_200 = arith.constant 0 : index
    %174 = vector.load %arg6[%c4_198, %c0_199, %c0_200] : memref<9x32x64xf32, #tpu.memory_space<vmem>>, vector<1x32x64xf32>
    %175 = vector.shape_cast %174 : vector<1x32x64xf32> to vector<32x64xf32>
    %cst_201 = arith.constant dense<0.000000e+00> : vector<64x64xf32>
    %176 = tpu.matmul %173, %175, %cst_201 {dimension_numbers = #tpu.dot_dimension_numbers<[1], [0], [0], [1], [0, 0, 1, 1], [], []>} : vector<64x32xf32>, vector<32x64xf32>, vector<64x64xf32> -> vector<64x64xf32>
    %177 = arith.addf %171, %176 : vector<64x64xf32>
    %c1_202 = arith.constant 1 : index
    %c2_203 = arith.constant 2 : index
    %c0_204 = arith.constant 0 : index
    %178 = vector.load %arg17[%c1_202, %c2_203, %c0_204] : memref<10x10x32xf32, #tpu.memory_space<vmem>>, vector<8x8x32xf32>
    %179 = vector.shape_cast %178 : vector<8x8x32xf32> to vector<64x32xf32>
    %c5_205 = arith.constant 5 : index
    %c0_206 = arith.constant 0 : index
    %c0_207 = arith.constant 0 : index
    %180 = vector.load %arg6[%c5_205, %c0_206, %c0_207] : memref<9x32x64xf32, #tpu.memory_space<vmem>>, vector<1x32x64xf32>
    %181 = vector.shape_cast %180 : vector<1x32x64xf32> to vector<32x64xf32>
    %cst_208 = arith.constant dense<0.000000e+00> : vector<64x64xf32>
    %182 = tpu.matmul %179, %181, %cst_208 {dimension_numbers = #tpu.dot_dimension_numbers<[1], [0], [0], [1], [0, 0, 1, 1], [], []>} : vector<64x32xf32>, vector<32x64xf32>, vector<64x64xf32> -> vector<64x64xf32>
    %183 = arith.addf %177, %182 : vector<64x64xf32>
    %c2_209 = arith.constant 2 : index
    %c0_210 = arith.constant 0 : index
    %c0_211 = arith.constant 0 : index
    %184 = vector.load %arg17[%c2_209, %c0_210, %c0_211] : memref<10x10x32xf32, #tpu.memory_space<vmem>>, vector<8x8x32xf32>
    %185 = vector.shape_cast %184 : vector<8x8x32xf32> to vector<64x32xf32>
    %c6_212 = arith.constant 6 : index
    %c0_213 = arith.constant 0 : index
    %c0_214 = arith.constant 0 : index
    %186 = vector.load %arg6[%c6_212, %c0_213, %c0_214] : memref<9x32x64xf32, #tpu.memory_space<vmem>>, vector<1x32x64xf32>
    %187 = vector.shape_cast %186 : vector<1x32x64xf32> to vector<32x64xf32>
    %cst_215 = arith.constant dense<0.000000e+00> : vector<64x64xf32>
    %188 = tpu.matmul %185, %187, %cst_215 {dimension_numbers = #tpu.dot_dimension_numbers<[1], [0], [0], [1], [0, 0, 1, 1], [], []>} : vector<64x32xf32>, vector<32x64xf32>, vector<64x64xf32> -> vector<64x64xf32>
    %189 = arith.addf %183, %188 : vector<64x64xf32>
    %c2_216 = arith.constant 2 : index
    %c1_217 = arith.constant 1 : index
    %c0_218 = arith.constant 0 : index
    %190 = vector.load %arg17[%c2_216, %c1_217, %c0_218] : memref<10x10x32xf32, #tpu.memory_space<vmem>>, vector<8x8x32xf32>
    %191 = vector.shape_cast %190 : vector<8x8x32xf32> to vector<64x32xf32>
    %c7_219 = arith.constant 7 : index
    %c0_220 = arith.constant 0 : index
    %c0_221 = arith.constant 0 : index
    %192 = vector.load %arg6[%c7_219, %c0_220, %c0_221] : memref<9x32x64xf32, #tpu.memory_space<vmem>>, vector<1x32x64xf32>
    %193 = vector.shape_cast %192 : vector<1x32x64xf32> to vector<32x64xf32>
    %cst_222 = arith.constant dense<0.000000e+00> : vector<64x64xf32>
    %194 = tpu.matmul %191, %193, %cst_222 {dimension_numbers = #tpu.dot_dimension_numbers<[1], [0], [0], [1], [0, 0, 1, 1], [], []>} : vector<64x32xf32>, vector<32x64xf32>, vector<64x64xf32> -> vector<64x64xf32>
    %195 = arith.addf %189, %194 : vector<64x64xf32>
    %c2_223 = arith.constant 2 : index
    %c2_224 = arith.constant 2 : index
    %c0_225 = arith.constant 0 : index
    %196 = vector.load %arg17[%c2_223, %c2_224, %c0_225] : memref<10x10x32xf32, #tpu.memory_space<vmem>>, vector<8x8x32xf32>
    %197 = vector.shape_cast %196 : vector<8x8x32xf32> to vector<64x32xf32>
    %c8_226 = arith.constant 8 : index
    %c0_227 = arith.constant 0 : index
    %c0_228 = arith.constant 0 : index
    %198 = vector.load %arg6[%c8_226, %c0_227, %c0_228] : memref<9x32x64xf32, #tpu.memory_space<vmem>>, vector<1x32x64xf32>
    %199 = vector.shape_cast %198 : vector<1x32x64xf32> to vector<32x64xf32>
    %cst_229 = arith.constant dense<0.000000e+00> : vector<64x64xf32>
    %200 = tpu.matmul %197, %199, %cst_229 {dimension_numbers = #tpu.dot_dimension_numbers<[1], [0], [0], [1], [0, 0, 1, 1], [], []>} : vector<64x32xf32>, vector<32x64xf32>, vector<64x64xf32> -> vector<64x64xf32>
    %201 = arith.addf %195, %200 : vector<64x64xf32>
    %202 = vector.shape_cast %201 : vector<64x64xf32> to vector<8x8x64xf32>
    %c0_230 = arith.constant 0 : index
    %c0_231 = arith.constant 0 : index
    %c0_232 = arith.constant 0 : index
    %203 = vector.load %arg7[%c0_230, %c0_231, %c0_232] : memref<1x1x64xf32, #tpu.memory_space<vmem>>, vector<1x1x64xf32>
    %204 = vector.broadcast %203 : vector<1x1x64xf32> to vector<8x8x64xf32>
    %205 = arith.addf %202, %204 : vector<8x8x64xf32>
    %cst_233 = arith.constant 0.000000e+00 : f32
    %206 = vector.broadcast %cst_233 : f32 to vector<8x8x64xf32>
    %207 = arith.maximumf %205, %206 : vector<8x8x64xf32>
    %c0_234 = arith.constant 0 : index
    %c0_235 = arith.constant 0 : index
    %c0_236 = arith.constant 0 : index
    %208 = vector.load %arg18[%c0_234, %c0_235, %c0_236] : memref<8x8x64xf32, #tpu.memory_space<vmem>>, vector<8x8x64xf32>
    tpu.vector_store %arg18[%c0_234, %c0_235, %c0_236], %207 {strides = array<i32>} : memref<8x8x64xf32, #tpu.memory_space<vmem>>, vector<8x8x64xf32>,
    %c0_237 = arith.constant 0 : index
    %c0_238 = arith.constant 0 : index
    %c0_239 = arith.constant 0 : index
    %209 = tpu.strided_load %arg18[%c0_237, %c0_238, %c0_239] {strides = array<i32: 1, 2, 1>} : memref<8x8x64xf32, #tpu.memory_space<vmem>>, vector<8x4x64xf32>
    %c0_240 = arith.constant 0 : index
    %c1_241 = arith.constant 1 : index
    %c0_242 = arith.constant 0 : index
    %210 = tpu.strided_load %arg18[%c0_240, %c1_241, %c0_242] {strides = array<i32: 1, 2, 1>} : memref<8x8x64xf32, #tpu.memory_space<vmem>>, vector<8x4x64xf32>
    %211 = arith.maximumf %209, %210 : vector<8x4x64xf32>
    %212 = vector.shape_cast %211 : vector<8x4x64xf32> to vector<4x2x4x64xf32>
    %213 = vector.extract_strided_slice %212 {offsets = [0, 0, 0, 0], sizes = [4, 1, 4, 64], strides = [1, 1, 1, 1]} : vector<4x2x4x64xf32> to vector<4x1x4x64xf32>
    %214 = vector.shape_cast %213 : vector<4x1x4x64xf32> to vector<4x4x64xf32>
    %215 = vector.extract_strided_slice %212 {offsets = [0, 1, 0, 0], sizes = [4, 1, 4, 64], strides = [1, 1, 1, 1]} : vector<4x2x4x64xf32> to vector<4x1x4x64xf32>
    %216 = vector.shape_cast %215 : vector<4x1x4x64xf32> to vector<4x4x64xf32>
    %217 = arith.maximumf %214, %216 : vector<4x4x64xf32>
    %218 = vector.shape_cast %217 : vector<4x4x64xf32> to vector<16x64xf32>
    %c0_243 = arith.constant 0 : index
    %c0_244 = arith.constant 0 : index
    %219 = vector.load %arg9[%c0_243, %c0_244] : memref<1x128xf32, #tpu.memory_space<vmem>>, vector<1x128xf32>
    %220 = vector.extract_strided_slice %218 {offsets = [0, 0], sizes = [1, 64], strides = [1, 1]} : vector<16x64xf32> to vector<1x64xf32>
    %c0_245 = arith.constant 0 : index
    %c0_246 = arith.constant 0 : index
    %c0_247 = arith.constant 0 : index
    %221 = vector.load %arg8[%c0_245, %c0_246, %c0_247] : memref<16x64x128xf32, #tpu.memory_space<vmem>>, vector<1x64x128xf32>
    %222 = vector.shape_cast %221 : vector<1x64x128xf32> to vector<64x128xf32>
    %cst_248 = arith.constant dense<0.000000e+00> : vector<1x128xf32>
    %223 = tpu.matmul %220, %222, %cst_248 {dimension_numbers = #tpu.dot_dimension_numbers<[1], [0], [0], [1], [0, 0, 1, 1], [], []>} : vector<1x64xf32>, vector<64x128xf32>, vector<1x128xf32> -> vector<1x128xf32>
    %224 = arith.addf %219, %223 : vector<1x128xf32>
    %225 = vector.extract_strided_slice %218 {offsets = [1, 0], sizes = [1, 64], strides = [1, 1]} : vector<16x64xf32> to vector<1x64xf32>
    %c1_249 = arith.constant 1 : index
    %c0_250 = arith.constant 0 : index
    %c0_251 = arith.constant 0 : index
    %226 = vector.load %arg8[%c1_249, %c0_250, %c0_251] : memref<16x64x128xf32, #tpu.memory_space<vmem>>, vector<1x64x128xf32>
    %227 = vector.shape_cast %226 : vector<1x64x128xf32> to vector<64x128xf32>
    %cst_252 = arith.constant dense<0.000000e+00> : vector<1x128xf32>
    %228 = tpu.matmul %225, %227, %cst_252 {dimension_numbers = #tpu.dot_dimension_numbers<[1], [0], [0], [1], [0, 0, 1, 1], [], []>} : vector<1x64xf32>, vector<64x128xf32>, vector<1x128xf32> -> vector<1x128xf32>
    %229 = arith.addf %224, %228 : vector<1x128xf32>
    %230 = vector.extract_strided_slice %218 {offsets = [2, 0], sizes = [1, 64], strides = [1, 1]} : vector<16x64xf32> to vector<1x64xf32>
    %c2_253 = arith.constant 2 : index
    %c0_254 = arith.constant 0 : index
    %c0_255 = arith.constant 0 : index
    %231 = vector.load %arg8[%c2_253, %c0_254, %c0_255] : memref<16x64x128xf32, #tpu.memory_space<vmem>>, vector<1x64x128xf32>
    %232 = vector.shape_cast %231 : vector<1x64x128xf32> to vector<64x128xf32>
    %cst_256 = arith.constant dense<0.000000e+00> : vector<1x128xf32>
    %233 = tpu.matmul %230, %232, %cst_256 {dimension_numbers = #tpu.dot_dimension_numbers<[1], [0], [0], [1], [0, 0, 1, 1], [], []>} : vector<1x64xf32>, vector<64x128xf32>, vector<1x128xf32> -> vector<1x128xf32>
    %234 = arith.addf %229, %233 : vector<1x128xf32>
    %235 = vector.extract_strided_slice %218 {offsets = [3, 0], sizes = [1, 64], strides = [1, 1]} : vector<16x64xf32> to vector<1x64xf32>
    %c3_257 = arith.constant 3 : index
    %c0_258 = arith.constant 0 : index
    %c0_259 = arith.constant 0 : index
    %236 = vector.load %arg8[%c3_257, %c0_258, %c0_259] : memref<16x64x128xf32, #tpu.memory_space<vmem>>, vector<1x64x128xf32>
    %237 = vector.shape_cast %236 : vector<1x64x128xf32> to vector<64x128xf32>
    %cst_260 = arith.constant dense<0.000000e+00> : vector<1x128xf32>
    %238 = tpu.matmul %235, %237, %cst_260 {dimension_numbers = #tpu.dot_dimension_numbers<[1], [0], [0], [1], [0, 0, 1, 1], [], []>} : vector<1x64xf32>, vector<64x128xf32>, vector<1x128xf32> -> vector<1x128xf32>
    %239 = arith.addf %234, %238 : vector<1x128xf32>
    %240 = vector.extract_strided_slice %218 {offsets = [4, 0], sizes = [1, 64], strides = [1, 1]} : vector<16x64xf32> to vector<1x64xf32>
    %c4_261 = arith.constant 4 : index
    %c0_262 = arith.constant 0 : index
    %c0_263 = arith.constant 0 : index
    %241 = vector.load %arg8[%c4_261, %c0_262, %c0_263] : memref<16x64x128xf32, #tpu.memory_space<vmem>>, vector<1x64x128xf32>
    %242 = vector.shape_cast %241 : vector<1x64x128xf32> to vector<64x128xf32>
    %cst_264 = arith.constant dense<0.000000e+00> : vector<1x128xf32>
    %243 = tpu.matmul %240, %242, %cst_264 {dimension_numbers = #tpu.dot_dimension_numbers<[1], [0], [0], [1], [0, 0, 1, 1], [], []>} : vector<1x64xf32>, vector<64x128xf32>, vector<1x128xf32> -> vector<1x128xf32>
    %244 = arith.addf %239, %243 : vector<1x128xf32>
    %245 = vector.extract_strided_slice %218 {offsets = [5, 0], sizes = [1, 64], strides = [1, 1]} : vector<16x64xf32> to vector<1x64xf32>
    %c5_265 = arith.constant 5 : index
    %c0_266 = arith.constant 0 : index
    %c0_267 = arith.constant 0 : index
    %246 = vector.load %arg8[%c5_265, %c0_266, %c0_267] : memref<16x64x128xf32, #tpu.memory_space<vmem>>, vector<1x64x128xf32>
    %247 = vector.shape_cast %246 : vector<1x64x128xf32> to vector<64x128xf32>
    %cst_268 = arith.constant dense<0.000000e+00> : vector<1x128xf32>
    %248 = tpu.matmul %245, %247, %cst_268 {dimension_numbers = #tpu.dot_dimension_numbers<[1], [0], [0], [1], [0, 0, 1, 1], [], []>} : vector<1x64xf32>, vector<64x128xf32>, vector<1x128xf32> -> vector<1x128xf32>
    %249 = arith.addf %244, %248 : vector<1x128xf32>
    %250 = vector.extract_strided_slice %218 {offsets = [6, 0], sizes = [1, 64], strides = [1, 1]} : vector<16x64xf32> to vector<1x64xf32>
    %c6_269 = arith.constant 6 : index
    %c0_270 = arith.constant 0 : index
    %c0_271 = arith.constant 0 : index
    %251 = vector.load %arg8[%c6_269, %c0_270, %c0_271] : memref<16x64x128xf32, #tpu.memory_space<vmem>>, vector<1x64x128xf32>
    %252 = vector.shape_cast %251 : vector<1x64x128xf32> to vector<64x128xf32>
    %cst_272 = arith.constant dense<0.000000e+00> : vector<1x128xf32>
    %253 = tpu.matmul %250, %252, %cst_272 {dimension_numbers = #tpu.dot_dimension_numbers<[1], [0], [0], [1], [0, 0, 1, 1], [], []>} : vector<1x64xf32>, vector<64x128xf32>, vector<1x128xf32> -> vector<1x128xf32>
    %254 = arith.addf %249, %253 : vector<1x128xf32>
    %255 = vector.extract_strided_slice %218 {offsets = [7, 0], sizes = [1, 64], strides = [1, 1]} : vector<16x64xf32> to vector<1x64xf32>
    %c7_273 = arith.constant 7 : index
    %c0_274 = arith.constant 0 : index
    %c0_275 = arith.constant 0 : index
    %256 = vector.load %arg8[%c7_273, %c0_274, %c0_275] : memref<16x64x128xf32, #tpu.memory_space<vmem>>, vector<1x64x128xf32>
    %257 = vector.shape_cast %256 : vector<1x64x128xf32> to vector<64x128xf32>
    %cst_276 = arith.constant dense<0.000000e+00> : vector<1x128xf32>
    %258 = tpu.matmul %255, %257, %cst_276 {dimension_numbers = #tpu.dot_dimension_numbers<[1], [0], [0], [1], [0, 0, 1, 1], [], []>} : vector<1x64xf32>, vector<64x128xf32>, vector<1x128xf32> -> vector<1x128xf32>
    %259 = arith.addf %254, %258 : vector<1x128xf32>
    %260 = vector.extract_strided_slice %218 {offsets = [8, 0], sizes = [1, 64], strides = [1, 1]} : vector<16x64xf32> to vector<1x64xf32>
    %c8_277 = arith.constant 8 : index
    %c0_278 = arith.constant 0 : index
    %c0_279 = arith.constant 0 : index
    %261 = vector.load %arg8[%c8_277, %c0_278, %c0_279] : memref<16x64x128xf32, #tpu.memory_space<vmem>>, vector<1x64x128xf32>
    %262 = vector.shape_cast %261 : vector<1x64x128xf32> to vector<64x128xf32>
    %cst_280 = arith.constant dense<0.000000e+00> : vector<1x128xf32>
    %263 = tpu.matmul %260, %262, %cst_280 {dimension_numbers = #tpu.dot_dimension_numbers<[1], [0], [0], [1], [0, 0, 1, 1], [], []>} : vector<1x64xf32>, vector<64x128xf32>, vector<1x128xf32> -> vector<1x128xf32>
    %264 = arith.addf %259, %263 : vector<1x128xf32>
    %265 = vector.extract_strided_slice %218 {offsets = [9, 0], sizes = [1, 64], strides = [1, 1]} : vector<16x64xf32> to vector<1x64xf32>
    %c9 = arith.constant 9 : index
    %c0_281 = arith.constant 0 : index
    %c0_282 = arith.constant 0 : index
    %266 = vector.load %arg8[%c9, %c0_281, %c0_282] : memref<16x64x128xf32, #tpu.memory_space<vmem>>, vector<1x64x128xf32>
    %267 = vector.shape_cast %266 : vector<1x64x128xf32> to vector<64x128xf32>
    %cst_283 = arith.constant dense<0.000000e+00> : vector<1x128xf32>
    %268 = tpu.matmul %265, %267, %cst_283 {dimension_numbers = #tpu.dot_dimension_numbers<[1], [0], [0], [1], [0, 0, 1, 1], [], []>} : vector<1x64xf32>, vector<64x128xf32>, vector<1x128xf32> -> vector<1x128xf32>
    %269 = arith.addf %264, %268 : vector<1x128xf32>
    %270 = vector.extract_strided_slice %218 {offsets = [10, 0], sizes = [1, 64], strides = [1, 1]} : vector<16x64xf32> to vector<1x64xf32>
    %c10 = arith.constant 10 : index
    %c0_284 = arith.constant 0 : index
    %c0_285 = arith.constant 0 : index
    %271 = vector.load %arg8[%c10, %c0_284, %c0_285] : memref<16x64x128xf32, #tpu.memory_space<vmem>>, vector<1x64x128xf32>
    %272 = vector.shape_cast %271 : vector<1x64x128xf32> to vector<64x128xf32>
    %cst_286 = arith.constant dense<0.000000e+00> : vector<1x128xf32>
    %273 = tpu.matmul %270, %272, %cst_286 {dimension_numbers = #tpu.dot_dimension_numbers<[1], [0], [0], [1], [0, 0, 1, 1], [], []>} : vector<1x64xf32>, vector<64x128xf32>, vector<1x128xf32> -> vector<1x128xf32>
    %274 = arith.addf %269, %273 : vector<1x128xf32>
    %275 = vector.extract_strided_slice %218 {offsets = [11, 0], sizes = [1, 64], strides = [1, 1]} : vector<16x64xf32> to vector<1x64xf32>
    %c11 = arith.constant 11 : index
    %c0_287 = arith.constant 0 : index
    %c0_288 = arith.constant 0 : index
    %276 = vector.load %arg8[%c11, %c0_287, %c0_288] : memref<16x64x128xf32, #tpu.memory_space<vmem>>, vector<1x64x128xf32>
    %277 = vector.shape_cast %276 : vector<1x64x128xf32> to vector<64x128xf32>
    %cst_289 = arith.constant dense<0.000000e+00> : vector<1x128xf32>
    %278 = tpu.matmul %275, %277, %cst_289 {dimension_numbers = #tpu.dot_dimension_numbers<[1], [0], [0], [1], [0, 0, 1, 1], [], []>} : vector<1x64xf32>, vector<64x128xf32>, vector<1x128xf32> -> vector<1x128xf32>
    %279 = arith.addf %274, %278 : vector<1x128xf32>
    %280 = vector.extract_strided_slice %218 {offsets = [12, 0], sizes = [1, 64], strides = [1, 1]} : vector<16x64xf32> to vector<1x64xf32>
    %c12 = arith.constant 12 : index
    %c0_290 = arith.constant 0 : index
    %c0_291 = arith.constant 0 : index
    %281 = vector.load %arg8[%c12, %c0_290, %c0_291] : memref<16x64x128xf32, #tpu.memory_space<vmem>>, vector<1x64x128xf32>
    %282 = vector.shape_cast %281 : vector<1x64x128xf32> to vector<64x128xf32>
    %cst_292 = arith.constant dense<0.000000e+00> : vector<1x128xf32>
    %283 = tpu.matmul %280, %282, %cst_292 {dimension_numbers = #tpu.dot_dimension_numbers<[1], [0], [0], [1], [0, 0, 1, 1], [], []>} : vector<1x64xf32>, vector<64x128xf32>, vector<1x128xf32> -> vector<1x128xf32>
    %284 = arith.addf %279, %283 : vector<1x128xf32>
    %285 = vector.extract_strided_slice %218 {offsets = [13, 0], sizes = [1, 64], strides = [1, 1]} : vector<16x64xf32> to vector<1x64xf32>
    %c13 = arith.constant 13 : index
    %c0_293 = arith.constant 0 : index
    %c0_294 = arith.constant 0 : index
    %286 = vector.load %arg8[%c13, %c0_293, %c0_294] : memref<16x64x128xf32, #tpu.memory_space<vmem>>, vector<1x64x128xf32>
    %287 = vector.shape_cast %286 : vector<1x64x128xf32> to vector<64x128xf32>
    %cst_295 = arith.constant dense<0.000000e+00> : vector<1x128xf32>
    %288 = tpu.matmul %285, %287, %cst_295 {dimension_numbers = #tpu.dot_dimension_numbers<[1], [0], [0], [1], [0, 0, 1, 1], [], []>} : vector<1x64xf32>, vector<64x128xf32>, vector<1x128xf32> -> vector<1x128xf32>
    %289 = arith.addf %284, %288 : vector<1x128xf32>
    %290 = vector.extract_strided_slice %218 {offsets = [14, 0], sizes = [1, 64], strides = [1, 1]} : vector<16x64xf32> to vector<1x64xf32>
    %c14 = arith.constant 14 : index
    %c0_296 = arith.constant 0 : index
    %c0_297 = arith.constant 0 : index
    %291 = vector.load %arg8[%c14, %c0_296, %c0_297] : memref<16x64x128xf32, #tpu.memory_space<vmem>>, vector<1x64x128xf32>
    %292 = vector.shape_cast %291 : vector<1x64x128xf32> to vector<64x128xf32>
    %cst_298 = arith.constant dense<0.000000e+00> : vector<1x128xf32>
    %293 = tpu.matmul %290, %292, %cst_298 {dimension_numbers = #tpu.dot_dimension_numbers<[1], [0], [0], [1], [0, 0, 1, 1], [], []>} : vector<1x64xf32>, vector<64x128xf32>, vector<1x128xf32> -> vector<1x128xf32>
    %294 = arith.addf %289, %293 : vector<1x128xf32>
    %295 = vector.extract_strided_slice %218 {offsets = [15, 0], sizes = [1, 64], strides = [1, 1]} : vector<16x64xf32> to vector<1x64xf32>
    %c15 = arith.constant 15 : index
    %c0_299 = arith.constant 0 : index
    %c0_300 = arith.constant 0 : index
    %296 = vector.load %arg8[%c15, %c0_299, %c0_300] : memref<16x64x128xf32, #tpu.memory_space<vmem>>, vector<1x64x128xf32>
    %297 = vector.shape_cast %296 : vector<1x64x128xf32> to vector<64x128xf32>
    %cst_301 = arith.constant dense<0.000000e+00> : vector<1x128xf32>
    %298 = tpu.matmul %295, %297, %cst_301 {dimension_numbers = #tpu.dot_dimension_numbers<[1], [0], [0], [1], [0, 0, 1, 1], [], []>} : vector<1x64xf32>, vector<64x128xf32>, vector<1x128xf32> -> vector<1x128xf32>
    %299 = arith.addf %294, %298 : vector<1x128xf32>
    %cst_302 = arith.constant 0.000000e+00 : f32
    %300 = vector.broadcast %cst_302 : f32 to vector<1x128xf32>
    %301 = arith.maximumf %299, %300 : vector<1x128xf32>
    %c0_303 = arith.constant 0 : index
    %c0_304 = arith.constant 0 : index
    %302 = vector.load %arg10[%c0_303, %c0_304] : memref<128x2xf32, #tpu.memory_space<vmem>>, vector<128x2xf32>
    %cst_305 = arith.constant dense<0.000000e+00> : vector<1x2xf32>
    %303 = tpu.matmul %301, %302, %cst_305 {dimension_numbers = #tpu.dot_dimension_numbers<[1], [0], [0], [1], [0, 0, 1, 1], [], []>} : vector<1x128xf32>, vector<128x2xf32>, vector<1x2xf32> -> vector<1x2xf32>
    %c0_306 = arith.constant 0 : index
    %c0_307 = arith.constant 0 : index
    %304 = vector.load %arg11[%c0_306, %c0_307] : memref<1x2xf32, #tpu.memory_space<vmem>>, vector<1x2xf32>
    %305 = arith.addf %303, %304 : vector<1x2xf32>
    %c0_308 = arith.constant 0 : index
    %c0_309 = arith.constant 0 : index
    %c0_310 = arith.constant 0 : index
    %306 = vector.load %arg12[%c0_308, %c0_309, %c0_310] : memref<1x1x2xf32, #tpu.memory_space<vmem>>, vector<1x1x2xf32>
    %307 = vector.shape_cast %306 : vector<1x1x2xf32> to vector<1x2xf32>
    %308 = vector.shape_cast %305 : vector<1x2xf32> to vector<1x1x2xf32>
    tpu.vector_store %arg12[%c0_308, %c0_309, %c0_310], %308 {strides = array<i32>} : memref<1x1x2xf32, #tpu.memory_space<vmem>>, vector<1x1x2xf32>,
    return
  }
  func.func @transform_0(%arg0: i32) -> (i32, i32, i32, i32) {
    %c0_i32 = arith.constant 0 : i32
    %c0_i32_0 = arith.constant 0 : i32
    %c0_i32_1 = arith.constant 0 : i32
    %c0_i32_2 = arith.constant 0 : i32
    return %arg0, %c0_i32, %c0_i32_0, %c0_i32_1 : i32, i32, i32, i32
  }
  func.func @transform_1(%arg0: i32) -> (i32, i32, i32) {
    %c0_i32 = arith.constant 0 : i32
    %c0_i32_0 = arith.constant 0 : i32
    %c0_i32_1 = arith.constant 0 : i32
    %c0_i32_2 = arith.constant 0 : i32
    return %c0_i32, %c0_i32_0, %c0_i32_1 : i32, i32, i32
  }
  func.func @transform_2(%arg0: i32) -> (i32, i32, i32) {
    %c0_i32 = arith.constant 0 : i32
    %c0_i32_0 = arith.constant 0 : i32
    %c0_i32_1 = arith.constant 0 : i32
    %c0_i32_2 = arith.constant 0 : i32
    return %c0_i32, %c0_i32_0, %c0_i32_1 : i32, i32, i32
  }
  func.func @transform_3(%arg0: i32) -> (i32, i32, i32) {
    %c0_i32 = arith.constant 0 : i32
    %c0_i32_0 = arith.constant 0 : i32
    %c0_i32_1 = arith.constant 0 : i32
    %c0_i32_2 = arith.constant 0 : i32
    return %c0_i32, %c0_i32_0, %c0_i32_1 : i32, i32, i32
  }
  func.func @transform_4(%arg0: i32) -> (i32, i32, i32) {
    %c0_i32 = arith.constant 0 : i32
    %c0_i32_0 = arith.constant 0 : i32
    %c0_i32_1 = arith.constant 0 : i32
    %c0_i32_2 = arith.constant 0 : i32
    return %c0_i32, %c0_i32_0, %c0_i32_1 : i32, i32, i32
  }
  func.func @transform_5(%arg0: i32) -> (i32, i32, i32) {
    %c0_i32 = arith.constant 0 : i32
    %c0_i32_0 = arith.constant 0 : i32
    %c0_i32_1 = arith.constant 0 : i32
    %c0_i32_2 = arith.constant 0 : i32
    return %c0_i32, %c0_i32_0, %c0_i32_1 : i32, i32, i32
  }
  func.func @transform_6(%arg0: i32) -> (i32, i32, i32) {
    %c0_i32 = arith.constant 0 : i32
    %c0_i32_0 = arith.constant 0 : i32
    %c0_i32_1 = arith.constant 0 : i32
    %c0_i32_2 = arith.constant 0 : i32
    return %c0_i32, %c0_i32_0, %c0_i32_1 : i32, i32, i32
  }
  func.func @transform_7(%arg0: i32) -> (i32, i32, i32) {
    %c0_i32 = arith.constant 0 : i32
    %c0_i32_0 = arith.constant 0 : i32
    %c0_i32_1 = arith.constant 0 : i32
    %c0_i32_2 = arith.constant 0 : i32
    return %c0_i32, %c0_i32_0, %c0_i32_1 : i32, i32, i32
  }
  func.func @transform_8(%arg0: i32) -> (i32, i32) {
    %c0_i32 = arith.constant 0 : i32
    %c0_i32_0 = arith.constant 0 : i32
    %c0_i32_1 = arith.constant 0 : i32
    return %c0_i32, %c0_i32_0 : i32, i32
  }
  func.func @transform_9(%arg0: i32) -> (i32, i32) {
    %c0_i32 = arith.constant 0 : i32
    %c0_i32_0 = arith.constant 0 : i32
    %c0_i32_1 = arith.constant 0 : i32
    return %c0_i32, %c0_i32_0 : i32, i32
  }
  func.func @transform_10(%arg0: i32) -> (i32, i32) {
    %c0_i32 = arith.constant 0 : i32
    %c0_i32_0 = arith.constant 0 : i32
    %c0_i32_1 = arith.constant 0 : i32
    return %c0_i32, %c0_i32_0 : i32, i32
  }
  func.func @transform_11(%arg0: i32) -> (i32, i32, i32) {
    %c0_i32 = arith.constant 0 : i32
    %c0_i32_0 = arith.constant 0 : i32
    %c0_i32_1 = arith.constant 0 : i32
    return %arg0, %c0_i32, %c0_i32_0 : i32, i32, i32
  }
}

</mosaic_0001>

<bundles_post_ra>
// kernel: audio_cnn_forward.1
= control target key start
LH: loop header
LB: loop body
LE: loop exit
PB: predicated region body
PF: predicated region fallthrough
CT: control target
= control target key end

     0   :  { %s33564_s0 = inlined_call_operand.vmem [shape: f32[2,32,32,1], index: 0, kind: input, shape index: {}]   ;;  %s33565_s1 = inlined_call_operand.vmem [shape: f32[9,8,16], index: 1, kind: input, shape index: {}]   ;;  %s33566_s2 = inlined_call_operand.vmem [shape: f32[1,1,16], index: 2, kind: input, shape index: {}]   ;;  %s33567_s3 = inlined_call_operand.vmem [shape: f32[9,16,32], index: 3, kind: input, shape index: {}]   ;;  %s33568_s4 = inlined_call_operand.vmem [shape: f32[1,1,32], index: 4, kind: input, shape index: {}]   ;;  %s33569_s5 = inlined_call_operand.vmem [shape: f32[9,32,64], index: 5, kind: input, shape index: {}]   ;;  %s33570_s6 = inlined_call_operand.vmem [shape: f32[1,1,64], index: 6, kind: input, shape index: {}]   ;;  %s33571_s7 = inlined_call_operand.vmem [shape: f32[16,64,128], index: 7, kind: input, shape index: {}]   ;;  %s33572_s8 = inlined_call_operand.vmem [shape: f32[1,128], index: 8, kind: input, shape index: {}]   ;;  %s33573_s9 = inlined_call_operand.vmem [shape: f32[128,2], index: 9, kind: input, shape index: {}]   ;;  %s33574_s10 = inlined_call_operand.vmem [shape: f32[1,2], index: 10, kind: input, shape index: {}]   ;;  %s33575_s11 = inlined_call_operand.hbm [shape: f32[2,1,2], index: 11, kind: output, shape index: {}]  }
   0x1   :  { %33626 = sst [smem:[#allocation90_spill]] %s33564_s0 }
   0x2   :  { %16 = vsyncpa [#allocation9], 0 }
   0x3   :  { %18 = vsyncpa [#allocation9 + $0x1], 0  ;;  %s28115_s17 = smov 0   ;;  %s28117_s18 = smov 0  }
   0x4   :  { %s28119_s19 = smov 0   ;;  %s28121_s20 = smov 0  }
   0x5 LB: > { %s28136_s21 = sadd.s32 4294967295, %s28049_s20   ;;  %s20056_s22 = sadd.s32 4294967294, %s28049_s20   ;;  %s28049_s20 = sphi %s28121_s20, %s33873_s20   ;;  %s28045_s19 = sphi %s28119_s19, %s33872_s19   ;;  %s28041_s18 = sphi %s28117_s18, %s33871_s18   ;;  %s28037_s17 = sphi %s28115_s17, %s33870_s17  }
   0x6   : > { %s28140_s23 = sadd.s32 1, %s28049_s20   ;;  %s267_s24 = sadd.s32 1, %s28045_s19 }
   0x7   : > { %s264_s25 = ssub.s32 %s28049_s20, %s28140_s23  ;;  %p277_p0 = scmp.ne.s32.totalorder %s28045_s19, %s28041_s18 }
   0x8   : > { %p265_p1 = scmp.eq.s32.totalorder %s264_s25, 0  ;;  %p278_p2 = scmp.eq.s32.totalorder %s28136_s21, 1 }
   0x9   : > { %p283_p3 = scmp.ne.s32.totalorder %s28041_s18, %s28037_s17  ;;  %p284_p4 = scmp.eq.s32.totalorder %s20056_s22, 1 }
   0xa   : > { %s28151_s26 = scalar_select %p265_p1, %s28045_s19, %s267_s24  }
   0xb   : > { %p28153_p5 = por %p278_p2, %p277_p0  ;;  %p28157_p6 = por %p284_p4, %p283_p3 }
   0xc   : > { %p20059_p7 = scmp.ge.s32.totalorder %s28049_s20, 1  ;;  %p340_p8 = scmp.lt.s32.totalorder %s28049_s20, 3 }
   0xe   : > { %p341_p9 = pnand %p20059_p7, %p340_p8 }
  0x10   : > { %344 = sbr.rel (%p341_p9) target bundleno = 3753 (0xea9), region = 64 }
  0x17   : > { %v28166_v0 = vld [vmem:[%s33565_s1 + $0x10] sm:$0xff]  ;;  %vm384_vm0 = vcmask 64512   ;;  %v28171_v1 = vld [vmem:[%s33565_s1 + $0x18] sm:$0xff]  ;;  %vm389_vm1 = vcmask 58368   ;;  %p379_p10 = scmp.lt.s32.totalorder %s28136_s21, 1  ;;  %v33576_v2 = vmov 0.0  }
  0x18   : > { %23897 = vmatprep.subr.mxu0 %v28166_v0  ;;  %385 = vst.msk [vmem:[#allocation2] sm:$0xff] %vm384_vm0, %v33576_v2  ;;  %386 = vst.msk [vmem:[#allocation2 + $0x8] sm:$0xff] %vm384_vm0, %v33576_v2  ;;  %vm685_vm2 = vcmask 7168   ;;  %s33629_s0 = sld [smem:[#allocation90_spill]]  ;;  %v28537_v9 = vld [vmem:[%s33565_s1 + $0x20] sm:$0xff]  ;;  %vm12944_vm3 = vcmask 130048  }
  0x19   : > { %387 = vst.msk [vmem:[#allocation2 + $0x10] sm:$0xff] %vm384_vm0, %v33576_v2  ;;  %388 = vst.msk [vmem:[#allocation2 + $0x18] sm:$0xff] %vm384_vm0, %v33576_v2  ;;  %23898 = vmatpush3.msra.mxu0 %v28166_v0  ;;  %s380_s14 = scalar_select %p379_p10, %s28136_s21, 1  ;;  %vm13426_vm4 = vcmask 123904   ;;  %vm17011_vm5 = vcmask 261120   ;;  %vm17132_vm6 = vcmask 254976  }
  0x1a   : > { %391 = vst.msk [vmem:[#allocation2 + $0x28] sm:$0xff] %vm384_vm0, %v33576_v2  ;;  %392 = vst.msk [vmem:[#allocation2 + $0x30] sm:$0xff] %vm384_vm0, %v33576_v2  ;;  %24091 = vmatprep.subr.mxu0 %v28171_v1  ;;  %vm28053_vm7 = vmmov 0   ;;  %vm18518_vm8 = vcmask 523264   ;;  %s377_s30 = sand.u32 1, %s28041_s18   ;;  %vm19986_vm9 = vcmask 8192  }
  0x1b   : > { %393 = vst.msk [vmem:[#allocation2 + $0x38] sm:$0xff] %vm384_vm0, %v33576_v2  ;;  %394 = vst.msk [vmem:[#allocation2 + $0x40] sm:$0xff] %vm384_vm0, %v33576_v2  ;;  %s21772_s15 = sshll.u32 %s380_s14, 10  ;;  %s21769_s14 = sshll.u32 %s28136_s21, 4 }
  0x1c   : > { %396 = vst.msk [vmem:[#allocation2 + $0x50] sm:$0xff] %vm384_vm0, %v33576_v2  ;;  %397 = vst.msk [vmem:[#allocation2 + $0x58] sm:$0xff] %vm384_vm0, %v33576_v2  ;;  %s33522_s25 = scalar_lea.hbm %s33575_s11, %s21769_s14  ;;  %s19989_s29 = scalar_lea.sflag [#allocation9], %s377_s30 }
  0x1d   : > { %398 = vst.msk [vmem:[#allocation2 + $0x60] sm:$0xff] %vm384_vm0, %v33576_v2  ;;  %399 = vst.msk [vmem:[#allocation2 + $0x68] sm:$0xff] %vm384_vm0, %v33576_v2  ;;  %s28054_s21 = smov [#allocation8]  }
  0x1e   : > { %401 = vst.msk [vmem:[#allocation2 + $0x78] sm:$0xff] %vm384_vm0, %v33576_v2  ;;  %402 = vst.msk [vmem:[#allocation2 + $0x80] sm:$0xff] %vm384_vm0, %v33576_v2  ;;  %s28523_s24 = scalar_lea.vmem %s33629_s0, %s21772_s15  ;;  %s378_s15 = scalar_lea.vmem [#allocation8], %s377_s30 }
  0x1f   : > { %403 = vst.msk [vmem:[#allocation2 + $0x88] sm:$0xff] %vm384_vm0, %v33576_v2  ;;  %404 = vst.msk [vmem:[#allocation2 + $0x90] sm:$0xff] %vm384_vm0, %v33576_v2  ;;  %v556_v3 = vld [vmem:[%s28523_s24] sm:$0xff]  ;;  %v557_v4 = vld [vmem:[%s28523_s24 + $0x8] sm:$0xff]  ;;  %s20001_s16 = sshll.u32 %s378_s15, 4  ;;  %s27991_s13 = sshll.u32 %s28054_s21, 4  ;;  %s33524_s16 = int_to_ptr.vmem [resolvable:$true] %s20001_s16  ;;  %s27992_s13 = int_to_ptr.vmem [resolvable:$false] %s27991_s13 }
  0x20   : > { %406 = vst.msk [vmem:[#allocation2 + $0xa0] sm:$0xff] %vm384_vm0, %v33576_v2  ;;  %407 = vst.msk [vmem:[#allocation2 + $0xa8] sm:$0xff] %vm384_vm0, %v33576_v2  ;;  %v558_v5 = vld [vmem:[%s28523_s24 + $0x10] sm:$0xff]  ;;  %v559_v6 = vld [vmem:[%s28523_s24 + $0x18] sm:$0xff]  ;;  %s27987_s12 = scalar_lea.vmem %s33524_s16, 16  ;;  %s27993_s0 = scalar_lea.vmem %s27992_s13, 32 }
  0x21   : > { %408 = vst.msk [vmem:[#allocation2 + $0xb0] sm:$0xff] %vm384_vm0, %v33576_v2  ;;  %409 = vst.msk [vmem:[#allocation2 + $0xb8] sm:$0xff] %vm384_vm0, %v33576_v2  ;;  %v560_v7 = vld [vmem:[%s28523_s24 + $0x20] sm:$0xff]  ;;  %v561_v8 = vld [vmem:[%s28523_s24 + $0x28] sm:$0xff]  ;;  %p27988_p11 = scmp.ne.s32.totalorder %s33524_s16, %s27987_s12  ;;  %p27994_p0 = scmp.lt.s32.totalorder %s33524_s16, %s27992_s13 }
  0x22   : > { %411 = vst.msk [vmem:[#allocation2 + $0xc8] sm:$0xff] %vm384_vm0, %v33576_v2  ;;  %412 = vst.msk [vmem:[#allocation2 + $0xd0] sm:$0xff] %vm384_vm0, %v33576_v2  ;;  %v3251_v10 = vld [vmem:[#allocation2 + $0x2] sm:$0xff]  ;;  %v3252_v11 = vld [vmem:[#allocation2 + $0xa] sm:$0xff]  ;;  %p27995_p1 = scmp.lt.s32.totalorder %s27993_s0, %s27987_s12 }
  0x23   : > { %413 = vst.msk [vmem:[#allocation2 + $0xd8] sm:$0xff] %vm384_vm0, %v33576_v2  ;;  %414 = vst.msk [vmem:[#allocation2 + $0xe0] sm:$0xff] %vm384_vm0, %v33576_v2  ;;  %v3253_v12 = vld [vmem:[#allocation2 + $0x12] sm:$0xff]  ;;  %23899 = vmatprep.mubr.msk.f32.mxu0 %vm384_vm0, %v3251_v10  ;;  %v564_v16 = vld [vmem:[%s28523_s24 + $0x40] sm:$0xff]  ;;  %p27989_p12 = pnand %p27988_p11, %p28153_p5 }
  0x24   : > { %416 = vst.msk [vmem:[#allocation2 + $0xf0] sm:$0xff] %vm384_vm0, %v33576_v2  ;;  %417 = vst.msk [vmem:[#allocation2 + $0xf8] sm:$0xff] %vm384_vm0, %v33576_v2  ;;  %v562_v14 = vld [vmem:[%s28523_s24 + $0x30] sm:$0xff]  ;;  %v563_v15 = vld [vmem:[%s28523_s24 + $0x38] sm:$0xff]  ;;  %23900 = vmatmul.mubr.msk.f32.vlgmr.msra.gmra.mrb[0].mxu0 %vm384_vm0, %v3252_v11  ;;  %p27996_p2 = por %p27995_p1, %p27994_p0 }
  0x25   : > { %418 = vst.msk [vmem:[#allocation2 + $0x100] sm:$0xff] %vm384_vm0, %v33576_v2  ;;  %419 = vst.msk [vmem:[#allocation2 + $0x108] sm:$0xff] %vm384_vm0, %v33576_v2  ;;  %v565_v17 = vld [vmem:[%s28523_s24 + $0x48] sm:$0xff]  ;;  %v566_v18 = vld [vmem:[%s28523_s24 + $0x50] sm:$0xff]  ;;  %24092 = vmatpush3.msra.mxu0 %v28171_v1  ;;  %23902 = vmatprep.mubr.msk.f32.mxu0 %vm384_vm0, %v3253_v12  ;;  %p27990_p13 = pneg %p27989_p12 }
  0x26   : > { %421 = vst.msk [vmem:[#allocation2 + $0x118] sm:$0xff] %vm384_vm0, %v33576_v2  ;;  %422 = vst.msk [vmem:[#allocation2 + $0x120] sm:$0xff] %vm384_vm0, %v33576_v2  ;;  %v567_v19 = vld [vmem:[%s28523_s24 + $0x58] sm:$0xff]  ;;  %v568_v20 = vld [vmem:[%s28523_s24 + $0x60] sm:$0xff]  ;;  %24285 = vmatprep.subr.mxu0 %v28537_v9 }
  0x27   : > { %423 = vst.msk [vmem:[#allocation2 + $0x128] sm:$0xff] %vm384_vm0, %v33576_v2  ;;  %424 = vst.msk [vmem:[#allocation2 + $0x130] sm:$0xff] %vm384_vm0, %v33576_v2  ;;  %v569_v21 = vld [vmem:[%s28523_s24 + $0x68] sm:$0xff]  ;;  %v570_v22 = vld [vmem:[%s28523_s24 + $0x70] sm:$0xff]  ;;  %p27997_p3 = pnand %p27996_p2, %p27990_p13 }
  0x28   : > { %426 = vst.msk [vmem:[#allocation2 + $0x140] sm:$0xff] %vm384_vm0, %v33576_v2  ;;  %427 = vst.msk [vmem:[#allocation2 + $0x148] sm:$0xff] %vm384_vm0, %v33576_v2  ;;  %v571_v23 = vld [vmem:[%s28523_s24 + $0x78] sm:$0xff]  ;;  %v572_v24 = vld [vmem:[%s28523_s24 + $0x80] sm:$0xff] }
  0x29   : > { %428 = vst.msk [vmem:[#allocation2 + $0x150] sm:$0xff] %vm384_vm0, %v33576_v2  ;;  %429 = vst.msk [vmem:[#allocation2 + $0x158] sm:$0xff] %vm384_vm0, %v33576_v2  ;;  %v573_v25 = vld [vmem:[%s28523_s24 + $0x88] sm:$0xff]  ;;  %v574_v26 = vld [vmem:[%s28523_s24 + $0x90] sm:$0xff] }
  0x2a   : > { %431 = vst.msk [vmem:[#allocation2 + $0x168] sm:$0xff] %vm384_vm0, %v33576_v2  ;;  %432 = vst.msk [vmem:[#allocation2 + $0x170] sm:$0xff] %vm384_vm0, %v33576_v2  ;;  %v575_v27 = vld [vmem:[%s28523_s24 + $0x98] sm:$0xff]  ;;  %v576_v29 = vld [vmem:[%s28523_s24 + $0xa0] sm:$0xff] }
  0x2b   : > { %433 = vst.msk [vmem:[#allocation2 + $0x178] sm:$0xff] %vm384_vm0, %v33576_v2  ;;  %434 = vst.msk [vmem:[#allocation2 + $0x180] sm:$0xff] %vm384_vm0, %v33576_v2  ;;  %v577_v32 = vld [vmem:[%s28523_s24 + $0xa8] sm:$0xff]  ;;  %v578_v33 = vld [vmem:[%s28523_s24 + $0xb0] sm:$0xff] }
  0x2c   : > { %436 = vst.msk [vmem:[#allocation2 + $0x190] sm:$0xff] %vm384_vm0, %v33576_v2  ;;  %437 = vst.msk [vmem:[#allocation2 + $0x198] sm:$0xff] %vm384_vm0, %v33576_v2  ;;  %v579_v34 = vld [vmem:[%s28523_s24 + $0xb8] sm:$0xff]  ;;  %v580_v35 = vld [vmem:[%s28523_s24 + $0xc0] sm:$0xff] }
  0x2d   : > { %438 = vst.msk [vmem:[#allocation2 + $0x1a0] sm:$0xff] %vm384_vm0, %v33576_v2  ;;  %439 = vst.msk [vmem:[#allocation2 + $0x1a8] sm:$0xff] %vm384_vm0, %v33576_v2  ;;  %v581_v39 = vld [vmem:[%s28523_s24 + $0xc8] sm:$0xff]  ;;  %v582_v40 = vld [vmem:[%s28523_s24 + $0xd0] sm:$0xff] }
  0x2e   : > { %441 = vst.msk [vmem:[#allocation2 + $0x1b8] sm:$0xff] %vm384_vm0, %v33576_v2  ;;  %442 = vst.msk [vmem:[#allocation2 + $0x1c0] sm:$0xff] %vm384_vm0, %v33576_v2  ;;  %v583_v41 = vld [vmem:[%s28523_s24 + $0xd8] sm:$0xff]  ;;  %v584_v42 = vld [vmem:[%s28523_s24 + $0xe0] sm:$0xff] }
  0x2f   : > { %443 = vst.msk [vmem:[#allocation2 + $0x1c8] sm:$0xff] %vm384_vm0, %v33576_v2  ;;  %444 = vst.msk [vmem:[#allocation2 + $0x1d0] sm:$0xff] %vm384_vm0, %v33576_v2  ;;  %v585_v43 = vld [vmem:[%s28523_s24 + $0xe8] sm:$0xff]  ;;  %v586_v46 = vld [vmem:[%s28523_s24 + $0xf0] sm:$0xff] }
  0x30   : > { %446 = vst.msk [vmem:[#allocation2 + $0x1e0] sm:$0xff] %vm384_vm0, %v33576_v2  ;;  %447 = vst.msk [vmem:[#allocation2 + $0x1e8] sm:$0xff] %vm384_vm0, %v33576_v2  ;;  %v587_v47 = vld [vmem:[%s28523_s24 + $0xf8] sm:$0xff]  ;;  %v588_v49 = vld [vmem:[%s28523_s24 + $0x100] sm:$0xff] }
  0x31   : > { %448 = vst.msk [vmem:[#allocation2 + $0x1f0] sm:$0xff] %vm384_vm0, %v33576_v2  ;;  %449 = vst.msk [vmem:[#allocation2 + $0x1f8] sm:$0xff] %vm384_vm0, %v33576_v2  ;;  %v589_v50 = vld [vmem:[%s28523_s24 + $0x108] sm:$0xff]  ;;  %v590_v51 = vld [vmem:[%s28523_s24 + $0x110] sm:$0xff] }
  0x32   : > { %451 = vst.msk [vmem:[#allocation2 + $0x208] sm:$0xff] %vm384_vm0, %v33576_v2  ;;  %452 = vst.msk [vmem:[#allocation2 + $0x210] sm:$0xff] %vm384_vm0, %v33576_v2  ;;  %v591_v52 = vld [vmem:[%s28523_s24 + $0x118] sm:$0xff]  ;;  %v592_v53 = vld [vmem:[%s28523_s24 + $0x120] sm:$0xff] }
  0x33   : > { %453 = vst.msk [vmem:[#allocation2 + $0x218] sm:$0xff] %vm384_vm0, %v33576_v2  ;;  %454 = vst.msk [vmem:[#allocation2 + $0x220] sm:$0xff] %vm384_vm0, %v33576_v2  ;;  %v593_v54 = vld [vmem:[%s28523_s24 + $0x128] sm:$0xff]  ;;  %v594_v55 = vld [vmem:[%s28523_s24 + $0x130] sm:$0xff] }
  0x34   : > { %456 = vst.msk [vmem:[#allocation2 + $0x230] sm:$0xff] %vm384_vm0, %v33576_v2  ;;  %457 = vst.msk [vmem:[#allocation2 + $0x238] sm:$0xff] %vm384_vm0, %v33576_v2  ;;  %v595_v56 = vld [vmem:[%s28523_s24 + $0x138] sm:$0xff]  ;;  %v596_v57 = vld [vmem:[%s28523_s24 + $0x140] sm:$0xff] }
  0x35   : > { %458 = vst.msk [vmem:[#allocation2 + $0x240] sm:$0xff] %vm384_vm0, %v33576_v2  ;;  %459 = vst.msk [vmem:[#allocation2 + $0x248] sm:$0xff] %vm384_vm0, %v33576_v2  ;;  %v597_v58 = vld [vmem:[%s28523_s24 + $0x148] sm:$0xff]  ;;  %v598_v59 = vld [vmem:[%s28523_s24 + $0x150] sm:$0xff] }
  0x36   : > { %461 = vst.msk [vmem:[#allocation2 + $0x258] sm:$0xff] %vm384_vm0, %v33576_v2  ;;  %462 = vst.msk [vmem:[#allocation2 + $0x260] sm:$0xff] %vm384_vm0, %v33576_v2  ;;  %v599_v60 = vld [vmem:[%s28523_s24 + $0x158] sm:$0xff]  ;;  %v600_v61 = vld [vmem:[%s28523_s24 + $0x160] sm:$0xff] }
  0x37   : > { %463 = vst.msk [vmem:[#allocation2 + $0x268] sm:$0xff] %vm384_vm0, %v33576_v2  ;;  %464 = vst.msk [vmem:[#allocation2 + $0x270] sm:$0xff] %vm384_vm0, %v33576_v2  ;;  %v601_v0 = vld [vmem:[%s28523_s24 + $0x168] sm:$0xff]  ;;  %v602_v1 = vld [vmem:[%s28523_s24 + $0x170] sm:$0xff] }
  0x38   : > { %466 = vst.msk [vmem:[#allocation2 + $0x280] sm:$0xff] %vm384_vm0, %v33576_v2  ;;  %467 = vst.msk [vmem:[#allocation2 + $0x288] sm:$0xff] %vm384_vm0, %v33576_v2  ;;  %v606_v10 = vld [vmem:[%s28523_s24 + $0x190] sm:$0xff]  ;;  %v607_v11 = vld [vmem:[%s28523_s24 + $0x198] sm:$0xff] }
  0x39   : > { %468 = vst.msk [vmem:[#allocation2 + $0x290] sm:$0xff] %vm384_vm0, %v33576_v2  ;;  %469 = vst.msk [vmem:[#allocation2 + $0x298] sm:$0xff] %vm384_vm0, %v33576_v2  ;;  %v608_v12 = vld [vmem:[%s28523_s24 + $0x1a0] sm:$0xff] }
  0x3a   : > { %471 = vst.msk [vmem:[#allocation2 + $0x2a8] sm:$0xff] %vm384_vm0, %v33576_v2  ;;  %472 = vst.msk [vmem:[#allocation2 + $0x2b0] sm:$0xff] %vm384_vm0, %v33576_v2 }
  0x3b   : > { %473 = vst.msk [vmem:[#allocation2 + $0x2b8] sm:$0xff] %vm384_vm0, %v33576_v2  ;;  %474 = vst.msk [vmem:[#allocation2 + $0x2c0] sm:$0xff] %vm384_vm0, %v33576_v2 }
  0x3c   : > { %476 = vst.msk [vmem:[#allocation2 + $0x2d0] sm:$0xff] %vm384_vm0, %v33576_v2  ;;  %477 = vst.msk [vmem:[#allocation2 + $0x2d8] sm:$0xff] %vm384_vm0, %v33576_v2 }
  0x3d   : > { %478 = vst.msk [vmem:[#allocation2 + $0x2e0] sm:$0xff] %vm384_vm0, %v33576_v2  ;;  %479 = vst.msk [vmem:[#allocation2 + $0x2e8] sm:$0xff] %vm384_vm0, %v33576_v2 }
  0x3e   : > { %481 = vst.msk [vmem:[#allocation2 + $0x2f8] sm:$0xff] %vm384_vm0, %v33576_v2  ;;  %482 = vst.msk [vmem:[#allocation2 + $0x300] sm:$0xff] %vm384_vm0, %v33576_v2 }
  0x3f   : > { %483 = vst.msk [vmem:[#allocation2 + $0x308] sm:$0xff] %vm384_vm0, %v33576_v2  ;;  %484 = vst.msk [vmem:[#allocation2 + $0x310] sm:$0xff] %vm384_vm0, %v33576_v2 }
  0x40   : > { %486 = vst.msk [vmem:[#allocation2 + $0x320] sm:$0xff] %vm384_vm0, %v33576_v2  ;;  %487 = vst.msk [vmem:[#allocation2 + $0x328] sm:$0xff] %vm384_vm0, %v33576_v2 }
  0x41   : > { %488 = vst.msk [vmem:[#allocation2 + $0x330] sm:$0xff] %vm384_vm0, %v33576_v2  ;;  %489 = vst.msk [vmem:[#allocation2 + $0x338] sm:$0xff] %vm384_vm0, %v33576_v2 }
  0x42   : > { %491 = vst.msk [vmem:[#allocation2 + $0x348] sm:$0xff] %vm384_vm0, %v33576_v2  ;;  %492 = vst.msk [vmem:[#allocation2 + $0x350] sm:$0xff] %vm384_vm0, %v33576_v2 }
  0x43   : > { %493 = vst.msk [vmem:[#allocation2 + $0x358] sm:$0xff] %vm384_vm0, %v33576_v2  ;;  %494 = vst.msk [vmem:[#allocation2 + $0x360] sm:$0xff] %vm384_vm0, %v33576_v2 }
  0x44   : > { %496 = vst.msk [vmem:[#allocation2 + $0x370] sm:$0xff] %vm384_vm0, %v33576_v2  ;;  %497 = vst.msk [vmem:[#allocation2 + $0x378] sm:$0xff] %vm384_vm0, %v33576_v2 }
  0x45   : > { %498 = vst.msk [vmem:[#allocation2 + $0x380] sm:$0xff] %vm384_vm0, %v33576_v2  ;;  %499 = vst.msk [vmem:[#allocation2 + $0x388] sm:$0xff] %vm384_vm0, %v33576_v2 }
  0x46   : > { %501 = vst.msk [vmem:[#allocation2 + $0x398] sm:$0xff] %vm384_vm0, %v33576_v2  ;;  %502 = vst.msk [vmem:[#allocation2 + $0x3a0] sm:$0xff] %vm384_vm0, %v33576_v2 }
  0x47   : > { %503 = vst.msk [vmem:[#allocation2 + $0x3a8] sm:$0xff] %vm384_vm0, %v33576_v2  ;;  %504 = vst.msk [vmem:[#allocation2 + $0x3b0] sm:$0xff] %vm384_vm0, %v33576_v2 }
  0x48   : > { %506 = vst.msk [vmem:[#allocation2 + $0x3c0] sm:$0xff] %vm384_vm0, %v33576_v2  ;;  %507 = vst.msk [vmem:[#allocation2 + $0x3c8] sm:$0xff] %vm384_vm0, %v33576_v2 }
  0x49   : > { %508 = vst.msk [vmem:[#allocation2 + $0x3d0] sm:$0xff] %vm384_vm0, %v33576_v2  ;;  %509 = vst.msk [vmem:[#allocation2 + $0x3d8] sm:$0xff] %vm384_vm0, %v33576_v2 }
  0x4a   : > { %511 = vst.msk [vmem:[#allocation2 + $0x3e8] sm:$0xff] %vm384_vm0, %v33576_v2  ;;  %512 = vst.msk [vmem:[#allocation2 + $0x3f0] sm:$0xff] %vm384_vm0, %v33576_v2 }
  0x4b   : > { %513 = vst.msk [vmem:[#allocation2 + $0x3f8] sm:$0xff] %vm384_vm0, %v33576_v2  ;;  %514 = vst.msk [vmem:[#allocation2 + $0x400] sm:$0xff] %vm384_vm0, %v33576_v2 }
  0x4c   : > { %516 = vst.msk [vmem:[#allocation2 + $0x410] sm:$0xff] %vm384_vm0, %v33576_v2  ;;  %517 = vst.msk [vmem:[#allocation2 + $0x418] sm:$0xff] %vm384_vm0, %v33576_v2 }
  0x4d   : > { %518 = vst.msk [vmem:[#allocation2 + $0x420] sm:$0xff] %vm384_vm0, %v33576_v2  ;;  %519 = vst.msk [vmem:[#allocation2 + $0x428] sm:$0xff] %vm384_vm0, %v33576_v2 }
  0x4e   : > { %521 = vst.msk [vmem:[#allocation2 + $0x438] sm:$0xff] %vm384_vm0, %v33576_v2  ;;  %522 = vst.msk [vmem:[#allocation2 + $0x440] sm:$0xff] %vm384_vm0, %v33576_v2 }
  0x4f   : > { %523 = vst.msk [vmem:[#allocation2 + $0x448] sm:$0xff] %vm384_vm0, %v33576_v2  ;;  %524 = vst.msk [vmem:[#allocation2 + $0x450] sm:$0xff] %vm384_vm0, %v33576_v2 }
  0x50   : > { %526 = vst.msk [vmem:[#allocation2 + $0x460] sm:$0xff] %vm384_vm0, %v33576_v2  ;;  %527 = vst.msk [vmem:[#allocation2 + $0x468] sm:$0xff] %vm384_vm0, %v33576_v2 }
  0x51   : > { %528 = vst.msk [vmem:[#allocation2 + $0x470] sm:$0xff] %vm384_vm0, %v33576_v2  ;;  %529 = vst.msk [vmem:[#allocation2 + $0x478] sm:$0xff] %vm384_vm0, %v33576_v2 }
  0x52   : > { %531 = vst.msk [vmem:[#allocation2 + $0x488] sm:$0xff] %vm384_vm0, %v33576_v2  ;;  %532 = vst.msk [vmem:[#allocation2 + $0x490] sm:$0xff] %vm384_vm0, %v33576_v2 }
  0x53   : > { %533 = vst.msk [vmem:[#allocation2 + $0x498] sm:$0xff] %vm384_vm0, %v33576_v2  ;;  %534 = vst.msk [vmem:[#allocation2 + $0x4a0] sm:$0xff] %vm384_vm0, %v33576_v2 }
  0x54   : > { %536 = vst.msk [vmem:[#allocation2 + $0x4b0] sm:$0xff] %vm384_vm0, %v33576_v2  ;;  %537 = vst.msk [vmem:[#allocation2 + $0x4b8] sm:$0xff] %vm384_vm0, %v33576_v2 }
  0x55   : > { %538 = vst.msk [vmem:[#allocation2 + $0x4c0] sm:$0xff] %vm384_vm0, %v33576_v2  ;;  %539 = vst.msk [vmem:[#allocation2 + $0x4c8] sm:$0xff] %vm384_vm0, %v33576_v2 }
  0x56   : > { %541 = vst.msk [vmem:[#allocation2 + $0x4d8] sm:$0xff] %vm384_vm0, %v33576_v2  ;;  %542 = vst.msk [vmem:[#allocation2 + $0x4e0] sm:$0xff] %vm384_vm0, %v33576_v2 }
  0x57   : > { %543 = vst.msk [vmem:[#allocation2 + $0x4e8] sm:$0xff] %vm384_vm0, %v33576_v2  ;;  %544 = vst.msk [vmem:[#allocation2 + $0x4f0] sm:$0xff] %vm384_vm0, %v33576_v2 }
  0x58   : > { %546 = vst.msk [vmem:[#allocation2 + $0x500] sm:$0xff] %vm384_vm0, %v33576_v2  ;;  %547 = vst.msk [vmem:[#allocation2 + $0x508] sm:$0xff] %vm384_vm0, %v33576_v2 }
  0x59   : > { %548 = vst.msk [vmem:[#allocation2 + $0x510] sm:$0xff] %vm384_vm0, %v33576_v2  ;;  %549 = vst.msk [vmem:[#allocation2 + $0x518] sm:$0xff] %vm384_vm0, %v33576_v2 }
  0x5a   : > { %551 = vst.msk [vmem:[#allocation2 + $0x528] sm:$0xff] %vm384_vm0, %v33576_v2  ;;  %552 = vst.msk [vmem:[#allocation2 + $0x530] sm:$0xff] %vm384_vm0, %v33576_v2 }
  0x5b   : > { %553 = vst.msk [vmem:[#allocation2 + $0x538] sm:$0xff] %vm384_vm0, %v33576_v2  ;;  %554 = vst.msk [vmem:[#allocation2 + $0x540] sm:$0xff] %vm384_vm0, %v33576_v2 }
  0x5c   : > { %390 = vst.msk [vmem:[#allocation2 + $0x20] sm:$0x3] %vm389_vm1, %v33576_v2  ;;  %395 = vst.msk [vmem:[#allocation2 + $0x48] sm:$0x3] %vm389_vm1, %v33576_v2 }
  0x5d   : > { %400 = vst.msk [vmem:[#allocation2 + $0x70] sm:$0x3] %vm389_vm1, %v33576_v2  ;;  %405 = vst.msk [vmem:[#allocation2 + $0x98] sm:$0x3] %vm389_vm1, %v33576_v2 }
  0x5e   : > { %410 = vst.msk [vmem:[#allocation2 + $0xc0] sm:$0x3] %vm389_vm1, %v33576_v2  ;;  %415 = vst.msk [vmem:[#allocation2 + $0xe8] sm:$0x3] %vm389_vm1, %v33576_v2 }
  0x5f   : > { %420 = vst.msk [vmem:[#allocation2 + $0x110] sm:$0x3] %vm389_vm1, %v33576_v2  ;;  %425 = vst.msk [vmem:[#allocation2 + $0x138] sm:$0x3] %vm389_vm1, %v33576_v2 }
  0x60   : > { %430 = vst.msk [vmem:[#allocation2 + $0x160] sm:$0x3] %vm389_vm1, %v33576_v2  ;;  %435 = vst.msk [vmem:[#allocation2 + $0x188] sm:$0x3] %vm389_vm1, %v33576_v2 }
  0x61   : > { %440 = vst.msk [vmem:[#allocation2 + $0x1b0] sm:$0x3] %vm389_vm1, %v33576_v2  ;;  %445 = vst.msk [vmem:[#allocation2 + $0x1d8] sm:$0x3] %vm389_vm1, %v33576_v2 }
  0x62   : > { %450 = vst.msk [vmem:[#allocation2 + $0x200] sm:$0x3] %vm389_vm1, %v33576_v2  ;;  %455 = vst.msk [vmem:[#allocation2 + $0x228] sm:$0x3] %vm389_vm1, %v33576_v2 }
  0x63   : > { %460 = vst.msk [vmem:[#allocation2 + $0x250] sm:$0x3] %vm389_vm1, %v33576_v2  ;;  %465 = vst.msk [vmem:[#allocation2 + $0x278] sm:$0x3] %vm389_vm1, %v33576_v2  ;;  %v3254_v13 = vld [vmem:[#allocation2 + $0x1a] sm:$0xff] }
  0x64   : > { %470 = vst.msk [vmem:[#allocation2 + $0x2a0] sm:$0x3] %vm389_vm1, %v33576_v2  ;;  %475 = vst.msk [vmem:[#allocation2 + $0x2c8] sm:$0x3] %vm389_vm1, %v33576_v2  ;;  %23903 = vmatmul.mubr.msk.f32.gmra.mrb[2].mxu0 %vm384_vm0, %v3254_v13  ;;  %v609_v13 = vld [vmem:[%s28523_s24 + $0x1a8] sm:$0xff] }
  0x65   : > { %480 = vst.msk [vmem:[#allocation2 + $0x2f0] sm:$0x3] %vm389_vm1, %v33576_v2  ;;  %485 = vst.msk [vmem:[#allocation2 + $0x318] sm:$0x3] %vm389_vm1, %v33576_v2 }
  0x66   : > { %490 = vst.msk [vmem:[#allocation2 + $0x340] sm:$0x3] %vm389_vm1, %v33576_v2  ;;  %495 = vst.msk [vmem:[#allocation2 + $0x368] sm:$0x3] %vm389_vm1, %v33576_v2 }
  0x67   : > { %500 = vst.msk [vmem:[#allocation2 + $0x390] sm:$0x3] %vm389_vm1, %v33576_v2  ;;  %505 = vst.msk [vmem:[#allocation2 + $0x3b8] sm:$0x3] %vm389_vm1, %v33576_v2 }
  0x68   : > { %510 = vst.msk [vmem:[#allocation2 + $0x3e0] sm:$0x3] %vm389_vm1, %v33576_v2  ;;  %515 = vst.msk [vmem:[#allocation2 + $0x408] sm:$0x3] %vm389_vm1, %v33576_v2 }
  0x69   : > { %520 = vst.msk [vmem:[#allocation2 + $0x430] sm:$0x3] %vm389_vm1, %v33576_v2  ;;  %525 = vst.msk [vmem:[#allocation2 + $0x458] sm:$0x3] %vm389_vm1, %v33576_v2 }
  0x6a   : > { %530 = vst.msk [vmem:[#allocation2 + $0x480] sm:$0x3] %vm389_vm1, %v33576_v2  ;;  %535 = vst.msk [vmem:[#allocation2 + $0x4a8] sm:$0x3] %vm389_vm1, %v33576_v2 }
  0x6b   : > { %540 = vst.msk [vmem:[#allocation2 + $0x4d0] sm:$0x3] %vm389_vm1, %v33576_v2  ;;  %545 = vst.msk [vmem:[#allocation2 + $0x4f8] sm:$0x3] %vm389_vm1, %v33576_v2 }
  0x6c   : > { %550 = vst.msk [vmem:[#allocation2 + $0x520] sm:$0x3] %vm389_vm1, %v33576_v2  ;;  %555 = vst.msk [vmem:[#allocation2 + $0x548] sm:$0x3] %vm389_vm1, %v33576_v2 }
  0x6d   : > { %686 = vst.msk [vmem:[#allocation2 + $0x29] sm:$0xff] %vm685_vm2, %v556_v3  ;;  %687 = vst.msk [vmem:[#allocation2 + $0x31] sm:$0xff] %vm685_vm2, %v557_v4  ;;  %v603_v3 = vld [vmem:[%s28523_s24 + $0x178] sm:$0xff]  ;;  %v604_v4 = vld [vmem:[%s28523_s24 + $0x180] sm:$0xff] }
  0x6e   : > { %688 = vst.msk [vmem:[#allocation2 + $0x39] sm:$0xff] %vm685_vm2, %v558_v5  ;;  %689 = vst.msk [vmem:[#allocation2 + $0x41] sm:$0xff] %vm685_vm2, %v559_v6 }
  0x6f   : > { %690 = vst.msk [vmem:[#allocation2 + $0x51] sm:$0xff] %vm685_vm2, %v560_v7  ;;  %691 = vst.msk [vmem:[#allocation2 + $0x59] sm:$0xff] %vm685_vm2, %v561_v8  ;;  %v605_v8 = vld [vmem:[%s28523_s24 + $0x188] sm:$0xff] }
  0x70   : > { %692 = vst.msk [vmem:[#allocation2 + $0x61] sm:$0xff] %vm685_vm2, %v562_v14  ;;  %693 = vst.msk [vmem:[#allocation2 + $0x69] sm:$0xff] %vm685_vm2, %v563_v15  ;;  %v610_v15 = vld [vmem:[%s28523_s24 + $0x1b0] sm:$0xff] }
  0x71   : > { %694 = vst.msk [vmem:[#allocation2 + $0x79] sm:$0xff] %vm685_vm2, %v564_v16  ;;  %695 = vst.msk [vmem:[#allocation2 + $0x81] sm:$0xff] %vm685_vm2, %v565_v17 }
  0x72   : > { %696 = vst.msk [vmem:[#allocation2 + $0x89] sm:$0xff] %vm685_vm2, %v566_v18  ;;  %697 = vst.msk [vmem:[#allocation2 + $0x91] sm:$0xff] %vm685_vm2, %v567_v19 }
  0x73   : > { %698 = vst.msk [vmem:[#allocation2 + $0xa1] sm:$0xff] %vm685_vm2, %v568_v20  ;;  %699 = vst.msk [vmem:[#allocation2 + $0xa9] sm:$0xff] %vm685_vm2, %v569_v21 }
  0x74   : > { %700 = vst.msk [vmem:[#allocation2 + $0xb1] sm:$0xff] %vm685_vm2, %v570_v22  ;;  %701 = vst.msk [vmem:[#allocation2 + $0xb9] sm:$0xff] %vm685_vm2, %v571_v23  ;;  %v3255_v28 = vld [vmem:[#allocation2 + $0x2a] sm:$0xff] }
  0x75   : > { %702 = vst.msk [vmem:[#allocation2 + $0xc9] sm:$0xff] %vm685_vm2, %v572_v24  ;;  %703 = vst.msk [vmem:[#allocation2 + $0xd1] sm:$0xff] %vm685_vm2, %v573_v25  ;;  %23905 = vmatprep.mubr.msk.f32.mxu0 %vm384_vm0, %v3255_v28  ;;  %v3256_v30 = vld [vmem:[#allocation2 + $0x32] sm:$0xff]  ;;  %v3257_v31 = vld [vmem:[#allocation2 + $0x3a] sm:$0xff] }
  0x76   : > { %704 = vst.msk [vmem:[#allocation2 + $0xd9] sm:$0xff] %vm685_vm2, %v574_v26  ;;  %705 = vst.msk [vmem:[#allocation2 + $0xe1] sm:$0xff] %vm685_vm2, %v575_v27  ;;  %23906 = vmatmul.mubr.msk.f32.gmra.mrb[4].mxu0 %vm384_vm0, %v3256_v30  ;;  %v3258_v36 = vld [vmem:[#allocation2 + $0x42] sm:$0xff]  ;;  %v3259_v37 = vld [vmem:[#allocation2 + $0x52] sm:$0xff] }
  0x77   : > { %706 = vst.msk [vmem:[#allocation2 + $0xf1] sm:$0xff] %vm685_vm2, %v576_v29  ;;  %707 = vst.msk [vmem:[#allocation2 + $0xf9] sm:$0xff] %vm685_vm2, %v577_v32  ;;  %23908 = vmatprep.mubr.msk.f32.mxu0 %vm384_vm0, %v3257_v31  ;;  %v3260_v38 = vld [vmem:[#allocation2 + $0x5a] sm:$0xff]  ;;  %v3261_v44 = vld [vmem:[#allocation2 + $0x62] sm:$0xff] }
  0x78   : > { %708 = vst.msk [vmem:[#allocation2 + $0x101] sm:$0xff] %vm685_vm2, %v578_v33  ;;  %709 = vst.msk [vmem:[#allocation2 + $0x109] sm:$0xff] %vm685_vm2, %v579_v34  ;;  %v3262_v45 = vld [vmem:[#allocation2 + $0x6a] sm:$0xff]  ;;  %v3263_v48 = vld [vmem:[#allocation2 + $0x7a] sm:$0xff] }
  0x79   : > { %710 = vst.msk [vmem:[#allocation2 + $0x119] sm:$0xff] %vm685_vm2, %v580_v35  ;;  %711 = vst.msk [vmem:[#allocation2 + $0x121] sm:$0xff] %vm685_vm2, %v581_v39  ;;  %v3264_v62 = vld [vmem:[#allocation2 + $0x82] sm:$0xff]  ;;  %v3265_v63 = vld [vmem:[#allocation2 + $0x8a] sm:$0xff] }
  0x7a   : > { %23909 = vmatmul.mubr.msk.f32.gmra.mrb[6].mxu0 %vm384_vm0, %v3258_v36  ;;  %712 = vst.msk [vmem:[#allocation2 + $0x129] sm:$0xff] %vm685_vm2, %v582_v40  ;;  %713 = vst.msk [vmem:[#allocation2 + $0x131] sm:$0xff] %vm685_vm2, %v583_v41  ;;  %v3266_v5 = vld [vmem:[#allocation2 + $0x92] sm:$0xff]  ;;  %v3267_v6 = vld [vmem:[#allocation2 + $0xa2] sm:$0xff] }
  0x7b   : > { %23911 = vmatprep.mubr.msk.f32.mxu0 %vm384_vm0, %v3259_v37  ;;  %714 = vst.msk [vmem:[#allocation2 + $0x141] sm:$0xff] %vm685_vm2, %v584_v42  ;;  %715 = vst.msk [vmem:[#allocation2 + $0x149] sm:$0xff] %vm685_vm2, %v585_v43  ;;  %v3268_v7 = vld [vmem:[#allocation2 + $0xaa] sm:$0xff]  ;;  %v3269_v14 = vld [vmem:[#allocation2 + $0xb2] sm:$0xff] }
  0x7c   : > { %716 = vst.msk [vmem:[#allocation2 + $0x151] sm:$0xff] %vm685_vm2, %v586_v46  ;;  %717 = vst.msk [vmem:[#allocation2 + $0x159] sm:$0xff] %vm685_vm2, %v587_v47  ;;  %v3270_v16 = vld [vmem:[#allocation2 + $0xba] sm:$0xff]  ;;  %v3271_v17 = vld [vmem:[#allocation2 + $0xca] sm:$0xff] }
  0x7d   : > { %718 = vst.msk [vmem:[#allocation2 + $0x169] sm:$0xff] %vm685_vm2, %v588_v49  ;;  %719 = vst.msk [vmem:[#allocation2 + $0x171] sm:$0xff] %vm685_vm2, %v589_v50  ;;  %v3272_v18 = vld [vmem:[#allocation2 + $0xd2] sm:$0xff]  ;;  %v3273_v19 = vld [vmem:[#allocation2 + $0xda] sm:$0xff] }
  0x7e   : > { %23912 = vmatmul.mubr.msk.f32.gmra.mrb[8].mxu0 %vm384_vm0, %v3260_v38  ;;  %720 = vst.msk [vmem:[#allocation2 + $0x179] sm:$0xff] %vm685_vm2, %v590_v51  ;;  %721 = vst.msk [vmem:[#allocation2 + $0x181] sm:$0xff] %vm685_vm2, %v591_v52  ;;  %v3274_v20 = vld [vmem:[#allocation2 + $0xe2] sm:$0xff]  ;;  %v3275_v21 = vld [vmem:[#allocation2 + $0xf2] sm:$0xff] }
  0x7f   : > { %23914 = vmatprep.mubr.msk.f32.mxu0 %vm384_vm0, %v3261_v44  ;;  %722 = vst.msk [vmem:[#allocation2 + $0x191] sm:$0xff] %vm685_vm2, %v592_v53  ;;  %723 = vst.msk [vmem:[#allocation2 + $0x199] sm:$0xff] %vm685_vm2, %v593_v54  ;;  %v3276_v22 = vld [vmem:[#allocation2 + $0xfa] sm:$0xff]  ;;  %v3277_v23 = vld [vmem:[#allocation2 + $0x102] sm:$0xff] }
  0x80   : > { %724 = vst.msk [vmem:[#allocation2 + $0x1a1] sm:$0xff] %vm685_vm2, %v594_v55  ;;  %725 = vst.msk [vmem:[#allocation2 + $0x1a9] sm:$0xff] %vm685_vm2, %v595_v56  ;;  %v3278_v24 = vld [vmem:[#allocation2 + $0x10a] sm:$0xff]  ;;  %v3279_v25 = vld [vmem:[#allocation2 + $0x11a] sm:$0xff] }
  0x81   : > { %726 = vst.msk [vmem:[#allocation2 + $0x1b9] sm:$0xff] %vm685_vm2, %v596_v57  ;;  %727 = vst.msk [vmem:[#allocation2 + $0x1c1] sm:$0xff] %vm685_vm2, %v597_v58  ;;  %v3280_v26 = vld [vmem:[#allocation2 + $0x122] sm:$0xff]  ;;  %v3281_v27 = vld [vmem:[#allocation2 + $0x12a] sm:$0xff] }
  0x82   : > { %23915 = vmatmul.mubr.msk.f32.gmra.mrb[10].mxu0 %vm384_vm0, %v3262_v45  ;;  %728 = vst.msk [vmem:[#allocation2 + $0x1c9] sm:$0xff] %vm685_vm2, %v598_v59  ;;  %729 = vst.msk [vmem:[#allocation2 + $0x1d1] sm:$0xff] %vm685_vm2, %v599_v60  ;;  %v3282_v28 = vld [vmem:[#allocation2 + $0x132] sm:$0xff]  ;;  %v3283_v29 = vld [vmem:[#allocation2 + $0x142] sm:$0xff] }
  0x83   : > { %23917 = vmatprep.mubr.msk.f32.mxu0 %vm384_vm0, %v3263_v48  ;;  %730 = vst.msk [vmem:[#allocation2 + $0x1e1] sm:$0xff] %vm685_vm2, %v600_v61  ;;  %731 = vst.msk [vmem:[#allocation2 + $0x1e9] sm:$0xff] %vm685_vm2, %v601_v0  ;;  %v3284_v30 = vld [vmem:[#allocation2 + $0x14a] sm:$0xff]  ;;  %v3285_v31 = vld [vmem:[#allocation2 + $0x152] sm:$0xff] }
  0x84   : > { %732 = vst.msk [vmem:[#allocation2 + $0x1f1] sm:$0xff] %vm685_vm2, %v602_v1  ;;  %733 = vst.msk [vmem:[#allocation2 + $0x1f9] sm:$0xff] %vm685_vm2, %v603_v3  ;;  %v3286_v32 = vld [vmem:[#allocation2 + $0x15a] sm:$0xff]  ;;  %v3287_v33 = vld [vmem:[#allocation2 + $0x16a] sm:$0xff] }
  0x85   : > { %734 = vst.msk [vmem:[#allocation2 + $0x209] sm:$0xff] %vm685_vm2, %v604_v4  ;;  %735 = vst.msk [vmem:[#allocation2 + $0x211] sm:$0xff] %vm685_vm2, %v605_v8  ;;  %v3288_v34 = vld [vmem:[#allocation2 + $0x172] sm:$0xff]  ;;  %v3289_v35 = vld [vmem:[#allocation2 + $0x17a] sm:$0xff] }
  0x86   : > { %23918 = vmatmul.mubr.msk.f32.gmra.mrb[12].mxu0 %vm384_vm0, %v3264_v62  ;;  %736 = vst.msk [vmem:[#allocation2 + $0x219] sm:$0xff] %vm685_vm2, %v606_v10  ;;  %737 = vst.msk [vmem:[#allocation2 + $0x221] sm:$0xff] %vm685_vm2, %v607_v11  ;;  %v3290_v36 = vld [vmem:[#allocation2 + $0x182] sm:$0xff]  ;;  %v3291_v37 = vld [vmem:[#allocation2 + $0x192] sm:$0xff] }
  0x87   : > { %23920 = vmatprep.mubr.msk.f32.mxu0 %vm384_vm0, %v3265_v63  ;;  %738 = vst.msk [vmem:[#allocation2 + $0x231] sm:$0xff] %vm685_vm2, %v608_v12  ;;  %739 = vst.msk [vmem:[#allocation2 + $0x239] sm:$0xff] %vm685_vm2, %v609_v13  ;;  %v3292_v38 = vld [vmem:[#allocation2 + $0x19a] sm:$0xff]  ;;  %v3293_v39 = vld [vmem:[#allocation2 + $0x1a2] sm:$0xff] }
  0x88   : > { %740 = vst.msk [vmem:[#allocation2 + $0x241] sm:$0xff] %vm685_vm2, %v610_v15  ;;  %v3294_v40 = vld [vmem:[#allocation2 + $0x1aa] sm:$0xff]  ;;  %v3295_v41 = vld [vmem:[#allocation2 + $0x1ba] sm:$0xff] }
  0x89   : > { %v3296_v42 = vld [vmem:[#allocation2 + $0x1c2] sm:$0xff]  ;;  %v3297_v43 = vld [vmem:[#allocation2 + $0x1ca] sm:$0xff]  ;;  %v611_v44 = vld [vmem:[%s28523_s24 + $0x1b8] sm:$0xff] }
  0x8a   : > { %23921 = vmatmul.mubr.msk.f32.gmra.mrb[14].mxu0 %vm384_vm0, %v3266_v5  ;;  %741 = vst.msk [vmem:[#allocation2 + $0x249] sm:$0xff] %vm685_vm2, %v611_v44  ;;  %v3298_v45 = vld [vmem:[#allocation2 + $0x1d2] sm:$0xff]  ;;  %v3299_v46 = vld [vmem:[#allocation2 + $0x1e2] sm:$0xff] }
  0x8b   : > { %23923 = vmatprep.mubr.msk.f32.mxu0 %vm384_vm0, %v3267_v6  ;;  %v612_v47 = vld [vmem:[%s28523_s24 + $0x1c0] sm:$0xff]  ;;  %v613_v48 = vld [vmem:[%s28523_s24 + $0x1c8] sm:$0xff]  ;;  %v3301_v50 = vld [vmem:[#allocation2 + $0x1f2] sm:$0xff] }
  0x8c   : > { %742 = vst.msk [vmem:[#allocation2 + $0x259] sm:$0xff] %vm685_vm2, %v612_v47  ;;  %743 = vst.msk [vmem:[#allocation2 + $0x261] sm:$0xff] %vm685_vm2, %v613_v48  ;;  %v3300_v49 = vld [vmem:[#allocation2 + $0x1ea] sm:$0xff]  ;;  %v615_v52 = vld [vmem:[%s28523_s24 + $0x1d8] sm:$0xff] }
  0x8d   : > { %v614_v51 = vld [vmem:[%s28523_s24 + $0x1d0] sm:$0xff]  ;;  %745 = vst.msk [vmem:[#allocation2 + $0x271] sm:$0xff] %vm685_vm2, %v615_v52  ;;  %v3302_v53 = vld [vmem:[#allocation2 + $0x1fa] sm:$0xff]  ;;  %v617_v56 = vld [vmem:[%s28523_s24 + $0x1e8] sm:$0xff] }
  0x8e   : > { %23924 = vmatmul.mubr.msk.f32.gmra.mrb[16].mxu0 %vm384_vm0, %v3268_v7  ;;  %744 = vst.msk [vmem:[#allocation2 + $0x269] sm:$0xff] %vm685_vm2, %v614_v51  ;;  %v3303_v54 = vld [vmem:[#allocation2 + $0x20a] sm:$0xff]  ;;  %v616_v55 = vld [vmem:[%s28523_s24 + $0x1e0] sm:$0xff]  ;;  %747 = vst.msk [vmem:[#allocation2 + $0x289] sm:$0xff] %vm685_vm2, %v617_v56 }
  0x8f   : > { %23926 = vmatprep.mubr.msk.f32.mxu0 %vm384_vm0, %v3269_v14  ;;  %746 = vst.msk [vmem:[#allocation2 + $0x281] sm:$0xff] %vm685_vm2, %v616_v55  ;;  %v3304_v57 = vld [vmem:[#allocation2 + $0x212] sm:$0xff]  ;;  %v3305_v58 = vld [vmem:[#allocation2 + $0x21a] sm:$0xff]  ;;  %v3306_v61 = vld [vmem:[#allocation2 + $0x222] sm:$0xff] }
  0x90   : > { %v618_v59 = vld [vmem:[%s28523_s24 + $0x1f0] sm:$0xff]  ;;  %v619_v60 = vld [vmem:[%s28523_s24 + $0x1f8] sm:$0xff]  ;;  %v620_v63 = vld [vmem:[%s28523_s24 + $0x200] sm:$0xff] }
  0x91   : > { %748 = vst.msk [vmem:[#allocation2 + $0x291] sm:$0xff] %vm685_vm2, %v618_v59  ;;  %749 = vst.msk [vmem:[#allocation2 + $0x299] sm:$0xff] %vm685_vm2, %v619_v60  ;;  %v3307_v62 = vld [vmem:[#allocation2 + $0x232] sm:$0xff]  ;;  %v621_v0 = vld [vmem:[%s28523_s24 + $0x208] sm:$0xff] }
  0x92   : > { %23927 = vmatmul.mubr.msk.f32.gmra.mrb[18].mxu0 %vm384_vm0, %v3270_v16  ;;  %750 = vst.msk [vmem:[#allocation2 + $0x2a9] sm:$0xff] %vm685_vm2, %v620_v63  ;;  %751 = vst.msk [vmem:[#allocation2 + $0x2b1] sm:$0xff] %vm685_vm2, %v621_v0  ;;  %v3308_v1 = vld [vmem:[#allocation2 + $0x23a] sm:$0xff]  ;;  %v4598_v3 = vld [vmem:[#allocation2 + $0x28] sm:$0xff] }
  0x93   : > { %23929 = vmatprep.mubr.msk.f32.mxu0 %vm384_vm0, %v3271_v17  ;;  %v622_v4 = vld [vmem:[%s28523_s24 + $0x210] sm:$0xff]  ;;  %v623_v5 = vld [vmem:[%s28523_s24 + $0x218] sm:$0xff]  ;;  %v624_v8 = vld [vmem:[%s28523_s24 + $0x220] sm:$0xff] }
  0x94   : > { %752 = vst.msk [vmem:[#allocation2 + $0x2b9] sm:$0xff] %vm685_vm2, %v622_v4  ;;  %753 = vst.msk [vmem:[#allocation2 + $0x2c1] sm:$0xff] %vm685_vm2, %v623_v5  ;;  %v4599_v6 = vld [vmem:[#allocation2 + $0x30] sm:$0xff]  ;;  %v4600_v7 = vld [vmem:[#allocation2 + $0x38] sm:$0xff] }
  0x95   : > { %754 = vst.msk [vmem:[#allocation2 + $0x2d1] sm:$0xff] %vm685_vm2, %v624_v8  ;;  %v625_v10 = vld [vmem:[%s28523_s24 + $0x228] sm:$0xff]  ;;  %v4601_v11 = vld [vmem:[#allocation2 + $0x40] sm:$0xff]  ;;  %v4602_v12 = vld [vmem:[#allocation2 + $0x50] sm:$0xff] }
  0x96   : > { %23930 = vmatmul.mubr.msk.f32.gmra.mrb[20].mxu0 %vm384_vm0, %v3272_v18  ;;  %755 = vst.msk [vmem:[#allocation2 + $0x2d9] sm:$0xff] %vm685_vm2, %v625_v10  ;;  %v626_v13 = vld [vmem:[%s28523_s24 + $0x230] sm:$0xff]  ;;  %v627_v14 = vld [vmem:[%s28523_s24 + $0x238] sm:$0xff]  ;;  %v4604_v16 = vld [vmem:[#allocation2 + $0x60] sm:$0xff] }
  0x97   : > { %23932 = vmatprep.mubr.msk.f32.mxu0 %vm384_vm0, %v3273_v19  ;;  %756 = vst.msk [vmem:[#allocation2 + $0x2e1] sm:$0xff] %vm685_vm2, %v626_v13  ;;  %757 = vst.msk [vmem:[#allocation2 + $0x2e9] sm:$0xff] %vm685_vm2, %v627_v14  ;;  %v4603_v15 = vld [vmem:[#allocation2 + $0x58] sm:$0xff]  ;;  %v628_v17 = vld [vmem:[%s28523_s24 + $0x240] sm:$0xff] }
  0x98   : > { %758 = vst.msk [vmem:[#allocation2 + $0x2f9] sm:$0xff] %vm685_vm2, %v628_v17  ;;  %v4605_v18 = vld [vmem:[#allocation2 + $0x68] sm:$0xff]  ;;  %v4606_v19 = vld [vmem:[#allocation2 + $0x78] sm:$0xff]  ;;  %v642_v44 = vld [vmem:[%s28523_s24 + $0x2b0] sm:$0xff] }
  0x99   : > { %772 = vst.msk [vmem:[#allocation2 + $0x381] sm:$0xff] %vm685_vm2, %v642_v44  ;;  %v4620_v47 = vld [vmem:[#allocation2 + $0x100] sm:$0xff]  ;;  %v4622_v51 = vld [vmem:[#allocation2 + $0x118] sm:$0xff]  ;;  %v646_v52 = vld [vmem:[%s28523_s24 + $0x2d0] sm:$0xff] }
  0x9a   : > { %23933 = vmatmul.mubr.msk.f32.gmra.mrb[22].mxu0 %vm384_vm0, %v3274_v20  ;;  %v630_v20 = vld [vmem:[%s28523_s24 + $0x250] sm:$0xff]  ;;  %v644_v48 = vld [vmem:[%s28523_s24 + $0x2c0] sm:$0xff]  ;;  %776 = vst.msk [vmem:[#allocation2 + $0x3a9] sm:$0xff] %vm685_vm2, %v646_v52  ;;  %v4624_v55 = vld [vmem:[#allocation2 + $0x128] sm:$0xff] }
  0x9b   : > { %23935 = vmatprep.mubr.msk.f32.mxu0 %vm384_vm0, %v3275_v21  ;;  %760 = vst.msk [vmem:[#allocation2 + $0x309] sm:$0xff] %vm685_vm2, %v630_v20  ;;  %v631_v21 = vld [vmem:[%s28523_s24 + $0x258] sm:$0xff]  ;;  %774 = vst.msk [vmem:[#allocation2 + $0x399] sm:$0xff] %vm685_vm2, %v644_v48  ;;  %v648_v56 = vld [vmem:[%s28523_s24 + $0x2e0] sm:$0xff] }
  0x9c   : > { %761 = vst.msk [vmem:[#allocation2 + $0x311] sm:$0xff] %vm685_vm2, %v631_v21  ;;  %778 = vst.msk [vmem:[#allocation2 + $0x3c1] sm:$0xff] %vm685_vm2, %v648_v56  ;;  %v4626_v59 = vld [vmem:[#allocation2 + $0x140] sm:$0xff]  ;;  %v650_v60 = vld [vmem:[%s28523_s24 + $0x2f0] sm:$0xff] }
  0x9d   : > { %780 = vst.msk [vmem:[#allocation2 + $0x3d1] sm:$0xff] %vm685_vm2, %v650_v60  ;;  %v4628_v63 = vld [vmem:[#allocation2 + $0x150] sm:$0xff]  ;;  %v652_v0 = vld [vmem:[%s28523_s24 + $0x300] sm:$0xff]  ;;  %v4630_v4 = vld [vmem:[#allocation2 + $0x168] sm:$0xff] }
  0x9e   : > { %23936 = vmatmul.mubr.msk.f32.gmra.mrb[24].mxu0 %vm384_vm0, %v3276_v22  ;;  %v4607_v22 = vld [vmem:[#allocation2 + $0x80] sm:$0xff]  ;;  %782 = vst.msk [vmem:[#allocation2 + $0x3e9] sm:$0xff] %vm685_vm2, %v652_v0  ;;  %v654_v5 = vld [vmem:[%s28523_s24 + $0x310] sm:$0xff]  ;;  %v4632_v8 = vld [vmem:[#allocation2 + $0x178] sm:$0xff] }
  0x9f   : > { %23938 = vmatprep.mubr.msk.f32.mxu0 %vm384_vm0, %v3277_v23  ;;  %v4608_v23 = vld [vmem:[#allocation2 + $0x88] sm:$0xff]  ;;  %784 = vst.msk [vmem:[#allocation2 + $0x3f9] sm:$0xff] %vm685_vm2, %v654_v5  ;;  %v656_v10 = vld [vmem:[%s28523_s24 + $0x320] sm:$0xff]  ;;  %v4634_v13 = vld [vmem:[#allocation2 + $0x190] sm:$0xff] }
  0xa0   : > { %786 = vst.msk [vmem:[#allocation2 + $0x411] sm:$0xff] %vm685_vm2, %v656_v10  ;;  %v658_v14 = vld [vmem:[%s28523_s24 + $0x330] sm:$0xff]  ;;  %v4636_v17 = vld [vmem:[#allocation2 + $0x1a0] sm:$0xff]  ;;  %v4638_v20 = vld [vmem:[#allocation2 + $0x1b8] sm:$0xff] }
  0xa1   : > { %788 = vst.msk [vmem:[#allocation2 + $0x421] sm:$0xff] %vm685_vm2, %v658_v14  ;;  %v662_v21 = vld [vmem:[%s28523_s24 + $0x350] sm:$0xff]  ;;  %v4652_v48 = vld [vmem:[#allocation2 + $0x240] sm:$0xff]  ;;  %v4654_v52 = vld [vmem:[#allocation2 + $0x258] sm:$0xff] }
  0xa2   : > { %23939 = vmatmul.mubr.msk.f32.gmra.mrb[26].mxu0 %vm384_vm0, %v3278_v24  ;;  %v632_v24 = vld [vmem:[%s28523_s24 + $0x260] sm:$0xff]  ;;  %792 = vst.msk [vmem:[#allocation2 + $0x449] sm:$0xff] %vm685_vm2, %v662_v21  ;;  %v4650_v44 = vld [vmem:[#allocation2 + $0x230] sm:$0xff]  ;;  %v4656_v56 = vld [vmem:[#allocation2 + $0x268] sm:$0xff] }
  0xa3   : > { %23941 = vmatprep.mubr.msk.f32.mxu0 %vm384_vm0, %v3279_v25  ;;  %762 = vst.msk [vmem:[#allocation2 + $0x321] sm:$0xff] %vm685_vm2, %v632_v24  ;;  %v633_v25 = vld [vmem:[%s28523_s24 + $0x268] sm:$0xff]  ;;  %v4658_v60 = vld [vmem:[#allocation2 + $0x280] sm:$0xff]  ;;  %v4660_v0 = vld [vmem:[#allocation2 + $0x290] sm:$0xff] }
  0xa4   : > { %763 = vst.msk [vmem:[#allocation2 + $0x329] sm:$0xff] %vm685_vm2, %v633_v25  ;;  %v4640_v24 = vld [vmem:[#allocation2 + $0x1c8] sm:$0xff]  ;;  %v664_v25 = vld [vmem:[%s28523_s24 + $0x360] sm:$0xff]  ;;  %v4667_v10 = vld [vmem:[#allocation2 + $0x2d8] sm:$0xff] }
  0xa5   : > { %794 = vst.msk [vmem:[#allocation2 + $0x461] sm:$0xff] %vm685_vm2, %v664_v25  ;;  %v28915_v5 = vld [vmem:[%s33565_s1 + $0x28] sm:$0xff]  ;;  %v30114_v2 = vld [vmem:[#allocation2 + $0x290] sm:$0xff] }
  0xa6   : > { %23942 = vmatmul.mubr.msk.f32.gmra.mrb[28].mxu0 %vm384_vm0, %v3280_v26  ;;  %v4609_v26 = vld [vmem:[#allocation2 + $0x90] sm:$0xff]  ;;  %33633 = vst [vmem:[#allocation14_spill] sm:$0xff] %v30114_v2 }
  0xa7   : > { %23944 = vmatprep.mubr.msk.f32.mxu0 %vm384_vm0, %v3281_v27  ;;  %v4610_v27 = vld [vmem:[#allocation2 + $0xa0] sm:$0xff] }
  0xaa   : > { %23945 = vmatmul.mubr.msk.f32.gmra.mrb[30].mxu0 %vm384_vm0, %v3282_v28  ;;  %v634_v28 = vld [vmem:[%s28523_s24 + $0x270] sm:$0xff] }
  0xab   : > { %23947 = vmatprep.mubr.msk.f32.mxu0 %vm384_vm0, %v3283_v29  ;;  %764 = vst.msk [vmem:[#allocation2 + $0x331] sm:$0xff] %vm685_vm2, %v634_v28  ;;  %v635_v29 = vld [vmem:[%s28523_s24 + $0x278] sm:$0xff]  ;;  %v4642_v28 = vld [vmem:[#allocation2 + $0x1e0] sm:$0xff] }
  0xac   : > { %765 = vst.msk [vmem:[#allocation2 + $0x339] sm:$0xff] %vm685_vm2, %v635_v29  ;;  %v666_v29 = vld [vmem:[%s28523_s24 + $0x370] sm:$0xff] }
  0xad   : > { %796 = vst.msk [vmem:[#allocation2 + $0x471] sm:$0xff] %vm685_vm2, %v666_v29 }
  0xae   : > { %23948 = vmatmul.mubr.msk.f32.gmra.mrb[32].mxu0 %vm384_vm0, %v3284_v30  ;;  %v4611_v30 = vld [vmem:[#allocation2 + $0xa8] sm:$0xff] }
  0xaf   : > { %23950 = vmatprep.mubr.msk.f32.mxu0 %vm384_vm0, %v3285_v31  ;;  %v4612_v31 = vld [vmem:[#allocation2 + $0xb0] sm:$0xff] }
  0xb2   : > { %23951 = vmatmul.mubr.msk.f32.gmra.mrb[34].mxu0 %vm384_vm0, %v3286_v32  ;;  %v636_v32 = vld [vmem:[%s28523_s24 + $0x280] sm:$0xff] }
  0xb3   : > { %23953 = vmatprep.mubr.msk.f32.mxu0 %vm384_vm0, %v3287_v33  ;;  %766 = vst.msk [vmem:[#allocation2 + $0x349] sm:$0xff] %vm685_vm2, %v636_v32  ;;  %v637_v33 = vld [vmem:[%s28523_s24 + $0x288] sm:$0xff]  ;;  %v4644_v32 = vld [vmem:[#allocation2 + $0x1f0] sm:$0xff] }
  0xb4   : > { %767 = vst.msk [vmem:[#allocation2 + $0x351] sm:$0xff] %vm685_vm2, %v637_v33  ;;  %v668_v33 = vld [vmem:[%s28523_s24 + $0x380] sm:$0xff] }
  0xb5   : > { %798 = vst.msk [vmem:[#allocation2 + $0x489] sm:$0xff] %vm685_vm2, %v668_v33 }
  0xb6   : > { %23954 = vmatmul.mubr.msk.f32.gmra.mrb[36].mxu0 %vm384_vm0, %v3288_v34  ;;  %v4613_v34 = vld [vmem:[#allocation2 + $0xb8] sm:$0xff] }
  0xb7   : > { %23956 = vmatprep.mubr.msk.f32.mxu0 %vm384_vm0, %v3289_v35  ;;  %v4614_v35 = vld [vmem:[#allocation2 + $0xc8] sm:$0xff] }
  0xba   : > { %23957 = vmatmul.mubr.msk.f32.gmra.mrb[38].mxu0 %vm384_vm0, %v3290_v36  ;;  %v638_v36 = vld [vmem:[%s28523_s24 + $0x290] sm:$0xff] }
  0xbb   : > { %23959 = vmatprep.mubr.msk.f32.mxu0 %vm384_vm0, %v3291_v37  ;;  %768 = vst.msk [vmem:[#allocation2 + $0x359] sm:$0xff] %vm685_vm2, %v638_v36  ;;  %v639_v37 = vld [vmem:[%s28523_s24 + $0x298] sm:$0xff]  ;;  %v4646_v36 = vld [vmem:[#allocation2 + $0x208] sm:$0xff]  ;;  %v4679_v21 = vld [vmem:[#allocation2 + $0x350] sm:$0xff] }
  0xbc   : > { %769 = vst.msk [vmem:[#allocation2 + $0x361] sm:$0xff] %vm685_vm2, %v639_v37  ;;  %v670_v37 = vld [vmem:[%s28523_s24 + $0x390] sm:$0xff] }
  0xbd   : > { %800 = vst.msk [vmem:[#allocation2 + $0x499] sm:$0xff] %vm685_vm2, %v670_v37 }
  0xbe   : > { %23960 = vmatmul.mubr.msk.f32.gmra.mrb[40].mxu0 %vm384_vm0, %v3292_v38  ;;  %v4615_v38 = vld [vmem:[#allocation2 + $0xd0] sm:$0xff] }
  0xbf   : > { %23962 = vmatprep.mubr.msk.f32.mxu0 %vm384_vm0, %v3293_v39  ;;  %v4616_v39 = vld [vmem:[#allocation2 + $0xd8] sm:$0xff] }
  0xc2   : > { %23963 = vmatmul.mubr.msk.f32.gmra.mrb[42].mxu0 %vm384_vm0, %v3294_v40  ;;  %v640_v40 = vld [vmem:[%s28523_s24 + $0x2a0] sm:$0xff] }
  0xc3   : > { %23965 = vmatprep.mubr.msk.f32.mxu0 %vm384_vm0, %v3295_v41  ;;  %770 = vst.msk [vmem:[#allocation2 + $0x371] sm:$0xff] %vm685_vm2, %v640_v40  ;;  %v641_v41 = vld [vmem:[%s28523_s24 + $0x2a8] sm:$0xff]  ;;  %v4648_v40 = vld [vmem:[#allocation2 + $0x218] sm:$0xff] }
  0xc4   : > { %771 = vst.msk [vmem:[#allocation2 + $0x379] sm:$0xff] %vm685_vm2, %v641_v41  ;;  %v672_v41 = vld [vmem:[%s28523_s24 + $0x3a0] sm:$0xff] }
  0xc5   : > { %802 = vst.msk [vmem:[#allocation2 + $0x4b1] sm:$0xff] %vm685_vm2, %v672_v41 }
  0xc6   : > { %23966 = vmatmul.mubr.msk.f32.gmra.mrb[44].mxu0 %vm384_vm0, %v3296_v42  ;;  %v4617_v42 = vld [vmem:[#allocation2 + $0xe0] sm:$0xff] }
  0xc7   : > { %23968 = vmatprep.mubr.msk.f32.mxu0 %vm384_vm0, %v3297_v43  ;;  %v4618_v43 = vld [vmem:[#allocation2 + $0xf0] sm:$0xff] }
  0xca   : > { %23969 = vmatmul.mubr.msk.f32.gmra.mrb[46].mxu0 %vm384_vm0, %v3298_v45  ;;  %v643_v45 = vld [vmem:[%s28523_s24 + $0x2b8] sm:$0xff] }
  0xcb   : > { %23971 = vmatprep.mubr.msk.f32.mxu0 %vm384_vm0, %v3299_v46  ;;  %773 = vst.msk [vmem:[#allocation2 + $0x389] sm:$0xff] %vm685_vm2, %v643_v45  ;;  %v4619_v46 = vld [vmem:[#allocation2 + $0xf8] sm:$0xff]  ;;  %v674_v45 = vld [vmem:[%s28523_s24 + $0x3b0] sm:$0xff] }
  0xcc   : > { %804 = vst.msk [vmem:[#allocation2 + $0x4c1] sm:$0xff] %vm685_vm2, %v674_v45  ;;  %v4683_v25 = vld [vmem:[#allocation2 + $0x378] sm:$0xff] }
  0xce   : > { %23972 = vmatmul.mubr.msk.f32.gmra.mrb[48].mxu0 %vm384_vm0, %v3300_v49  ;;  %v645_v49 = vld [vmem:[%s28523_s24 + $0x2c8] sm:$0xff] }
  0xcf   : > { %23974 = vmatprep.mubr.msk.f32.mxu0 %vm384_vm0, %v3301_v50  ;;  %775 = vst.msk [vmem:[#allocation2 + $0x3a1] sm:$0xff] %vm685_vm2, %v645_v49  ;;  %v4621_v50 = vld [vmem:[#allocation2 + $0x108] sm:$0xff]  ;;  %v676_v49 = vld [vmem:[%s28523_s24 + $0x3c0] sm:$0xff] }
  0xd0   : > { %806 = vst.msk [vmem:[#allocation2 + $0x4d9] sm:$0xff] %vm685_vm2, %v676_v49 }
  0xd2   : > { %23975 = vmatmul.mubr.msk.f32.gmra.mrb[50].mxu0 %vm384_vm0, %v3302_v53  ;;  %v647_v53 = vld [vmem:[%s28523_s24 + $0x2d8] sm:$0xff] }
  0xd3   : > { %23977 = vmatprep.mubr.msk.f32.mxu0 %vm384_vm0, %v3303_v54  ;;  %777 = vst.msk [vmem:[#allocation2 + $0x3b1] sm:$0xff] %vm685_vm2, %v647_v53  ;;  %v4623_v54 = vld [vmem:[#allocation2 + $0x120] sm:$0xff]  ;;  %v678_v53 = vld [vmem:[%s28523_s24 + $0x3d0] sm:$0xff] }
  0xd4   : > { %808 = vst.msk [vmem:[#allocation2 + $0x4e9] sm:$0xff] %vm685_vm2, %v678_v53 }
  0xd6   : > { %23978 = vmatmul.mubr.msk.f32.gmra.mrb[52].mxu0 %vm384_vm0, %v3304_v57  ;;  %v649_v57 = vld [vmem:[%s28523_s24 + $0x2e8] sm:$0xff]  ;;  %v4687_v29 = vld [vmem:[#allocation2 + $0x3a0] sm:$0xff] }
  0xd7   : > { %23980 = vmatprep.mubr.msk.f32.mxu0 %vm384_vm0, %v3305_v58  ;;  %779 = vst.msk [vmem:[#allocation2 + $0x3c9] sm:$0xff] %vm685_vm2, %v649_v57  ;;  %v4625_v58 = vld [vmem:[#allocation2 + $0x130] sm:$0xff]  ;;  %v680_v57 = vld [vmem:[%s28523_s24 + $0x3e0] sm:$0xff] }
  0xd8   : > { %810 = vst.msk [vmem:[#allocation2 + $0x501] sm:$0xff] %vm685_vm2, %v680_v57 }
  0xda   : > { %23981 = vmatmul.mubr.msk.f32.gmra.mrb[54].mxu0 %vm384_vm0, %v3306_v61  ;;  %v651_v61 = vld [vmem:[%s28523_s24 + $0x2f8] sm:$0xff] }
  0xdb   : > { %23983 = vmatprep.mubr.msk.f32.mxu0 %vm384_vm0, %v3307_v62  ;;  %781 = vst.msk [vmem:[#allocation2 + $0x3d9] sm:$0xff] %vm685_vm2, %v651_v61  ;;  %v4627_v62 = vld [vmem:[#allocation2 + $0x148] sm:$0xff]  ;;  %v682_v61 = vld [vmem:[%s28523_s24 + $0x3f0] sm:$0xff] }
  0xdc   : > { %812 = vst.msk [vmem:[#allocation2 + $0x511] sm:$0xff] %vm685_vm2, %v682_v61 }
  0xde   : > { %23984 = vmatmul.mubr.msk.f32.gmra.mrb[56].mxu0 %vm384_vm0, %v3308_v1  ;;  %v653_v1 = vld [vmem:[%s28523_s24 + $0x308] sm:$0xff] }
  0xdf   : > { %24093 = vmatprep.mubr.msk.f32.mxu0 %vm384_vm0, %v4598_v3  ;;  %783 = vst.msk [vmem:[#allocation2 + $0x3f1] sm:$0xff] %vm685_vm2, %v653_v1  ;;  %v4629_v3 = vld [vmem:[#allocation2 + $0x158] sm:$0xff]  ;;  %v4691_v33 = vld [vmem:[#allocation2 + $0x3c8] sm:$0xff] }
  0xe0   : > { %v4661_v1 = vld [vmem:[#allocation2 + $0x298] sm:$0xff] }
  0xe2   : > { %24094 = vmatmul.mubr.msk.f32.vlgmr.msra.gmra.mrb[0].mxu0 %vm384_vm0, %v4599_v6  ;;  %v655_v6 = vld [vmem:[%s28523_s24 + $0x318] sm:$0xff] }
  0xe3   : > { %24286 = vmatpush3.msra.mxu0 %v28537_v9  ;;  %24096 = vmatprep.mubr.msk.f32.mxu0 %vm384_vm0, %v4600_v7  ;;  %v629_v9 = vld [vmem:[%s28523_s24 + $0x248] sm:$0xff]  ;;  %785 = vst.msk [vmem:[#allocation2 + $0x401] sm:$0xff] %vm685_vm2, %v655_v6  ;;  %v4631_v7 = vld [vmem:[#allocation2 + $0x170] sm:$0xff]  ;;  %v4664_v6 = vld [vmem:[#allocation2 + $0x2b8] sm:$0xff] }
  0xe4   : > { %759 = vst.msk [vmem:[#allocation2 + $0x301] sm:$0xff] %vm685_vm2, %v629_v9  ;;  %v660_v9 = vld [vmem:[%s28523_s24 + $0x340] sm:$0xff]  ;;  %24479 = vmatprep.subr.mxu0 %v28915_v5 }
  0xe5   : > { %790 = vst.msk [vmem:[#allocation2 + $0x439] sm:$0xff] %vm685_vm2, %v660_v9  ;;  %v4675_v9 = vld [vmem:[#allocation2 + $0x328] sm:$0xff] }
  0xe6   : > { %24097 = vmatmul.mubr.msk.f32.gmra.mrb[2].mxu0 %vm384_vm0, %v4601_v11  ;;  %v657_v11 = vld [vmem:[%s28523_s24 + $0x328] sm:$0xff]  ;;  %v4695_v37 = vld [vmem:[#allocation2 + $0x3f0] sm:$0xff] }
  0xe7   : > { %24099 = vmatprep.mubr.msk.f32.mxu0 %vm384_vm0, %v4602_v12  ;;  %787 = vst.msk [vmem:[#allocation2 + $0x419] sm:$0xff] %vm685_vm2, %v657_v11  ;;  %v4633_v12 = vld [vmem:[#allocation2 + $0x180] sm:$0xff] }
  0xe8   : > { %v4668_v11 = vld [vmem:[#allocation2 + $0x2e0] sm:$0xff] }
  0xea   : > { %24100 = vmatmul.mubr.msk.f32.gmra.mrb[4].mxu0 %vm384_vm0, %v4603_v15  ;;  %v659_v15 = vld [vmem:[%s28523_s24 + $0x338] sm:$0xff] }
  0xeb   : > { %24102 = vmatprep.mubr.msk.f32.mxu0 %vm384_vm0, %v4604_v16  ;;  %789 = vst.msk [vmem:[#allocation2 + $0x429] sm:$0xff] %vm685_vm2, %v659_v15  ;;  %v4635_v16 = vld [vmem:[#allocation2 + $0x198] sm:$0xff]  ;;  %v4671_v14 = vld [vmem:[#allocation2 + $0x300] sm:$0xff]  ;;  %v4672_v15 = vld [vmem:[#allocation2 + $0x308] sm:$0xff] }
  0xee   : > { %24103 = vmatmul.mubr.msk.f32.gmra.mrb[6].mxu0 %vm384_vm0, %v4605_v18  ;;  %v661_v18 = vld [vmem:[%s28523_s24 + $0x348] sm:$0xff]  ;;  %v4699_v41 = vld [vmem:[#allocation2 + $0x418] sm:$0xff] }
  0xef   : > { %24105 = vmatprep.mubr.msk.f32.mxu0 %vm384_vm0, %v4606_v19  ;;  %791 = vst.msk [vmem:[#allocation2 + $0x441] sm:$0xff] %vm685_vm2, %v661_v18  ;;  %v4637_v19 = vld [vmem:[#allocation2 + $0x1a8] sm:$0xff]  ;;  %v4676_v18 = vld [vmem:[#allocation2 + $0x330] sm:$0xff] }
  0xf2   : > { %24106 = vmatmul.mubr.msk.f32.gmra.mrb[8].mxu0 %vm384_vm0, %v4607_v22  ;;  %v663_v22 = vld [vmem:[%s28523_s24 + $0x358] sm:$0xff] }
  0xf3   : > { %24108 = vmatprep.mubr.msk.f32.mxu0 %vm384_vm0, %v4608_v23  ;;  %793 = vst.msk [vmem:[#allocation2 + $0x451] sm:$0xff] %vm685_vm2, %v663_v22  ;;  %v4639_v23 = vld [vmem:[#allocation2 + $0x1c0] sm:$0xff]  ;;  %v4680_v22 = vld [vmem:[#allocation2 + $0x358] sm:$0xff] }
  0xf6   : > { %24109 = vmatmul.mubr.msk.f32.gmra.mrb[10].mxu0 %vm384_vm0, %v4609_v26  ;;  %v665_v26 = vld [vmem:[%s28523_s24 + $0x368] sm:$0xff]  ;;  %v4703_v45 = vld [vmem:[#allocation2 + $0x440] sm:$0xff] }
  0xf7   : > { %24111 = vmatprep.mubr.msk.f32.mxu0 %vm384_vm0, %v4610_v27  ;;  %795 = vst.msk [vmem:[#allocation2 + $0x469] sm:$0xff] %vm685_vm2, %v665_v26  ;;  %v4641_v27 = vld [vmem:[#allocation2 + $0x1d0] sm:$0xff]  ;;  %v4684_v26 = vld [vmem:[#allocation2 + $0x380] sm:$0xff] }
  0xfa   : > { %24112 = vmatmul.mubr.msk.f32.gmra.mrb[12].mxu0 %vm384_vm0, %v4611_v30  ;;  %v667_v30 = vld [vmem:[%s28523_s24 + $0x378] sm:$0xff] }
  0xfb   : > { %24114 = vmatprep.mubr.msk.f32.mxu0 %vm384_vm0, %v4612_v31  ;;  %797 = vst.msk [vmem:[#allocation2 + $0x479] sm:$0xff] %vm685_vm2, %v667_v30  ;;  %v4643_v31 = vld [vmem:[#allocation2 + $0x1e8] sm:$0xff] }
  0xfc   : > { %v4688_v30 = vld [vmem:[#allocation2 + $0x3a8] sm:$0xff] }
  0xfe   : > { %24115 = vmatmul.mubr.msk.f32.gmra.mrb[14].mxu0 %vm384_vm0, %v4613_v34  ;;  %v669_v34 = vld [vmem:[%s28523_s24 + $0x388] sm:$0xff] }
  0xff   : > { %24117 = vmatprep.mubr.msk.f32.mxu0 %vm384_vm0, %v4614_v35  ;;  %799 = vst.msk [vmem:[#allocation2 + $0x491] sm:$0xff] %vm685_vm2, %v669_v34  ;;  %v4645_v35 = vld [vmem:[#allocation2 + $0x1f8] sm:$0xff]  ;;  %v4692_v34 = vld [vmem:[#allocation2 + $0x3d0] sm:$0xff]  ;;  %v4707_v49 = vld [vmem:[#allocation2 + $0x468] sm:$0xff] }
 0x102   : > { %24118 = vmatmul.mubr.msk.f32.gmra.mrb[16].mxu0 %vm384_vm0, %v4615_v38  ;;  %v671_v38 = vld [vmem:[%s28523_s24 + $0x398] sm:$0xff] }
 0x103   : > { %24120 = vmatprep.mubr.msk.f32.mxu0 %vm384_vm0, %v4616_v39  ;;  %801 = vst.msk [vmem:[#allocation2 + $0x4a1] sm:$0xff] %vm685_vm2, %v671_v38  ;;  %v4647_v39 = vld [vmem:[#allocation2 + $0x210] sm:$0xff]  ;;  %v4696_v38 = vld [vmem:[#allocation2 + $0x3f8] sm:$0xff] }
 0x106   : > { %24121 = vmatmul.mubr.msk.f32.gmra.mrb[18].mxu0 %vm384_vm0, %v4617_v42  ;;  %v673_v42 = vld [vmem:[%s28523_s24 + $0x3a8] sm:$0xff]  ;;  %v4711_v53 = vld [vmem:[#allocation2 + $0x490] sm:$0xff] }
 0x107   : > { %24123 = vmatprep.mubr.msk.f32.mxu0 %vm384_vm0, %v4618_v43  ;;  %803 = vst.msk [vmem:[#allocation2 + $0x4b9] sm:$0xff] %vm685_vm2, %v673_v42  ;;  %v4649_v43 = vld [vmem:[#allocation2 + $0x220] sm:$0xff] }
 0x108   : > { %v4700_v42 = vld [vmem:[#allocation2 + $0x420] sm:$0xff] }
 0x10a   : > { %24124 = vmatmul.mubr.msk.f32.gmra.mrb[20].mxu0 %vm384_vm0, %v4619_v46  ;;  %v675_v46 = vld [vmem:[%s28523_s24 + $0x3b8] sm:$0xff] }
 0x10b   : > { %24126 = vmatprep.mubr.msk.f32.mxu0 %vm384_vm0, %v4620_v47  ;;  %805 = vst.msk [vmem:[#allocation2 + $0x4c9] sm:$0xff] %vm685_vm2, %v675_v46  ;;  %v4651_v47 = vld [vmem:[#allocation2 + $0x238] sm:$0xff]  ;;  %v4704_v46 = vld [vmem:[#allocation2 + $0x448] sm:$0xff] }
 0x10e   : > { %24127 = vmatmul.mubr.msk.f32.gmra.mrb[22].mxu0 %vm384_vm0, %v4621_v50  ;;  %v677_v50 = vld [vmem:[%s28523_s24 + $0x3c8] sm:$0xff]  ;;  %v4715_v57 = vld [vmem:[#allocation2 + $0x4b8] sm:$0xff] }
 0x10f   : > { %24129 = vmatprep.mubr.msk.f32.mxu0 %vm384_vm0, %v4622_v51  ;;  %807 = vst.msk [vmem:[#allocation2 + $0x4e1] sm:$0xff] %vm685_vm2, %v677_v50  ;;  %v4653_v51 = vld [vmem:[#allocation2 + $0x248] sm:$0xff]  ;;  %v4708_v50 = vld [vmem:[#allocation2 + $0x470] sm:$0xff] }
 0x112   : > { %24130 = vmatmul.mubr.msk.f32.gmra.mrb[24].mxu0 %vm384_vm0, %v4623_v54  ;;  %v679_v54 = vld [vmem:[%s28523_s24 + $0x3d8] sm:$0xff] }
 0x113   : > { %24132 = vmatprep.mubr.msk.f32.mxu0 %vm384_vm0, %v4624_v55  ;;  %809 = vst.msk [vmem:[#allocation2 + $0x4f1] sm:$0xff] %vm685_vm2, %v679_v54  ;;  %v4655_v55 = vld [vmem:[#allocation2 + $0x260] sm:$0xff]  ;;  %v4712_v54 = vld [vmem:[#allocation2 + $0x498] sm:$0xff] }
 0x116   : > { %24133 = vmatmul.mubr.msk.f32.gmra.mrb[26].mxu0 %vm384_vm0, %v4625_v58  ;;  %v681_v58 = vld [vmem:[%s28523_s24 + $0x3e8] sm:$0xff]  ;;  %v4719_v61 = vld [vmem:[#allocation2 + $0x4e0] sm:$0xff] }
 0x117   : > { %24135 = vmatprep.mubr.msk.f32.mxu0 %vm384_vm0, %v4626_v59  ;;  %811 = vst.msk [vmem:[#allocation2 + $0x509] sm:$0xff] %vm685_vm2, %v681_v58  ;;  %v4657_v59 = vld [vmem:[#allocation2 + $0x270] sm:$0xff]  ;;  %v4716_v58 = vld [vmem:[#allocation2 + $0x4c0] sm:$0xff] }
 0x11a   : > { %24136 = vmatmul.mubr.msk.f32.gmra.mrb[28].mxu0 %vm384_vm0, %v4627_v62  ;;  %v683_v62 = vld [vmem:[%s28523_s24 + $0x3f8] sm:$0xff] }
 0x11b   : > { %24138 = vmatprep.mubr.msk.f32.mxu0 %vm384_vm0, %v4628_v63  ;;  %813 = vst.msk [vmem:[#allocation2 + $0x519] sm:$0xff] %vm685_vm2, %v683_v62  ;;  %v4659_v63 = vld [vmem:[#allocation2 + $0x288] sm:$0xff] }
 0x11c   : > { %v4720_v62 = vld [vmem:[#allocation2 + $0x4e8] sm:$0xff] }
 0x11e   : > { %24139 = vmatmul.mubr.msk.f32.gmra.mrb[30].mxu0 %vm384_vm0, %v4629_v3  ;;  %v4662_v3 = vld [vmem:[#allocation2 + $0x2a8] sm:$0xff] }
 0x11f   : > { %24141 = vmatprep.mubr.msk.f32.mxu0 %vm384_vm0, %v4630_v4  ;;  %v4663_v4 = vld [vmem:[#allocation2 + $0x2b0] sm:$0xff] }
 0x122   : > { %24142 = vmatmul.mubr.msk.f32.gmra.mrb[32].mxu0 %vm384_vm0, %v4631_v7  ;;  %v4665_v7 = vld [vmem:[#allocation2 + $0x2c0] sm:$0xff] }
 0x123   : > { %24144 = vmatprep.mubr.msk.f32.mxu0 %vm384_vm0, %v4632_v8  ;;  %v4666_v8 = vld [vmem:[#allocation2 + $0x2d0] sm:$0xff] }
 0x126   : > { %24145 = vmatmul.mubr.msk.f32.gmra.mrb[34].mxu0 %vm384_vm0, %v4633_v12  ;;  %v4669_v12 = vld [vmem:[#allocation2 + $0x2e8] sm:$0xff] }
 0x127   : > { %24147 = vmatprep.mubr.msk.f32.mxu0 %vm384_vm0, %v4634_v13  ;;  %v4670_v13 = vld [vmem:[#allocation2 + $0x2f8] sm:$0xff] }
 0x12a   : > { %24148 = vmatmul.mubr.msk.f32.gmra.mrb[36].mxu0 %vm384_vm0, %v4635_v16  ;;  %v4673_v16 = vld [vmem:[#allocation2 + $0x310] sm:$0xff] }
 0x12b   : > { %24150 = vmatprep.mubr.msk.f32.mxu0 %vm384_vm0, %v4636_v17  ;;  %v4674_v17 = vld [vmem:[#allocation2 + $0x320] sm:$0xff] }
 0x12e   : > { %24151 = vmatmul.mubr.msk.f32.gmra.mrb[38].mxu0 %vm384_vm0, %v4637_v19  ;;  %v4677_v19 = vld [vmem:[#allocation2 + $0x338] sm:$0xff] }
 0x12f   : > { %24153 = vmatprep.mubr.msk.f32.mxu0 %vm384_vm0, %v4638_v20  ;;  %v4678_v20 = vld [vmem:[#allocation2 + $0x348] sm:$0xff] }
 0x132   : > { %24154 = vmatmul.mubr.msk.f32.gmra.mrb[40].mxu0 %vm384_vm0, %v4639_v23  ;;  %v4681_v23 = vld [vmem:[#allocation2 + $0x360] sm:$0xff] }
 0x133   : > { %24156 = vmatprep.mubr.msk.f32.mxu0 %vm384_vm0, %v4640_v24  ;;  %v4682_v24 = vld [vmem:[#allocation2 + $0x370] sm:$0xff] }
 0x136   : > { %24157 = vmatmul.mubr.msk.f32.gmra.mrb[42].mxu0 %vm384_vm0, %v4641_v27  ;;  %v4685_v27 = vld [vmem:[#allocation2 + $0x388] sm:$0xff] }
 0x137   : > { %24159 = vmatprep.mubr.msk.f32.mxu0 %vm384_vm0, %v4642_v28  ;;  %v4686_v28 = vld [vmem:[#allocation2 + $0x398] sm:$0xff] }
 0x13a   : > { %24160 = vmatmul.mubr.msk.f32.gmra.mrb[44].mxu0 %vm384_vm0, %v4643_v31  ;;  %v4689_v31 = vld [vmem:[#allocation2 + $0x3b0] sm:$0xff] }
 0x13b   : > { %24162 = vmatprep.mubr.msk.f32.mxu0 %vm384_vm0, %v4644_v32  ;;  %v4690_v32 = vld [vmem:[#allocation2 + $0x3c0] sm:$0xff] }
 0x13e   : > { %24163 = vmatmul.mubr.msk.f32.gmra.mrb[46].mxu0 %vm384_vm0, %v4645_v35  ;;  %v4693_v35 = vld [vmem:[#allocation2 + $0x3d8] sm:$0xff] }
 0x13f   : > { %24165 = vmatprep.mubr.msk.f32.mxu0 %vm384_vm0, %v4646_v36  ;;  %v4694_v36 = vld [vmem:[#allocation2 + $0x3e8] sm:$0xff] }
 0x142   : > { %24166 = vmatmul.mubr.msk.f32.gmra.mrb[48].mxu0 %vm384_vm0, %v4647_v39  ;;  %v4697_v39 = vld [vmem:[#allocation2 + $0x400] sm:$0xff] }
 0x143   : > { %24168 = vmatprep.mubr.msk.f32.mxu0 %vm384_vm0, %v4648_v40  ;;  %v4698_v40 = vld [vmem:[#allocation2 + $0x410] sm:$0xff] }
 0x146   : > { %24169 = vmatmul.mubr.msk.f32.gmra.mrb[50].mxu0 %vm384_vm0, %v4649_v43  ;;  %v4701_v43 = vld [vmem:[#allocation2 + $0x428] sm:$0xff] }
 0x147   : > { %24171 = vmatprep.mubr.msk.f32.mxu0 %vm384_vm0, %v4650_v44  ;;  %v4702_v44 = vld [vmem:[#allocation2 + $0x438] sm:$0xff] }
 0x14a   : > { %24172 = vmatmul.mubr.msk.f32.gmra.mrb[52].mxu0 %vm384_vm0, %v4651_v47  ;;  %v4705_v47 = vld [vmem:[#allocation2 + $0x450] sm:$0xff] }
 0x14b   : > { %24174 = vmatprep.mubr.msk.f32.mxu0 %vm384_vm0, %v4652_v48  ;;  %v4706_v48 = vld [vmem:[#allocation2 + $0x460] sm:$0xff] }
 0x14e   : > { %24175 = vmatmul.mubr.msk.f32.gmra.mrb[54].mxu0 %vm384_vm0, %v4653_v51  ;;  %v4709_v51 = vld [vmem:[#allocation2 + $0x478] sm:$0xff] }
 0x14f   : > { %24177 = vmatprep.mubr.msk.f32.mxu0 %vm384_vm0, %v4654_v52  ;;  %v4710_v52 = vld [vmem:[#allocation2 + $0x488] sm:$0xff] }
 0x152   : > { %24178 = vmatmul.mubr.msk.f32.gmra.mrb[56].mxu0 %vm384_vm0, %v4655_v55  ;;  %v4713_v55 = vld [vmem:[#allocation2 + $0x4a0] sm:$0xff] }
 0x153   : > { %24180 = vmatprep.mubr.msk.f32.mxu0 %vm384_vm0, %v4656_v56  ;;  %v4714_v56 = vld [vmem:[#allocation2 + $0x4b0] sm:$0xff] }
 0x156   : > { %24181 = vmatmul.mubr.msk.f32.gmra.mrb[58].mxu0 %vm384_vm0, %v4657_v59  ;;  %v4717_v59 = vld [vmem:[#allocation2 + $0x4c8] sm:$0xff] }
 0x157   : > { %24183 = vmatprep.mubr.msk.f32.mxu0 %vm384_vm0, %v4658_v60  ;;  %v4718_v60 = vld [vmem:[#allocation2 + $0x4d8] sm:$0xff] }
 0x15a   : > { %24184 = vmatmul.mubr.msk.f32.gmra.mrb[60].mxu0 %vm384_vm0, %v4659_v63  ;;  %v4721_v63 = vld [vmem:[#allocation2 + $0x4f0] sm:$0xff] }
 0x15b   : > { %24186 = vmatprep.mubr.msk.f32.mxu0 %vm384_vm0, %v4660_v0  ;;  %v4722_v0 = vld [vmem:[#allocation2 + $0x500] sm:$0xff] }
 0x15e   : > { %24187 = vmatmul.mubr.msk.f32.gmra.mrb[62].mxu0 %vm384_vm0, %v4661_v1  ;;  %v4723_v1 = vld [vmem:[#allocation2 + $0x508] sm:$0xff] }
 0x15f   : > { %24189 = vmatprep.mubr.msk.f32.mxu0 %vm384_vm0, %v4662_v3  ;;  %v4724_v3 = vld [vmem:[#allocation2 + $0x510] sm:$0xff] }
 0x162   : > { %24190 = vmatmul.mubr.msk.f32.gmra.mrb[64].mxu0 %vm384_vm0, %v4663_v4  ;;  %v4725_v4 = vld [vmem:[#allocation2 + $0x518] sm:$0xff] }
 0x163   : > { %24192 = vmatprep.mubr.msk.f32.mxu0 %vm384_vm0, %v4664_v6  ;;  %v28980_v6 = vld [vmem:[#allocation2 + $0x29] sm:$0xff] }
 0x166   : > { %24193 = vmatmul.mubr.msk.f32.gmra.mrb[66].mxu0 %vm384_vm0, %v4665_v7  ;;  %v28985_v7 = vld [vmem:[#allocation2 + $0x31] sm:$0xff] }
 0x167   : > { %24195 = vmatprep.mubr.msk.f32.mxu0 %vm384_vm0, %v4666_v8  ;;  %v28987_v8 = vld [vmem:[#allocation2 + $0x39] sm:$0xff] }
 0x16a   : > { %24196 = vmatmul.mubr.msk.f32.gmra.mrb[68].mxu0 %vm384_vm0, %v4667_v10  ;;  %v28994_v10 = vld [vmem:[#allocation2 + $0x41] sm:$0xff] }
 0x16b   : > { %24198 = vmatprep.mubr.msk.f32.mxu0 %vm384_vm0, %v4668_v11  ;;  %v28996_v11 = vld [vmem:[#allocation2 + $0x51] sm:$0xff] }
 0x16e   : > { %24199 = vmatmul.mubr.msk.f32.gmra.mrb[70].mxu0 %vm384_vm0, %v4669_v12  ;;  %v29002_v12 = vld [vmem:[#allocation2 + $0x59] sm:$0xff] }
 0x16f   : > { %24201 = vmatprep.mubr.msk.f32.mxu0 %vm384_vm0, %v4670_v13  ;;  %v29004_v13 = vld [vmem:[#allocation2 + $0x61] sm:$0xff] }
 0x172   : > { %24202 = vmatmul.mubr.msk.f32.gmra.mrb[72].mxu0 %vm384_vm0, %v4671_v14  ;;  %v29012_v14 = vld [vmem:[#allocation2 + $0x79] sm:$0xff] }
 0x173   : > { %24204 = vmatprep.mubr.msk.f32.mxu0 %vm384_vm0, %v4672_v15  ;;  %v29018_v15 = vld [vmem:[#allocation2 + $0x81] sm:$0xff] }
 0x176   : > { %24205 = vmatmul.mubr.msk.f32.gmra.mrb[74].mxu0 %vm384_vm0, %v4673_v16  ;;  %v29020_v16 = vld [vmem:[#allocation2 + $0x89] sm:$0xff] }
 0x177   : > { %24207 = vmatprep.mubr.msk.f32.mxu0 %vm384_vm0, %v4674_v17  ;;  %v29026_v17 = vld [vmem:[#allocation2 + $0x91] sm:$0xff] }
 0x17a   : > { %24208 = vmatmul.mubr.msk.f32.gmra.mrb[76].mxu0 %vm384_vm0, %v4675_v9  ;;  %v29028_v9 = vld [vmem:[#allocation2 + $0xa1] sm:$0xff] }
 0x17b   : > { %24210 = vmatprep.mubr.msk.f32.mxu0 %vm384_vm0, %v4676_v18  ;;  %v29034_v18 = vld [vmem:[#allocation2 + $0xa9] sm:$0xff] }
 0x17e   : > { %24211 = vmatmul.mubr.msk.f32.gmra.mrb[78].mxu0 %vm384_vm0, %v4677_v19  ;;  %v29036_v19 = vld [vmem:[#allocation2 + $0xb1] sm:$0xff] }
 0x17f   : > { %24213 = vmatprep.mubr.msk.f32.mxu0 %vm384_vm0, %v4678_v20  ;;  %v29042_v20 = vld [vmem:[#allocation2 + $0xb9] sm:$0xff] }
 0x182   : > { %24214 = vmatmul.mubr.msk.f32.gmra.mrb[80].mxu0 %vm384_vm0, %v4679_v21  ;;  %v29044_v21 = vld [vmem:[#allocation2 + $0xc9] sm:$0xff] }
 0x183   : > { %24216 = vmatprep.mubr.msk.f32.mxu0 %vm384_vm0, %v4680_v22  ;;  %v29050_v22 = vld [vmem:[#allocation2 + $0xd1] sm:$0xff] }
 0x186   : > { %24217 = vmatmul.mubr.msk.f32.gmra.mrb[82].mxu0 %vm384_vm0, %v4681_v23  ;;  %v29052_v23 = vld [vmem:[#allocation2 + $0xd9] sm:$0xff] }
 0x187   : > { %24219 = vmatprep.mubr.msk.f32.mxu0 %vm384_vm0, %v4682_v24  ;;  %v29058_v24 = vld [vmem:[#allocation2 + $0xe1] sm:$0xff] }
 0x18a   : > { %24220 = vmatmul.mubr.msk.f32.gmra.mrb[84].mxu0 %vm384_vm0, %v4683_v25  ;;  %v29060_v25 = vld [vmem:[#allocation2 + $0xf1] sm:$0xff] }
 0x18b   : > { %24222 = vmatprep.mubr.msk.f32.mxu0 %vm384_vm0, %v4684_v26  ;;  %v29066_v26 = vld [vmem:[#allocation2 + $0xf9] sm:$0xff] }
 0x18e   : > { %24223 = vmatmul.mubr.msk.f32.gmra.mrb[86].mxu0 %vm384_vm0, %v4685_v27  ;;  %v29068_v27 = vld [vmem:[#allocation2 + $0x101] sm:$0xff] }
 0x18f   : > { %24225 = vmatprep.mubr.msk.f32.mxu0 %vm384_vm0, %v4686_v28  ;;  %v29074_v28 = vld [vmem:[#allocation2 + $0x109] sm:$0xff] }
 0x192   : > { %24226 = vmatmul.mubr.msk.f32.gmra.mrb[88].mxu0 %vm384_vm0, %v4687_v29  ;;  %v29076_v29 = vld [vmem:[#allocation2 + $0x119] sm:$0xff] }
 0x193   : > { %24228 = vmatprep.mubr.msk.f32.mxu0 %vm384_vm0, %v4688_v30  ;;  %v29082_v30 = vld [vmem:[#allocation2 + $0x121] sm:$0xff] }
 0x196   : > { %24229 = vmatmul.mubr.msk.f32.gmra.mrb[90].mxu0 %vm384_vm0, %v4689_v31  ;;  %v29084_v31 = vld [vmem:[#allocation2 + $0x129] sm:$0xff] }
 0x197   : > { %24231 = vmatprep.mubr.msk.f32.mxu0 %vm384_vm0, %v4690_v32  ;;  %v29090_v32 = vld [vmem:[#allocation2 + $0x131] sm:$0xff] }
 0x19a   : > { %24232 = vmatmul.mubr.msk.f32.gmra.mrb[92].mxu0 %vm384_vm0, %v4691_v33  ;;  %v29092_v33 = vld [vmem:[#allocation2 + $0x141] sm:$0xff] }
 0x19b   : > { %24234 = vmatprep.mubr.msk.f32.mxu0 %vm384_vm0, %v4692_v34  ;;  %v29098_v34 = vld [vmem:[#allocation2 + $0x149] sm:$0xff] }
 0x19e   : > { %24235 = vmatmul.mubr.msk.f32.gmra.mrb[94].mxu0 %vm384_vm0, %v4693_v35  ;;  %v29100_v35 = vld [vmem:[#allocation2 + $0x151] sm:$0xff] }
 0x19f   : > { %24237 = vmatprep.mubr.msk.f32.mxu0 %vm384_vm0, %v4694_v36  ;;  %v29106_v36 = vld [vmem:[#allocation2 + $0x159] sm:$0xff] }
 0x1a2   : > { %24238 = vmatmul.mubr.msk.f32.gmra.mrb[96].mxu0 %vm384_vm0, %v4695_v37  ;;  %v29108_v37 = vld [vmem:[#allocation2 + $0x169] sm:$0xff] }
 0x1a3   : > { %24240 = vmatprep.mubr.msk.f32.mxu0 %vm384_vm0, %v4696_v38  ;;  %v29114_v38 = vld [vmem:[#allocation2 + $0x171] sm:$0xff] }
 0x1a6   : > { %24241 = vmatmul.mubr.msk.f32.gmra.mrb[98].mxu0 %vm384_vm0, %v4697_v39  ;;  %v29116_v39 = vld [vmem:[#allocation2 + $0x179] sm:$0xff] }
 0x1a7   : > { %24243 = vmatprep.mubr.msk.f32.mxu0 %vm384_vm0, %v4698_v40  ;;  %v29122_v40 = vld [vmem:[#allocation2 + $0x181] sm:$0xff] }
 0x1aa   : > { %24244 = vmatmul.mubr.msk.f32.gmra.mrb[100].mxu0 %vm384_vm0, %v4699_v41  ;;  %v29124_v41 = vld [vmem:[#allocation2 + $0x191] sm:$0xff] }
 0x1ab   : > { %24246 = vmatprep.mubr.msk.f32.mxu0 %vm384_vm0, %v4700_v42  ;;  %v29130_v42 = vld [vmem:[#allocation2 + $0x199] sm:$0xff] }
 0x1ae   : > { %24247 = vmatmul.mubr.msk.f32.gmra.mrb[102].mxu0 %vm384_vm0, %v4701_v43  ;;  %v29132_v43 = vld [vmem:[#allocation2 + $0x1a1] sm:$0xff] }
 0x1af   : > { %24249 = vmatprep.mubr.msk.f32.mxu0 %vm384_vm0, %v4702_v44  ;;  %v29138_v44 = vld [vmem:[#allocation2 + $0x1a9] sm:$0xff] }
 0x1b2   : > { %24250 = vmatmul.mubr.msk.f32.gmra.mrb[104].mxu0 %vm384_vm0, %v4703_v45  ;;  %v29140_v45 = vld [vmem:[#allocation2 + $0x1b9] sm:$0xff] }
 0x1b3   : > { %24252 = vmatprep.mubr.msk.f32.mxu0 %vm384_vm0, %v4704_v46  ;;  %v29146_v46 = vld [vmem:[#allocation2 + $0x1c1] sm:$0xff] }
 0x1b6   : > { %24253 = vmatmul.mubr.msk.f32.gmra.mrb[106].mxu0 %vm384_vm0, %v4705_v47  ;;  %v29148_v47 = vld [vmem:[#allocation2 + $0x1c9] sm:$0xff] }
 0x1b7   : > { %24255 = vmatprep.mubr.msk.f32.mxu0 %vm384_vm0, %v4706_v48  ;;  %v29154_v48 = vld [vmem:[#allocation2 + $0x1d1] sm:$0xff] }
 0x1ba   : > { %24256 = vmatmul.mubr.msk.f32.gmra.mrb[108].mxu0 %vm384_vm0, %v4707_v49  ;;  %v29156_v49 = vld [vmem:[#allocation2 + $0x1e1] sm:$0xff] }
 0x1bb   : > { %24258 = vmatprep.mubr.msk.f32.mxu0 %vm384_vm0, %v4708_v50  ;;  %v29162_v50 = vld [vmem:[#allocation2 + $0x1e9] sm:$0xff] }
 0x1be   : > { %24259 = vmatmul.mubr.msk.f32.gmra.mrb[110].mxu0 %vm384_vm0, %v4709_v51  ;;  %v29164_v51 = vld [vmem:[#allocation2 + $0x1f1] sm:$0xff] }
 0x1bf   : > { %24261 = vmatprep.mubr.msk.f32.mxu0 %vm384_vm0, %v4710_v52  ;;  %v29170_v52 = vld [vmem:[#allocation2 + $0x1f9] sm:$0xff] }
 0x1c2   : > { %24262 = vmatmul.mubr.msk.f32.gmra.mrb[112].mxu0 %vm384_vm0, %v4711_v53  ;;  %v29172_v53 = vld [vmem:[#allocation2 + $0x209] sm:$0xff] }
 0x1c3   : > { %24264 = vmatprep.mubr.msk.f32.mxu0 %vm384_vm0, %v4712_v54  ;;  %v29178_v54 = vld [vmem:[#allocation2 + $0x211] sm:$0xff] }
 0x1c6   : > { %24265 = vmatmul.mubr.msk.f32.gmra.mrb[114].mxu0 %vm384_vm0, %v4713_v55  ;;  %v29180_v55 = vld [vmem:[#allocation2 + $0x219] sm:$0xff] }
 0x1c7   : > { %24267 = vmatprep.mubr.msk.f32.mxu0 %vm384_vm0, %v4714_v56  ;;  %v29186_v56 = vld [vmem:[#allocation2 + $0x221] sm:$0xff] }
 0x1ca   : > { %24268 = vmatmul.mubr.msk.f32.gmra.mrb[116].mxu0 %vm384_vm0, %v4715_v57  ;;  %v29188_v57 = vld [vmem:[#allocation2 + $0x231] sm:$0xff] }
 0x1cb   : > { %24270 = vmatprep.mubr.msk.f32.mxu0 %vm384_vm0, %v4716_v58  ;;  %v20062_v58 = vld [vmem:[%s33565_s1 + $0x8] sm:$0xff] }
 0x1cc   : > { %23509 = vmatprep.subr.mxu1 %v20062_v58 }
 0x1cd   : > { %23510 = vmatpush3.msra.mxu1 %v20062_v58  ;;  %v29221_v58 = vld [vmem:[#allocation2 + $0x269] sm:$0xff] }
 0x1ce   : > { %24271 = vmatmul.mubr.msk.f32.gmra.mrb[118].mxu0 %vm384_vm0, %v4717_v59  ;;  %v943_v59 = vld [vmem:[#allocation2 + $0x1] sm:$0xff] }
 0x1cf   : > { %24273 = vmatprep.mubr.msk.f32.mxu0 %vm384_vm0, %v4718_v60  ;;  %v944_v60 = vld [vmem:[#allocation2 + $0x9] sm:$0xff]  ;;  %23511 = vmatprep.mubr.msk.f32.mxu1 %vm384_vm0, %v943_v59  ;;  %v29233_v59 = vld [vmem:[#allocation2 + $0x281] sm:$0xff] }
 0x1d0   : > { %23512 = vmatmul.mubr.msk.f32.vlgmr.msra.gmra.mrb[0].mxu1 %vm384_vm0, %v944_v60  ;;  %v29274_v60 = vld [vmem:[#allocation2 + $0x2b9] sm:$0xff] }
 0x1d2   : > { %24274 = vmatmul.mubr.msk.f32.gmra.mrb[120].mxu0 %vm384_vm0, %v4719_v61  ;;  %v29197_v61 = vld [vmem:[#allocation2 + $0x239] sm:$0xff] }
 0x1d3   : > { %24276 = vmatprep.mubr.msk.f32.mxu0 %vm384_vm0, %v4720_v62  ;;  %v29199_v62 = vld [vmem:[#allocation2 + $0x241] sm:$0xff] }
 0x1d6   : > { %24277 = vmatmul.mubr.msk.f32.gmra.mrb[122].mxu0 %vm384_vm0, %v4721_v63  ;;  %v945_v63 = vld [vmem:[#allocation2 + $0x11] sm:$0xff] }
 0x1d7   : > { %24279 = vmatprep.mubr.msk.f32.mxu0 %vm384_vm0, %v4722_v0  ;;  %v946_v0 = vld [vmem:[#allocation2 + $0x19] sm:$0xff]  ;;  %23514 = vmatprep.mubr.msk.f32.mxu1 %vm384_vm0, %v945_v63  ;;  %v29573_v63 = vld [vmem:[#allocation2 + $0x4a1] sm:$0xff] }
 0x1d8   : > { %23515 = vmatmul.mubr.msk.f32.gmra.mrb[2].mxu1 %vm384_vm0, %v946_v0  ;;  %v29575_v0 = vld [vmem:[#allocation2 + $0x4b1] sm:$0xff] }
 0x1d9   : > { %23517 = vmatprep.mubr.msk.f32.mxu1 %vm384_vm0, %v28980_v6 }
 0x1da   : > { %24280 = vmatmul.mubr.msk.f32.gmra.mrb[124].mxu0 %vm384_vm0, %v4723_v1  ;;  %v29207_v1 = vld [vmem:[#allocation2 + $0x249] sm:$0xff] }
 0x1db   : > { %24282 = vmatprep.mubr.msk.f32.mxu0 %vm384_vm0, %v4724_v3  ;;  %v29210_v3 = vld [vmem:[#allocation2 + $0x259] sm:$0xff] }
 0x1dc   : > { %23518 = vmatmul.mubr.msk.f32.gmra.mrb[4].mxu1 %vm384_vm0, %v28985_v7 }
 0x1dd   : > { %23520 = vmatprep.mubr.msk.f32.mxu1 %vm384_vm0, %v28987_v8 }
 0x1de   : > { %24283 = vmatmul.mubr.msk.f32.gmra.mrb[126].mxu0 %vm384_vm0, %v4725_v4  ;;  %v29219_v4 = vld [vmem:[#allocation2 + $0x261] sm:$0xff] }
 0x1df   : > { %24287 = vmatprep.mubr.msk.f32.mxu0 %vm384_vm0, %v28980_v6  ;;  %v29231_v6 = vld [vmem:[#allocation2 + $0x271] sm:$0xff] }
 0x1e0   : > { %23521 = vmatmul.mubr.msk.f32.gmra.mrb[6].mxu1 %vm384_vm0, %v28994_v10 }
 0x1e1   : > { %23523 = vmatprep.mubr.msk.f32.mxu1 %vm384_vm0, %v28996_v11 }
 0x1e2   : > { %24288 = vmatmul.mubr.msk.f32.vlgmr.msra.gmra.mrb[0].mxu0 %vm384_vm0, %v28985_v7  ;;  %v29243_v7 = vld [vmem:[#allocation2 + $0x289] sm:$0xff] }
 0x1e3   : > { %24480 = vmatpush3.msra.mxu0 %v28915_v5  ;;  %24290 = vmatprep.mubr.msk.f32.mxu0 %vm384_vm0, %v28987_v8  ;;  %v29010_v5 = vld [vmem:[#allocation2 + $0x69] sm:$0xff]  ;;  %v29245_v8 = vld [vmem:[#allocation2 + $0x291] sm:$0xff] }
 0x1e4   : > { %23524 = vmatmul.mubr.msk.f32.gmra.mrb[8].mxu1 %vm384_vm0, %v29002_v12 }
 0x1e5   : > { %23526 = vmatprep.mubr.msk.f32.mxu1 %vm384_vm0, %v29004_v13 }
 0x1e6   : > { %24291 = vmatmul.mubr.msk.f32.gmra.mrb[2].mxu0 %vm384_vm0, %v28994_v10  ;;  %v29255_v10 = vld [vmem:[#allocation2 + $0x299] sm:$0xff] }
 0x1e7   : > { %24293 = vmatprep.mubr.msk.f32.mxu0 %vm384_vm0, %v28996_v11  ;;  %v29257_v11 = vld [vmem:[#allocation2 + $0x2a9] sm:$0xff] }
 0x1e8   : > { %23527 = vmatmul.mubr.msk.f32.gmra.mrb[10].mxu1 %vm384_vm0, %v29010_v5 }
 0x1e9   : > { %23529 = vmatprep.mubr.msk.f32.mxu1 %vm384_vm0, %v29012_v14 }
 0x1ea   : > { %24294 = vmatmul.mubr.msk.f32.gmra.mrb[4].mxu0 %vm384_vm0, %v29002_v12  ;;  %v29267_v12 = vld [vmem:[#allocation2 + $0x2b1] sm:$0xff] }
 0x1eb   : > { %24296 = vmatprep.mubr.msk.f32.mxu0 %vm384_vm0, %v29004_v13  ;;  %v29272_v13 = vld [vmem:[%s33565_s1 + $0x30] sm:$0xff] }
 0x1ec   : > { %24673 = vmatprep.subr.mxu0 %v29272_v13  ;;  %23530 = vmatmul.mubr.msk.f32.gmra.mrb[12].mxu1 %vm384_vm0, %v29018_v15 }
 0x1ed   : > { %23532 = vmatprep.mubr.msk.f32.mxu1 %vm384_vm0, %v29020_v16 }
 0x1ee   : > { %24297 = vmatmul.mubr.msk.f32.gmra.mrb[6].mxu0 %vm384_vm0, %v29010_v5  ;;  %v29285_v5 = vld [vmem:[#allocation2 + $0x2c1] sm:$0xff] }
 0x1ef   : > { %24299 = vmatprep.mubr.msk.f32.mxu0 %vm384_vm0, %v29012_v14  ;;  %v29287_v14 = vld [vmem:[#allocation2 + $0x2d1] sm:$0xff] }
 0x1f0   : > { %23533 = vmatmul.mubr.msk.f32.gmra.mrb[14].mxu1 %vm384_vm0, %v29026_v17 }
 0x1f1   : > { %23535 = vmatprep.mubr.msk.f32.mxu1 %vm384_vm0, %v29028_v9 }
 0x1f2   : > { %24300 = vmatmul.mubr.msk.f32.gmra.mrb[8].mxu0 %vm384_vm0, %v29018_v15  ;;  %v29297_v15 = vld [vmem:[#allocation2 + $0x2d9] sm:$0xff] }
 0x1f3   : > { %24302 = vmatprep.mubr.msk.f32.mxu0 %vm384_vm0, %v29020_v16  ;;  %v29299_v16 = vld [vmem:[#allocation2 + $0x2e1] sm:$0xff] }
 0x1f4   : > { %23536 = vmatmul.mubr.msk.f32.gmra.mrb[16].mxu1 %vm384_vm0, %v29034_v18 }
 0x1f5   : > { %23538 = vmatprep.mubr.msk.f32.mxu1 %vm384_vm0, %v29036_v19 }
 0x1f6   : > { %24303 = vmatmul.mubr.msk.f32.gmra.mrb[10].mxu0 %vm384_vm0, %v29026_v17  ;;  %v29309_v17 = vld [vmem:[#allocation2 + $0x2e9] sm:$0xff] }
 0x1f7   : > { %24305 = vmatprep.mubr.msk.f32.mxu0 %vm384_vm0, %v29028_v9  ;;  %v29311_v9 = vld [vmem:[#allocation2 + $0x2f9] sm:$0xff] }
 0x1f8   : > { %23539 = vmatmul.mubr.msk.f32.gmra.mrb[18].mxu1 %vm384_vm0, %v29042_v20 }
 0x1f9   : > { %23541 = vmatprep.mubr.msk.f32.mxu1 %vm384_vm0, %v29044_v21 }
 0x1fa   : > { %24306 = vmatmul.mubr.msk.f32.gmra.mrb[12].mxu0 %vm384_vm0, %v29034_v18  ;;  %v29321_v18 = vld [vmem:[#allocation2 + $0x301] sm:$0xff] }
 0x1fb   : > { %24308 = vmatprep.mubr.msk.f32.mxu0 %vm384_vm0, %v29036_v19  ;;  %v29323_v19 = vld [vmem:[#allocation2 + $0x309] sm:$0xff] }
 0x1fc   : > { %23542 = vmatmul.mubr.msk.f32.gmra.mrb[20].mxu1 %vm384_vm0, %v29050_v22 }
 0x1fd   : > { %23544 = vmatprep.mubr.msk.f32.mxu1 %vm384_vm0, %v29052_v23 }
 0x1fe   : > { %24309 = vmatmul.mubr.msk.f32.gmra.mrb[14].mxu0 %vm384_vm0, %v29042_v20  ;;  %v29333_v20 = vld [vmem:[#allocation2 + $0x311] sm:$0xff] }
 0x1ff   : > { %24311 = vmatprep.mubr.msk.f32.mxu0 %vm384_vm0, %v29044_v21  ;;  %v29335_v21 = vld [vmem:[#allocation2 + $0x321] sm:$0xff] }
 0x200   : > { %23545 = vmatmul.mubr.msk.f32.gmra.mrb[22].mxu1 %vm384_vm0, %v29058_v24 }
 0x201   : > { %23547 = vmatprep.mubr.msk.f32.mxu1 %vm384_vm0, %v29060_v25 }
 0x202   : > { %24312 = vmatmul.mubr.msk.f32.gmra.mrb[16].mxu0 %vm384_vm0, %v29050_v22  ;;  %v29345_v22 = vld [vmem:[#allocation2 + $0x329] sm:$0xff] }
 0x203   : > { %24314 = vmatprep.mubr.msk.f32.mxu0 %vm384_vm0, %v29052_v23  ;;  %v29347_v23 = vld [vmem:[#allocation2 + $0x331] sm:$0xff] }
 0x204   : > { %23548 = vmatmul.mubr.msk.f32.gmra.mrb[24].mxu1 %vm384_vm0, %v29066_v26 }
 0x205   : > { %23550 = vmatprep.mubr.msk.f32.mxu1 %vm384_vm0, %v29068_v27 }
 0x206   : > { %24315 = vmatmul.mubr.msk.f32.gmra.mrb[18].mxu0 %vm384_vm0, %v29058_v24  ;;  %v29357_v24 = vld [vmem:[#allocation2 + $0x339] sm:$0xff] }
 0x207   : > { %24317 = vmatprep.mubr.msk.f32.mxu0 %vm384_vm0, %v29060_v25  ;;  %v29359_v25 = vld [vmem:[#allocation2 + $0x349] sm:$0xff] }
 0x208   : > { %23551 = vmatmul.mubr.msk.f32.gmra.mrb[26].mxu1 %vm384_vm0, %v29074_v28 }
 0x209   : > { %23553 = vmatprep.mubr.msk.f32.mxu1 %vm384_vm0, %v29076_v29 }
 0x20a   : > { %24318 = vmatmul.mubr.msk.f32.gmra.mrb[20].mxu0 %vm384_vm0, %v29066_v26  ;;  %v29369_v26 = vld [vmem:[#allocation2 + $0x351] sm:$0xff] }
 0x20b   : > { %24320 = vmatprep.mubr.msk.f32.mxu0 %vm384_vm0, %v29068_v27  ;;  %v29371_v27 = vld [vmem:[#allocation2 + $0x359] sm:$0xff] }
 0x20c   : > { %23554 = vmatmul.mubr.msk.f32.gmra.mrb[28].mxu1 %vm384_vm0, %v29082_v30 }
 0x20d   : > { %23556 = vmatprep.mubr.msk.f32.mxu1 %vm384_vm0, %v29084_v31 }
 0x20e   : > { %24321 = vmatmul.mubr.msk.f32.gmra.mrb[22].mxu0 %vm384_vm0, %v29074_v28  ;;  %v29381_v28 = vld [vmem:[#allocation2 + $0x361] sm:$0xff] }
 0x20f   : > { %24323 = vmatprep.mubr.msk.f32.mxu0 %vm384_vm0, %v29076_v29  ;;  %v29383_v29 = vld [vmem:[#allocation2 + $0x371] sm:$0xff] }
 0x210   : > { %23557 = vmatmul.mubr.msk.f32.gmra.mrb[30].mxu1 %vm384_vm0, %v29090_v32 }
 0x211   : > { %23559 = vmatprep.mubr.msk.f32.mxu1 %vm384_vm0, %v29092_v33 }
 0x212   : > { %24324 = vmatmul.mubr.msk.f32.gmra.mrb[24].mxu0 %vm384_vm0, %v29082_v30  ;;  %v29393_v30 = vld [vmem:[#allocation2 + $0x379] sm:$0xff] }
 0x213   : > { %24326 = vmatprep.mubr.msk.f32.mxu0 %vm384_vm0, %v29084_v31  ;;  %v29395_v31 = vld [vmem:[#allocation2 + $0x381] sm:$0xff] }
 0x214   : > { %23560 = vmatmul.mubr.msk.f32.gmra.mrb[32].mxu1 %vm384_vm0, %v29098_v34 }
 0x215   : > { %23562 = vmatprep.mubr.msk.f32.mxu1 %vm384_vm0, %v29100_v35 }
 0x216   : > { %24327 = vmatmul.mubr.msk.f32.gmra.mrb[26].mxu0 %vm384_vm0, %v29090_v32  ;;  %v29405_v32 = vld [vmem:[#allocation2 + $0x389] sm:$0xff] }
 0x217   : > { %24329 = vmatprep.mubr.msk.f32.mxu0 %vm384_vm0, %v29092_v33  ;;  %v29407_v33 = vld [vmem:[#allocation2 + $0x399] sm:$0xff] }
 0x218   : > { %23563 = vmatmul.mubr.msk.f32.gmra.mrb[34].mxu1 %vm384_vm0, %v29106_v36 }
 0x219   : > { %23565 = vmatprep.mubr.msk.f32.mxu1 %vm384_vm0, %v29108_v37 }
 0x21a   : > { %24330 = vmatmul.mubr.msk.f32.gmra.mrb[28].mxu0 %vm384_vm0, %v29098_v34  ;;  %v29417_v34 = vld [vmem:[#allocation2 + $0x3a1] sm:$0xff] }
 0x21b   : > { %24332 = vmatprep.mubr.msk.f32.mxu0 %vm384_vm0, %v29100_v35  ;;  %v29419_v35 = vld [vmem:[#allocation2 + $0x3a9] sm:$0xff] }
 0x21c   : > { %23566 = vmatmul.mubr.msk.f32.gmra.mrb[36].mxu1 %vm384_vm0, %v29114_v38 }
 0x21d   : > { %23568 = vmatprep.mubr.msk.f32.mxu1 %vm384_vm0, %v29116_v39 }
 0x21e   : > { %24333 = vmatmul.mubr.msk.f32.gmra.mrb[30].mxu0 %vm384_vm0, %v29106_v36  ;;  %v29429_v36 = vld [vmem:[#allocation2 + $0x3b1] sm:$0xff] }
 0x21f   : > { %24335 = vmatprep.mubr.msk.f32.mxu0 %vm384_vm0, %v29108_v37  ;;  %v29431_v37 = vld [vmem:[#allocation2 + $0x3c1] sm:$0xff] }
 0x220   : > { %23569 = vmatmul.mubr.msk.f32.gmra.mrb[38].mxu1 %vm384_vm0, %v29122_v40 }
 0x221   : > { %23571 = vmatprep.mubr.msk.f32.mxu1 %vm384_vm0, %v29124_v41 }
 0x222   : > { %24336 = vmatmul.mubr.msk.f32.gmra.mrb[32].mxu0 %vm384_vm0, %v29114_v38  ;;  %v29441_v38 = vld [vmem:[#allocation2 + $0x3c9] sm:$0xff] }
 0x223   : > { %24338 = vmatprep.mubr.msk.f32.mxu0 %vm384_vm0, %v29116_v39  ;;  %v29443_v39 = vld [vmem:[#allocation2 + $0x3d1] sm:$0xff] }
 0x224   : > { %23572 = vmatmul.mubr.msk.f32.gmra.mrb[40].mxu1 %vm384_vm0, %v29130_v42 }
 0x225   : > { %23574 = vmatprep.mubr.msk.f32.mxu1 %vm384_vm0, %v29132_v43 }
 0x226   : > { %24339 = vmatmul.mubr.msk.f32.gmra.mrb[34].mxu0 %vm384_vm0, %v29122_v40  ;;  %v29453_v40 = vld [vmem:[#allocation2 + $0x3d9] sm:$0xff] }
 0x227   : > { %24341 = vmatprep.mubr.msk.f32.mxu0 %vm384_vm0, %v29124_v41  ;;  %v29455_v41 = vld [vmem:[#allocation2 + $0x3e9] sm:$0xff] }
 0x228   : > { %23575 = vmatmul.mubr.msk.f32.gmra.mrb[42].mxu1 %vm384_vm0, %v29138_v44 }
 0x229   : > { %23577 = vmatprep.mubr.msk.f32.mxu1 %vm384_vm0, %v29140_v45 }
 0x22a   : > { %24342 = vmatmul.mubr.msk.f32.gmra.mrb[36].mxu0 %vm384_vm0, %v29130_v42  ;;  %v29465_v42 = vld [vmem:[#allocation2 + $0x3f1] sm:$0xff] }
 0x22b   : > { %24344 = vmatprep.mubr.msk.f32.mxu0 %vm384_vm0, %v29132_v43  ;;  %v29467_v43 = vld [vmem:[#allocation2 + $0x3f9] sm:$0xff] }
 0x22c   : > { %23578 = vmatmul.mubr.msk.f32.gmra.mrb[44].mxu1 %vm384_vm0, %v29146_v46 }
 0x22d   : > { %23580 = vmatprep.mubr.msk.f32.mxu1 %vm384_vm0, %v29148_v47 }
 0x22e   : > { %24345 = vmatmul.mubr.msk.f32.gmra.mrb[38].mxu0 %vm384_vm0, %v29138_v44  ;;  %v29477_v44 = vld [vmem:[#allocation2 + $0x401] sm:$0xff] }
 0x22f   : > { %24347 = vmatprep.mubr.msk.f32.mxu0 %vm384_vm0, %v29140_v45  ;;  %v29479_v45 = vld [vmem:[#allocation2 + $0x411] sm:$0xff] }
 0x230   : > { %23581 = vmatmul.mubr.msk.f32.gmra.mrb[46].mxu1 %vm384_vm0, %v29154_v48 }
 0x231   : > { %23583 = vmatprep.mubr.msk.f32.mxu1 %vm384_vm0, %v29156_v49 }
 0x232   : > { %24348 = vmatmul.mubr.msk.f32.gmra.mrb[40].mxu0 %vm384_vm0, %v29146_v46  ;;  %v29489_v46 = vld [vmem:[#allocation2 + $0x419] sm:$0xff] }
 0x233   : > { %24350 = vmatprep.mubr.msk.f32.mxu0 %vm384_vm0, %v29148_v47  ;;  %v29491_v47 = vld [vmem:[#allocation2 + $0x421] sm:$0xff] }
 0x234   : > { %23584 = vmatmul.mubr.msk.f32.gmra.mrb[48].mxu1 %vm384_vm0, %v29162_v50 }
 0x235   : > { %23586 = vmatprep.mubr.msk.f32.mxu1 %vm384_vm0, %v29164_v51 }
 0x236   : > { %24351 = vmatmul.mubr.msk.f32.gmra.mrb[42].mxu0 %vm384_vm0, %v29154_v48  ;;  %v29501_v48 = vld [vmem:[#allocation2 + $0x429] sm:$0xff] }
 0x237   : > { %24353 = vmatprep.mubr.msk.f32.mxu0 %vm384_vm0, %v29156_v49  ;;  %v29503_v49 = vld [vmem:[#allocation2 + $0x439] sm:$0xff] }
 0x238   : > { %23587 = vmatmul.mubr.msk.f32.gmra.mrb[50].mxu1 %vm384_vm0, %v29170_v52 }
 0x239   : > { %23589 = vmatprep.mubr.msk.f32.mxu1 %vm384_vm0, %v29172_v53 }
 0x23a   : > { %24354 = vmatmul.mubr.msk.f32.gmra.mrb[44].mxu0 %vm384_vm0, %v29162_v50  ;;  %v29513_v50 = vld [vmem:[#allocation2 + $0x441] sm:$0xff] }
 0x23b   : > { %24356 = vmatprep.mubr.msk.f32.mxu0 %vm384_vm0, %v29164_v51  ;;  %v29515_v51 = vld [vmem:[#allocation2 + $0x449] sm:$0xff] }
 0x23c   : > { %23590 = vmatmul.mubr.msk.f32.gmra.mrb[52].mxu1 %vm384_vm0, %v29178_v54 }
 0x23d   : > { %23592 = vmatprep.mubr.msk.f32.mxu1 %vm384_vm0, %v29180_v55 }
 0x23e   : > { %24357 = vmatmul.mubr.msk.f32.gmra.mrb[46].mxu0 %vm384_vm0, %v29170_v52  ;;  %v29525_v52 = vld [vmem:[#allocation2 + $0x451] sm:$0xff] }
 0x23f   : > { %24359 = vmatprep.mubr.msk.f32.mxu0 %vm384_vm0, %v29172_v53  ;;  %v29527_v53 = vld [vmem:[#allocation2 + $0x461] sm:$0xff] }
 0x240   : > { %23593 = vmatmul.mubr.msk.f32.gmra.mrb[54].mxu1 %vm384_vm0, %v29186_v56 }
 0x241   : > { %23595 = vmatprep.mubr.msk.f32.mxu1 %vm384_vm0, %v29188_v57 }
 0x242   : > { %24360 = vmatmul.mubr.msk.f32.gmra.mrb[48].mxu0 %vm384_vm0, %v29178_v54  ;;  %v29537_v54 = vld [vmem:[#allocation2 + $0x469] sm:$0xff] }
 0x243   : > { %24362 = vmatprep.mubr.msk.f32.mxu0 %vm384_vm0, %v29180_v55  ;;  %v29539_v55 = vld [vmem:[#allocation2 + $0x471] sm:$0xff] }
 0x244   : > { %23596 = vmatmul.mubr.msk.f32.gmra.mrb[56].mxu1 %vm384_vm0, %v29197_v61 }
 0x245   : > { %23598 = vmatprep.mubr.msk.f32.mxu1 %vm384_vm0, %v29199_v62 }
 0x246   : > { %24363 = vmatmul.mubr.msk.f32.gmra.mrb[50].mxu0 %vm384_vm0, %v29186_v56  ;;  %v29549_v56 = vld [vmem:[#allocation2 + $0x479] sm:$0xff] }
 0x247   : > { %24365 = vmatprep.mubr.msk.f32.mxu0 %vm384_vm0, %v29188_v57  ;;  %v29551_v57 = vld [vmem:[#allocation2 + $0x489] sm:$0xff] }
 0x248   : > { %23599 = vmatmul.mubr.msk.f32.gmra.mrb[58].mxu1 %vm384_vm0, %v29207_v1 }
 0x249   : > { %23601 = vmatprep.mubr.msk.f32.mxu1 %vm384_vm0, %v29210_v3 }
 0x24a   : > { %24366 = vmatmul.mubr.msk.f32.gmra.mrb[52].mxu0 %vm384_vm0, %v29197_v61  ;;  %v29561_v61 = vld [vmem:[#allocation2 + $0x491] sm:$0xff] }
 0x24b   : > { %24368 = vmatprep.mubr.msk.f32.mxu0 %vm384_vm0, %v29199_v62  ;;  %v29563_v62 = vld [vmem:[#allocation2 + $0x499] sm:$0xff] }
 0x24c   : > { %23602 = vmatmul.mubr.msk.f32.gmra.mrb[60].mxu1 %vm384_vm0, %v29219_v4 }
 0x24d   : > { %23604 = vmatprep.mubr.msk.f32.mxu1 %vm384_vm0, %v29221_v58 }
 0x24e   : > { %24369 = vmatmul.mubr.msk.f32.gmra.mrb[54].mxu0 %vm384_vm0, %v29207_v1  ;;  %v29585_v1 = vld [vmem:[#allocation2 + $0x4b9] sm:$0xff] }
 0x24f   : > { %24371 = vmatprep.mubr.msk.f32.mxu0 %vm384_vm0, %v29210_v3  ;;  %v29587_v3 = vld [vmem:[#allocation2 + $0x4c1] sm:$0xff] }
 0x250   : > { %23605 = vmatmul.mubr.msk.f32.gmra.mrb[62].mxu1 %vm384_vm0, %v29231_v6 }
 0x251   : > { %23607 = vmatprep.mubr.msk.f32.mxu1 %vm384_vm0, %v29233_v59 }
 0x252   : > { %24372 = vmatmul.mubr.msk.f32.gmra.mrb[56].mxu0 %vm384_vm0, %v29219_v4  ;;  %v29597_v4 = vld [vmem:[#allocation2 + $0x4c9] sm:$0xff] }
 0x253   : > { %24374 = vmatprep.mubr.msk.f32.mxu0 %vm384_vm0, %v29221_v58  ;;  %v29599_v58 = vld [vmem:[#allocation2 + $0x4d9] sm:$0xff] }
 0x254   : > { %23608 = vmatmul.mubr.msk.f32.gmra.mrb[64].mxu1 %vm384_vm0, %v29243_v7 }
 0x255   : > { %23610 = vmatprep.mubr.msk.f32.mxu1 %vm384_vm0, %v29245_v8 }
 0x256   : > { %24375 = vmatmul.mubr.msk.f32.gmra.mrb[58].mxu0 %vm384_vm0, %v29231_v6  ;;  %v29609_v6 = vld [vmem:[#allocation2 + $0x4e1] sm:$0xff] }
 0x257   : > { %24377 = vmatprep.mubr.msk.f32.mxu0 %vm384_vm0, %v29233_v59  ;;  %v29611_v59 = vld [vmem:[#allocation2 + $0x4e9] sm:$0xff] }
 0x258   : > { %23611 = vmatmul.mubr.msk.f32.gmra.mrb[66].mxu1 %vm384_vm0, %v29255_v10 }
 0x259   : > { %23613 = vmatprep.mubr.msk.f32.mxu1 %vm384_vm0, %v29257_v11 }
 0x25a   : > { %24378 = vmatmul.mubr.msk.f32.gmra.mrb[60].mxu0 %vm384_vm0, %v29243_v7  ;;  %v29621_v7 = vld [vmem:[#allocation2 + $0x4f1] sm:$0xff] }
 0x25b   : > { %24380 = vmatprep.mubr.msk.f32.mxu0 %vm384_vm0, %v29245_v8  ;;  %v6069_v8 = vld [vmem:[#allocation2 + $0x501] sm:$0xff] }
 0x25c   : > { %23614 = vmatmul.mubr.msk.f32.gmra.mrb[68].mxu1 %vm384_vm0, %v29267_v12 }
 0x25d   : > { %23616 = vmatprep.mubr.msk.f32.mxu1 %vm384_vm0, %v29274_v60 }
 0x25e   : > { %24381 = vmatmul.mubr.msk.f32.gmra.mrb[62].mxu0 %vm384_vm0, %v29255_v10  ;;  %v6070_v10 = vld [vmem:[#allocation2 + $0x509] sm:$0xff] }
 0x25f   : > { %24383 = vmatprep.mubr.msk.f32.mxu0 %vm384_vm0, %v29257_v11  ;;  %v6071_v11 = vld [vmem:[#allocation2 + $0x511] sm:$0xff] }
 0x260   : > { %23617 = vmatmul.mubr.msk.f32.gmra.mrb[70].mxu1 %vm384_vm0, %v29285_v5 }
 0x261   : > { %23619 = vmatprep.mubr.msk.f32.mxu1 %vm384_vm0, %v29287_v14 }
 0x262   : > { %24384 = vmatmul.mubr.msk.f32.gmra.mrb[64].mxu0 %vm384_vm0, %v29267_v12  ;;  %v6072_v12 = vld [vmem:[#allocation2 + $0x519] sm:$0xff] }
 0x263   : > { %24386 = vmatprep.mubr.msk.f32.mxu0 %vm384_vm0, %v29274_v60  ;;  %v7292_v60 = vld [vmem:[#allocation2 + $0x2a] sm:$0xff] }
 0x264   : > { %23620 = vmatmul.mubr.msk.f32.gmra.mrb[72].mxu1 %vm384_vm0, %v29297_v15 }
 0x265   : > { %23622 = vmatprep.mubr.msk.f32.mxu1 %vm384_vm0, %v29299_v16 }
 0x266   : > { %24387 = vmatmul.mubr.msk.f32.gmra.mrb[66].mxu0 %vm384_vm0, %v29285_v5  ;;  %v7293_v5 = vld [vmem:[#allocation2 + $0x32] sm:$0xff] }
 0x267   : > { %24389 = vmatprep.mubr.msk.f32.mxu0 %vm384_vm0, %v29287_v14  ;;  %v7294_v14 = vld [vmem:[#allocation2 + $0x3a] sm:$0xff] }
 0x268   : > { %23623 = vmatmul.mubr.msk.f32.gmra.mrb[74].mxu1 %vm384_vm0, %v29309_v17 }
 0x269   : > { %23625 = vmatprep.mubr.msk.f32.mxu1 %vm384_vm0, %v29311_v9 }
 0x26a   : > { %24390 = vmatmul.mubr.msk.f32.gmra.mrb[68].mxu0 %vm384_vm0, %v29297_v15  ;;  %v7295_v15 = vld [vmem:[#allocation2 + $0x42] sm:$0xff] }
 0x26b   : > { %24392 = vmatprep.mubr.msk.f32.mxu0 %vm384_vm0, %v29299_v16  ;;  %v7296_v16 = vld [vmem:[#allocation2 + $0x52] sm:$0xff] }
 0x26c   : > { %23626 = vmatmul.mubr.msk.f32.gmra.mrb[76].mxu1 %vm384_vm0, %v29321_v18 }
 0x26d   : > { %23628 = vmatprep.mubr.msk.f32.mxu1 %vm384_vm0, %v29323_v19 }
 0x26e   : > { %24393 = vmatmul.mubr.msk.f32.gmra.mrb[70].mxu0 %vm384_vm0, %v29309_v17  ;;  %v7297_v17 = vld [vmem:[#allocation2 + $0x5a] sm:$0xff] }
 0x26f   : > { %24395 = vmatprep.mubr.msk.f32.mxu0 %vm384_vm0, %v29311_v9  ;;  %v7298_v9 = vld [vmem:[#allocation2 + $0x62] sm:$0xff] }
 0x270   : > { %23629 = vmatmul.mubr.msk.f32.gmra.mrb[78].mxu1 %vm384_vm0, %v29333_v20 }
 0x271   : > { %23631 = vmatprep.mubr.msk.f32.mxu1 %vm384_vm0, %v29335_v21 }
 0x272   : > { %24396 = vmatmul.mubr.msk.f32.gmra.mrb[72].mxu0 %vm384_vm0, %v29321_v18  ;;  %v7300_v18 = vld [vmem:[#allocation2 + $0x7a] sm:$0xff] }
 0x273   : > { %24398 = vmatprep.mubr.msk.f32.mxu0 %vm384_vm0, %v29323_v19  ;;  %v7301_v19 = vld [vmem:[#allocation2 + $0x82] sm:$0xff] }
 0x274   : > { %23632 = vmatmul.mubr.msk.f32.gmra.mrb[80].mxu1 %vm384_vm0, %v29345_v22 }
 0x275   : > { %23634 = vmatprep.mubr.msk.f32.mxu1 %vm384_vm0, %v29347_v23 }
 0x276   : > { %24399 = vmatmul.mubr.msk.f32.gmra.mrb[74].mxu0 %vm384_vm0, %v29333_v20  ;;  %v7302_v20 = vld [vmem:[#allocation2 + $0x8a] sm:$0xff] }
 0x277   : > { %24401 = vmatprep.mubr.msk.f32.mxu0 %vm384_vm0, %v29335_v21  ;;  %v7303_v21 = vld [vmem:[#allocation2 + $0x92] sm:$0xff] }
 0x278   : > { %23635 = vmatmul.mubr.msk.f32.gmra.mrb[82].mxu1 %vm384_vm0, %v29357_v24 }
 0x279   : > { %23637 = vmatprep.mubr.msk.f32.mxu1 %vm384_vm0, %v29359_v25 }
 0x27a   : > { %24402 = vmatmul.mubr.msk.f32.gmra.mrb[76].mxu0 %vm384_vm0, %v29345_v22  ;;  %v7304_v22 = vld [vmem:[#allocation2 + $0xa2] sm:$0xff] }
 0x27b   : > { %24404 = vmatprep.mubr.msk.f32.mxu0 %vm384_vm0, %v29347_v23  ;;  %v7305_v23 = vld [vmem:[#allocation2 + $0xaa] sm:$0xff] }
 0x27c   : > { %23638 = vmatmul.mubr.msk.f32.gmra.mrb[84].mxu1 %vm384_vm0, %v29369_v26 }
 0x27d   : > { %23640 = vmatprep.mubr.msk.f32.mxu1 %vm384_vm0, %v29371_v27 }
 0x27e   : > { %24405 = vmatmul.mubr.msk.f32.gmra.mrb[78].mxu0 %vm384_vm0, %v29357_v24  ;;  %v7306_v24 = vld [vmem:[#allocation2 + $0xb2] sm:$0xff] }
 0x27f   : > { %24407 = vmatprep.mubr.msk.f32.mxu0 %vm384_vm0, %v29359_v25  ;;  %v7307_v25 = vld [vmem:[#allocation2 + $0xba] sm:$0xff] }
 0x280   : > { %23641 = vmatmul.mubr.msk.f32.gmra.mrb[86].mxu1 %vm384_vm0, %v29381_v28 }
 0x281   : > { %23643 = vmatprep.mubr.msk.f32.mxu1 %vm384_vm0, %v29383_v29 }
 0x282   : > { %24408 = vmatmul.mubr.msk.f32.gmra.mrb[80].mxu0 %vm384_vm0, %v29369_v26  ;;  %v7308_v26 = vld [vmem:[#allocation2 + $0xca] sm:$0xff] }
 0x283   : > { %24410 = vmatprep.mubr.msk.f32.mxu0 %vm384_vm0, %v29371_v27  ;;  %v7309_v27 = vld [vmem:[#allocation2 + $0xd2] sm:$0xff] }
 0x284   : > { %23644 = vmatmul.mubr.msk.f32.gmra.mrb[88].mxu1 %vm384_vm0, %v29393_v30 }
 0x285   : > { %23646 = vmatprep.mubr.msk.f32.mxu1 %vm384_vm0, %v29395_v31 }
 0x286   : > { %24411 = vmatmul.mubr.msk.f32.gmra.mrb[82].mxu0 %vm384_vm0, %v29381_v28  ;;  %v7310_v28 = vld [vmem:[#allocation2 + $0xda] sm:$0xff] }
 0x287   : > { %24413 = vmatprep.mubr.msk.f32.mxu0 %vm384_vm0, %v29383_v29  ;;  %v7311_v29 = vld [vmem:[#allocation2 + $0xe2] sm:$0xff] }
 0x288   : > { %23647 = vmatmul.mubr.msk.f32.gmra.mrb[90].mxu1 %vm384_vm0, %v29405_v32 }
 0x289   : > { %23649 = vmatprep.mubr.msk.f32.mxu1 %vm384_vm0, %v29407_v33 }
 0x28a   : > { %24414 = vmatmul.mubr.msk.f32.gmra.mrb[84].mxu0 %vm384_vm0, %v29393_v30  ;;  %v7312_v30 = vld [vmem:[#allocation2 + $0xf2] sm:$0xff] }
 0x28b   : > { %24416 = vmatprep.mubr.msk.f32.mxu0 %vm384_vm0, %v29395_v31  ;;  %v7313_v31 = vld [vmem:[#allocation2 + $0xfa] sm:$0xff] }
 0x28c   : > { %23650 = vmatmul.mubr.msk.f32.gmra.mrb[92].mxu1 %vm384_vm0, %v29417_v34 }
 0x28d   : > { %23652 = vmatprep.mubr.msk.f32.mxu1 %vm384_vm0, %v29419_v35 }
 0x28e   : > { %24417 = vmatmul.mubr.msk.f32.gmra.mrb[86].mxu0 %vm384_vm0, %v29405_v32  ;;  %v7314_v32 = vld [vmem:[#allocation2 + $0x102] sm:$0xff] }
 0x28f   : > { %24419 = vmatprep.mubr.msk.f32.mxu0 %vm384_vm0, %v29407_v33  ;;  %v7315_v33 = vld [vmem:[#allocation2 + $0x10a] sm:$0xff] }
 0x290   : > { %23653 = vmatmul.mubr.msk.f32.gmra.mrb[94].mxu1 %vm384_vm0, %v29429_v36 }
 0x291   : > { %23655 = vmatprep.mubr.msk.f32.mxu1 %vm384_vm0, %v29431_v37 }
 0x292   : > { %24420 = vmatmul.mubr.msk.f32.gmra.mrb[88].mxu0 %vm384_vm0, %v29417_v34  ;;  %v7316_v34 = vld [vmem:[#allocation2 + $0x11a] sm:$0xff] }
 0x293   : > { %24422 = vmatprep.mubr.msk.f32.mxu0 %vm384_vm0, %v29419_v35  ;;  %v7317_v35 = vld [vmem:[#allocation2 + $0x122] sm:$0xff] }
 0x294   : > { %23656 = vmatmul.mubr.msk.f32.gmra.mrb[96].mxu1 %vm384_vm0, %v29441_v38 }
 0x295   : > { %23658 = vmatprep.mubr.msk.f32.mxu1 %vm384_vm0, %v29443_v39 }
 0x296   : > { %24423 = vmatmul.mubr.msk.f32.gmra.mrb[90].mxu0 %vm384_vm0, %v29429_v36  ;;  %v7318_v36 = vld [vmem:[#allocation2 + $0x12a] sm:$0xff] }
 0x297   : > { %24425 = vmatprep.mubr.msk.f32.mxu0 %vm384_vm0, %v29431_v37  ;;  %v7319_v37 = vld [vmem:[#allocation2 + $0x132] sm:$0xff] }
 0x298   : > { %23659 = vmatmul.mubr.msk.f32.gmra.mrb[98].mxu1 %vm384_vm0, %v29453_v40 }
 0x299   : > { %23661 = vmatprep.mubr.msk.f32.mxu1 %vm384_vm0, %v29455_v41 }
 0x29a   : > { %24426 = vmatmul.mubr.msk.f32.gmra.mrb[92].mxu0 %vm384_vm0, %v29441_v38  ;;  %v7320_v38 = vld [vmem:[#allocation2 + $0x142] sm:$0xff] }
 0x29b   : > { %24428 = vmatprep.mubr.msk.f32.mxu0 %vm384_vm0, %v29443_v39  ;;  %v7321_v39 = vld [vmem:[#allocation2 + $0x14a] sm:$0xff] }
 0x29c   : > { %23662 = vmatmul.mubr.msk.f32.gmra.mrb[100].mxu1 %vm384_vm0, %v29465_v42 }
 0x29d   : > { %23664 = vmatprep.mubr.msk.f32.mxu1 %vm384_vm0, %v29467_v43 }
 0x29e   : > { %24429 = vmatmul.mubr.msk.f32.gmra.mrb[94].mxu0 %vm384_vm0, %v29453_v40  ;;  %v7322_v40 = vld [vmem:[#allocation2 + $0x152] sm:$0xff] }
 0x29f   : > { %24431 = vmatprep.mubr.msk.f32.mxu0 %vm384_vm0, %v29455_v41  ;;  %v7323_v41 = vld [vmem:[#allocation2 + $0x15a] sm:$0xff] }
 0x2a0   : > { %23665 = vmatmul.mubr.msk.f32.gmra.mrb[102].mxu1 %vm384_vm0, %v29477_v44 }
 0x2a1   : > { %23667 = vmatprep.mubr.msk.f32.mxu1 %vm384_vm0, %v29479_v45 }
 0x2a2   : > { %24432 = vmatmul.mubr.msk.f32.gmra.mrb[96].mxu0 %vm384_vm0, %v29465_v42  ;;  %v7324_v42 = vld [vmem:[#allocation2 + $0x16a] sm:$0xff] }
 0x2a3   : > { %24434 = vmatprep.mubr.msk.f32.mxu0 %vm384_vm0, %v29467_v43  ;;  %v7325_v43 = vld [vmem:[#allocation2 + $0x172] sm:$0xff] }
 0x2a4   : > { %23668 = vmatmul.mubr.msk.f32.gmra.mrb[104].mxu1 %vm384_vm0, %v29489_v46 }
 0x2a5   : > { %23670 = vmatprep.mubr.msk.f32.mxu1 %vm384_vm0, %v29491_v47 }
 0x2a6   : > { %24435 = vmatmul.mubr.msk.f32.gmra.mrb[98].mxu0 %vm384_vm0, %v29477_v44  ;;  %v7326_v44 = vld [vmem:[#allocation2 + $0x17a] sm:$0xff] }
 0x2a7   : > { %24437 = vmatprep.mubr.msk.f32.mxu0 %vm384_vm0, %v29479_v45  ;;  %v7327_v45 = vld [vmem:[#allocation2 + $0x182] sm:$0xff] }
 0x2a8   : > { %23671 = vmatmul.mubr.msk.f32.gmra.mrb[106].mxu1 %vm384_vm0, %v29501_v48 }
 0x2a9   : > { %23673 = vmatprep.mubr.msk.f32.mxu1 %vm384_vm0, %v29503_v49 }
 0x2aa   : > { %24438 = vmatmul.mubr.msk.f32.gmra.mrb[100].mxu0 %vm384_vm0, %v29489_v46  ;;  %v7328_v46 = vld [vmem:[#allocation2 + $0x192] sm:$0xff] }
 0x2ab   : > { %24440 = vmatprep.mubr.msk.f32.mxu0 %vm384_vm0, %v29491_v47  ;;  %v7329_v47 = vld [vmem:[#allocation2 + $0x19a] sm:$0xff] }
 0x2ac   : > { %23674 = vmatmul.mubr.msk.f32.gmra.mrb[108].mxu1 %vm384_vm0, %v29513_v50 }
 0x2ad   : > { %23676 = vmatprep.mubr.msk.f32.mxu1 %vm384_vm0, %v29515_v51 }
 0x2ae   : > { %24441 = vmatmul.mubr.msk.f32.gmra.mrb[102].mxu0 %vm384_vm0, %v29501_v48  ;;  %v7330_v48 = vld [vmem:[#allocation2 + $0x1a2] sm:$0xff] }
 0x2af   : > { %24443 = vmatprep.mubr.msk.f32.mxu0 %vm384_vm0, %v29503_v49  ;;  %v7331_v49 = vld [vmem:[#allocation2 + $0x1aa] sm:$0xff] }
 0x2b0   : > { %23677 = vmatmul.mubr.msk.f32.gmra.mrb[110].mxu1 %vm384_vm0, %v29525_v52 }
 0x2b1   : > { %23679 = vmatprep.mubr.msk.f32.mxu1 %vm384_vm0, %v29527_v53 }
 0x2b2   : > { %24444 = vmatmul.mubr.msk.f32.gmra.mrb[104].mxu0 %vm384_vm0, %v29513_v50  ;;  %v7332_v50 = vld [vmem:[#allocation2 + $0x1ba] sm:$0xff] }
 0x2b3   : > { %24446 = vmatprep.mubr.msk.f32.mxu0 %vm384_vm0, %v29515_v51  ;;  %v7333_v51 = vld [vmem:[#allocation2 + $0x1c2] sm:$0xff] }
 0x2b4   : > { %23680 = vmatmul.mubr.msk.f32.gmra.mrb[112].mxu1 %vm384_vm0, %v29537_v54 }
 0x2b5   : > { %23682 = vmatprep.mubr.msk.f32.mxu1 %vm384_vm0, %v29539_v55 }
 0x2b6   : > { %24447 = vmatmul.mubr.msk.f32.gmra.mrb[106].mxu0 %vm384_vm0, %v29525_v52  ;;  %v7334_v52 = vld [vmem:[#allocation2 + $0x1ca] sm:$0xff] }
 0x2b7   : > { %24449 = vmatprep.mubr.msk.f32.mxu0 %vm384_vm0, %v29527_v53  ;;  %v7335_v53 = vld [vmem:[#allocation2 + $0x1d2] sm:$0xff] }
 0x2b8   : > { %23683 = vmatmul.mubr.msk.f32.gmra.mrb[114].mxu1 %vm384_vm0, %v29549_v56 }
 0x2b9   : > { %23685 = vmatprep.mubr.msk.f32.mxu1 %vm384_vm0, %v29551_v57 }
 0x2ba   : > { %24450 = vmatmul.mubr.msk.f32.gmra.mrb[108].mxu0 %vm384_vm0, %v29537_v54  ;;  %v7336_v54 = vld [vmem:[#allocation2 + $0x1e2] sm:$0xff] }
 0x2bb   : > { %24452 = vmatprep.mubr.msk.f32.mxu0 %vm384_vm0, %v29539_v55  ;;  %v7337_v55 = vld [vmem:[#allocation2 + $0x1ea] sm:$0xff] }
 0x2bc   : > { %23686 = vmatmul.mubr.msk.f32.gmra.mrb[116].mxu1 %vm384_vm0, %v29561_v61 }
 0x2bd   : > { %23688 = vmatprep.mubr.msk.f32.mxu1 %vm384_vm0, %v29563_v62 }
 0x2be   : > { %24453 = vmatmul.mubr.msk.f32.gmra.mrb[110].mxu0 %vm384_vm0, %v29549_v56  ;;  %v7338_v56 = vld [vmem:[#allocation2 + $0x1f2] sm:$0xff] }
 0x2bf   : > { %24455 = vmatprep.mubr.msk.f32.mxu0 %vm384_vm0, %v29551_v57  ;;  %v7339_v57 = vld [vmem:[#allocation2 + $0x1fa] sm:$0xff] }
 0x2c0   : > { %23689 = vmatmul.mubr.msk.f32.gmra.mrb[118].mxu1 %vm384_vm0, %v29573_v63 }
 0x2c1   : > { %23691 = vmatprep.mubr.msk.f32.mxu1 %vm384_vm0, %v29575_v0 }
 0x2c2   : > { %24456 = vmatmul.mubr.msk.f32.gmra.mrb[112].mxu0 %vm384_vm0, %v29561_v61  ;;  %v7340_v61 = vld [vmem:[#allocation2 + $0x20a] sm:$0xff] }
 0x2c3   : > { %24458 = vmatprep.mubr.msk.f32.mxu0 %vm384_vm0, %v29563_v62  ;;  %v7341_v62 = vld [vmem:[#allocation2 + $0x212] sm:$0xff] }
 0x2c4   : > { %23692 = vmatmul.mubr.msk.f32.gmra.mrb[120].mxu1 %vm384_vm0, %v29585_v1 }
 0x2c5   : > { %23694 = vmatprep.mubr.msk.f32.mxu1 %vm384_vm0, %v29587_v3 }
 0x2c6   : > { %24459 = vmatmul.mubr.msk.f32.gmra.mrb[114].mxu0 %vm384_vm0, %v29573_v63  ;;  %v7342_v63 = vld [vmem:[#allocation2 + $0x21a] sm:$0xff] }
 0x2c7   : > { %24461 = vmatprep.mubr.msk.f32.mxu0 %vm384_vm0, %v29575_v0  ;;  %v7343_v0 = vld [vmem:[#allocation2 + $0x222] sm:$0xff] }
 0x2c8   : > { %23695 = vmatmul.mubr.msk.f32.gmra.mrb[122].mxu1 %vm384_vm0, %v29597_v4 }
 0x2c9   : > { %23697 = vmatprep.mubr.msk.f32.mxu1 %vm384_vm0, %v29599_v58 }
 0x2ca   : > { %24462 = vmatmul.mubr.msk.f32.gmra.mrb[116].mxu0 %vm384_vm0, %v29585_v1  ;;  %v7344_v1 = vld [vmem:[#allocation2 + $0x232] sm:$0xff] }
 0x2cb   : > { %24464 = vmatprep.mubr.msk.f32.mxu0 %vm384_vm0, %v29587_v3  ;;  %v942_v3 = vld [vmem:[%s33565_s1] sm:$0xff] }
 0x2cc   : > { %23698 = vmatmul.mubr.msk.f32.gmra.mrb[124].mxu1 %vm384_vm0, %v29609_v6  ;;  %23703 = vmatprep.subr.mxu1 %v942_v3 }
 0x2cd   : > { %23700 = vmatprep.mubr.msk.f32.mxu1 %vm384_vm0, %v29611_v59  ;;  %23704 = vmatpush3.msra.mxu1 %v942_v3  ;;  %v29934_v3 = vld [vmem:[#allocation2 + $0x128] sm:$0xff] }
 0x2ce   : > { %24465 = vmatmul.mubr.msk.f32.gmra.mrb[118].mxu0 %vm384_vm0, %v29597_v4  ;;  %v814_v4 = vld [vmem:[#allocation2] sm:$0xff] }
 0x2cf   : > { %24467 = vmatprep.mubr.msk.f32.mxu0 %vm384_vm0, %v29599_v58  ;;  %v815_v58 = vld [vmem:[#allocation2 + $0x8] sm:$0xff] }
 0x2d0   : > { %23701 = vmatmul.mubr.msk.f32.gmra.mrb[126].mxu1 %vm384_vm0, %v29621_v7 }
 0x2d1   : > { %23705 = vmatprep.mubr.msk.f32.mxu1 %vm384_vm0, %v814_v4  ;;  %v29936_v4 = vld [vmem:[#allocation2 + $0x130] sm:$0xff] }
 0x2d2   : > { %24468 = vmatmul.mubr.msk.f32.gmra.mrb[120].mxu0 %vm384_vm0, %v29609_v6  ;;  %v7345_v6 = vld [vmem:[#allocation2 + $0x23a] sm:$0xff] }
 0x2d3   : > { %24470 = vmatprep.mubr.msk.f32.mxu0 %vm384_vm0, %v29611_v59  ;;  %v7346_v59 = vld [vmem:[#allocation2 + $0x242] sm:$0xff] }
 0x2d4   : > { %23706 = vmatmul.mubr.msk.f32.vlgmr.msra.gmra.mrb[0].mxu1 %vm384_vm0, %v815_v58  ;;  %v7375_v58 = vld [vmem:[#allocation2 + $0x362] sm:$0xff] }
 0x2d6   : > { %24471 = vmatmul.mubr.msk.f32.gmra.mrb[122].mxu0 %vm384_vm0, %v29621_v7  ;;  %v27985_v7 = vld [vmem:[%s33565_s1 + $0x10] sm:$0xff] }
 0x2d7   : > { %24473 = vmatprep.mubr.msk.f32.mxu0 %vm384_vm0, %v6069_v8  ;;  %26566 = vmatprep.subr.mxu1 %v27985_v7  ;;  %v816_v8 = vld [vmem:[#allocation2 + $0x10] sm:$0xff] }
 0x2d8   : > { %26567 = vmatpush3.msra.mxu1 %v27985_v7  ;;  %23708 = vmatprep.mubr.msk.f32.mxu1 %vm384_vm0, %v816_v8  ;;  %v29946_v7 = vld [vmem:[#allocation2 + $0x148] sm:$0xff]  ;;  %v7377_v8 = vld [vmem:[#allocation2 + $0x37a] sm:$0xff] }
 0x2da   : > { %24474 = vmatmul.mubr.msk.f32.gmra.mrb[124].mxu0 %vm384_vm0, %v6070_v10  ;;  %v817_v10 = vld [vmem:[#allocation2 + $0x18] sm:$0xff] }
 0x2db   : > { %24476 = vmatprep.mubr.msk.f32.mxu0 %vm384_vm0, %v6071_v11  ;;  %v7347_v11 = vld [vmem:[#allocation2 + $0x24a] sm:$0xff]  ;;  %23709 = vmatmul.mubr.msk.f32.gmra.mrb[2].mxu1 %vm384_vm0, %v817_v10  ;;  %v7378_v10 = vld [vmem:[#allocation2 + $0x382] sm:$0xff] }
 0x2de   : > { %24477 = vmatmul.mubr.msk.f32.gmra.mrb[126].mxu0 %vm384_vm0, %v6072_v12  ;;  %v7348_v12 = vld [vmem:[#allocation2 + $0x25a] sm:$0xff] }
 0x2df   : > { %24481 = vmatprep.mubr.msk.f32.mxu0 %vm384_vm0, %v7292_v60  ;;  %v818_v60 = vld [vmem:[#allocation2 + $0x28] sm:$0xff] }
 0x2e0   : > { %23711 = vmatprep.mubr.msk.f32.mxu1 %vm384_vm0, %v818_v60  ;;  %v7379_v60 = vld [vmem:[#allocation2 + $0x38a] sm:$0xff] }
 0x2e2   : > { %24482 = vmatmul.mubr.msk.f32.vlgmr.msra.gmra.mrb[0].mxu0 %vm384_vm0, %v7293_v5  ;;  %v819_v5 = vld [vmem:[#allocation2 + $0x30] sm:$0xff] }
 0x2e3   : > { %24674 = vmatpush3.msra.mxu0 %v29272_v13  ;;  %24484 = vmatprep.mubr.msk.f32.mxu0 %vm384_vm0, %v7294_v14  ;;  %v7299_v13 = vld [vmem:[#allocation2 + $0x6a] sm:$0xff]  ;;  %v7349_v14 = vld [vmem:[#allocation2 + $0x262] sm:$0xff] }
 0x2e4   : > { %23712 = vmatmul.mubr.msk.f32.gmra.mrb[4].mxu1 %vm384_vm0, %v819_v5  ;;  %v7380_v5 = vld [vmem:[#allocation2 + $0x39a] sm:$0xff] }
 0x2e6   : > { %24485 = vmatmul.mubr.msk.f32.gmra.mrb[2].mxu0 %vm384_vm0, %v7295_v15  ;;  %v7350_v15 = vld [vmem:[#allocation2 + $0x26a] sm:$0xff] }
 0x2e7   : > { %24487 = vmatprep.mubr.msk.f32.mxu0 %vm384_vm0, %v7296_v16  ;;  %v820_v16 = vld [vmem:[#allocation2 + $0x38] sm:$0xff] }
 0x2e8   : > { %23714 = vmatprep.mubr.msk.f32.mxu1 %vm384_vm0, %v820_v16  ;;  %v7381_v16 = vld [vmem:[#allocation2 + $0x3a2] sm:$0xff] }
 0x2ea   : > { %24488 = vmatmul.mubr.msk.f32.gmra.mrb[4].mxu0 %vm384_vm0, %v7297_v17  ;;  %v821_v17 = vld [vmem:[#allocation2 + $0x40] sm:$0xff] }
 0x2eb   : > { %24490 = vmatprep.mubr.msk.f32.mxu0 %vm384_vm0, %v7298_v9  ;;  %v7351_v9 = vld [vmem:[#allocation2 + $0x272] sm:$0xff]  ;;  %23715 = vmatmul.mubr.msk.f32.gmra.mrb[6].mxu1 %vm384_vm0, %v821_v17  ;;  %v7382_v17 = vld [vmem:[#allocation2 + $0x3aa] sm:$0xff] }
 0x2ee   : > { %24491 = vmatmul.mubr.msk.f32.gmra.mrb[6].mxu0 %vm384_vm0, %v7299_v13  ;;  %v7352_v13 = vld [vmem:[#allocation2 + $0x282] sm:$0xff] }
 0x2ef   : > { %24493 = vmatprep.mubr.msk.f32.mxu0 %vm384_vm0, %v7300_v18  ;;  %v29818_v18 = vld [vmem:[#allocation2 + $0x50] sm:$0xff] }
 0x2f0   : > { %23717 = vmatprep.mubr.msk.f32.mxu1 %vm384_vm0, %v29818_v18 }
 0x2f2   : > { %24494 = vmatmul.mubr.msk.f32.gmra.mrb[8].mxu0 %vm384_vm0, %v7301_v19  ;;  %v29820_v19 = vld [vmem:[#allocation2 + $0x58] sm:$0xff] }
 0x2f3   : > { %24496 = vmatprep.mubr.msk.f32.mxu0 %vm384_vm0, %v7302_v20  ;;  %v7353_v20 = vld [vmem:[#allocation2 + $0x28a] sm:$0xff]  ;;  %23718 = vmatmul.mubr.msk.f32.gmra.mrb[8].mxu1 %vm384_vm0, %v29820_v19 }
 0x2f6   : > { %24497 = vmatmul.mubr.msk.f32.gmra.mrb[10].mxu0 %vm384_vm0, %v7303_v21  ;;  %v7354_v21 = vld [vmem:[#allocation2 + $0x292] sm:$0xff] }
 0x2f7   : > { %24499 = vmatprep.mubr.msk.f32.mxu0 %vm384_vm0, %v7304_v22  ;;  %v29828_v22 = vld [vmem:[#allocation2 + $0x60] sm:$0xff] }
 0x2f8   : > { %23720 = vmatprep.mubr.msk.f32.mxu1 %vm384_vm0, %v29828_v22 }
 0x2fa   : > { %24500 = vmatmul.mubr.msk.f32.gmra.mrb[12].mxu0 %vm384_vm0, %v7305_v23  ;;  %v29830_v23 = vld [vmem:[#allocation2 + $0x68] sm:$0xff] }
 0x2fb   : > { %24502 = vmatprep.mubr.msk.f32.mxu0 %vm384_vm0, %v7306_v24  ;;  %v7355_v24 = vld [vmem:[#allocation2 + $0x29a] sm:$0xff]  ;;  %23721 = vmatmul.mubr.msk.f32.gmra.mrb[10].mxu1 %vm384_vm0, %v29830_v23 }
 0x2fe   : > { %24503 = vmatmul.mubr.msk.f32.gmra.mrb[14].mxu0 %vm384_vm0, %v7307_v25  ;;  %v7356_v25 = vld [vmem:[#allocation2 + $0x2aa] sm:$0xff] }
 0x2ff   : > { %24505 = vmatprep.mubr.msk.f32.mxu0 %vm384_vm0, %v7308_v26  ;;  %v29838_v26 = vld [vmem:[#allocation2 + $0x78] sm:$0xff] }
 0x300   : > { %23723 = vmatprep.mubr.msk.f32.mxu1 %vm384_vm0, %v29838_v26 }
 0x302   : > { %24506 = vmatmul.mubr.msk.f32.gmra.mrb[16].mxu0 %vm384_vm0, %v7309_v27  ;;  %v29840_v27 = vld [vmem:[#allocation2 + $0x80] sm:$0xff] }
 0x303   : > { %24508 = vmatprep.mubr.msk.f32.mxu0 %vm384_vm0, %v7310_v28  ;;  %v7357_v28 = vld [vmem:[#allocation2 + $0x2b2] sm:$0xff]  ;;  %23724 = vmatmul.mubr.msk.f32.gmra.mrb[12].mxu1 %vm384_vm0, %v29840_v27 }
 0x306   : > { %24509 = vmatmul.mubr.msk.f32.gmra.mrb[18].mxu0 %vm384_vm0, %v7311_v29  ;;  %v29848_v29 = vld [vmem:[%s33565_s1 + $0x38] sm:$0xff] }
 0x307   : > { %24511 = vmatprep.mubr.msk.f32.mxu0 %vm384_vm0, %v7312_v30  ;;  %v7358_v30 = vld [vmem:[#allocation2 + $0x2ba] sm:$0xff]  ;;  %24867 = vmatprep.subr.mxu0 %v29848_v29 }
 0x30a   : > { %24512 = vmatmul.mubr.msk.f32.gmra.mrb[20].mxu0 %vm384_vm0, %v7313_v31  ;;  %v7359_v31 = vld [vmem:[#allocation2 + $0x2c2] sm:$0xff] }
 0x30b   : > { %24514 = vmatprep.mubr.msk.f32.mxu0 %vm384_vm0, %v7314_v32  ;;  %v29855_v32 = vld [vmem:[#allocation2 + $0x88] sm:$0xff] }
 0x30c   : > { %23726 = vmatprep.mubr.msk.f32.mxu1 %vm384_vm0, %v29855_v32 }
 0x30e   : > { %24515 = vmatmul.mubr.msk.f32.gmra.mrb[22].mxu0 %vm384_vm0, %v7315_v33  ;;  %v29857_v33 = vld [vmem:[#allocation2 + $0x90] sm:$0xff] }
 0x30f   : > { %24517 = vmatprep.mubr.msk.f32.mxu0 %vm384_vm0, %v7316_v34  ;;  %v7360_v34 = vld [vmem:[#allocation2 + $0x2d2] sm:$0xff]  ;;  %23727 = vmatmul.mubr.msk.f32.gmra.mrb[14].mxu1 %vm384_vm0, %v29857_v33 }
 0x312   : > { %24518 = vmatmul.mubr.msk.f32.gmra.mrb[24].mxu0 %vm384_vm0, %v7317_v35  ;;  %v29864_v35 = vld [vmem:[#allocation2 + $0xa0] sm:$0xff] }
 0x313   : > { %24520 = vmatprep.mubr.msk.f32.mxu0 %vm384_vm0, %v7318_v36  ;;  %v29866_v36 = vld [vmem:[#allocation2 + $0xa8] sm:$0xff]  ;;  %23729 = vmatprep.mubr.msk.f32.mxu1 %vm384_vm0, %v29864_v35 }
 0x314   : > { %23730 = vmatmul.mubr.msk.f32.gmra.mrb[16].mxu1 %vm384_vm0, %v29866_v36 }
 0x316   : > { %24521 = vmatmul.mubr.msk.f32.gmra.mrb[26].mxu0 %vm384_vm0, %v7319_v37  ;;  %v7361_v37 = vld [vmem:[#allocation2 + $0x2da] sm:$0xff] }
 0x317   : > { %24523 = vmatprep.mubr.msk.f32.mxu0 %vm384_vm0, %v7320_v38  ;;  %v7362_v38 = vld [vmem:[#allocation2 + $0x2e2] sm:$0xff] }
 0x31a   : > { %24524 = vmatmul.mubr.msk.f32.gmra.mrb[28].mxu0 %vm384_vm0, %v7321_v39  ;;  %v29874_v39 = vld [vmem:[#allocation2 + $0xb0] sm:$0xff] }
 0x31b   : > { %24526 = vmatprep.mubr.msk.f32.mxu0 %vm384_vm0, %v7322_v40  ;;  %v29876_v40 = vld [vmem:[#allocation2 + $0xb8] sm:$0xff]  ;;  %23732 = vmatprep.mubr.msk.f32.mxu1 %vm384_vm0, %v29874_v39 }
 0x31c   : > { %23733 = vmatmul.mubr.msk.f32.gmra.mrb[18].mxu1 %vm384_vm0, %v29876_v40 }
 0x31e   : > { %24527 = vmatmul.mubr.msk.f32.gmra.mrb[30].mxu0 %vm384_vm0, %v7323_v41  ;;  %v7363_v41 = vld [vmem:[#allocation2 + $0x2ea] sm:$0xff] }
 0x31f   : > { %24529 = vmatprep.mubr.msk.f32.mxu0 %vm384_vm0, %v7324_v42  ;;  %v7364_v42 = vld [vmem:[#allocation2 + $0x2fa] sm:$0xff] }
 0x322   : > { %24530 = vmatmul.mubr.msk.f32.gmra.mrb[32].mxu0 %vm384_vm0, %v7325_v43  ;;  %v29884_v43 = vld [vmem:[#allocation2 + $0xc8] sm:$0xff] }
 0x323   : > { %24532 = vmatprep.mubr.msk.f32.mxu0 %vm384_vm0, %v7326_v44  ;;  %v29886_v44 = vld [vmem:[#allocation2 + $0xd0] sm:$0xff]  ;;  %23735 = vmatprep.mubr.msk.f32.mxu1 %vm384_vm0, %v29884_v43 }
 0x324   : > { %23736 = vmatmul.mubr.msk.f32.gmra.mrb[20].mxu1 %vm384_vm0, %v29886_v44 }
 0x326   : > { %24533 = vmatmul.mubr.msk.f32.gmra.mrb[34].mxu0 %vm384_vm0, %v7327_v45  ;;  %v7365_v45 = vld [vmem:[#allocation2 + $0x302] sm:$0xff] }
 0x327   : > { %24535 = vmatprep.mubr.msk.f32.mxu0 %vm384_vm0, %v7328_v46  ;;  %v7366_v46 = vld [vmem:[#allocation2 + $0x30a] sm:$0xff] }
 0x32a   : > { %24536 = vmatmul.mubr.msk.f32.gmra.mrb[36].mxu0 %vm384_vm0, %v7329_v47  ;;  %v29894_v47 = vld [vmem:[#allocation2 + $0xd8] sm:$0xff] }
 0x32b   : > { %24538 = vmatprep.mubr.msk.f32.mxu0 %vm384_vm0, %v7330_v48  ;;  %v29896_v48 = vld [vmem:[#allocation2 + $0xe0] sm:$0xff]  ;;  %23738 = vmatprep.mubr.msk.f32.mxu1 %vm384_vm0, %v29894_v47 }
 0x32c   : > { %23739 = vmatmul.mubr.msk.f32.gmra.mrb[22].mxu1 %vm384_vm0, %v29896_v48 }
 0x32e   : > { %24539 = vmatmul.mubr.msk.f32.gmra.mrb[38].mxu0 %vm384_vm0, %v7331_v49  ;;  %v7367_v49 = vld [vmem:[#allocation2 + $0x312] sm:$0xff] }
 0x32f   : > { %24541 = vmatprep.mubr.msk.f32.mxu0 %vm384_vm0, %v7332_v50  ;;  %v7368_v50 = vld [vmem:[#allocation2 + $0x322] sm:$0xff] }
 0x332   : > { %24542 = vmatmul.mubr.msk.f32.gmra.mrb[40].mxu0 %vm384_vm0, %v7333_v51  ;;  %v29904_v51 = vld [vmem:[#allocation2 + $0xf0] sm:$0xff] }
 0x333   : > { %24544 = vmatprep.mubr.msk.f32.mxu0 %vm384_vm0, %v7334_v52  ;;  %v29906_v52 = vld [vmem:[#allocation2 + $0xf8] sm:$0xff]  ;;  %23741 = vmatprep.mubr.msk.f32.mxu1 %vm384_vm0, %v29904_v51 }
 0x334   : > { %23742 = vmatmul.mubr.msk.f32.gmra.mrb[24].mxu1 %vm384_vm0, %v29906_v52 }
 0x336   : > { %24545 = vmatmul.mubr.msk.f32.gmra.mrb[42].mxu0 %vm384_vm0, %v7335_v53  ;;  %v7369_v53 = vld [vmem:[#allocation2 + $0x32a] sm:$0xff] }
 0x337   : > { %24547 = vmatprep.mubr.msk.f32.mxu0 %vm384_vm0, %v7336_v54  ;;  %v7370_v54 = vld [vmem:[#allocation2 + $0x332] sm:$0xff] }
 0x33a   : > { %24548 = vmatmul.mubr.msk.f32.gmra.mrb[44].mxu0 %vm384_vm0, %v7337_v55  ;;  %v29914_v55 = vld [vmem:[#allocation2 + $0x100] sm:$0xff] }
 0x33b   : > { %24550 = vmatprep.mubr.msk.f32.mxu0 %vm384_vm0, %v7338_v56  ;;  %v29916_v56 = vld [vmem:[#allocation2 + $0x108] sm:$0xff]  ;;  %23744 = vmatprep.mubr.msk.f32.mxu1 %vm384_vm0, %v29914_v55 }
 0x33c   : > { %23745 = vmatmul.mubr.msk.f32.gmra.mrb[26].mxu1 %vm384_vm0, %v29916_v56 }
 0x33e   : > { %24551 = vmatmul.mubr.msk.f32.gmra.mrb[46].mxu0 %vm384_vm0, %v7339_v57  ;;  %v7371_v57 = vld [vmem:[#allocation2 + $0x33a] sm:$0xff] }
 0x33f   : > { %24553 = vmatprep.mubr.msk.f32.mxu0 %vm384_vm0, %v7340_v61  ;;  %v7372_v61 = vld [vmem:[#allocation2 + $0x34a] sm:$0xff] }
 0x342   : > { %24554 = vmatmul.mubr.msk.f32.gmra.mrb[48].mxu0 %vm384_vm0, %v7341_v62  ;;  %v29924_v62 = vld [vmem:[#allocation2 + $0x118] sm:$0xff] }
 0x343   : > { %24556 = vmatprep.mubr.msk.f32.mxu0 %vm384_vm0, %v7342_v63  ;;  %v29926_v63 = vld [vmem:[#allocation2 + $0x120] sm:$0xff]  ;;  %23747 = vmatprep.mubr.msk.f32.mxu1 %vm384_vm0, %v29924_v62 }
 0x344   : > { %23748 = vmatmul.mubr.msk.f32.gmra.mrb[28].mxu1 %vm384_vm0, %v29926_v63 }
 0x345   : > { %23750 = vmatprep.mubr.msk.f32.mxu1 %vm384_vm0, %v29934_v3 }
 0x346   : > { %24557 = vmatmul.mubr.msk.f32.gmra.mrb[50].mxu0 %vm384_vm0, %v7343_v0  ;;  %v7373_v0 = vld [vmem:[#allocation2 + $0x352] sm:$0xff] }
 0x347   : > { %24559 = vmatprep.mubr.msk.f32.mxu0 %vm384_vm0, %v7344_v1  ;;  %v7374_v1 = vld [vmem:[#allocation2 + $0x35a] sm:$0xff] }
 0x348   : > { %23751 = vmatmul.mubr.msk.f32.gmra.mrb[30].mxu1 %vm384_vm0, %v29936_v4 }
 0x34a   : > { %24560 = vmatmul.mubr.msk.f32.gmra.mrb[52].mxu0 %vm384_vm0, %v7345_v6  ;;  %v7376_v6 = vld [vmem:[#allocation2 + $0x372] sm:$0xff] }
 0x34b   : > { %24562 = vmatprep.mubr.msk.f32.mxu0 %vm384_vm0, %v7346_v59  ;;  %v29944_v59 = vld [vmem:[#allocation2 + $0x140] sm:$0xff] }
 0x34c   : > { %23753 = vmatprep.mubr.msk.f32.mxu1 %vm384_vm0, %v29944_v59 }
 0x34d   : > { %23754 = vmatmul.mubr.msk.f32.gmra.mrb[32].mxu1 %vm384_vm0, %v29946_v7 }
 0x34e   : > { %24563 = vmatmul.mubr.msk.f32.gmra.mrb[54].mxu0 %vm384_vm0, %v7347_v11  ;;  %v29954_v11 = vld [vmem:[#allocation2 + $0x150] sm:$0xff] }
 0x34f   : > { %24565 = vmatprep.mubr.msk.f32.mxu0 %vm384_vm0, %v7348_v12  ;;  %v29956_v12 = vld [vmem:[#allocation2 + $0x158] sm:$0xff]  ;;  %23756 = vmatprep.mubr.msk.f32.mxu1 %vm384_vm0, %v29954_v11 }
 0x351   : > { %23757 = vmatmul.mubr.msk.f32.gmra.mrb[34].mxu1 %vm384_vm0, %v29956_v12 }
 0x352   : > { %24566 = vmatmul.mubr.msk.f32.gmra.mrb[56].mxu0 %vm384_vm0, %v7349_v14  ;;  %v29964_v14 = vld [vmem:[#allocation2 + $0x168] sm:$0xff] }
 0x353   : > { %24568 = vmatprep.mubr.msk.f32.mxu0 %vm384_vm0, %v7350_v15  ;;  %v29966_v15 = vld [vmem:[#allocation2 + $0x170] sm:$0xff]  ;;  %23759 = vmatprep.mubr.msk.f32.mxu1 %vm384_vm0, %v29964_v14 }
 0x355   : > { %23760 = vmatmul.mubr.msk.f32.gmra.mrb[36].mxu1 %vm384_vm0, %v29966_v15 }
 0x356   : > { %24569 = vmatmul.mubr.msk.f32.gmra.mrb[58].mxu0 %vm384_vm0, %v7351_v9  ;;  %v29974_v9 = vld [vmem:[#allocation2 + $0x178] sm:$0xff] }
 0x357   : > { %24571 = vmatprep.mubr.msk.f32.mxu0 %vm384_vm0, %v7352_v13  ;;  %v29976_v13 = vld [vmem:[#allocation2 + $0x180] sm:$0xff]  ;;  %23762 = vmatprep.mubr.msk.f32.mxu1 %vm384_vm0, %v29974_v9 }
 0x359   : > { %23763 = vmatmul.mubr.msk.f32.gmra.mrb[38].mxu1 %vm384_vm0, %v29976_v13 }
 0x35a   : > { %24572 = vmatmul.mubr.msk.f32.gmra.mrb[60].mxu0 %vm384_vm0, %v7353_v20  ;;  %v7383_v20 = vld [vmem:[#allocation2 + $0x3b2] sm:$0xff] }
 0x35b   : > { %24574 = vmatprep.mubr.msk.f32.mxu0 %vm384_vm0, %v7354_v21  ;;  %v7384_v21 = vld [vmem:[#allocation2 + $0x3c2] sm:$0xff] }
 0x35e   : > { %24575 = vmatmul.mubr.msk.f32.gmra.mrb[62].mxu0 %vm384_vm0, %v7355_v24  ;;  %v29984_v24 = vld [vmem:[#allocation2 + $0x190] sm:$0xff] }
 0x35f   : > { %24577 = vmatprep.mubr.msk.f32.mxu0 %vm384_vm0, %v7356_v25  ;;  %v29986_v25 = vld [vmem:[#allocation2 + $0x198] sm:$0xff]  ;;  %23765 = vmatprep.mubr.msk.f32.mxu1 %vm384_vm0, %v29984_v24 }
 0x360   : > { %23766 = vmatmul.mubr.msk.f32.gmra.mrb[40].mxu1 %vm384_vm0, %v29986_v25 }
 0x362   : > { %24578 = vmatmul.mubr.msk.f32.gmra.mrb[64].mxu0 %vm384_vm0, %v7357_v28  ;;  %v7385_v28 = vld [vmem:[#allocation2 + $0x3ca] sm:$0xff] }
 0x363   : > { %24580 = vmatprep.mubr.msk.f32.mxu0 %vm384_vm0, %v7358_v30  ;;  %v7386_v30 = vld [vmem:[#allocation2 + $0x3d2] sm:$0xff] }
 0x366   : > { %24581 = vmatmul.mubr.msk.f32.gmra.mrb[66].mxu0 %vm384_vm0, %v7359_v31  ;;  %v29994_v31 = vld [vmem:[#allocation2 + $0x1a0] sm:$0xff] }
 0x367   : > { %24583 = vmatprep.mubr.msk.f32.mxu0 %vm384_vm0, %v7360_v34  ;;  %v29996_v34 = vld [vmem:[#allocation2 + $0x1a8] sm:$0xff]  ;;  %23768 = vmatprep.mubr.msk.f32.mxu1 %vm384_vm0, %v29994_v31 }
 0x368   : > { %23769 = vmatmul.mubr.msk.f32.gmra.mrb[42].mxu1 %vm384_vm0, %v29996_v34 }
 0x36a   : > { %24584 = vmatmul.mubr.msk.f32.gmra.mrb[68].mxu0 %vm384_vm0, %v7361_v37  ;;  %v7387_v37 = vld [vmem:[#allocation2 + $0x3da] sm:$0xff] }
 0x36b   : > { %24586 = vmatprep.mubr.msk.f32.mxu0 %vm384_vm0, %v7362_v38  ;;  %v7388_v38 = vld [vmem:[#allocation2 + $0x3ea] sm:$0xff] }
 0x36e   : > { %24587 = vmatmul.mubr.msk.f32.gmra.mrb[70].mxu0 %vm384_vm0, %v7363_v41  ;;  %v30004_v41 = vld [vmem:[#allocation2 + $0x1b8] sm:$0xff] }
 0x36f   : > { %24589 = vmatprep.mubr.msk.f32.mxu0 %vm384_vm0, %v7364_v42  ;;  %v30006_v42 = vld [vmem:[#allocation2 + $0x1c0] sm:$0xff]  ;;  %23771 = vmatprep.mubr.msk.f32.mxu1 %vm384_vm0, %v30004_v41 }
 0x370   : > { %23772 = vmatmul.mubr.msk.f32.gmra.mrb[44].mxu1 %vm384_vm0, %v30006_v42 }
 0x372   : > { %24590 = vmatmul.mubr.msk.f32.gmra.mrb[72].mxu0 %vm384_vm0, %v7365_v45  ;;  %v7389_v45 = vld [vmem:[#allocation2 + $0x3f2] sm:$0xff] }
 0x373   : > { %24592 = vmatprep.mubr.msk.f32.mxu0 %vm384_vm0, %v7366_v46  ;;  %v7390_v46 = vld [vmem:[#allocation2 + $0x3fa] sm:$0xff] }
 0x376   : > { %24593 = vmatmul.mubr.msk.f32.gmra.mrb[74].mxu0 %vm384_vm0, %v7367_v49  ;;  %v30014_v49 = vld [vmem:[#allocation2 + $0x1c8] sm:$0xff] }
 0x377   : > { %24595 = vmatprep.mubr.msk.f32.mxu0 %vm384_vm0, %v7368_v50  ;;  %v30016_v50 = vld [vmem:[#allocation2 + $0x1d0] sm:$0xff]  ;;  %23774 = vmatprep.mubr.msk.f32.mxu1 %vm384_vm0, %v30014_v49 }
 0x378   : > { %23775 = vmatmul.mubr.msk.f32.gmra.mrb[46].mxu1 %vm384_vm0, %v30016_v50 }
 0x37a   : > { %24596 = vmatmul.mubr.msk.f32.gmra.mrb[76].mxu0 %vm384_vm0, %v7369_v53  ;;  %v7391_v53 = vld [vmem:[#allocation2 + $0x402] sm:$0xff] }
 0x37b   : > { %24598 = vmatprep.mubr.msk.f32.mxu0 %vm384_vm0, %v7370_v54  ;;  %v7392_v54 = vld [vmem:[#allocation2 + $0x412] sm:$0xff] }
 0x37e   : > { %24599 = vmatmul.mubr.msk.f32.gmra.mrb[78].mxu0 %vm384_vm0, %v7371_v57  ;;  %v30024_v57 = vld [vmem:[#allocation2 + $0x1e0] sm:$0xff] }
 0x37f   : > { %24601 = vmatprep.mubr.msk.f32.mxu0 %vm384_vm0, %v7372_v61  ;;  %v30026_v61 = vld [vmem:[#allocation2 + $0x1e8] sm:$0xff]  ;;  %23777 = vmatprep.mubr.msk.f32.mxu1 %vm384_vm0, %v30024_v57 }
 0x380   : > { %23778 = vmatmul.mubr.msk.f32.gmra.mrb[48].mxu1 %vm384_vm0, %v30026_v61 }
 0x382   : > { %24602 = vmatmul.mubr.msk.f32.gmra.mrb[80].mxu0 %vm384_vm0, %v7373_v0  ;;  %v7393_v0 = vld [vmem:[#allocation2 + $0x41a] sm:$0xff] }
 0x383   : > { %24604 = vmatprep.mubr.msk.f32.mxu0 %vm384_vm0, %v7374_v1  ;;  %v7394_v1 = vld [vmem:[#allocation2 + $0x422] sm:$0xff] }
 0x386   : > { %24605 = vmatmul.mubr.msk.f32.gmra.mrb[82].mxu0 %vm384_vm0, %v7375_v58  ;;  %v30034_v58 = vld [vmem:[#allocation2 + $0x1f0] sm:$0xff] }
 0x387   : > { %24607 = vmatprep.mubr.msk.f32.mxu0 %vm384_vm0, %v7376_v6  ;;  %v30036_v6 = vld [vmem:[#allocation2 + $0x1f8] sm:$0xff]  ;;  %23780 = vmatprep.mubr.msk.f32.mxu1 %vm384_vm0, %v30034_v58 }
 0x388   : > { %23781 = vmatmul.mubr.msk.f32.gmra.mrb[50].mxu1 %vm384_vm0, %v30036_v6 }
 0x38a   : > { %24608 = vmatmul.mubr.msk.f32.gmra.mrb[84].mxu0 %vm384_vm0, %v7377_v8  ;;  %v7395_v8 = vld [vmem:[#allocation2 + $0x42a] sm:$0xff] }
 0x38b   : > { %24610 = vmatprep.mubr.msk.f32.mxu0 %vm384_vm0, %v7378_v10  ;;  %v7396_v10 = vld [vmem:[#allocation2 + $0x43a] sm:$0xff] }
 0x38e   : > { %24611 = vmatmul.mubr.msk.f32.gmra.mrb[86].mxu0 %vm384_vm0, %v7379_v60  ;;  %v30044_v60 = vld [vmem:[#allocation2 + $0x208] sm:$0xff] }
 0x38f   : > { %24613 = vmatprep.mubr.msk.f32.mxu0 %vm384_vm0, %v7380_v5  ;;  %v30046_v5 = vld [vmem:[#allocation2 + $0x210] sm:$0xff]  ;;  %23783 = vmatprep.mubr.msk.f32.mxu1 %vm384_vm0, %v30044_v60 }
 0x390   : > { %23784 = vmatmul.mubr.msk.f32.gmra.mrb[52].mxu1 %vm384_vm0, %v30046_v5 }
 0x392   : > { %24614 = vmatmul.mubr.msk.f32.gmra.mrb[88].mxu0 %vm384_vm0, %v7381_v16  ;;  %v7397_v16 = vld [vmem:[#allocation2 + $0x442] sm:$0xff] }
 0x393   : > { %24616 = vmatprep.mubr.msk.f32.mxu0 %vm384_vm0, %v7382_v17  ;;  %v7398_v17 = vld [vmem:[#allocation2 + $0x44a] sm:$0xff] }
 0x396   : > { %24617 = vmatmul.mubr.msk.f32.gmra.mrb[90].mxu0 %vm384_vm0, %v7383_v20  ;;  %v30054_v20 = vld [vmem:[#allocation2 + $0x218] sm:$0xff] }
 0x397   : > { %24619 = vmatprep.mubr.msk.f32.mxu0 %vm384_vm0, %v7384_v21  ;;  %v30056_v21 = vld [vmem:[#allocation2 + $0x220] sm:$0xff]  ;;  %23786 = vmatprep.mubr.msk.f32.mxu1 %vm384_vm0, %v30054_v20 }
 0x398   : > { %23787 = vmatmul.mubr.msk.f32.gmra.mrb[54].mxu1 %vm384_vm0, %v30056_v21 }
 0x39a   : > { %24620 = vmatmul.mubr.msk.f32.gmra.mrb[92].mxu0 %vm384_vm0, %v7385_v28  ;;  %v7399_v28 = vld [vmem:[#allocation2 + $0x452] sm:$0xff] }
 0x39b   : > { %24622 = vmatprep.mubr.msk.f32.mxu0 %vm384_vm0, %v7386_v30  ;;  %v7400_v30 = vld [vmem:[#allocation2 + $0x462] sm:$0xff] }
 0x39e   : > { %24623 = vmatmul.mubr.msk.f32.gmra.mrb[94].mxu0 %vm384_vm0, %v7387_v37  ;;  %v30064_v37 = vld [vmem:[#allocation2 + $0x230] sm:$0xff] }
 0x39f   : > { %24625 = vmatprep.mubr.msk.f32.mxu0 %vm384_vm0, %v7388_v38  ;;  %v30066_v38 = vld [vmem:[#allocation2 + $0x238] sm:$0xff]  ;;  %23789 = vmatprep.mubr.msk.f32.mxu1 %vm384_vm0, %v30064_v37 }
 0x3a0   : > { %23790 = vmatmul.mubr.msk.f32.gmra.mrb[56].mxu1 %vm384_vm0, %v30066_v38 }
 0x3a2   : > { %24626 = vmatmul.mubr.msk.f32.gmra.mrb[96].mxu0 %vm384_vm0, %v7389_v45  ;;  %v7401_v45 = vld [vmem:[#allocation2 + $0x46a] sm:$0xff] }
 0x3a3   : > { %24628 = vmatprep.mubr.msk.f32.mxu0 %vm384_vm0, %v7390_v46  ;;  %v7402_v46 = vld [vmem:[#allocation2 + $0x472] sm:$0xff] }
 0x3a6   : > { %24629 = vmatmul.mubr.msk.f32.gmra.mrb[98].mxu0 %vm384_vm0, %v7391_v53  ;;  %v30074_v53 = vld [vmem:[#allocation2 + $0x240] sm:$0xff] }
 0x3a7   : > { %24631 = vmatprep.mubr.msk.f32.mxu0 %vm384_vm0, %v7392_v54  ;;  %v30076_v54 = vld [vmem:[#allocation2 + $0x248] sm:$0xff]  ;;  %23792 = vmatprep.mubr.msk.f32.mxu1 %vm384_vm0, %v30074_v53 }
 0x3a8   : > { %23793 = vmatmul.mubr.msk.f32.gmra.mrb[58].mxu1 %vm384_vm0, %v30076_v54 }
 0x3aa   : > { %24632 = vmatmul.mubr.msk.f32.gmra.mrb[100].mxu0 %vm384_vm0, %v7393_v0  ;;  %v7403_v0 = vld [vmem:[#allocation2 + $0x47a] sm:$0xff] }
 0x3ab   : > { %24634 = vmatprep.mubr.msk.f32.mxu0 %vm384_vm0, %v7394_v1  ;;  %v7404_v1 = vld [vmem:[#allocation2 + $0x48a] sm:$0xff] }
 0x3ae   : > { %24635 = vmatmul.mubr.msk.f32.gmra.mrb[102].mxu0 %vm384_vm0, %v7395_v8  ;;  %v30084_v8 = vld [vmem:[#allocation2 + $0x258] sm:$0xff] }
 0x3af   : > { %24637 = vmatprep.mubr.msk.f32.mxu0 %vm384_vm0, %v7396_v10  ;;  %v30086_v10 = vld [vmem:[#allocation2 + $0x260] sm:$0xff]  ;;  %23795 = vmatprep.mubr.msk.f32.mxu1 %vm384_vm0, %v30084_v8 }
 0x3b0   : > { %23796 = vmatmul.mubr.msk.f32.gmra.mrb[60].mxu1 %vm384_vm0, %v30086_v10 }
 0x3b2   : > { %24638 = vmatmul.mubr.msk.f32.gmra.mrb[104].mxu0 %vm384_vm0, %v7397_v16  ;;  %v7405_v16 = vld [vmem:[#allocation2 + $0x492] sm:$0xff] }
 0x3b3   : > { %24640 = vmatprep.mubr.msk.f32.mxu0 %vm384_vm0, %v7398_v17  ;;  %v7406_v17 = vld [vmem:[#allocation2 + $0x49a] sm:$0xff] }
 0x3b6   : > { %24641 = vmatmul.mubr.msk.f32.gmra.mrb[106].mxu0 %vm384_vm0, %v7399_v28  ;;  %v30094_v28 = vld [vmem:[#allocation2 + $0x268] sm:$0xff] }
 0x3b7   : > { %24643 = vmatprep.mubr.msk.f32.mxu0 %vm384_vm0, %v7400_v30  ;;  %v30096_v30 = vld [vmem:[#allocation2 + $0x270] sm:$0xff]  ;;  %23798 = vmatprep.mubr.msk.f32.mxu1 %vm384_vm0, %v30094_v28 }
 0x3b8   : > { %33630 = vst [vmem:[#allocation11_spill] sm:$0xff] %v30096_v30  ;;  %23799 = vmatmul.mubr.msk.f32.gmra.mrb[62].mxu1 %vm384_vm0, %v30096_v30  ;;  %v30116_v30 = vld [vmem:[#allocation2 + $0x298] sm:$0xff] }
 0x3b9   : > { %33634 = vst [vmem:[#allocation15_spill] sm:$0xff] %v30116_v30 }
 0x3ba   : > { %24644 = vmatmul.mubr.msk.f32.gmra.mrb[108].mxu0 %vm384_vm0, %v7401_v45  ;;  %v7407_v45 = vld [vmem:[#allocation2 + $0x4a2] sm:$0xff] }
 0x3bb   : > { %24646 = vmatprep.mubr.msk.f32.mxu0 %vm384_vm0, %v7402_v46  ;;  %v7408_v46 = vld [vmem:[#allocation2 + $0x4b2] sm:$0xff] }
 0x3be   : > { %24647 = vmatmul.mubr.msk.f32.gmra.mrb[110].mxu0 %vm384_vm0, %v7403_v0  ;;  %v30104_v0 = vld [vmem:[#allocation2 + $0x280] sm:$0xff] }
 0x3bf   : > { %24649 = vmatprep.mubr.msk.f32.mxu0 %vm384_vm0, %v7404_v1  ;;  %33631 = vst [vmem:[#allocation12_spill] sm:$0xff] %v30104_v0  ;;  %v30106_v1 = vld [vmem:[#allocation2 + $0x288] sm:$0xff]  ;;  %23801 = vmatprep.mubr.msk.f32.mxu1 %vm384_vm0, %v30104_v0 }
 0x3c0   : > { %33632 = vst [vmem:[#allocation13_spill] sm:$0xff] %v30106_v1  ;;  %23802 = vmatmul.mubr.msk.f32.gmra.mrb[64].mxu1 %vm384_vm0, %v30106_v1  ;;  %v30124_v0 = vld [vmem:[#allocation2 + $0x2a8] sm:$0xff]  ;;  %v30126_v1 = vld [vmem:[#allocation2 + $0x2b0] sm:$0xff] }
 0x3c1   : > { %23804 = vmatprep.mubr.msk.f32.mxu1 %vm384_vm0, %v30114_v2  ;;  %33635 = vst [vmem:[#allocation16_spill] sm:$0xff] %v30124_v0  ;;  %33636 = vst [vmem:[#allocation17_spill] sm:$0xff] %v30126_v1  ;;  %v30134_v2 = vld [vmem:[#allocation2 + $0x2b8] sm:$0xff] }
 0x3c2   : > { %24650 = vmatmul.mubr.msk.f32.gmra.mrb[112].mxu0 %vm384_vm0, %v7405_v16  ;;  %v7409_v16 = vld [vmem:[#allocation2 + $0x4ba] sm:$0xff]  ;;  %33637 = vst [vmem:[#allocation18_spill] sm:$0xff] %v30134_v2 }
 0x3c3   : > { %24652 = vmatprep.mubr.msk.f32.mxu0 %vm384_vm0, %v7406_v17  ;;  %v7410_v17 = vld [vmem:[#allocation2 + $0x4c2] sm:$0xff] }
 0x3c4   : > { %23805 = vmatmul.mubr.msk.f32.gmra.mrb[66].mxu1 %vm384_vm0, %v30116_v30  ;;  %v30136_v30 = vld [vmem:[#allocation2 + $0x2c0] sm:$0xff] }
 0x3c5   : > { %23807 = vmatprep.mubr.msk.f32.mxu1 %vm384_vm0, %v30124_v0  ;;  %33638 = vst [vmem:[#allocation19_spill] sm:$0xff] %v30136_v30  ;;  %v30144_v0 = vld [vmem:[#allocation2 + $0x2d0] sm:$0xff] }
 0x3c6   : > { %24653 = vmatmul.mubr.msk.f32.gmra.mrb[114].mxu0 %vm384_vm0, %v7407_v45  ;;  %v7411_v45 = vld [vmem:[#allocation2 + $0x4ca] sm:$0xff] }
 0x3c7   : > { %24655 = vmatprep.mubr.msk.f32.mxu0 %vm384_vm0, %v7408_v46  ;;  %v7412_v46 = vld [vmem:[#allocation2 + $0x4da] sm:$0xff] }
 0x3c8   : > { %23808 = vmatmul.mubr.msk.f32.gmra.mrb[68].mxu1 %vm384_vm0, %v30126_v1  ;;  %v30146_v1 = vld [vmem:[#allocation2 + $0x2d8] sm:$0xff] }
 0x3c9   : > { %23810 = vmatprep.mubr.msk.f32.mxu1 %vm384_vm0, %v30134_v2  ;;  %33639 = vst [vmem:[#allocation20_spill] sm:$0xff] %v30146_v1  ;;  %v30154_v2 = vld [vmem:[#allocation2 + $0x2e0] sm:$0xff] }
 0x3ca   : > { %24656 = vmatmul.mubr.msk.f32.gmra.mrb[116].mxu0 %vm384_vm0, %v7409_v16  ;;  %v7413_v16 = vld [vmem:[#allocation2 + $0x4e2] sm:$0xff] }
 0x3cb   : > { %24658 = vmatprep.mubr.msk.f32.mxu0 %vm384_vm0, %v7410_v17  ;;  %v7414_v17 = vld [vmem:[#allocation2 + $0x4ea] sm:$0xff] }
 0x3cc   : > { %23811 = vmatmul.mubr.msk.f32.gmra.mrb[70].mxu1 %vm384_vm0, %v30136_v30  ;;  %v30156_v30 = vld [vmem:[#allocation2 + $0x2e8] sm:$0xff] }
 0x3cd   : > { %23813 = vmatprep.mubr.msk.f32.mxu1 %vm384_vm0, %v30144_v0 }
 0x3ce   : > { %24659 = vmatmul.mubr.msk.f32.gmra.mrb[118].mxu0 %vm384_vm0, %v7411_v45  ;;  %v7415_v45 = vld [vmem:[#allocation2 + $0x4f2] sm:$0xff] }
 0x3cf   : > { %24661 = vmatprep.mubr.msk.f32.mxu0 %vm384_vm0, %v7412_v46  ;;  %v7416_v46 = vld [vmem:[#allocation2 + $0x502] sm:$0xff] }
 0x3d0   : > { %23814 = vmatmul.mubr.msk.f32.gmra.mrb[72].mxu1 %vm384_vm0, %v30146_v1  ;;  %v30166_v1 = vld [vmem:[#allocation2 + $0x300] sm:$0xff] }
 0x3d1   : > { %23816 = vmatprep.mubr.msk.f32.mxu1 %vm384_vm0, %v30154_v2 }
 0x3d2   : > { %24662 = vmatmul.mubr.msk.f32.gmra.mrb[120].mxu0 %vm384_vm0, %v7413_v16  ;;  %v7417_v16 = vld [vmem:[#allocation2 + $0x50a] sm:$0xff] }
 0x3d3   : > { %24664 = vmatprep.mubr.msk.f32.mxu0 %vm384_vm0, %v7414_v17  ;;  %v7418_v17 = vld [vmem:[#allocation2 + $0x512] sm:$0xff] }
 0x3d4   : > { %23817 = vmatmul.mubr.msk.f32.gmra.mrb[74].mxu1 %vm384_vm0, %v30156_v30 }
 0x3d6   : > { %24665 = vmatmul.mubr.msk.f32.gmra.mrb[122].mxu0 %vm384_vm0, %v7415_v45  ;;  %v7419_v45 = vld [vmem:[#allocation2 + $0x51a] sm:$0xff] }
 0x3d7   : > { %24667 = vmatprep.mubr.msk.f32.mxu0 %vm384_vm0, %v7416_v46  ;;  %v30164_v46 = vld [vmem:[#allocation2 + $0x2f8] sm:$0xff] }
 0x3d8   : > { %23819 = vmatprep.mubr.msk.f32.mxu1 %vm384_vm0, %v30164_v46 }
 0x3d9   : > { %23820 = vmatmul.mubr.msk.f32.gmra.mrb[76].mxu1 %vm384_vm0, %v30166_v1 }
 0x3da   : > { %24668 = vmatmul.mubr.msk.f32.gmra.mrb[124].mxu0 %vm384_vm0, %v7417_v16  ;;  %v30176_v16 = vld [vmem:[#allocation2 + $0x308] sm:$0xff] }
 0x3db   : > { %24670 = vmatprep.mubr.msk.f32.mxu0 %vm384_vm0, %v7418_v17  ;;  %v30178_v17 = vld [vmem:[#allocation2 + $0x310] sm:$0xff]  ;;  %23822 = vmatprep.mubr.msk.f32.mxu1 %vm384_vm0, %v30176_v16 }
 0x3dd   : > { %23823 = vmatmul.mubr.msk.f32.gmra.mrb[78].mxu1 %vm384_vm0, %v30178_v17 }
 0x3de   : > { %24671 = vmatmul.mubr.msk.f32.gmra.mrb[126].mxu0 %vm384_vm0, %v7419_v45  ;;  %v3314_v45 = vld [vmem:[#allocation2 + $0x272] sm:$0xff] }
 0x3df   : > { %24675 = vmatprep.mubr.msk.f32.mxu0 %vm384_vm0, %v29818_v18  ;;  %v30189_v18 = vld [vmem:[#allocation2 + $0x320] sm:$0xff] }
 0x3e0   : > { %23825 = vmatprep.mubr.msk.f32.mxu1 %vm384_vm0, %v30189_v18 }
 0x3e2   : > { %24676 = vmatmul.mubr.msk.f32.vlgmr.msra.gmra.mrb[0].mxu0 %vm384_vm0, %v29820_v19  ;;  %v30191_v19 = vld [vmem:[#allocation2 + $0x328] sm:$0xff] }
 0x3e3   : > { %24868 = vmatpush3.msra.mxu0 %v29848_v29  ;;  %24678 = vmatprep.mubr.msk.f32.mxu0 %vm384_vm0, %v29828_v22  ;;  %v30201_v22 = vld [vmem:[#allocation2 + $0x330] sm:$0xff]  ;;  %v30203_v29 = vld [vmem:[#allocation2 + $0x338] sm:$0xff] }
 0x3e4   : > { %23826 = vmatmul.mubr.msk.f32.gmra.mrb[80].mxu1 %vm384_vm0, %v30191_v19 }
 0x3e5   : > { %23828 = vmatprep.mubr.msk.f32.mxu1 %vm384_vm0, %v30201_v22 }
 0x3e6   : > { %24679 = vmatmul.mubr.msk.f32.gmra.mrb[2].mxu0 %vm384_vm0, %v29830_v23  ;;  %v30213_v23 = vld [vmem:[#allocation2 + $0x348] sm:$0xff] }
 0x3e7   : > { %24681 = vmatprep.mubr.msk.f32.mxu0 %vm384_vm0, %v29838_v26  ;;  %v30215_v26 = vld [vmem:[#allocation2 + $0x350] sm:$0xff] }
 0x3e8   : > { %23829 = vmatmul.mubr.msk.f32.gmra.mrb[82].mxu1 %vm384_vm0, %v30203_v29 }
 0x3e9   : > { %23831 = vmatprep.mubr.msk.f32.mxu1 %vm384_vm0, %v30213_v23 }
 0x3ea   : > { %24682 = vmatmul.mubr.msk.f32.gmra.mrb[4].mxu0 %vm384_vm0, %v29840_v27  ;;  %v30225_v27 = vld [vmem:[#allocation2 + $0x358] sm:$0xff] }
 0x3eb   : > { %24684 = vmatprep.mubr.msk.f32.mxu0 %vm384_vm0, %v29855_v32  ;;  %v30227_v32 = vld [vmem:[#allocation2 + $0x360] sm:$0xff] }
 0x3ec   : > { %23832 = vmatmul.mubr.msk.f32.gmra.mrb[84].mxu1 %vm384_vm0, %v30215_v26 }
 0x3ed   : > { %23834 = vmatprep.mubr.msk.f32.mxu1 %vm384_vm0, %v30225_v27 }
 0x3ee   : > { %24685 = vmatmul.mubr.msk.f32.gmra.mrb[6].mxu0 %vm384_vm0, %v29857_v33  ;;  %v30237_v33 = vld [vmem:[#allocation2 + $0x370] sm:$0xff] }
 0x3ef   : > { %24687 = vmatprep.mubr.msk.f32.mxu0 %vm384_vm0, %v29864_v35  ;;  %v30239_v35 = vld [vmem:[#allocation2 + $0x378] sm:$0xff] }
 0x3f0   : > { %23835 = vmatmul.mubr.msk.f32.gmra.mrb[86].mxu1 %vm384_vm0, %v30227_v32 }
 0x3f1   : > { %23837 = vmatprep.mubr.msk.f32.mxu1 %vm384_vm0, %v30237_v33 }
 0x3f2   : > { %24688 = vmatmul.mubr.msk.f32.gmra.mrb[8].mxu0 %vm384_vm0, %v29866_v36  ;;  %v30249_v36 = vld [vmem:[#allocation2 + $0x380] sm:$0xff] }
 0x3f3   : > { %24690 = vmatprep.mubr.msk.f32.mxu0 %vm384_vm0, %v29874_v39  ;;  %v30251_v39 = vld [vmem:[#allocation2 + $0x388] sm:$0xff] }
 0x3f4   : > { %23838 = vmatmul.mubr.msk.f32.gmra.mrb[88].mxu1 %vm384_vm0, %v30239_v35 }
 0x3f5   : > { %23840 = vmatprep.mubr.msk.f32.mxu1 %vm384_vm0, %v30249_v36 }
 0x3f6   : > { %24691 = vmatmul.mubr.msk.f32.gmra.mrb[10].mxu0 %vm384_vm0, %v29876_v40  ;;  %v30261_v40 = vld [vmem:[#allocation2 + $0x398] sm:$0xff] }
 0x3f7   : > { %24693 = vmatprep.mubr.msk.f32.mxu0 %vm384_vm0, %v29884_v43  ;;  %v30263_v43 = vld [vmem:[#allocation2 + $0x3a0] sm:$0xff] }
 0x3f8   : > { %23841 = vmatmul.mubr.msk.f32.gmra.mrb[90].mxu1 %vm384_vm0, %v30251_v39 }
 0x3f9   : > { %23843 = vmatprep.mubr.msk.f32.mxu1 %vm384_vm0, %v30261_v40 }
 0x3fa   : > { %24694 = vmatmul.mubr.msk.f32.gmra.mrb[12].mxu0 %vm384_vm0, %v29886_v44  ;;  %v30273_v44 = vld [vmem:[#allocation2 + $0x3a8] sm:$0xff] }
 0x3fb   : > { %24696 = vmatprep.mubr.msk.f32.mxu0 %vm384_vm0, %v29894_v47  ;;  %v30275_v47 = vld [vmem:[#allocation2 + $0x3b0] sm:$0xff] }
 0x3fc   : > { %23844 = vmatmul.mubr.msk.f32.gmra.mrb[92].mxu1 %vm384_vm0, %v30263_v43 }
 0x3fd   : > { %23846 = vmatprep.mubr.msk.f32.mxu1 %vm384_vm0, %v30273_v44 }
 0x3fe   : > { %24697 = vmatmul.mubr.msk.f32.gmra.mrb[14].mxu0 %vm384_vm0, %v29896_v48  ;;  %v30285_v48 = vld [vmem:[#allocation2 + $0x3c0] sm:$0xff] }
 0x3ff   : > { %24699 = vmatprep.mubr.msk.f32.mxu0 %vm384_vm0, %v29904_v51  ;;  %v30287_v51 = vld [vmem:[#allocation2 + $0x3c8] sm:$0xff] }
 0x400   : > { %23847 = vmatmul.mubr.msk.f32.gmra.mrb[94].mxu1 %vm384_vm0, %v30275_v47 }
 0x401   : > { %23849 = vmatprep.mubr.msk.f32.mxu1 %vm384_vm0, %v30285_v48 }
 0x402   : > { %24700 = vmatmul.mubr.msk.f32.gmra.mrb[16].mxu0 %vm384_vm0, %v29906_v52  ;;  %v30297_v52 = vld [vmem:[#allocation2 + $0x3d0] sm:$0xff] }
 0x403   : > { %24702 = vmatprep.mubr.msk.f32.mxu0 %vm384_vm0, %v29914_v55  ;;  %v30299_v55 = vld [vmem:[#allocation2 + $0x3d8] sm:$0xff] }
 0x404   : > { %23850 = vmatmul.mubr.msk.f32.gmra.mrb[96].mxu1 %vm384_vm0, %v30287_v51 }
 0x405   : > { %23852 = vmatprep.mubr.msk.f32.mxu1 %vm384_vm0, %v30297_v52 }
 0x406   : > { %24703 = vmatmul.mubr.msk.f32.gmra.mrb[18].mxu0 %vm384_vm0, %v29916_v56  ;;  %v30309_v56 = vld [vmem:[#allocation2 + $0x3e8] sm:$0xff] }
 0x407   : > { %24705 = vmatprep.mubr.msk.f32.mxu0 %vm384_vm0, %v29924_v62  ;;  %v30311_v62 = vld [vmem:[#allocation2 + $0x3f0] sm:$0xff] }
 0x408   : > { %23853 = vmatmul.mubr.msk.f32.gmra.mrb[98].mxu1 %vm384_vm0, %v30299_v55 }
 0x409   : > { %23855 = vmatprep.mubr.msk.f32.mxu1 %vm384_vm0, %v30309_v56 }
 0x40a   : > { %24706 = vmatmul.mubr.msk.f32.gmra.mrb[20].mxu0 %vm384_vm0, %v29926_v63  ;;  %v30321_v63 = vld [vmem:[#allocation2 + $0x3f8] sm:$0xff] }
 0x40b   : > { %24708 = vmatprep.mubr.msk.f32.mxu0 %vm384_vm0, %v29934_v3  ;;  %v30323_v3 = vld [vmem:[#allocation2 + $0x400] sm:$0xff] }
 0x40c   : > { %23856 = vmatmul.mubr.msk.f32.gmra.mrb[100].mxu1 %vm384_vm0, %v30311_v62 }
 0x40d   : > { %23858 = vmatprep.mubr.msk.f32.mxu1 %vm384_vm0, %v30321_v63 }
 0x40e   : > { %24709 = vmatmul.mubr.msk.f32.gmra.mrb[22].mxu0 %vm384_vm0, %v29936_v4  ;;  %v30333_v4 = vld [vmem:[#allocation2 + $0x410] sm:$0xff] }
 0x40f   : > { %24711 = vmatprep.mubr.msk.f32.mxu0 %vm384_vm0, %v29944_v59  ;;  %v30335_v59 = vld [vmem:[#allocation2 + $0x418] sm:$0xff] }
 0x410   : > { %23859 = vmatmul.mubr.msk.f32.gmra.mrb[102].mxu1 %vm384_vm0, %v30323_v3 }
 0x411   : > { %23861 = vmatprep.mubr.msk.f32.mxu1 %vm384_vm0, %v30333_v4 }
 0x412   : > { %24712 = vmatmul.mubr.msk.f32.gmra.mrb[24].mxu0 %vm384_vm0, %v29946_v7  ;;  %v30345_v7 = vld [vmem:[#allocation2 + $0x420] sm:$0xff] }
 0x413   : > { %24714 = vmatprep.mubr.msk.f32.mxu0 %vm384_vm0, %v29954_v11  ;;  %v30347_v11 = vld [vmem:[#allocation2 + $0x428] sm:$0xff] }
 0x414   : > { %23862 = vmatmul.mubr.msk.f32.gmra.mrb[104].mxu1 %vm384_vm0, %v30335_v59 }
 0x415   : > { %23864 = vmatprep.mubr.msk.f32.mxu1 %vm384_vm0, %v30345_v7 }
 0x416   : > { %24715 = vmatmul.mubr.msk.f32.gmra.mrb[26].mxu0 %vm384_vm0, %v29956_v12  ;;  %v30357_v12 = vld [vmem:[#allocation2 + $0x438] sm:$0xff] }
 0x417   : > { %24717 = vmatprep.mubr.msk.f32.mxu0 %vm384_vm0, %v29964_v14  ;;  %v30359_v14 = vld [vmem:[#allocation2 + $0x440] sm:$0xff] }
 0x418   : > { %23865 = vmatmul.mubr.msk.f32.gmra.mrb[106].mxu1 %vm384_vm0, %v30347_v11 }
 0x419   : > { %23867 = vmatprep.mubr.msk.f32.mxu1 %vm384_vm0, %v30357_v12 }
 0x41a   : > { %24718 = vmatmul.mubr.msk.f32.gmra.mrb[28].mxu0 %vm384_vm0, %v29966_v15  ;;  %v30369_v15 = vld [vmem:[#allocation2 + $0x448] sm:$0xff] }
 0x41b   : > { %24720 = vmatprep.mubr.msk.f32.mxu0 %vm384_vm0, %v29974_v9  ;;  %v30371_v9 = vld [vmem:[#allocation2 + $0x450] sm:$0xff] }
 0x41c   : > { %23868 = vmatmul.mubr.msk.f32.gmra.mrb[108].mxu1 %vm384_vm0, %v30359_v14 }
 0x41d   : > { %23870 = vmatprep.mubr.msk.f32.mxu1 %vm384_vm0, %v30369_v15 }
 0x41e   : > { %24721 = vmatmul.mubr.msk.f32.gmra.mrb[30].mxu0 %vm384_vm0, %v29976_v13  ;;  %v30381_v13 = vld [vmem:[#allocation2 + $0x460] sm:$0xff] }
 0x41f   : > { %24723 = vmatprep.mubr.msk.f32.mxu0 %vm384_vm0, %v29984_v24  ;;  %v30383_v24 = vld [vmem:[#allocation2 + $0x468] sm:$0xff] }
 0x420   : > { %23871 = vmatmul.mubr.msk.f32.gmra.mrb[110].mxu1 %vm384_vm0, %v30371_v9 }
 0x421   : > { %23873 = vmatprep.mubr.msk.f32.mxu1 %vm384_vm0, %v30381_v13 }
 0x422   : > { %24724 = vmatmul.mubr.msk.f32.gmra.mrb[32].mxu0 %vm384_vm0, %v29986_v25  ;;  %v30393_v25 = vld [vmem:[#allocation2 + $0x470] sm:$0xff] }
 0x423   : > { %24726 = vmatprep.mubr.msk.f32.mxu0 %vm384_vm0, %v29994_v31  ;;  %v30395_v31 = vld [vmem:[#allocation2 + $0x478] sm:$0xff] }
 0x424   : > { %23874 = vmatmul.mubr.msk.f32.gmra.mrb[112].mxu1 %vm384_vm0, %v30383_v24 }
 0x425   : > { %23876 = vmatprep.mubr.msk.f32.mxu1 %vm384_vm0, %v30393_v25 }
 0x426   : > { %24727 = vmatmul.mubr.msk.f32.gmra.mrb[34].mxu0 %vm384_vm0, %v29996_v34  ;;  %v30405_v34 = vld [vmem:[#allocation2 + $0x488] sm:$0xff] }
 0x427   : > { %24729 = vmatprep.mubr.msk.f32.mxu0 %vm384_vm0, %v30004_v41  ;;  %v30407_v41 = vld [vmem:[#allocation2 + $0x490] sm:$0xff] }
 0x428   : > { %23877 = vmatmul.mubr.msk.f32.gmra.mrb[114].mxu1 %vm384_vm0, %v30395_v31 }
 0x429   : > { %23879 = vmatprep.mubr.msk.f32.mxu1 %vm384_vm0, %v30405_v34 }
 0x42a   : > { %24730 = vmatmul.mubr.msk.f32.gmra.mrb[36].mxu0 %vm384_vm0, %v30006_v42  ;;  %v30417_v42 = vld [vmem:[#allocation2 + $0x498] sm:$0xff] }
 0x42b   : > { %24732 = vmatprep.mubr.msk.f32.mxu0 %vm384_vm0, %v30014_v49  ;;  %v30419_v49 = vld [vmem:[#allocation2 + $0x4a0] sm:$0xff] }
 0x42c   : > { %23880 = vmatmul.mubr.msk.f32.gmra.mrb[116].mxu1 %vm384_vm0, %v30407_v41 }
 0x42d   : > { %23882 = vmatprep.mubr.msk.f32.mxu1 %vm384_vm0, %v30417_v42 }
 0x42e   : > { %24733 = vmatmul.mubr.msk.f32.gmra.mrb[38].mxu0 %vm384_vm0, %v30016_v50  ;;  %v30429_v50 = vld [vmem:[#allocation2 + $0x4b0] sm:$0xff] }
 0x42f   : > { %24735 = vmatprep.mubr.msk.f32.mxu0 %vm384_vm0, %v30024_v57  ;;  %v30431_v57 = vld [vmem:[#allocation2 + $0x4b8] sm:$0xff] }
 0x430   : > { %23883 = vmatmul.mubr.msk.f32.gmra.mrb[118].mxu1 %vm384_vm0, %v30419_v49 }
 0x431   : > { %23885 = vmatprep.mubr.msk.f32.mxu1 %vm384_vm0, %v30429_v50 }
 0x432   : > { %24736 = vmatmul.mubr.msk.f32.gmra.mrb[40].mxu0 %vm384_vm0, %v30026_v61  ;;  %v30441_v61 = vld [vmem:[#allocation2 + $0x4c0] sm:$0xff] }
 0x433   : > { %24738 = vmatprep.mubr.msk.f32.mxu0 %vm384_vm0, %v30034_v58  ;;  %v30443_v58 = vld [vmem:[#allocation2 + $0x4c8] sm:$0xff] }
 0x434   : > { %23886 = vmatmul.mubr.msk.f32.gmra.mrb[120].mxu1 %vm384_vm0, %v30431_v57 }
 0x435   : > { %23888 = vmatprep.mubr.msk.f32.mxu1 %vm384_vm0, %v30441_v61 }
 0x436   : > { %24739 = vmatmul.mubr.msk.f32.gmra.mrb[42].mxu0 %vm384_vm0, %v30036_v6  ;;  %v30453_v6 = vld [vmem:[#allocation2 + $0x4d8] sm:$0xff] }
 0x437   : > { %24741 = vmatprep.mubr.msk.f32.mxu0 %vm384_vm0, %v30044_v60  ;;  %v30455_v60 = vld [vmem:[#allocation2 + $0x4e0] sm:$0xff] }
 0x438   : > { %23889 = vmatmul.mubr.msk.f32.gmra.mrb[122].mxu1 %vm384_vm0, %v30443_v58 }
 0x439   : > { %23891 = vmatprep.mubr.msk.f32.mxu1 %vm384_vm0, %v30453_v6 }
 0x43a   : > { %24742 = vmatmul.mubr.msk.f32.gmra.mrb[44].mxu0 %vm384_vm0, %v30046_v5  ;;  %v30465_v5 = vld [vmem:[#allocation2 + $0x4e8] sm:$0xff] }
 0x43b   : > { %24744 = vmatprep.mubr.msk.f32.mxu0 %vm384_vm0, %v30054_v20  ;;  %v30467_v20 = vld [vmem:[#allocation2 + $0x4f0] sm:$0xff] }
 0x43c   : > { %23892 = vmatmul.mubr.msk.f32.gmra.mrb[124].mxu1 %vm384_vm0, %v30455_v60 }
 0x43d   : > { %23894 = vmatprep.mubr.msk.f32.mxu1 %vm384_vm0, %v30465_v5 }
 0x43e   : > { %24745 = vmatmul.mubr.msk.f32.gmra.mrb[46].mxu0 %vm384_vm0, %v30056_v21  ;;  %v3309_v21 = vld [vmem:[#allocation2 + $0x242] sm:$0xff] }
 0x43f   : > { %24747 = vmatprep.mubr.msk.f32.mxu0 %vm384_vm0, %v30064_v37  ;;  %v3310_v37 = vld [vmem:[#allocation2 + $0x24a] sm:$0xff] }
 0x440   : > { %23895 = vmatmul.mubr.msk.f32.gmra.mrb[126].mxu1 %vm384_vm0, %v30467_v20 }
 0x441   : > { %23986 = vmatprep.mubr.msk.f32.mxu1 %vm384_vm0, %v3309_v21  ;;  %v33641_v21 = vld [vmem:[#allocation12_spill] sm:$0xff] }
 0x442   : > { %24748 = vmatmul.mubr.msk.f32.gmra.mrb[48].mxu0 %vm384_vm0, %v30066_v38  ;;  %v3311_v38 = vld [vmem:[#allocation2 + $0x25a] sm:$0xff] }
 0x443   : > { %24750 = vmatprep.mubr.msk.f32.mxu0 %vm384_vm0, %v30074_v53  ;;  %v3312_v53 = vld [vmem:[#allocation2 + $0x262] sm:$0xff] }
 0x444   : > { %23987 = vmatmul.mubr.msk.f32.vlgmr.msra.gmra.mrb[58].mxu1 %vm384_vm0, %v3310_v37  ;;  %v3316_v37 = vld [vmem:[#allocation2 + $0x28a] sm:$0xff] }
 0x445   : > { %23989 = vmatprep.mubr.msk.f32.mxu1 %vm384_vm0, %v3311_v38  ;;  %v33643_v38 = vld [vmem:[#allocation14_spill] sm:$0xff] }
 0x446   : > { %24751 = vmatmul.mubr.msk.f32.gmra.mrb[50].mxu0 %vm384_vm0, %v30076_v54  ;;  %v33640_v54 = vld [vmem:[#allocation11_spill] sm:$0xff] }
 0x447   : > { %24753 = vmatprep.mubr.msk.f32.mxu0 %vm384_vm0, %v30084_v8  ;;  %v3313_v8 = vld [vmem:[#allocation2 + $0x26a] sm:$0xff] }
 0x448   : > { %23990 = vmatmul.mubr.msk.f32.gmra.mrb[60].mxu1 %vm384_vm0, %v3312_v53  ;;  %v33644_v53 = vld [vmem:[#allocation15_spill] sm:$0xff] }
 0x449   : > { %23992 = vmatprep.mubr.msk.f32.mxu1 %vm384_vm0, %v3313_v8  ;;  %v33645_v8 = vld [vmem:[#allocation16_spill] sm:$0xff] }
 0x44a   : > { %24754 = vmatmul.mubr.msk.f32.gmra.mrb[52].mxu0 %vm384_vm0, %v30086_v10  ;;  %v33642_v10 = vld [vmem:[#allocation13_spill] sm:$0xff] }
 0x44b   : > { %24756 = vmatprep.mubr.msk.f32.mxu0 %vm384_vm0, %v30094_v28  ;;  %v3315_v28 = vld [vmem:[#allocation2 + $0x282] sm:$0xff] }
 0x44c   : > { %23993 = vmatmul.mubr.msk.f32.gmra.mrb[62].mxu1 %vm384_vm0, %v3314_v45  ;;  %v33646_v45 = vld [vmem:[#allocation17_spill] sm:$0xff] }
 0x44d   : > { %23995 = vmatprep.mubr.msk.f32.mxu1 %vm384_vm0, %v3315_v28  ;;  %v33647_v28 = vld [vmem:[#allocation18_spill] sm:$0xff] }
 0x44e   : > { %24757 = vmatmul.mubr.msk.f32.gmra.mrb[54].mxu0 %vm384_vm0, %v33640_v54  ;;  %v3317_v54 = vld [vmem:[#allocation2 + $0x292] sm:$0xff] }
 0x44f   : > { %24759 = vmatprep.mubr.msk.f32.mxu0 %vm384_vm0, %v33641_v21  ;;  %v3318_v21 = vld [vmem:[#allocation2 + $0x29a] sm:$0xff] }
 0x450   : > { %23996 = vmatmul.mubr.msk.f32.gmra.mrb[64].mxu1 %vm384_vm0, %v3316_v37  ;;  %v33648_v37 = vld [vmem:[#allocation19_spill] sm:$0xff] }
 0x451   : > { %23998 = vmatprep.mubr.msk.f32.mxu1 %vm384_vm0, %v3317_v54  ;;  %v30519_v54 = vld [vmem:[%s33565_s1 + $0x40] sm:$0xff] }
 0x452   : > { %24760 = vmatmul.mubr.msk.f32.gmra.mrb[56].mxu0 %vm384_vm0, %v33642_v10  ;;  %v3319_v10 = vld [vmem:[#allocation2 + $0x2aa] sm:$0xff]  ;;  %25061 = vmatprep.subr.mxu0 %v30519_v54 }
 0x453   : > { %24762 = vmatprep.mubr.msk.f32.mxu0 %vm384_vm0, %v33643_v38  ;;  %v3320_v38 = vld [vmem:[#allocation2 + $0x2b2] sm:$0xff] }
 0x454   : > { %23999 = vmatmul.mubr.msk.f32.gmra.mrb[66].mxu1 %vm384_vm0, %v3318_v21  ;;  %v33649_v21 = vld [vmem:[#allocation20_spill] sm:$0xff] }
 0x455   : > { %24001 = vmatprep.mubr.msk.f32.mxu1 %vm384_vm0, %v3319_v10  ;;  %v3324_v10 = vld [vmem:[#allocation2 + $0x2da] sm:$0xff] }
 0x456   : > { %24763 = vmatmul.mubr.msk.f32.gmra.mrb[58].mxu0 %vm384_vm0, %v33644_v53  ;;  %v3321_v53 = vld [vmem:[#allocation2 + $0x2ba] sm:$0xff] }
 0x457   : > { %24765 = vmatprep.mubr.msk.f32.mxu0 %vm384_vm0, %v33645_v8  ;;  %v3322_v8 = vld [vmem:[#allocation2 + $0x2c2] sm:$0xff] }
 0x458   : > { %24002 = vmatmul.mubr.msk.f32.gmra.mrb[68].mxu1 %vm384_vm0, %v3320_v38  ;;  %v3326_v38 = vld [vmem:[#allocation2 + $0x2ea] sm:$0xff] }
 0x459   : > { %24004 = vmatprep.mubr.msk.f32.mxu1 %vm384_vm0, %v3321_v53  ;;  %v3359_v53 = vld [vmem:[#allocation2 + $0x43a] sm:$0xff] }
 0x45a   : > { %24766 = vmatmul.mubr.msk.f32.gmra.mrb[60].mxu0 %vm384_vm0, %v33646_v45  ;;  %v3323_v45 = vld [vmem:[#allocation2 + $0x2d2] sm:$0xff] }
 0x45b   : > { %24768 = vmatprep.mubr.msk.f32.mxu0 %vm384_vm0, %v33647_v28  ;;  %v3328_v28 = vld [vmem:[#allocation2 + $0x302] sm:$0xff] }
 0x45c   : > { %24005 = vmatmul.mubr.msk.f32.gmra.mrb[70].mxu1 %vm384_vm0, %v3322_v8 }
 0x45d   : > { %24007 = vmatprep.mubr.msk.f32.mxu1 %vm384_vm0, %v3323_v45 }
 0x45e   : > { %24769 = vmatmul.mubr.msk.f32.gmra.mrb[62].mxu0 %vm384_vm0, %v33648_v37  ;;  %v3358_v37 = vld [vmem:[#allocation2 + $0x42a] sm:$0xff] }
 0x45f   : > { %24771 = vmatprep.mubr.msk.f32.mxu0 %vm384_vm0, %v30144_v0  ;;  %v3325_v0 = vld [vmem:[#allocation2 + $0x2e2] sm:$0xff] }
 0x460   : > { %24008 = vmatmul.mubr.msk.f32.gmra.mrb[72].mxu1 %vm384_vm0, %v3324_v10  ;;  %v3363_v10 = vld [vmem:[#allocation2 + $0x462] sm:$0xff] }
 0x461   : > { %24010 = vmatprep.mubr.msk.f32.mxu1 %vm384_vm0, %v3325_v0 }
 0x462   : > { %24772 = vmatmul.mubr.msk.f32.gmra.mrb[64].mxu0 %vm384_vm0, %v33649_v21  ;;  %v3361_v21 = vld [vmem:[#allocation2 + $0x44a] sm:$0xff] }
 0x463   : > { %24774 = vmatprep.mubr.msk.f32.mxu0 %vm384_vm0, %v30154_v2  ;;  %v3327_v2 = vld [vmem:[#allocation2 + $0x2fa] sm:$0xff] }
 0x464   : > { %24011 = vmatmul.mubr.msk.f32.gmra.mrb[74].mxu1 %vm384_vm0, %v3326_v38  ;;  %v3365_v38 = vld [vmem:[#allocation2 + $0x472] sm:$0xff] }
 0x465   : > { %24013 = vmatprep.mubr.msk.f32.mxu1 %vm384_vm0, %v3327_v2 }
 0x466   : > { %24775 = vmatmul.mubr.msk.f32.gmra.mrb[66].mxu0 %vm384_vm0, %v30156_v30  ;;  %v3329_v30 = vld [vmem:[#allocation2 + $0x30a] sm:$0xff] }
 0x467   : > { %24777 = vmatprep.mubr.msk.f32.mxu0 %vm384_vm0, %v30164_v46  ;;  %v3330_v46 = vld [vmem:[#allocation2 + $0x312] sm:$0xff] }
 0x468   : > { %24014 = vmatmul.mubr.msk.f32.gmra.mrb[76].mxu1 %vm384_vm0, %v3328_v28  ;;  %v3367_v28 = vld [vmem:[#allocation2 + $0x48a] sm:$0xff] }
 0x469   : > { %24016 = vmatprep.mubr.msk.f32.mxu1 %vm384_vm0, %v3329_v30 }
 0x46a   : > { %24778 = vmatmul.mubr.msk.f32.gmra.mrb[68].mxu0 %vm384_vm0, %v30166_v1  ;;  %v3331_v1 = vld [vmem:[#allocation2 + $0x322] sm:$0xff] }
 0x46b   : > { %24780 = vmatprep.mubr.msk.f32.mxu0 %vm384_vm0, %v30176_v16  ;;  %v3332_v16 = vld [vmem:[#allocation2 + $0x32a] sm:$0xff] }
 0x46c   : > { %24017 = vmatmul.mubr.msk.f32.gmra.mrb[78].mxu1 %vm384_vm0, %v3330_v46  ;;  %v3369_v46 = vld [vmem:[#allocation2 + $0x49a] sm:$0xff] }
 0x46d   : > { %24019 = vmatprep.mubr.msk.f32.mxu1 %vm384_vm0, %v3331_v1 }
 0x46e   : > { %24781 = vmatmul.mubr.msk.f32.gmra.mrb[70].mxu0 %vm384_vm0, %v30178_v17  ;;  %v3333_v17 = vld [vmem:[#allocation2 + $0x332] sm:$0xff] }
 0x46f   : > { %24783 = vmatprep.mubr.msk.f32.mxu0 %vm384_vm0, %v30189_v18  ;;  %v3334_v18 = vld [vmem:[#allocation2 + $0x33a] sm:$0xff] }
 0x470   : > { %24020 = vmatmul.mubr.msk.f32.gmra.mrb[80].mxu1 %vm384_vm0, %v3332_v16  ;;  %v3371_v16 = vld [vmem:[#allocation2 + $0x4b2] sm:$0xff] }
 0x471   : > { %24022 = vmatprep.mubr.msk.f32.mxu1 %vm384_vm0, %v3333_v17 }
 0x472   : > { %24784 = vmatmul.mubr.msk.f32.gmra.mrb[72].mxu0 %vm384_vm0, %v30191_v19  ;;  %v3335_v19 = vld [vmem:[#allocation2 + $0x34a] sm:$0xff] }
 0x473   : > { %24786 = vmatprep.mubr.msk.f32.mxu0 %vm384_vm0, %v30201_v22  ;;  %v3336_v22 = vld [vmem:[#allocation2 + $0x352] sm:$0xff] }
 0x474   : > { %24023 = vmatmul.mubr.msk.f32.gmra.mrb[82].mxu1 %vm384_vm0, %v3334_v18  ;;  %v3373_v18 = vld [vmem:[#allocation2 + $0x4c2] sm:$0xff] }
 0x475   : > { %24025 = vmatprep.mubr.msk.f32.mxu1 %vm384_vm0, %v3335_v19 }
 0x476   : > { %24787 = vmatmul.mubr.msk.f32.gmra.mrb[74].mxu0 %vm384_vm0, %v30203_v29  ;;  %v3337_v29 = vld [vmem:[#allocation2 + $0x35a] sm:$0xff] }
 0x477   : > { %24789 = vmatprep.mubr.msk.f32.mxu0 %vm384_vm0, %v30213_v23  ;;  %v3338_v23 = vld [vmem:[#allocation2 + $0x362] sm:$0xff] }
 0x478   : > { %24026 = vmatmul.mubr.msk.f32.gmra.mrb[84].mxu1 %vm384_vm0, %v3336_v22  ;;  %v3375_v22 = vld [vmem:[#allocation2 + $0x4da] sm:$0xff] }
 0x479   : > { %24028 = vmatprep.mubr.msk.f32.mxu1 %vm384_vm0, %v3337_v29 }
 0x47a   : > { %24790 = vmatmul.mubr.msk.f32.gmra.mrb[76].mxu0 %vm384_vm0, %v30215_v26  ;;  %v3339_v26 = vld [vmem:[#allocation2 + $0x372] sm:$0xff] }
 0x47b   : > { %24792 = vmatprep.mubr.msk.f32.mxu0 %vm384_vm0, %v30225_v27  ;;  %v3340_v27 = vld [vmem:[#allocation2 + $0x37a] sm:$0xff] }
 0x47c   : > { %24029 = vmatmul.mubr.msk.f32.gmra.mrb[86].mxu1 %vm384_vm0, %v3338_v23 }
 0x47d   : > { %24031 = vmatprep.mubr.msk.f32.mxu1 %vm384_vm0, %v3339_v26  ;;  %v3378_v26 = vld [vmem:[#allocation2 + $0x4f2] sm:$0xff] }
 0x47e   : > { %24793 = vmatmul.mubr.msk.f32.gmra.mrb[78].mxu0 %vm384_vm0, %v30227_v32  ;;  %v3341_v32 = vld [vmem:[#allocation2 + $0x382] sm:$0xff] }
 0x47f   : > { %24795 = vmatprep.mubr.msk.f32.mxu0 %vm384_vm0, %v30237_v33  ;;  %v3342_v33 = vld [vmem:[#allocation2 + $0x38a] sm:$0xff] }
 0x480   : > { %24032 = vmatmul.mubr.msk.f32.gmra.mrb[88].mxu1 %vm384_vm0, %v3340_v27  ;;  %v8761_v27 = vld [vmem:[#allocation2 + $0x508] sm:$0xff] }
 0x481   : > { %24034 = vmatprep.mubr.msk.f32.mxu1 %vm384_vm0, %v3341_v32  ;;  %v8762_v32 = vld [vmem:[#allocation2 + $0x510] sm:$0xff] }
 0x482   : > { %24796 = vmatmul.mubr.msk.f32.gmra.mrb[80].mxu0 %vm384_vm0, %v30239_v35  ;;  %v3343_v35 = vld [vmem:[#allocation2 + $0x39a] sm:$0xff] }
 0x483   : > { %24798 = vmatprep.mubr.msk.f32.mxu0 %vm384_vm0, %v30249_v36  ;;  %v3344_v36 = vld [vmem:[#allocation2 + $0x3a2] sm:$0xff] }
 0x484   : > { %24035 = vmatmul.mubr.msk.f32.gmra.mrb[90].mxu1 %vm384_vm0, %v3342_v33 }
 0x485   : > { %24037 = vmatprep.mubr.msk.f32.mxu1 %vm384_vm0, %v3343_v35 }
 0x486   : > { %24799 = vmatmul.mubr.msk.f32.gmra.mrb[82].mxu0 %vm384_vm0, %v30251_v39  ;;  %v3345_v39 = vld [vmem:[#allocation2 + $0x3aa] sm:$0xff] }
 0x487   : > { %24801 = vmatprep.mubr.msk.f32.mxu0 %vm384_vm0, %v30261_v40  ;;  %v3346_v40 = vld [vmem:[#allocation2 + $0x3b2] sm:$0xff] }
 0x488   : > { %24038 = vmatmul.mubr.msk.f32.gmra.mrb[92].mxu1 %vm384_vm0, %v3344_v36  ;;  %v8764_v36 = vld [vmem:[#allocation2 + $0x528] sm:$0xff] }
 0x489   : > { %24040 = vmatprep.mubr.msk.f32.mxu1 %vm384_vm0, %v3345_v39 }
 0x48a   : > { %24802 = vmatmul.mubr.msk.f32.gmra.mrb[84].mxu0 %vm384_vm0, %v30263_v43  ;;  %v3347_v43 = vld [vmem:[#allocation2 + $0x3c2] sm:$0xff] }
 0x48b   : > { %24804 = vmatprep.mubr.msk.f32.mxu0 %vm384_vm0, %v30273_v44  ;;  %v3348_v44 = vld [vmem:[#allocation2 + $0x3ca] sm:$0xff] }
 0x48c   : > { %24041 = vmatmul.mubr.msk.f32.gmra.mrb[94].mxu1 %vm384_vm0, %v3346_v40  ;;  %v8765_v40 = vld [vmem:[#allocation2 + $0x530] sm:$0xff] }
 0x48d   : > { %24043 = vmatprep.mubr.msk.f32.mxu1 %vm384_vm0, %v3347_v43 }
 0x48e   : > { %24805 = vmatmul.mubr.msk.f32.gmra.mrb[86].mxu0 %vm384_vm0, %v30275_v47  ;;  %v3349_v47 = vld [vmem:[#allocation2 + $0x3d2] sm:$0xff] }
 0x48f   : > { %24807 = vmatprep.mubr.msk.f32.mxu0 %vm384_vm0, %v30285_v48  ;;  %v3350_v48 = vld [vmem:[#allocation2 + $0x3da] sm:$0xff] }
 0x490   : > { %24044 = vmatmul.mubr.msk.f32.gmra.mrb[96].mxu1 %vm384_vm0, %v3348_v44  ;;  %v8766_v44 = vld [vmem:[#allocation2 + $0x538] sm:$0xff] }
 0x491   : > { %24046 = vmatprep.mubr.msk.f32.mxu1 %vm384_vm0, %v3349_v47 }
 0x492   : > { %24808 = vmatmul.mubr.msk.f32.gmra.mrb[88].mxu0 %vm384_vm0, %v30287_v51  ;;  %v3351_v51 = vld [vmem:[#allocation2 + $0x3ea] sm:$0xff] }
 0x493   : > { %24810 = vmatprep.mubr.msk.f32.mxu0 %vm384_vm0, %v30297_v52  ;;  %v3352_v52 = vld [vmem:[#allocation2 + $0x3f2] sm:$0xff] }
 0x494   : > { %24047 = vmatmul.mubr.msk.f32.gmra.mrb[98].mxu1 %vm384_vm0, %v3350_v48  ;;  %v8767_v48 = vld [vmem:[#allocation2 + $0x540] sm:$0xff] }
 0x495   : > { %24049 = vmatprep.mubr.msk.f32.mxu1 %vm384_vm0, %v3351_v51 }
 0x496   : > { %24811 = vmatmul.mubr.msk.f32.gmra.mrb[90].mxu0 %vm384_vm0, %v30299_v55  ;;  %v3353_v55 = vld [vmem:[#allocation2 + $0x3fa] sm:$0xff] }
 0x497   : > { %24813 = vmatprep.mubr.msk.f32.mxu0 %vm384_vm0, %v30309_v56  ;;  %v3354_v56 = vld [vmem:[#allocation2 + $0x402] sm:$0xff] }
 0x498   : > { %24050 = vmatmul.mubr.msk.f32.gmra.mrb[100].mxu1 %vm384_vm0, %v3352_v52  ;;  %v9987_v52 = vld [vmem:[#allocation2 + $0x51] sm:$0xff] }
 0x499   : > { %24052 = vmatprep.mubr.msk.f32.mxu1 %vm384_vm0, %v3353_v55 }
 0x49a   : > { %24814 = vmatmul.mubr.msk.f32.gmra.mrb[92].mxu0 %vm384_vm0, %v30311_v62  ;;  %v3355_v62 = vld [vmem:[#allocation2 + $0x412] sm:$0xff] }
 0x49b   : > { %24816 = vmatprep.mubr.msk.f32.mxu0 %vm384_vm0, %v30321_v63  ;;  %v3356_v63 = vld [vmem:[#allocation2 + $0x41a] sm:$0xff] }
 0x49c   : > { %24053 = vmatmul.mubr.msk.f32.gmra.mrb[102].mxu1 %vm384_vm0, %v3354_v56  ;;  %v9988_v56 = vld [vmem:[#allocation2 + $0x59] sm:$0xff] }
 0x49d   : > { %24055 = vmatprep.mubr.msk.f32.mxu1 %vm384_vm0, %v3355_v62 }
 0x49e   : > { %24817 = vmatmul.mubr.msk.f32.gmra.mrb[94].mxu0 %vm384_vm0, %v30323_v3  ;;  %v30627_v3 = vpop.f32.mrb[0].mxu1 }
 0x49f   : > { %24819 = vmatprep.mubr.msk.f32.mxu0 %vm384_vm0, %v30333_v4  ;;  %v3357_v4 = vld [vmem:[#allocation2 + $0x422] sm:$0xff] }
 0x4a0   : > { %24056 = vmatmul.mubr.msk.f32.gmra.mrb[104].mxu1 %vm384_vm0, %v3356_v63  ;;  %v9989_v63 = vld [vmem:[#allocation2 + $0x61] sm:$0xff] }
 0x4a1   : > { %24058 = vmatprep.mubr.msk.f32.mxu1 %vm384_vm0, %v3357_v4 }
 0x4a2   : > { %24820 = vmatmul.mubr.msk.f32.gmra.mrb[96].mxu0 %vm384_vm0, %v30335_v59  ;;  %v30632_v59 = vpop.f32.mrb[1].mxu1 }
 0x4a3   : > { %24822 = vmatprep.mubr.msk.f32.mxu0 %vm384_vm0, %v30345_v7  ;;  %v30637_v7 = vpop.f32.mrb[2].mxu1 }
 0x4a4   : > { %24059 = vmatmul.mubr.msk.f32.gmra.mrb[106].mxu1 %vm384_vm0, %v3358_v37  ;;  %v30642_v8 = vpop.f32.mrb[3].mxu1  ;;  %v9990_v37 = vld [vmem:[#allocation2 + $0x69] sm:$0xff] }
 0x4a5   : > { %24061 = vmatprep.mubr.msk.f32.mxu1 %vm384_vm0, %v3359_v53 }
 0x4a6   : > { %24823 = vmatmul.mubr.msk.f32.gmra.mrb[98].mxu0 %vm384_vm0, %v30347_v11  ;;  %v3360_v11 = vld [vmem:[#allocation2 + $0x442] sm:$0xff] }
 0x4a7   : > { %24825 = vmatprep.mubr.msk.f32.mxu0 %vm384_vm0, %v30357_v12  ;;  %v30647_v12 = vpop.f32.mrb[4].mxu1 }
 0x4a8   : > { %24062 = vmatmul.mubr.msk.f32.gmra.mrb[108].mxu1 %vm384_vm0, %v3360_v11  ;;  %v30652_v45 = vpop.f32.mrb[5].mxu1  ;;  %v9991_v11 = vld [vmem:[#allocation2 + $0x79] sm:$0xff] }
 0x4a9   : > { %24064 = vmatprep.mubr.msk.f32.mxu1 %vm384_vm0, %v3361_v21 }
 0x4aa   : > { %24826 = vmatmul.mubr.msk.f32.gmra.mrb[100].mxu0 %vm384_vm0, %v30359_v14  ;;  %v3362_v14 = vld [vmem:[#allocation2 + $0x452] sm:$0xff] }
 0x4ab   : > { %24828 = vmatprep.mubr.msk.f32.mxu0 %vm384_vm0, %v30369_v15  ;;  %v30657_v15 = vpop.f32.mrb[6].mxu1 }
 0x4ac   : > { %24065 = vmatmul.mubr.msk.f32.gmra.mrb[110].mxu1 %vm384_vm0, %v3362_v14  ;;  %v30662_v0 = vpop.f32.mrb[7].mxu1  ;;  %v9992_v14 = vld [vmem:[#allocation2 + $0x81] sm:$0xff] }
 0x4ad   : > { %24067 = vmatprep.mubr.msk.f32.mxu1 %vm384_vm0, %v3363_v10 }
 0x4ae   : > { %24829 = vmatmul.mubr.msk.f32.gmra.mrb[102].mxu0 %vm384_vm0, %v30371_v9  ;;  %v3364_v9 = vld [vmem:[#allocation2 + $0x46a] sm:$0xff] }
 0x4af   : > { %24831 = vmatprep.mubr.msk.f32.mxu0 %vm384_vm0, %v30381_v13  ;;  %v30667_v13 = vpop.f32.mrb[8].mxu1 }
 0x4b0   : > { %24068 = vmatmul.mubr.msk.f32.gmra.mrb[112].mxu1 %vm384_vm0, %v3364_v9  ;;  %v30672_v2 = vpop.f32.mrb[9].mxu1  ;;  %v9993_v9 = vld [vmem:[#allocation2 + $0x89] sm:$0xff] }
 0x4b1   : > { %24070 = vmatprep.mubr.msk.f32.mxu1 %vm384_vm0, %v3365_v38 }
 0x4b2   : > { %24832 = vmatmul.mubr.msk.f32.gmra.mrb[104].mxu0 %vm384_vm0, %v30383_v24  ;;  %v3366_v24 = vld [vmem:[#allocation2 + $0x47a] sm:$0xff] }
 0x4b3   : > { %24834 = vmatprep.mubr.msk.f32.mxu0 %vm384_vm0, %v30393_v25  ;;  %v30677_v25 = vpop.f32.mrb[10].mxu1 }
 0x4b4   : > { %24071 = vmatmul.mubr.msk.f32.gmra.mrb[114].mxu1 %vm384_vm0, %v3366_v24  ;;  %v30682_v30 = vpop.f32.mrb[11].mxu1 }
 0x4b5   : > { %24073 = vmatprep.mubr.msk.f32.mxu1 %vm384_vm0, %v3367_v28  ;;  %v9995_v28 = vld [vmem:[#allocation2 + $0xa1] sm:$0xff] }
 0x4b6   : > { %24835 = vmatmul.mubr.msk.f32.gmra.mrb[106].mxu0 %vm384_vm0, %v30395_v31  ;;  %v3368_v31 = vld [vmem:[#allocation2 + $0x492] sm:$0xff] }
 0x4b7   : > { %24837 = vmatprep.mubr.msk.f32.mxu0 %vm384_vm0, %v30405_v34  ;;  %v30687_v34 = vpop.f32.mrb[12].mxu1 }
 0x4b8   : > { %24074 = vmatmul.mubr.msk.f32.gmra.mrb[116].mxu1 %vm384_vm0, %v3368_v31  ;;  %v30692_v1 = vpop.f32.mrb[13].mxu1 }
 0x4b9   : > { %24076 = vmatprep.mubr.msk.f32.mxu1 %vm384_vm0, %v3369_v46  ;;  %v9996_v46 = vld [vmem:[#allocation2 + $0xa9] sm:$0xff] }
 0x4ba   : > { %24838 = vmatmul.mubr.msk.f32.gmra.mrb[108].mxu0 %vm384_vm0, %v30407_v41  ;;  %v3370_v41 = vld [vmem:[#allocation2 + $0x4a2] sm:$0xff] }
 0x4bb   : > { %24840 = vmatprep.mubr.msk.f32.mxu0 %vm384_vm0, %v30417_v42  ;;  %v30697_v42 = vpop.f32.mrb[14].mxu1 }
 0x4bc   : > { %24077 = vmatmul.mubr.msk.f32.gmra.mrb[118].mxu1 %vm384_vm0, %v3370_v41  ;;  %v30702_v17 = vpop.f32.mrb[15].mxu1 }
 0x4bd   : > { %24079 = vmatprep.mubr.msk.f32.mxu1 %vm384_vm0, %v3371_v16  ;;  %v9997_v16 = vld [vmem:[#allocation2 + $0xb1] sm:$0xff] }
 0x4be   : > { %24841 = vmatmul.mubr.msk.f32.gmra.mrb[110].mxu0 %vm384_vm0, %v30419_v49  ;;  %v3372_v49 = vld [vmem:[#allocation2 + $0x4ba] sm:$0xff] }
 0x4bf   : > { %24843 = vmatprep.mubr.msk.f32.mxu0 %vm384_vm0, %v30429_v50  ;;  %v30707_v50 = vpop.f32.mrb[16].mxu1 }
 0x4c0   : > { %24080 = vmatmul.mubr.msk.f32.gmra.mrb[120].mxu1 %vm384_vm0, %v3372_v49  ;;  %v30712_v19 = vpop.f32.mrb[17].mxu1 }
 0x4c1   : > { %24082 = vmatprep.mubr.msk.f32.mxu1 %vm384_vm0, %v3373_v18  ;;  %v9998_v18 = vld [vmem:[#allocation2 + $0xb9] sm:$0xff] }
 0x4c2   : > { %24844 = vmatmul.mubr.msk.f32.gmra.mrb[112].mxu0 %vm384_vm0, %v30431_v57  ;;  %v3374_v57 = vld [vmem:[#allocation2 + $0x4ca] sm:$0xff] }
 0x4c3   : > { %24846 = vmatprep.mubr.msk.f32.mxu0 %vm384_vm0, %v30441_v61  ;;  %v30717_v61 = vpop.f32.mrb[18].mxu1 }
 0x4c4   : > { %24083 = vmatmul.mubr.msk.f32.gmra.mrb[122].mxu1 %vm384_vm0, %v3374_v57  ;;  %v30722_v29 = vpop.f32.mrb[19].mxu1 }
 0x4c5   : > { %24085 = vmatprep.mubr.msk.f32.mxu1 %vm384_vm0, %v3375_v22  ;;  %v30727_v23 = vpop.f32.mrb[20].mxu1  ;;  %v9999_v22 = vld [vmem:[#allocation2 + $0xc9] sm:$0xff] }
 0x4c6   : > { %24847 = vmatmul.mubr.msk.f32.gmra.mrb[114].mxu0 %vm384_vm0, %v30443_v58  ;;  %v3376_v58 = vld [vmem:[#allocation2 + $0x4e2] sm:$0xff] }
 0x4c7   : > { %24849 = vmatprep.mubr.msk.f32.mxu0 %vm384_vm0, %v30453_v6  ;;  %v8760_v6 = vld [vmem:[#allocation2 + $0x500] sm:$0xff] }
 0x4c8   : > { %24086 = vmatmul.mubr.msk.f32.gmra.mrb[124].mxu1 %vm384_vm0, %v3376_v58 }
 0x4ca   : > { %24850 = vmatmul.mubr.msk.f32.gmra.mrb[116].mxu0 %vm384_vm0, %v30455_v60  ;;  %v3377_v60 = vld [vmem:[#allocation2 + $0x4ea] sm:$0xff] }
 0x4cb   : > { %24852 = vmatprep.mubr.msk.f32.mxu0 %vm384_vm0, %v30465_v5  ;;  %24088 = vmatprep.mubr.msk.f32.mxu1 %vm384_vm0, %v3377_v60  ;;  %v30731_v5 = vpop.f32.mrb[21].mxu1 }
 0x4cc   : > { %24089 = vmatmul.mubr.msk.f32.gmra.mrb[126].mxu1 %vm384_vm0, %v3378_v26  ;;  %v30735_v33 = vpop.f32.mrb[22].mxu1  ;;  %v10001_v26 = vld [vmem:[#allocation2 + $0xd9] sm:$0xff] }
 0x4cd   : > { %v30738_v35 = vpop.f32.mrb[23].mxu1 }
 0x4ce   : > { %24853 = vmatmul.mubr.msk.f32.gmra.mrb[118].mxu0 %vm384_vm0, %v30467_v20  ;;  %v8763_v20 = vld [vmem:[#allocation2 + $0x518] sm:$0xff]  ;;  %v30741_v39 = vpop.f32.mrb[24].mxu1 }
 0x4cf   : > { %24855 = vmatprep.mubr.msk.f32.mxu0 %vm384_vm0, %v8760_v6  ;;  %v30744_v43 = vpop.f32.mrb[25].mxu1  ;;  %v10000_v6 = vld [vmem:[#allocation2 + $0xd1] sm:$0xff] }
 0x4d0   : > { %v30747_v47 = vpop.f32.mrb[26].mxu1 }
 0x4d1   : > { %v30750_v51 = vpop.f32.mrb[27].mxu1 }
 0x4d2   : > { %24856 = vmatmul.mubr.msk.f32.gmra.mrb[120].mxu0 %vm384_vm0, %v8761_v27  ;;  %v30753_v55 = vpop.f32.mrb[28].mxu1 }
 0x4d3   : > { %24858 = vmatprep.mubr.msk.f32.mxu0 %vm384_vm0, %v8762_v32  ;;  %v30756_v62 = vpop.f32.mrb[29].mxu1  ;;  %v10002_v32 = vld [vmem:[#allocation2 + $0xe1] sm:$0xff] }
 0x4d4   : > { %v30759_v4 = vpop.f32.mrb[30].mxu1 }
 0x4d5   : > { %v30763_v53 = vpop.f32.mrb[31].mxu1 }
 0x4d6   : > { %24859 = vmatmul.mubr.msk.f32.gmra.mrb[122].mxu0 %vm384_vm0, %v8763_v20  ;;  %v30766_v21 = vpop.f32.mrb[32].mxu1 }
 0x4d7   : > { %24861 = vmatprep.mubr.msk.f32.mxu0 %vm384_vm0, %v8764_v36  ;;  %v30769_v10 = vpop.f32.mrb[33].mxu1  ;;  %v10003_v36 = vld [vmem:[#allocation2 + $0xf1] sm:$0xff] }
 0x4d8   : > { %v30772_v38 = vpop.f32.mrb[34].mxu1 }
 0x4d9   : > { %v30775_v24 = vpop.f32.mrb[35].mxu1 }
 0x4da   : > { %24862 = vmatmul.mubr.msk.f32.gmra.mrb[124].mxu0 %vm384_vm0, %v8765_v40  ;;  %v30778_v31 = vpop.f32.mrb[36].mxu1 }
 0x4db   : > { %24864 = vmatprep.mubr.msk.f32.mxu0 %vm384_vm0, %v8766_v44  ;;  %v30781_v41 = vpop.f32.mrb[37].mxu1  ;;  %v10004_v44 = vld [vmem:[#allocation2 + $0xf9] sm:$0xff] }
 0x4dc   : > { %v30784_v49 = vpop.f32.mrb[38].mxu1 }
 0x4dd   : > { %v30787_v57 = vpop.f32.mrb[39].mxu1 }
 0x4de   : > { %24865 = vmatmul.mubr.msk.f32.gmra.mrb[126].mxu0 %vm384_vm0, %v8767_v48  ;;  %v30790_v58 = vpop.f32.mrb[40].mxu1 }
 0x4df   : > { %24869 = vmatprep.mubr.msk.f32.mxu0 %vm384_vm0, %v9987_v52  ;;  %v30793_v60 = vpop.f32.mrb[41].mxu1  ;;  %v10005_v52 = vld [vmem:[#allocation2 + $0x101] sm:$0xff] }
 0x4e0   : > { %v30796_v27 = vpop.f32.mrb[42].mxu1 }
 0x4e1   : > { %v30799_v20 = vpop.f32.mrb[43].mxu1 }
 0x4e2   : > { %24870 = vmatmul.mubr.msk.f32.vlgmr.msra.gmra.mrb[0].mxu0 %vm384_vm0, %v9988_v56  ;;  %v30802_v40 = vpop.f32.mrb[44].mxu1 }
 0x4e3   : > { %25062 = vmatpush3.msra.mxu0 %v30519_v54  ;;  %24872 = vmatprep.mubr.msk.f32.mxu0 %vm384_vm0, %v9989_v63  ;;  %v9994_v54 = vld [vmem:[#allocation2 + $0x91] sm:$0xff]  ;;  %v30805_v48 = vpop.f32.mrb[45].mxu1  ;;  %v10006_v63 = vld [vmem:[#allocation2 + $0x109] sm:$0xff] }
 0x4e4   : > { %v30808_v56 = vpop.f32.mrb[46].mxu1 }
 0x4e6   : > { %24873 = vmatmul.mubr.msk.f32.gmra.mrb[2].mxu0 %vm384_vm0, %v9990_v37  ;;  %v30811_v37 = vpop.f32.mrb[47].mxu1 }
 0x4e7   : > { %24875 = vmatprep.mubr.msk.f32.mxu0 %vm384_vm0, %v9991_v11  ;;  %v10007_v11 = vld [vmem:[#allocation2 + $0x119] sm:$0xff] }
 0x4ea   : > { %24876 = vmatmul.mubr.msk.f32.gmra.mrb[4].mxu0 %vm384_vm0, %v9992_v14  ;;  %v30814_v14 = vpop.f32.mrb[48].mxu1 }
 0x4eb   : > { %24878 = vmatprep.mubr.msk.f32.mxu0 %vm384_vm0, %v9993_v9  ;;  %v10008_v9 = vld [vmem:[#allocation2 + $0x121] sm:$0xff] }
 0x4ee   : > { %24879 = vmatmul.mubr.msk.f32.gmra.mrb[6].mxu0 %vm384_vm0, %v9994_v54  ;;  %v30817_v54 = vpop.f32.mrb[49].mxu1 }
 0x4ef   : > { %24881 = vmatprep.mubr.msk.f32.mxu0 %vm384_vm0, %v9995_v28  ;;  %33650 = vst [vmem:[#allocation11_spill] sm:$0xff] %v30817_v54  ;;  %v10009_v28 = vld [vmem:[#allocation2 + $0x129] sm:$0xff] }
 0x4f2   : > { %24882 = vmatmul.mubr.msk.f32.gmra.mrb[8].mxu0 %vm384_vm0, %v9996_v46  ;;  %v30820_v46 = vpop.f32.mrb[50].mxu1 }
 0x4f3   : > { %24884 = vmatprep.mubr.msk.f32.mxu0 %vm384_vm0, %v9997_v16  ;;  %33651 = vst [vmem:[#allocation12_spill] sm:$0xff] %v30820_v46  ;;  %v10010_v16 = vld [vmem:[#allocation2 + $0x131] sm:$0xff] }
 0x4f6   : > { %24885 = vmatmul.mubr.msk.f32.gmra.mrb[10].mxu0 %vm384_vm0, %v9998_v18  ;;  %v30823_v18 = vpop.f32.mrb[51].mxu1 }
 0x4f7   : > { %24887 = vmatprep.mubr.msk.f32.mxu0 %vm384_vm0, %v9999_v22  ;;  %33652 = vst [vmem:[#allocation13_spill] sm:$0xff] %v30823_v18  ;;  %v10011_v22 = vld [vmem:[#allocation2 + $0x141] sm:$0xff] }
 0x4fa   : > { %24888 = vmatmul.mubr.msk.f32.gmra.mrb[12].mxu0 %vm384_vm0, %v10000_v6  ;;  %v30826_v6 = vpop.f32.mrb[52].mxu1 }
 0x4fb   : > { %24890 = vmatprep.mubr.msk.f32.mxu0 %vm384_vm0, %v10001_v26  ;;  %33653 = vst [vmem:[#allocation14_spill] sm:$0xff] %v30826_v6  ;;  %v10012_v26 = vld [vmem:[#allocation2 + $0x149] sm:$0xff] }
 0x4fe   : > { %24891 = vmatmul.mubr.msk.f32.gmra.mrb[14].mxu0 %vm384_vm0, %v10002_v32  ;;  %v30829_v32 = vpop.f32.mrb[53].mxu1 }
 0x4ff   : > { %24893 = vmatprep.mubr.msk.f32.mxu0 %vm384_vm0, %v10003_v36  ;;  %33654 = vst [vmem:[#allocation15_spill] sm:$0xff] %v30829_v32  ;;  %v10013_v36 = vld [vmem:[#allocation2 + $0x151] sm:$0xff] }
 0x502   : > { %24894 = vmatmul.mubr.msk.f32.gmra.mrb[16].mxu0 %vm384_vm0, %v10004_v44  ;;  %v30832_v44 = vpop.f32.mrb[54].mxu1 }
 0x503   : > { %24896 = vmatprep.mubr.msk.f32.mxu0 %vm384_vm0, %v10005_v52  ;;  %33655 = vst [vmem:[#allocation16_spill] sm:$0xff] %v30832_v44  ;;  %v10014_v52 = vld [vmem:[#allocation2 + $0x159] sm:$0xff] }
 0x506   : > { %24897 = vmatmul.mubr.msk.f32.gmra.mrb[18].mxu0 %vm384_vm0, %v10006_v63  ;;  %v30835_v63 = vpop.f32.mrb[55].mxu1 }
 0x507   : > { %24899 = vmatprep.mubr.msk.f32.mxu0 %vm384_vm0, %v10007_v11  ;;  %33656 = vst [vmem:[#allocation17_spill] sm:$0xff] %v30835_v63  ;;  %v10015_v11 = vld [vmem:[#allocation2 + $0x169] sm:$0xff] }
 0x50a   : > { %24900 = vmatmul.mubr.msk.f32.gmra.mrb[20].mxu0 %vm384_vm0, %v10008_v9  ;;  %v30838_v9 = vpop.f32.mrb[56].mxu1 }
 0x50b   : > { %24902 = vmatprep.mubr.msk.f32.mxu0 %vm384_vm0, %v10009_v28  ;;  %33657 = vst [vmem:[#allocation18_spill] sm:$0xff] %v30838_v9  ;;  %v10016_v28 = vld [vmem:[#allocation2 + $0x171] sm:$0xff] }
 0x50e   : > { %24903 = vmatmul.mubr.msk.f32.gmra.mrb[22].mxu0 %vm384_vm0, %v10010_v16  ;;  %v30841_v16 = vpop.f32.mrb[57].mxu1 }
 0x50f   : > { %24905 = vmatprep.mubr.msk.f32.mxu0 %vm384_vm0, %v10011_v22  ;;  %33658 = vst [vmem:[#allocation19_spill] sm:$0xff] %v30841_v16  ;;  %v10017_v22 = vld [vmem:[#allocation2 + $0x179] sm:$0xff] }
 0x512   : > { %24906 = vmatmul.mubr.msk.f32.gmra.mrb[24].mxu0 %vm384_vm0, %v10012_v26  ;;  %v10018_v26 = vld [vmem:[#allocation2 + $0x181] sm:$0xff] }
 0x513   : > { %24908 = vmatprep.mubr.msk.f32.mxu0 %vm384_vm0, %v10013_v36  ;;  %v10019_v36 = vld [vmem:[#allocation2 + $0x191] sm:$0xff] }
 0x516   : > { %24909 = vmatmul.mubr.msk.f32.gmra.mrb[26].mxu0 %vm384_vm0, %v10014_v52  ;;  %v10020_v52 = vld [vmem:[#allocation2 + $0x199] sm:$0xff] }
 0x517   : > { %24911 = vmatprep.mubr.msk.f32.mxu0 %vm384_vm0, %v10015_v11  ;;  %v30845_v44 = vpop.f32.mrb[58].mxu1  ;;  %v10021_v11 = vld [vmem:[#allocation2 + $0x1a1] sm:$0xff] }
 0x518   : > { %33659 = vst [vmem:[#allocation20_spill] sm:$0xff] %v30845_v44  ;;  %v30847_v63 = vpop.f32.mrb[59].mxu1 }
 0x519   : > { %33660 = vst [vmem:[#allocation21_spill] sm:$0xff] %v30847_v63 }
 0x51a   : > { %24912 = vmatmul.mubr.msk.f32.gmra.mrb[28].mxu0 %vm384_vm0, %v10016_v28  ;;  %v10022_v28 = vld [vmem:[#allocation2 + $0x1a9] sm:$0xff] }
 0x51b   : > { %24914 = vmatprep.mubr.msk.f32.mxu0 %vm384_vm0, %v10017_v22  ;;  %v30851_v9 = vpop.f32.mrb[60].mxu1  ;;  %v10023_v22 = vld [vmem:[#allocation2 + $0x1b9] sm:$0xff] }
 0x51c   : > { %33661 = vst [vmem:[#allocation22_spill] sm:$0xff] %v30851_v9  ;;  %v30853_v16 = vpop.f32.mrb[61].mxu1 }
 0x51d   : > { %33662 = vst [vmem:[#allocation23_spill] sm:$0xff] %v30853_v16 }
 0x51e   : > { %24915 = vmatmul.mubr.msk.f32.gmra.mrb[30].mxu0 %vm384_vm0, %v10018_v26  ;;  %v10024_v26 = vld [vmem:[#allocation2 + $0x1c1] sm:$0xff] }
 0x51f   : > { %24917 = vmatprep.mubr.msk.f32.mxu0 %vm384_vm0, %v10019_v36  ;;  %v30857_v32 = vpop.f32.mrb[62].mxu1  ;;  %v10025_v36 = vld [vmem:[#allocation2 + $0x1c9] sm:$0xff] }
 0x520   : > { %33663 = vst [vmem:[#allocation24_spill] sm:$0xff] %v30857_v32  ;;  %v30859_v44 = vpop.f32.mrb[63].mxu1 }
 0x521   : > { %33664 = vst [vmem:[#allocation25_spill] sm:$0xff] %v30859_v44 }
 0x522   : > { %24918 = vmatmul.mubr.msk.f32.gmra.mrb[32].mxu0 %vm384_vm0, %v10020_v52  ;;  %v10026_v52 = vld [vmem:[#allocation2 + $0x1d1] sm:$0xff] }
 0x523   : > { %24920 = vmatprep.mubr.msk.f32.mxu0 %vm384_vm0, %v10021_v11  ;;  %v30863_v63 = vpop.f32.mrb[64].mxu1  ;;  %v10027_v11 = vld [vmem:[#allocation2 + $0x1e1] sm:$0xff] }
 0x524   : > { %33665 = vst [vmem:[#allocation26_spill] sm:$0xff] %v30863_v63  ;;  %v30865_v9 = vpop.f32.mrb[65].mxu1 }
 0x525   : > { %33666 = vst [vmem:[#allocation27_spill] sm:$0xff] %v30865_v9 }
 0x526   : > { %24921 = vmatmul.mubr.msk.f32.gmra.mrb[34].mxu0 %vm384_vm0, %v10022_v28  ;;  %v10028_v28 = vld [vmem:[#allocation2 + $0x1e9] sm:$0xff] }
 0x527   : > { %24923 = vmatprep.mubr.msk.f32.mxu0 %vm384_vm0, %v10023_v22  ;;  %v30869_v16 = vpop.f32.mrb[66].mxu1  ;;  %v10029_v22 = vld [vmem:[#allocation2 + $0x1f1] sm:$0xff] }
 0x528   : > { %33667 = vst [vmem:[#allocation28_spill] sm:$0xff] %v30869_v16  ;;  %v30871_v32 = vpop.f32.mrb[67].mxu1 }
 0x529   : > { %33668 = vst [vmem:[#allocation29_spill] sm:$0xff] %v30871_v32 }
 0x52a   : > { %24924 = vmatmul.mubr.msk.f32.gmra.mrb[36].mxu0 %vm384_vm0, %v10024_v26  ;;  %v10030_v26 = vld [vmem:[#allocation2 + $0x1f9] sm:$0xff] }
 0x52b   : > { %24926 = vmatprep.mubr.msk.f32.mxu0 %vm384_vm0, %v10025_v36  ;;  %v30875_v44 = vpop.f32.mrb[68].mxu1  ;;  %v10031_v36 = vld [vmem:[#allocation2 + $0x209] sm:$0xff] }
 0x52c   : > { %33669 = vst [vmem:[#allocation30_spill] sm:$0xff] %v30875_v44  ;;  %v30877_v63 = vpop.f32.mrb[69].mxu1 }
 0x52d   : > { %33670 = vst [vmem:[#allocation31_spill] sm:$0xff] %v30877_v63 }
 0x52e   : > { %24927 = vmatmul.mubr.msk.f32.gmra.mrb[38].mxu0 %vm384_vm0, %v10026_v52  ;;  %v10032_v52 = vld [vmem:[#allocation2 + $0x211] sm:$0xff] }
 0x52f   : > { %24929 = vmatprep.mubr.msk.f32.mxu0 %vm384_vm0, %v10027_v11  ;;  %v30881_v9 = vpop.f32.mrb[70].mxu1  ;;  %v10033_v11 = vld [vmem:[#allocation2 + $0x219] sm:$0xff] }
 0x530   : > { %33671 = vst [vmem:[#allocation32_spill] sm:$0xff] %v30881_v9  ;;  %v30883_v16 = vpop.f32.mrb[71].mxu1 }
 0x531   : > { %33672 = vst [vmem:[#allocation33_spill] sm:$0xff] %v30883_v16 }
 0x532   : > { %24930 = vmatmul.mubr.msk.f32.gmra.mrb[40].mxu0 %vm384_vm0, %v10028_v28  ;;  %v10034_v28 = vld [vmem:[#allocation2 + $0x221] sm:$0xff] }
 0x533   : > { %24932 = vmatprep.mubr.msk.f32.mxu0 %vm384_vm0, %v10029_v22  ;;  %v30887_v32 = vpop.f32.mrb[72].mxu1  ;;  %v10035_v22 = vld [vmem:[#allocation2 + $0x231] sm:$0xff] }
 0x534   : > { %33673 = vst [vmem:[#allocation34_spill] sm:$0xff] %v30887_v32  ;;  %v30889_v44 = vpop.f32.mrb[73].mxu1 }
 0x535   : > { %33674 = vst [vmem:[#allocation35_spill] sm:$0xff] %v30889_v44 }
 0x536   : > { %24933 = vmatmul.mubr.msk.f32.gmra.mrb[42].mxu0 %vm384_vm0, %v10030_v26  ;;  %v10036_v26 = vld [vmem:[#allocation2 + $0x239] sm:$0xff] }
 0x537   : > { %24935 = vmatprep.mubr.msk.f32.mxu0 %vm384_vm0, %v10031_v36  ;;  %v30893_v63 = vpop.f32.mrb[74].mxu1  ;;  %v10037_v36 = vld [vmem:[#allocation2 + $0x241] sm:$0xff] }
 0x538   : > { %33675 = vst [vmem:[#allocation36_spill] sm:$0xff] %v30893_v63  ;;  %v30895_v9 = vpop.f32.mrb[75].mxu1 }
 0x539   : > { %33676 = vst [vmem:[#allocation37_spill] sm:$0xff] %v30895_v9 }
 0x53a   : > { %24936 = vmatmul.mubr.msk.f32.gmra.mrb[44].mxu0 %vm384_vm0, %v10032_v52  ;;  %v10038_v52 = vld [vmem:[#allocation2 + $0x249] sm:$0xff] }
 0x53b   : > { %24938 = vmatprep.mubr.msk.f32.mxu0 %vm384_vm0, %v10033_v11  ;;  %v30899_v16 = vpop.f32.mrb[76].mxu1  ;;  %v10039_v11 = vld [vmem:[#allocation2 + $0x259] sm:$0xff] }
 0x53c   : > { %33677 = vst [vmem:[#allocation38_spill] sm:$0xff] %v30899_v16  ;;  %v30901_v32 = vpop.f32.mrb[77].mxu1 }
 0x53d   : > { %33678 = vst [vmem:[#allocation39_spill] sm:$0xff] %v30901_v32 }
 0x53e   : > { %24939 = vmatmul.mubr.msk.f32.gmra.mrb[46].mxu0 %vm384_vm0, %v10034_v28  ;;  %v10040_v28 = vld [vmem:[#allocation2 + $0x261] sm:$0xff] }
 0x53f   : > { %24941 = vmatprep.mubr.msk.f32.mxu0 %vm384_vm0, %v10035_v22  ;;  %v30905_v44 = vpop.f32.mrb[78].mxu1  ;;  %v10041_v22 = vld [vmem:[#allocation2 + $0x269] sm:$0xff] }
 0x540   : > { %33679 = vst [vmem:[#allocation40_spill] sm:$0xff] %v30905_v44  ;;  %v30907_v63 = vpop.f32.mrb[79].mxu1 }
 0x541   : > { %33680 = vst [vmem:[#allocation41_spill] sm:$0xff] %v30907_v63 }
 0x542   : > { %24942 = vmatmul.mubr.msk.f32.gmra.mrb[48].mxu0 %vm384_vm0, %v10036_v26  ;;  %v10042_v26 = vld [vmem:[#allocation2 + $0x271] sm:$0xff] }
 0x543   : > { %24944 = vmatprep.mubr.msk.f32.mxu0 %vm384_vm0, %v10037_v36  ;;  %v30911_v9 = vpop.f32.mrb[80].mxu1  ;;  %v10043_v36 = vld [vmem:[#allocation2 + $0x281] sm:$0xff] }
 0x544   : > { %33681 = vst [vmem:[#allocation42_spill] sm:$0xff] %v30911_v9  ;;  %v30913_v16 = vpop.f32.mrb[81].mxu1 }
 0x545   : > { %33682 = vst [vmem:[#allocation43_spill] sm:$0xff] %v30913_v16 }
 0x546   : > { %24945 = vmatmul.mubr.msk.f32.gmra.mrb[50].mxu0 %vm384_vm0, %v10038_v52  ;;  %v10044_v52 = vld [vmem:[#allocation2 + $0x289] sm:$0xff] }
 0x547   : > { %24947 = vmatprep.mubr.msk.f32.mxu0 %vm384_vm0, %v10039_v11  ;;  %v30917_v32 = vpop.f32.mrb[82].mxu1  ;;  %v10045_v11 = vld [vmem:[#allocation2 + $0x291] sm:$0xff] }
 0x548   : > { %33683 = vst [vmem:[#allocation44_spill] sm:$0xff] %v30917_v32  ;;  %v30919_v44 = vpop.f32.mrb[83].mxu1 }
 0x549   : > { %33684 = vst [vmem:[#allocation45_spill] sm:$0xff] %v30919_v44 }
 0x54a   : > { %24948 = vmatmul.mubr.msk.f32.gmra.mrb[52].mxu0 %vm384_vm0, %v10040_v28  ;;  %v10046_v28 = vld [vmem:[#allocation2 + $0x299] sm:$0xff] }
 0x54b   : > { %24950 = vmatprep.mubr.msk.f32.mxu0 %vm384_vm0, %v10041_v22  ;;  %v30923_v63 = vpop.f32.mrb[84].mxu1  ;;  %v10047_v22 = vld [vmem:[#allocation2 + $0x2a9] sm:$0xff] }
 0x54c   : > { %33685 = vst [vmem:[#allocation46_spill] sm:$0xff] %v30923_v63  ;;  %v30925_v9 = vpop.f32.mrb[85].mxu1 }
 0x54d   : > { %33686 = vst [vmem:[#allocation47_spill] sm:$0xff] %v30925_v9 }
 0x54e   : > { %24951 = vmatmul.mubr.msk.f32.gmra.mrb[54].mxu0 %vm384_vm0, %v10042_v26  ;;  %v10048_v26 = vld [vmem:[#allocation2 + $0x2b1] sm:$0xff] }
 0x54f   : > { %24953 = vmatprep.mubr.msk.f32.mxu0 %vm384_vm0, %v10043_v36  ;;  %v30929_v16 = vpop.f32.mrb[86].mxu1  ;;  %v10049_v36 = vld [vmem:[#allocation2 + $0x2b9] sm:$0xff] }
 0x550   : > { %33687 = vst [vmem:[#allocation48_spill] sm:$0xff] %v30929_v16  ;;  %v30931_v32 = vpop.f32.mrb[87].mxu1 }
 0x551   : > { %33688 = vst [vmem:[#allocation49_spill] sm:$0xff] %v30931_v32 }
 0x552   : > { %24954 = vmatmul.mubr.msk.f32.gmra.mrb[56].mxu0 %vm384_vm0, %v10044_v52  ;;  %v10050_v52 = vld [vmem:[#allocation2 + $0x2c1] sm:$0xff] }
 0x553   : > { %24956 = vmatprep.mubr.msk.f32.mxu0 %vm384_vm0, %v10045_v11  ;;  %v30935_v44 = vpop.f32.mrb[88].mxu1  ;;  %v10051_v11 = vld [vmem:[#allocation2 + $0x2d1] sm:$0xff] }
 0x554   : > { %33689 = vst [vmem:[#allocation50_spill] sm:$0xff] %v30935_v44  ;;  %v30937_v63 = vpop.f32.mrb[89].mxu1 }
 0x555   : > { %33690 = vst [vmem:[#allocation51_spill] sm:$0xff] %v30937_v63 }
 0x556   : > { %24957 = vmatmul.mubr.msk.f32.gmra.mrb[58].mxu0 %vm384_vm0, %v10046_v28  ;;  %v10052_v28 = vld [vmem:[#allocation2 + $0x2d9] sm:$0xff] }
 0x557   : > { %24959 = vmatprep.mubr.msk.f32.mxu0 %vm384_vm0, %v10047_v22  ;;  %v30941_v9 = vpop.f32.mrb[90].mxu1  ;;  %v10053_v22 = vld [vmem:[#allocation2 + $0x2e1] sm:$0xff] }
 0x558   : > { %33691 = vst [vmem:[#allocation52_spill] sm:$0xff] %v30941_v9  ;;  %v30943_v16 = vpop.f32.mrb[91].mxu1 }
 0x559   : > { %33692 = vst [vmem:[#allocation53_spill] sm:$0xff] %v30943_v16 }
 0x55a   : > { %24960 = vmatmul.mubr.msk.f32.gmra.mrb[60].mxu0 %vm384_vm0, %v10048_v26  ;;  %v10054_v26 = vld [vmem:[#allocation2 + $0x2e9] sm:$0xff] }
 0x55b   : > { %24962 = vmatprep.mubr.msk.f32.mxu0 %vm384_vm0, %v10049_v36  ;;  %v30947_v32 = vpop.f32.mrb[92].mxu1  ;;  %v10055_v36 = vld [vmem:[#allocation2 + $0x2f9] sm:$0xff] }
 0x55c   : > { %33693 = vst [vmem:[#allocation54_spill] sm:$0xff] %v30947_v32  ;;  %v30949_v44 = vpop.f32.mrb[93].mxu1 }
 0x55d   : > { %33694 = vst [vmem:[#allocation55_spill] sm:$0xff] %v30949_v44 }
 0x55e   : > { %24963 = vmatmul.mubr.msk.f32.gmra.mrb[62].mxu0 %vm384_vm0, %v10050_v52  ;;  %v10056_v52 = vld [vmem:[#allocation2 + $0x301] sm:$0xff] }
 0x55f   : > { %24965 = vmatprep.mubr.msk.f32.mxu0 %vm384_vm0, %v10051_v11  ;;  %v30953_v63 = vpop.f32.mrb[94].mxu1  ;;  %v10057_v11 = vld [vmem:[#allocation2 + $0x309] sm:$0xff] }
 0x560   : > { %33695 = vst [vmem:[#allocation56_spill] sm:$0xff] %v30953_v63  ;;  %v30955_v9 = vpop.f32.mrb[95].mxu1 }
 0x561   : > { %33696 = vst [vmem:[#allocation57_spill] sm:$0xff] %v30955_v9 }
 0x562   : > { %24966 = vmatmul.mubr.msk.f32.gmra.mrb[64].mxu0 %vm384_vm0, %v10052_v28  ;;  %v10058_v28 = vld [vmem:[#allocation2 + $0x311] sm:$0xff] }
 0x563   : > { %24968 = vmatprep.mubr.msk.f32.mxu0 %vm384_vm0, %v10053_v22  ;;  %v30959_v16 = vpop.f32.mrb[96].mxu1  ;;  %v10059_v22 = vld [vmem:[#allocation2 + $0x321] sm:$0xff] }
 0x564   : > { %33697 = vst [vmem:[#allocation58_spill] sm:$0xff] %v30959_v16  ;;  %v30961_v32 = vpop.f32.mrb[97].mxu1 }
 0x565   : > { %33698 = vst [vmem:[#allocation59_spill] sm:$0xff] %v30961_v32 }
 0x566   : > { %24969 = vmatmul.mubr.msk.f32.gmra.mrb[66].mxu0 %vm384_vm0, %v10054_v26  ;;  %v10060_v26 = vld [vmem:[#allocation2 + $0x329] sm:$0xff] }
 0x567   : > { %24971 = vmatprep.mubr.msk.f32.mxu0 %vm384_vm0, %v10055_v36  ;;  %v30965_v44 = vpop.f32.mrb[98].mxu1  ;;  %v10061_v36 = vld [vmem:[#allocation2 + $0x331] sm:$0xff] }
 0x568   : > { %33699 = vst [vmem:[#allocation60_spill] sm:$0xff] %v30965_v44  ;;  %v30967_v63 = vpop.f32.mrb[99].mxu1 }
 0x569   : > { %33700 = vst [vmem:[#allocation61_spill] sm:$0xff] %v30967_v63 }
 0x56a   : > { %24972 = vmatmul.mubr.msk.f32.gmra.mrb[68].mxu0 %vm384_vm0, %v10056_v52  ;;  %v10062_v52 = vld [vmem:[#allocation2 + $0x339] sm:$0xff] }
 0x56b   : > { %24974 = vmatprep.mubr.msk.f32.mxu0 %vm384_vm0, %v10057_v11  ;;  %v30971_v9 = vpop.f32.mrb[100].mxu1  ;;  %v10063_v11 = vld [vmem:[#allocation2 + $0x349] sm:$0xff] }
 0x56c   : > { %33701 = vst [vmem:[#allocation62_spill] sm:$0xff] %v30971_v9  ;;  %v30973_v16 = vpop.f32.mrb[101].mxu1 }
 0x56d   : > { %33702 = vst [vmem:[#allocation63_spill] sm:$0xff] %v30973_v16 }
 0x56e   : > { %24975 = vmatmul.mubr.msk.f32.gmra.mrb[70].mxu0 %vm384_vm0, %v10058_v28  ;;  %v10064_v28 = vld [vmem:[#allocation2 + $0x351] sm:$0xff] }
 0x56f   : > { %24977 = vmatprep.mubr.msk.f32.mxu0 %vm384_vm0, %v10059_v22  ;;  %v30977_v32 = vpop.f32.mrb[102].mxu1  ;;  %v10065_v22 = vld [vmem:[#allocation2 + $0x359] sm:$0xff] }
 0x570   : > { %33703 = vst [vmem:[#allocation64_spill] sm:$0xff] %v30977_v32  ;;  %v30979_v44 = vpop.f32.mrb[103].mxu1 }
 0x571   : > { %33704 = vst [vmem:[#allocation65_spill] sm:$0xff] %v30979_v44 }
 0x572   : > { %24978 = vmatmul.mubr.msk.f32.gmra.mrb[72].mxu0 %vm384_vm0, %v10060_v26  ;;  %v10066_v26 = vld [vmem:[#allocation2 + $0x361] sm:$0xff] }
 0x573   : > { %24980 = vmatprep.mubr.msk.f32.mxu0 %vm384_vm0, %v10061_v36  ;;  %v30983_v63 = vpop.f32.mrb[104].mxu1  ;;  %v10067_v36 = vld [vmem:[#allocation2 + $0x371] sm:$0xff] }
 0x574   : > { %33705 = vst [vmem:[#allocation66_spill] sm:$0xff] %v30983_v63  ;;  %v30985_v9 = vpop.f32.mrb[105].mxu1 }
 0x575   : > { %33706 = vst [vmem:[#allocation67_spill] sm:$0xff] %v30985_v9 }
 0x576   : > { %24981 = vmatmul.mubr.msk.f32.gmra.mrb[74].mxu0 %vm384_vm0, %v10062_v52  ;;  %v10068_v52 = vld [vmem:[#allocation2 + $0x379] sm:$0xff] }
 0x577   : > { %24983 = vmatprep.mubr.msk.f32.mxu0 %vm384_vm0, %v10063_v11  ;;  %v30989_v16 = vpop.f32.mrb[106].mxu1  ;;  %v10069_v11 = vld [vmem:[#allocation2 + $0x381] sm:$0xff] }
 0x578   : > { %33707 = vst [vmem:[#allocation68_spill] sm:$0xff] %v30989_v16  ;;  %v30991_v32 = vpop.f32.mrb[107].mxu1 }
 0x579   : > { %33708 = vst [vmem:[#allocation69_spill] sm:$0xff] %v30991_v32 }
 0x57a   : > { %24984 = vmatmul.mubr.msk.f32.gmra.mrb[76].mxu0 %vm384_vm0, %v10064_v28  ;;  %v10070_v28 = vld [vmem:[#allocation2 + $0x389] sm:$0xff] }
 0x57b   : > { %24986 = vmatprep.mubr.msk.f32.mxu0 %vm384_vm0, %v10065_v22  ;;  %v30995_v44 = vpop.f32.mrb[108].mxu1  ;;  %v10071_v22 = vld [vmem:[#allocation2 + $0x399] sm:$0xff] }
 0x57c   : > { %33709 = vst [vmem:[#allocation70_spill] sm:$0xff] %v30995_v44  ;;  %v30997_v63 = vpop.f32.mrb[109].mxu1 }
 0x57d   : > { %33710 = vst [vmem:[#allocation71_spill] sm:$0xff] %v30997_v63 }
 0x57e   : > { %24987 = vmatmul.mubr.msk.f32.gmra.mrb[78].mxu0 %vm384_vm0, %v10066_v26  ;;  %v10072_v26 = vld [vmem:[#allocation2 + $0x3a1] sm:$0xff] }
 0x57f   : > { %24989 = vmatprep.mubr.msk.f32.mxu0 %vm384_vm0, %v10067_v36  ;;  %v31001_v9 = vpop.f32.mrb[110].mxu1  ;;  %v10073_v36 = vld [vmem:[#allocation2 + $0x3a9] sm:$0xff] }
 0x580   : > { %33711 = vst [vmem:[#allocation72_spill] sm:$0xff] %v31001_v9  ;;  %v31003_v16 = vpop.f32.mrb[111].mxu1 }
 0x581   : > { %33712 = vst [vmem:[#allocation73_spill] sm:$0xff] %v31003_v16 }
 0x582   : > { %24990 = vmatmul.mubr.msk.f32.gmra.mrb[80].mxu0 %vm384_vm0, %v10068_v52  ;;  %v10074_v52 = vld [vmem:[#allocation2 + $0x3b1] sm:$0xff] }
 0x583   : > { %24992 = vmatprep.mubr.msk.f32.mxu0 %vm384_vm0, %v10069_v11  ;;  %v31007_v32 = vpop.f32.mrb[112].mxu1  ;;  %v10075_v11 = vld [vmem:[#allocation2 + $0x3c1] sm:$0xff] }
 0x584   : > { %33713 = vst [vmem:[#allocation74_spill] sm:$0xff] %v31007_v32  ;;  %v31009_v44 = vpop.f32.mrb[113].mxu1 }
 0x585   : > { %33714 = vst [vmem:[#allocation75_spill] sm:$0xff] %v31009_v44 }
 0x586   : > { %24993 = vmatmul.mubr.msk.f32.gmra.mrb[82].mxu0 %vm384_vm0, %v10070_v28  ;;  %v10076_v28 = vld [vmem:[#allocation2 + $0x3c9] sm:$0xff] }
 0x587   : > { %24995 = vmatprep.mubr.msk.f32.mxu0 %vm384_vm0, %v10071_v22  ;;  %v31013_v63 = vpop.f32.mrb[114].mxu1  ;;  %v10077_v22 = vld [vmem:[#allocation2 + $0x3d1] sm:$0xff] }
 0x588   : > { %33715 = vst [vmem:[#allocation76_spill] sm:$0xff] %v31013_v63  ;;  %v31015_v9 = vpop.f32.mrb[115].mxu1 }
 0x589   : > { %33716 = vst [vmem:[#allocation77_spill] sm:$0xff] %v31015_v9 }
 0x58a   : > { %24996 = vmatmul.mubr.msk.f32.gmra.mrb[84].mxu0 %vm384_vm0, %v10072_v26  ;;  %v10078_v26 = vld [vmem:[#allocation2 + $0x3d9] sm:$0xff] }
 0x58b   : > { %24998 = vmatprep.mubr.msk.f32.mxu0 %vm384_vm0, %v10073_v36  ;;  %v31019_v16 = vpop.f32.mrb[116].mxu1  ;;  %v10079_v36 = vld [vmem:[#allocation2 + $0x3e9] sm:$0xff] }
 0x58c   : > { %33717 = vst [vmem:[#allocation78_spill] sm:$0xff] %v31019_v16  ;;  %v31021_v32 = vpop.f32.mrb[117].mxu1 }
 0x58d   : > { %33718 = vst [vmem:[#allocation79_spill] sm:$0xff] %v31021_v32 }
 0x58e   : > { %24999 = vmatmul.mubr.msk.f32.gmra.mrb[86].mxu0 %vm384_vm0, %v10074_v52  ;;  %v10080_v52 = vld [vmem:[#allocation2 + $0x3f1] sm:$0xff] }
 0x58f   : > { %25001 = vmatprep.mubr.msk.f32.mxu0 %vm384_vm0, %v10075_v11  ;;  %v31025_v44 = vpop.f32.mrb[118].mxu1  ;;  %v10081_v11 = vld [vmem:[#allocation2 + $0x3f9] sm:$0xff] }
 0x590   : > { %33719 = vst [vmem:[#allocation80_spill] sm:$0xff] %v31025_v44  ;;  %v31027_v63 = vpop.f32.mrb[119].mxu1 }
 0x591   : > { %33720 = vst [vmem:[#allocation81_spill] sm:$0xff] %v31027_v63 }
 0x592   : > { %25002 = vmatmul.mubr.msk.f32.gmra.mrb[88].mxu0 %vm384_vm0, %v10076_v28  ;;  %v10082_v28 = vld [vmem:[#allocation2 + $0x401] sm:$0xff] }
 0x593   : > { %25004 = vmatprep.mubr.msk.f32.mxu0 %vm384_vm0, %v10077_v22  ;;  %v31031_v9 = vpop.f32.mrb[120].mxu1  ;;  %v10083_v22 = vld [vmem:[#allocation2 + $0x411] sm:$0xff] }
 0x594   : > { %33721 = vst [vmem:[#allocation82_spill] sm:$0xff] %v31031_v9  ;;  %v31033_v16 = vpop.f32.mrb[121].mxu1 }
 0x595   : > { %33722 = vst [vmem:[#allocation83_spill] sm:$0xff] %v31033_v16 }
 0x596   : > { %25005 = vmatmul.mubr.msk.f32.gmra.mrb[90].mxu0 %vm384_vm0, %v10078_v26  ;;  %v10084_v26 = vld [vmem:[#allocation2 + $0x419] sm:$0xff] }
 0x597   : > { %25007 = vmatprep.mubr.msk.f32.mxu0 %vm384_vm0, %v10079_v36  ;;  %v31037_v32 = vpop.f32.mrb[122].mxu1  ;;  %v10085_v36 = vld [vmem:[#allocation2 + $0x421] sm:$0xff] }
 0x598   : > { %33723 = vst [vmem:[#allocation84_spill] sm:$0xff] %v31037_v32  ;;  %v31039_v44 = vpop.f32.mrb[123].mxu1 }
 0x599   : > { %33724 = vst [vmem:[#allocation85_spill] sm:$0xff] %v31039_v44  ;;  %v11396_v44 = vld [vmem:[#allocation2 + $0x2ba] sm:$0xff] }
 0x59a   : > { %25008 = vmatmul.mubr.msk.f32.gmra.mrb[92].mxu0 %vm384_vm0, %v10080_v52  ;;  %v10086_v52 = vld [vmem:[#allocation2 + $0x429] sm:$0xff] }
 0x59b   : > { %25010 = vmatprep.mubr.msk.f32.mxu0 %vm384_vm0, %v10081_v11  ;;  %v31043_v63 = vpop.f32.mrb[124].mxu1  ;;  %v10087_v11 = vld [vmem:[#allocation2 + $0x439] sm:$0xff] }
 0x59c   : > { %33725 = vst [vmem:[#allocation86_spill] sm:$0xff] %v31043_v63  ;;  %v31045_v9 = vpop.f32.mrb[125].mxu1 }
 0x59d   : > { %33726 = vst [vmem:[#allocation87_spill] sm:$0xff] %v31045_v9  ;;  %v10090_v9 = vld [vmem:[#allocation2 + $0x451] sm:$0xff] }
 0x59e   : > { %25011 = vmatmul.mubr.msk.f32.gmra.mrb[94].mxu0 %vm384_vm0, %v10082_v28  ;;  %v10088_v28 = vld [vmem:[#allocation2 + $0x441] sm:$0xff] }
 0x59f   : > { %25013 = vmatprep.mubr.msk.f32.mxu0 %vm384_vm0, %v10083_v22  ;;  %v31049_v16 = vpop.f32.mrb[126].mxu1  ;;  %v10089_v22 = vld [vmem:[#allocation2 + $0x449] sm:$0xff] }
 0x5a0   : > { %33727 = vst [vmem:[#allocation88_spill] sm:$0xff] %v31049_v16  ;;  %v31051_v32 = vpop.f32.mrb[127].mxu1  ;;  %v10093_v16 = vld [vmem:[#allocation2 + $0x471] sm:$0xff] }
 0x5a1   : > { %33728 = vst [vmem:[#allocation89_spill] sm:$0xff] %v31051_v32  ;;  %v11388_v32 = vld [vmem:[#allocation2 + $0x26a] sm:$0xff] }
 0x5a2   : > { %25014 = vmatmul.mubr.msk.f32.gmra.mrb[96].mxu0 %vm384_vm0, %v10084_v26  ;;  %v10091_v26 = vld [vmem:[#allocation2 + $0x461] sm:$0xff] }
 0x5a3   : > { %25016 = vmatprep.mubr.msk.f32.mxu0 %vm384_vm0, %v10085_v36  ;;  %v10092_v36 = vld [vmem:[#allocation2 + $0x469] sm:$0xff] }
 0x5a6   : > { %25017 = vmatmul.mubr.msk.f32.gmra.mrb[98].mxu0 %vm384_vm0, %v10086_v52  ;;  %v10094_v52 = vld [vmem:[#allocation2 + $0x479] sm:$0xff] }
 0x5a7   : > { %25019 = vmatprep.mubr.msk.f32.mxu0 %vm384_vm0, %v10087_v11  ;;  %v10095_v11 = vld [vmem:[#allocation2 + $0x489] sm:$0xff] }
 0x5aa   : > { %25020 = vmatmul.mubr.msk.f32.gmra.mrb[100].mxu0 %vm384_vm0, %v10088_v28  ;;  %v10096_v28 = vld [vmem:[#allocation2 + $0x491] sm:$0xff] }
 0x5ab   : > { %25022 = vmatprep.mubr.msk.f32.mxu0 %vm384_vm0, %v10089_v22  ;;  %v10097_v22 = vld [vmem:[#allocation2 + $0x499] sm:$0xff] }
 0x5ae   : > { %25023 = vmatmul.mubr.msk.f32.gmra.mrb[102].mxu0 %vm384_vm0, %v10090_v9  ;;  %v10098_v9 = vld [vmem:[#allocation2 + $0x4a1] sm:$0xff] }
 0x5af   : > { %25025 = vmatprep.mubr.msk.f32.mxu0 %vm384_vm0, %v10091_v26  ;;  %v10099_v26 = vld [vmem:[#allocation2 + $0x4b1] sm:$0xff] }
 0x5b2   : > { %25026 = vmatmul.mubr.msk.f32.gmra.mrb[104].mxu0 %vm384_vm0, %v10092_v36  ;;  %v10100_v36 = vld [vmem:[#allocation2 + $0x4b9] sm:$0xff] }
 0x5b3   : > { %25028 = vmatprep.mubr.msk.f32.mxu0 %vm384_vm0, %v10093_v16  ;;  %v10101_v16 = vld [vmem:[#allocation2 + $0x4c1] sm:$0xff] }
 0x5b6   : > { %25029 = vmatmul.mubr.msk.f32.gmra.mrb[106].mxu0 %vm384_vm0, %v10094_v52  ;;  %v10102_v52 = vld [vmem:[#allocation2 + $0x4c9] sm:$0xff] }
 0x5b7   : > { %25031 = vmatprep.mubr.msk.f32.mxu0 %vm384_vm0, %v10095_v11  ;;  %v10103_v11 = vld [vmem:[#allocation2 + $0x4d9] sm:$0xff] }
 0x5ba   : > { %25032 = vmatmul.mubr.msk.f32.gmra.mrb[108].mxu0 %vm384_vm0, %v10096_v28  ;;  %v10104_v28 = vld [vmem:[#allocation2 + $0x4e1] sm:$0xff] }
 0x5bb   : > { %25034 = vmatprep.mubr.msk.f32.mxu0 %vm384_vm0, %v10097_v22  ;;  %v10105_v22 = vld [vmem:[#allocation2 + $0x4e9] sm:$0xff] }
 0x5be   : > { %25035 = vmatmul.mubr.msk.f32.gmra.mrb[110].mxu0 %vm384_vm0, %v10098_v9  ;;  %v10106_v9 = vld [vmem:[#allocation2 + $0x4f1] sm:$0xff] }
 0x5bf   : > { %25037 = vmatprep.mubr.msk.f32.mxu0 %vm384_vm0, %v10099_v26  ;;  %v10107_v26 = vld [vmem:[#allocation2 + $0x501] sm:$0xff] }
 0x5c2   : > { %25038 = vmatmul.mubr.msk.f32.gmra.mrb[112].mxu0 %vm384_vm0, %v10100_v36  ;;  %v10108_v36 = vld [vmem:[#allocation2 + $0x509] sm:$0xff] }
 0x5c3   : > { %25040 = vmatprep.mubr.msk.f32.mxu0 %vm384_vm0, %v10101_v16  ;;  %v10109_v16 = vld [vmem:[#allocation2 + $0x511] sm:$0xff] }
 0x5c6   : > { %25041 = vmatmul.mubr.msk.f32.gmra.mrb[114].mxu0 %vm384_vm0, %v10102_v52  ;;  %v10110_v52 = vld [vmem:[#allocation2 + $0x519] sm:$0xff] }
 0x5c7   : > { %25043 = vmatprep.mubr.msk.f32.mxu0 %vm384_vm0, %v10103_v11  ;;  %v10111_v11 = vld [vmem:[#allocation2 + $0x529] sm:$0xff] }
 0x5ca   : > { %25044 = vmatmul.mubr.msk.f32.gmra.mrb[116].mxu0 %vm384_vm0, %v10104_v28  ;;  %v10112_v28 = vld [vmem:[#allocation2 + $0x531] sm:$0xff] }
 0x5cb   : > { %25046 = vmatprep.mubr.msk.f32.mxu0 %vm384_vm0, %v10105_v22  ;;  %v10113_v22 = vld [vmem:[#allocation2 + $0x539] sm:$0xff] }
 0x5ce   : > { %25047 = vmatmul.mubr.msk.f32.gmra.mrb[118].mxu0 %vm384_vm0, %v10106_v9  ;;  %v10114_v9 = vld [vmem:[#allocation2 + $0x541] sm:$0xff] }
 0x5cf   : > { %25049 = vmatprep.mubr.msk.f32.mxu0 %vm384_vm0, %v10107_v26  ;;  %v11334_v26 = vld [vmem:[#allocation2 + $0x52] sm:$0xff] }
 0x5d2   : > { %25050 = vmatmul.mubr.msk.f32.gmra.mrb[120].mxu0 %vm384_vm0, %v10108_v36  ;;  %v11335_v36 = vld [vmem:[#allocation2 + $0x5a] sm:$0xff] }
 0x5d3   : > { %25052 = vmatprep.mubr.msk.f32.mxu0 %vm384_vm0, %v10109_v16  ;;  %v11336_v16 = vld [vmem:[#allocation2 + $0x62] sm:$0xff] }
 0x5d6   : > { %25053 = vmatmul.mubr.msk.f32.gmra.mrb[122].mxu0 %vm384_vm0, %v10110_v52  ;;  %v11337_v52 = vld [vmem:[#allocation2 + $0x6a] sm:$0xff] }
 0x5d7   : > { %25055 = vmatprep.mubr.msk.f32.mxu0 %vm384_vm0, %v10111_v11  ;;  %v11338_v11 = vld [vmem:[#allocation2 + $0x7a] sm:$0xff] }
 0x5da   : > { %25056 = vmatmul.mubr.msk.f32.gmra.mrb[124].mxu0 %vm384_vm0, %v10112_v28  ;;  %v11339_v28 = vld [vmem:[#allocation2 + $0x82] sm:$0xff] }
 0x5db   : > { %25058 = vmatprep.mubr.msk.f32.mxu0 %vm384_vm0, %v10113_v22  ;;  %v11340_v22 = vld [vmem:[#allocation2 + $0x8a] sm:$0xff] }
 0x5de   : > { %25059 = vmatmul.mubr.msk.f32.gmra.mrb[126].mxu0 %vm384_vm0, %v10114_v9  ;;  %v11341_v9 = vld [vmem:[#allocation2 + $0x92] sm:$0xff] }
 0x5df   : > { %25063 = vmatprep.mubr.msk.f32.mxu0 %vm384_vm0, %v11334_v26  ;;  %v11342_v26 = vld [vmem:[#allocation2 + $0xa2] sm:$0xff] }
 0x5e2   : > { %25064 = vmatmul.mubr.msk.f32.vlgmr.msra.gmra.mrb[0].mxu0 %vm384_vm0, %v11335_v36  ;;  %v11343_v36 = vld [vmem:[#allocation2 + $0xaa] sm:$0xff] }
 0x5e3   : > { %25066 = vmatprep.mubr.msk.f32.mxu0 %vm384_vm0, %v11336_v16  ;;  %v11344_v16 = vld [vmem:[#allocation2 + $0xb2] sm:$0xff] }
 0x5e6   : > { %25067 = vmatmul.mubr.msk.f32.gmra.mrb[2].mxu0 %vm384_vm0, %v11337_v52  ;;  %v11345_v52 = vld [vmem:[#allocation2 + $0xba] sm:$0xff] }
 0x5e7   : > { %25069 = vmatprep.mubr.msk.f32.mxu0 %vm384_vm0, %v11338_v11  ;;  %v11346_v11 = vld [vmem:[#allocation2 + $0xca] sm:$0xff] }
 0x5ea   : > { %25070 = vmatmul.mubr.msk.f32.gmra.mrb[4].mxu0 %vm384_vm0, %v11339_v28  ;;  %v11347_v28 = vld [vmem:[#allocation2 + $0xd2] sm:$0xff] }
 0x5eb   : > { %25072 = vmatprep.mubr.msk.f32.mxu0 %vm384_vm0, %v11340_v22  ;;  %v11348_v22 = vld [vmem:[#allocation2 + $0xda] sm:$0xff] }
 0x5ee   : > { %25073 = vmatmul.mubr.msk.f32.gmra.mrb[6].mxu0 %vm384_vm0, %v11341_v9  ;;  %v11349_v9 = vld [vmem:[#allocation2 + $0xe2] sm:$0xff] }
 0x5ef   : > { %25075 = vmatprep.mubr.msk.f32.mxu0 %vm384_vm0, %v11342_v26  ;;  %v11350_v26 = vld [vmem:[#allocation2 + $0xf2] sm:$0xff] }
 0x5f2   : > { %25076 = vmatmul.mubr.msk.f32.gmra.mrb[8].mxu0 %vm384_vm0, %v11343_v36  ;;  %v11351_v36 = vld [vmem:[#allocation2 + $0xfa] sm:$0xff] }
 0x5f3   : > { %25078 = vmatprep.mubr.msk.f32.mxu0 %vm384_vm0, %v11344_v16  ;;  %v11352_v16 = vld [vmem:[#allocation2 + $0x102] sm:$0xff] }
 0x5f6   : > { %25079 = vmatmul.mubr.msk.f32.gmra.mrb[10].mxu0 %vm384_vm0, %v11345_v52  ;;  %v11353_v52 = vld [vmem:[#allocation2 + $0x10a] sm:$0xff] }
 0x5f7   : > { %25081 = vmatprep.mubr.msk.f32.mxu0 %vm384_vm0, %v11346_v11  ;;  %v11354_v11 = vld [vmem:[#allocation2 + $0x11a] sm:$0xff] }
 0x5fa   : > { %25082 = vmatmul.mubr.msk.f32.gmra.mrb[12].mxu0 %vm384_vm0, %v11347_v28  ;;  %v11355_v28 = vld [vmem:[#allocation2 + $0x122] sm:$0xff] }
 0x5fb   : > { %25084 = vmatprep.mubr.msk.f32.mxu0 %vm384_vm0, %v11348_v22  ;;  %v11356_v22 = vld [vmem:[#allocation2 + $0x12a] sm:$0xff] }
 0x5fe   : > { %25085 = vmatmul.mubr.msk.f32.gmra.mrb[14].mxu0 %vm384_vm0, %v11349_v9  ;;  %v11357_v9 = vld [vmem:[#allocation2 + $0x132] sm:$0xff] }
 0x5ff   : > { %25087 = vmatprep.mubr.msk.f32.mxu0 %vm384_vm0, %v11350_v26  ;;  %v11358_v26 = vld [vmem:[#allocation2 + $0x142] sm:$0xff] }
 0x602   : > { %25088 = vmatmul.mubr.msk.f32.gmra.mrb[16].mxu0 %vm384_vm0, %v11351_v36  ;;  %v11359_v36 = vld [vmem:[#allocation2 + $0x14a] sm:$0xff] }
 0x603   : > { %25090 = vmatprep.mubr.msk.f32.mxu0 %vm384_vm0, %v11352_v16  ;;  %v11360_v16 = vld [vmem:[#allocation2 + $0x152] sm:$0xff] }
 0x606   : > { %25091 = vmatmul.mubr.msk.f32.gmra.mrb[18].mxu0 %vm384_vm0, %v11353_v52  ;;  %v11361_v52 = vld [vmem:[#allocation2 + $0x15a] sm:$0xff] }
 0x607   : > { %25093 = vmatprep.mubr.msk.f32.mxu0 %vm384_vm0, %v11354_v11  ;;  %v11362_v11 = vld [vmem:[#allocation2 + $0x16a] sm:$0xff] }
 0x60a   : > { %25094 = vmatmul.mubr.msk.f32.gmra.mrb[20].mxu0 %vm384_vm0, %v11355_v28  ;;  %v11363_v28 = vld [vmem:[#allocation2 + $0x172] sm:$0xff] }
 0x60b   : > { %25096 = vmatprep.mubr.msk.f32.mxu0 %vm384_vm0, %v11356_v22  ;;  %v11364_v22 = vld [vmem:[#allocation2 + $0x17a] sm:$0xff] }
 0x60e   : > { %25097 = vmatmul.mubr.msk.f32.gmra.mrb[22].mxu0 %vm384_vm0, %v11357_v9  ;;  %v11365_v9 = vld [vmem:[#allocation2 + $0x182] sm:$0xff] }
 0x60f   : > { %25099 = vmatprep.mubr.msk.f32.mxu0 %vm384_vm0, %v11358_v26  ;;  %v11366_v26 = vld [vmem:[#allocation2 + $0x192] sm:$0xff] }
 0x612   : > { %25100 = vmatmul.mubr.msk.f32.gmra.mrb[24].mxu0 %vm384_vm0, %v11359_v36  ;;  %v11367_v36 = vld [vmem:[#allocation2 + $0x19a] sm:$0xff] }
 0x613   : > { %25102 = vmatprep.mubr.msk.f32.mxu0 %vm384_vm0, %v11360_v16  ;;  %v11368_v16 = vld [vmem:[#allocation2 + $0x1a2] sm:$0xff] }
 0x616   : > { %25103 = vmatmul.mubr.msk.f32.gmra.mrb[26].mxu0 %vm384_vm0, %v11361_v52  ;;  %v11369_v52 = vld [vmem:[#allocation2 + $0x1aa] sm:$0xff] }
 0x617   : > { %25105 = vmatprep.mubr.msk.f32.mxu0 %vm384_vm0, %v11362_v11  ;;  %v11370_v11 = vld [vmem:[#allocation2 + $0x1ba] sm:$0xff] }
 0x61a   : > { %25106 = vmatmul.mubr.msk.f32.gmra.mrb[28].mxu0 %vm384_vm0, %v11363_v28  ;;  %v11371_v28 = vld [vmem:[#allocation2 + $0x1c2] sm:$0xff] }
 0x61b   : > { %25108 = vmatprep.mubr.msk.f32.mxu0 %vm384_vm0, %v11364_v22  ;;  %v11372_v22 = vld [vmem:[#allocation2 + $0x1ca] sm:$0xff] }
 0x61e   : > { %25109 = vmatmul.mubr.msk.f32.gmra.mrb[30].mxu0 %vm384_vm0, %v11365_v9  ;;  %v11373_v9 = vld [vmem:[#allocation2 + $0x1d2] sm:$0xff] }
 0x61f   : > { %25111 = vmatprep.mubr.msk.f32.mxu0 %vm384_vm0, %v11366_v26  ;;  %v11374_v26 = vld [vmem:[#allocation2 + $0x1e2] sm:$0xff] }
 0x622   : > { %25112 = vmatmul.mubr.msk.f32.gmra.mrb[32].mxu0 %vm384_vm0, %v11367_v36  ;;  %v11375_v36 = vld [vmem:[#allocation2 + $0x1ea] sm:$0xff] }
 0x623   : > { %25114 = vmatprep.mubr.msk.f32.mxu0 %vm384_vm0, %v11368_v16  ;;  %v11376_v16 = vld [vmem:[#allocation2 + $0x1f2] sm:$0xff] }
 0x626   : > { %25115 = vmatmul.mubr.msk.f32.gmra.mrb[34].mxu0 %vm384_vm0, %v11369_v52  ;;  %v11377_v52 = vld [vmem:[#allocation2 + $0x1fa] sm:$0xff] }
 0x627   : > { %25117 = vmatprep.mubr.msk.f32.mxu0 %vm384_vm0, %v11370_v11  ;;  %v11378_v11 = vld [vmem:[#allocation2 + $0x20a] sm:$0xff] }
 0x62a   : > { %25118 = vmatmul.mubr.msk.f32.gmra.mrb[36].mxu0 %vm384_vm0, %v11371_v28  ;;  %v11379_v28 = vld [vmem:[#allocation2 + $0x212] sm:$0xff] }
 0x62b   : > { %25120 = vmatprep.mubr.msk.f32.mxu0 %vm384_vm0, %v11372_v22  ;;  %v11380_v22 = vld [vmem:[#allocation2 + $0x21a] sm:$0xff] }
 0x62e   : > { %25121 = vmatmul.mubr.msk.f32.gmra.mrb[38].mxu0 %vm384_vm0, %v11373_v9  ;;  %v11381_v9 = vld [vmem:[#allocation2 + $0x222] sm:$0xff] }
 0x62f   : > { %25123 = vmatprep.mubr.msk.f32.mxu0 %vm384_vm0, %v11374_v26  ;;  %v33729_v26 = vmov 0.0  }
 0x630   : > { %13424 = vst.msk [vmem:[#allocation4] sm:$0xff] %vm12944_vm3, %v33729_v26  ;;  %13425 = vst.msk [vmem:[#allocation4 + $0x8] sm:$0xff] %vm12944_vm3, %v33729_v26 }
 0x631   : > { %13428 = vst.msk [vmem:[#allocation4 + $0x18] sm:$0xff] %vm12944_vm3, %v33729_v26  ;;  %13429 = vst.msk [vmem:[#allocation4 + $0x20] sm:$0xff] %vm12944_vm3, %v33729_v26 }
 0x632   : > { %25124 = vmatmul.mubr.msk.f32.gmra.mrb[40].mxu0 %vm384_vm0, %v11375_v36  ;;  %13431 = vst.msk [vmem:[#allocation4 + $0x30] sm:$0xff] %vm12944_vm3, %v33729_v26  ;;  %13432 = vst.msk [vmem:[#allocation4 + $0x38] sm:$0xff] %vm12944_vm3, %v33729_v26  ;;  %v11382_v36 = vld [vmem:[#allocation2 + $0x232] sm:$0xff] }
 0x633   : > { %25126 = vmatprep.mubr.msk.f32.mxu0 %vm384_vm0, %v11376_v16  ;;  %13434 = vst.msk [vmem:[#allocation4 + $0x48] sm:$0xff] %vm12944_vm3, %v33729_v26  ;;  %13435 = vst.msk [vmem:[#allocation4 + $0x50] sm:$0xff] %vm12944_vm3, %v33729_v26  ;;  %v11383_v16 = vld [vmem:[#allocation2 + $0x23a] sm:$0xff] }
 0x634   : > { %13437 = vst.msk [vmem:[#allocation4 + $0x60] sm:$0xff] %vm12944_vm3, %v33729_v26  ;;  %13438 = vst.msk [vmem:[#allocation4 + $0x68] sm:$0xff] %vm12944_vm3, %v33729_v26 }
 0x635   : > { %13440 = vst.msk [vmem:[#allocation4 + $0x78] sm:$0xff] %vm12944_vm3, %v33729_v26  ;;  %13441 = vst.msk [vmem:[#allocation4 + $0x80] sm:$0xff] %vm12944_vm3, %v33729_v26 }
 0x636   : > { %25127 = vmatmul.mubr.msk.f32.gmra.mrb[42].mxu0 %vm384_vm0, %v11377_v52  ;;  %13443 = vst.msk [vmem:[#allocation4 + $0x90] sm:$0xff] %vm12944_vm3, %v33729_v26  ;;  %13444 = vst.msk [vmem:[#allocation4 + $0x98] sm:$0xff] %vm12944_vm3, %v33729_v26  ;;  %v11384_v52 = vld [vmem:[#allocation2 + $0x242] sm:$0xff] }
 0x637   : > { %25129 = vmatprep.mubr.msk.f32.mxu0 %vm384_vm0, %v11378_v11  ;;  %13446 = vst.msk [vmem:[#allocation4 + $0xa8] sm:$0xff] %vm12944_vm3, %v33729_v26  ;;  %13447 = vst.msk [vmem:[#allocation4 + $0xb0] sm:$0xff] %vm12944_vm3, %v33729_v26  ;;  %v11385_v11 = vld [vmem:[#allocation2 + $0x24a] sm:$0xff] }
 0x638   : > { %13449 = vst.msk [vmem:[#allocation4 + $0xc0] sm:$0xff] %vm12944_vm3, %v33729_v26  ;;  %13450 = vst.msk [vmem:[#allocation4 + $0xc8] sm:$0xff] %vm12944_vm3, %v33729_v26 }
 0x639   : > { %13452 = vst.msk [vmem:[#allocation4 + $0xd8] sm:$0xff] %vm12944_vm3, %v33729_v26  ;;  %13453 = vst.msk [vmem:[#allocation4 + $0xe0] sm:$0xff] %vm12944_vm3, %v33729_v26 }
 0x63a   : > { %25130 = vmatmul.mubr.msk.f32.gmra.mrb[44].mxu0 %vm384_vm0, %v11379_v28  ;;  %13455 = vst.msk [vmem:[#allocation4 + $0xf0] sm:$0xff] %vm12944_vm3, %v33729_v26  ;;  %13456 = vst.msk [vmem:[#allocation4 + $0xf8] sm:$0xff] %vm12944_vm3, %v33729_v26  ;;  %v11386_v28 = vld [vmem:[#allocation2 + $0x25a] sm:$0xff] }
 0x63b   : > { %25132 = vmatprep.mubr.msk.f32.mxu0 %vm384_vm0, %v11380_v22  ;;  %13458 = vst.msk [vmem:[#allocation4 + $0x108] sm:$0xff] %vm12944_vm3, %v33729_v26  ;;  %13459 = vst.msk [vmem:[#allocation4 + $0x110] sm:$0xff] %vm12944_vm3, %v33729_v26  ;;  %v11387_v22 = vld [vmem:[#allocation2 + $0x262] sm:$0xff] }
 0x63c   : > { %13461 = vst.msk [vmem:[#allocation4 + $0x120] sm:$0xff] %vm12944_vm3, %v33729_v26  ;;  %13462 = vst.msk [vmem:[#allocation4 + $0x128] sm:$0xff] %vm12944_vm3, %v33729_v26 }
 0x63d   : > { %13464 = vst.msk [vmem:[#allocation4 + $0x138] sm:$0xff] %vm12944_vm3, %v33729_v26  ;;  %13465 = vst.msk [vmem:[#allocation4 + $0x140] sm:$0xff] %vm12944_vm3, %v33729_v26 }
 0x63e   : > { %13467 = vst.msk [vmem:[#allocation4 + $0x150] sm:$0xff] %vm12944_vm3, %v33729_v26  ;;  %13468 = vst.msk [vmem:[#allocation4 + $0x158] sm:$0xff] %vm12944_vm3, %v33729_v26  ;;  %25133 = vmatmul.mubr.msk.f32.gmra.mrb[46].mxu0 %vm384_vm0, %v11381_v9  ;;  %v11389_v9 = vld [vmem:[#allocation2 + $0x272] sm:$0xff] }
 0x63f   : > { %13470 = vst.msk [vmem:[#allocation4 + $0x168] sm:$0xff] %vm12944_vm3, %v33729_v26  ;;  %13471 = vst.msk [vmem:[#allocation4 + $0x170] sm:$0xff] %vm12944_vm3, %v33729_v26  ;;  %25135 = vmatprep.mubr.msk.f32.mxu0 %vm384_vm0, %v11382_v36  ;;  %v11390_v36 = vld [vmem:[#allocation2 + $0x282] sm:$0xff] }
 0x640   : > { %13473 = vst.msk [vmem:[#allocation4 + $0x180] sm:$0xff] %vm12944_vm3, %v33729_v26  ;;  %13474 = vst.msk [vmem:[#allocation4 + $0x188] sm:$0xff] %vm12944_vm3, %v33729_v26 }
 0x641   : > { %13476 = vst.msk [vmem:[#allocation4 + $0x198] sm:$0xff] %vm12944_vm3, %v33729_v26  ;;  %13477 = vst.msk [vmem:[#allocation4 + $0x1a0] sm:$0xff] %vm12944_vm3, %v33729_v26 }
 0x642   : > { %25136 = vmatmul.mubr.msk.f32.gmra.mrb[48].mxu0 %vm384_vm0, %v11383_v16  ;;  %v11391_v16 = vld [vmem:[#allocation2 + $0x28a] sm:$0xff]  ;;  %13427 = vst.msk [vmem:[#allocation4 + $0x10] sm:$0x3] %vm13426_vm4, %v33729_v26  ;;  %13430 = vst.msk [vmem:[#allocation4 + $0x28] sm:$0x3] %vm13426_vm4, %v33729_v26 }
 0x643   : > { %25138 = vmatprep.mubr.msk.f32.mxu0 %vm384_vm0, %v11384_v52  ;;  %v11392_v52 = vld [vmem:[#allocation2 + $0x292] sm:$0xff]  ;;  %13433 = vst.msk [vmem:[#allocation4 + $0x40] sm:$0x3] %vm13426_vm4, %v33729_v26  ;;  %13436 = vst.msk [vmem:[#allocation4 + $0x58] sm:$0x3] %vm13426_vm4, %v33729_v26 }
 0x644   : > { %13439 = vst.msk [vmem:[#allocation4 + $0x70] sm:$0x3] %vm13426_vm4, %v33729_v26  ;;  %13442 = vst.msk [vmem:[#allocation4 + $0x88] sm:$0x3] %vm13426_vm4, %v33729_v26 }
 0x645   : > { %13445 = vst.msk [vmem:[#allocation4 + $0xa0] sm:$0x3] %vm13426_vm4, %v33729_v26  ;;  %13448 = vst.msk [vmem:[#allocation4 + $0xb8] sm:$0x3] %vm13426_vm4, %v33729_v26 }
 0x646   : > { %25139 = vmatmul.mubr.msk.f32.gmra.mrb[50].mxu0 %vm384_vm0, %v11385_v11  ;;  %13451 = vst.msk [vmem:[#allocation4 + $0xd0] sm:$0x3] %vm13426_vm4, %v33729_v26  ;;  %13454 = vst.msk [vmem:[#allocation4 + $0xe8] sm:$0x3] %vm13426_vm4, %v33729_v26  ;;  %v21224_v11 = vld [vmem:[%s33567_s3 + $0x18] sm:$0xff] }
 0x647   : > { %25141 = vmatprep.mubr.msk.f32.mxu0 %vm384_vm0, %v11386_v28  ;;  %13457 = vst.msk [vmem:[#allocation4 + $0x100] sm:$0x3] %vm13426_vm4, %v33729_v26  ;;  %13460 = vst.msk [vmem:[#allocation4 + $0x118] sm:$0x3] %vm13426_vm4, %v33729_v26 }
 0x648   : > { %13463 = vst.msk [vmem:[#allocation4 + $0x130] sm:$0x3] %vm13426_vm4, %v33729_v26  ;;  %13466 = vst.msk [vmem:[#allocation4 + $0x148] sm:$0x3] %vm13426_vm4, %v33729_v26 }
 0x649   : > { %13469 = vst.msk [vmem:[#allocation4 + $0x160] sm:$0x3] %vm13426_vm4, %v33729_v26  ;;  %13472 = vst.msk [vmem:[#allocation4 + $0x178] sm:$0x3] %vm13426_vm4, %v33729_v26  ;;  %v13547_v63 = vld [vmem:[#allocation4 + $0x9] sm:$0xff] }
 0x64a   : > { %25142 = vmatmul.mubr.msk.f32.gmra.mrb[52].mxu0 %vm384_vm0, %v11387_v22  ;;  %13475 = vst.msk [vmem:[#allocation4 + $0x190] sm:$0x3] %vm13426_vm4, %v33729_v26  ;;  %13478 = vst.msk [vmem:[#allocation4 + $0x1a8] sm:$0x3] %vm13426_vm4, %v33729_v26  ;;  %v11393_v22 = vld [vmem:[#allocation2 + $0x29a] sm:$0xff]  ;;  %v11395_v26 = vld [vmem:[#allocation2 + $0x2b2] sm:$0xff] }
 0x64b   : > { %25144 = vmatprep.mubr.msk.f32.mxu0 %vm384_vm0, %v11388_v32  ;;  %v21223_v32 = vld [vmem:[%s33567_s3 + $0x10] sm:$0xff] }
 0x64c   : > { %v26242_v28 = vpack.c.bf16 %v21224_v11, %v21223_v32  ;;  %v11399_v32 = vld [vmem:[#allocation2 + $0x2da] sm:$0xff]  ;;  %v11400_v11 = vld [vmem:[#allocation2 + $0x2e2] sm:$0xff] }
 0x64e   : > { %25145 = vmatmul.mubr.msk.f32.gmra.mrb[54].mxu0 %vm384_vm0, %v11389_v9  ;;  %v11394_v9 = vld [vmem:[#allocation2 + $0x2aa] sm:$0xff]  ;;  %26243 = vmatprep.subr.bf16.mxu1 %v26242_v28 }
 0x64f   : > { %25147 = vmatprep.mubr.msk.f32.mxu0 %vm384_vm0, %v11390_v36  ;;  %26245 = vmatpush3.bf16.msra.mxu1 %v26242_v28  ;;  %v13546_v36 = vld [vmem:[#allocation4 + $0x1] sm:$0xff] }
 0x650   : > { %25259 = vmatprep.mubr.msk.f32.mxu1 %vm12944_vm3, %v13546_v36  ;;  %v11401_v28 = vld [vmem:[#allocation2 + $0x2ea] sm:$0xff] }
 0x651   : > { %v11407_v36 = vld [vmem:[#allocation2 + $0x32a] sm:$0xff] }
 0x652   : > { %25148 = vmatmul.mubr.msk.f32.gmra.mrb[56].mxu0 %vm384_vm0, %v11391_v16  ;;  %25260 = vmatmul.mubr.msk.f32.vlgmr.msra.gmra.mrb[128].mxu1 %vm12944_vm3, %v13547_v63  ;;  %v11397_v16 = vld [vmem:[#allocation2 + $0x2c2] sm:$0xff] }
 0x653   : > { %25150 = vmatprep.mubr.msk.f32.mxu0 %vm384_vm0, %v11392_v52  ;;  %v11398_v52 = vld [vmem:[#allocation2 + $0x2d2] sm:$0xff]  ;;  %v11403_v63 = vld [vmem:[#allocation2 + $0x302] sm:$0xff] }
 0x656   : > { %25151 = vmatmul.mubr.msk.f32.gmra.mrb[58].mxu0 %vm384_vm0, %v11393_v22  ;;  %v11402_v22 = vld [vmem:[#allocation2 + $0x2fa] sm:$0xff] }
 0x657   : > { %25153 = vmatprep.mubr.msk.f32.mxu0 %vm384_vm0, %v11394_v9  ;;  %v11406_v9 = vld [vmem:[#allocation2 + $0x322] sm:$0xff] }
 0x65a   : > { %25154 = vmatmul.mubr.msk.f32.gmra.mrb[60].mxu0 %vm384_vm0, %v11395_v26  ;;  %v11405_v26 = vld [vmem:[#allocation2 + $0x312] sm:$0xff] }
 0x65b   : > { %25156 = vmatprep.mubr.msk.f32.mxu0 %vm384_vm0, %v11396_v44  ;;  %v11404_v44 = vld [vmem:[#allocation2 + $0x30a] sm:$0xff] }
 0x65e   : > { %25157 = vmatmul.mubr.msk.f32.gmra.mrb[62].mxu0 %vm384_vm0, %v11397_v16  ;;  %v11408_v16 = vld [vmem:[#allocation2 + $0x332] sm:$0xff] }
 0x65f   : > { %25159 = vmatprep.mubr.msk.f32.mxu0 %vm384_vm0, %v11398_v52  ;;  %v11409_v52 = vld [vmem:[#allocation2 + $0x33a] sm:$0xff] }
 0x662   : > { %25160 = vmatmul.mubr.msk.f32.gmra.mrb[64].mxu0 %vm384_vm0, %v11399_v32  ;;  %v11410_v32 = vld [vmem:[#allocation2 + $0x34a] sm:$0xff] }
 0x663   : > { %25162 = vmatprep.mubr.msk.f32.mxu0 %vm384_vm0, %v11400_v11  ;;  %v11411_v11 = vld [vmem:[#allocation2 + $0x352] sm:$0xff] }
 0x666   : > { %25163 = vmatmul.mubr.msk.f32.gmra.mrb[66].mxu0 %vm384_vm0, %v11401_v28  ;;  %v11412_v28 = vld [vmem:[#allocation2 + $0x35a] sm:$0xff] }
 0x667   : > { %25165 = vmatprep.mubr.msk.f32.mxu0 %vm384_vm0, %v11402_v22  ;;  %v11413_v22 = vld [vmem:[#allocation2 + $0x362] sm:$0xff] }
 0x66a   : > { %25166 = vmatmul.mubr.msk.f32.gmra.mrb[68].mxu0 %vm384_vm0, %v11403_v63  ;;  %v11414_v63 = vld [vmem:[#allocation2 + $0x372] sm:$0xff] }
 0x66b   : > { %25168 = vmatprep.mubr.msk.f32.mxu0 %vm384_vm0, %v11404_v44  ;;  %v11415_v44 = vld [vmem:[#allocation2 + $0x37a] sm:$0xff] }
 0x66e   : > { %25169 = vmatmul.mubr.msk.f32.gmra.mrb[70].mxu0 %vm384_vm0, %v11405_v26  ;;  %v11416_v26 = vld [vmem:[#allocation2 + $0x382] sm:$0xff] }
 0x66f   : > { %25171 = vmatprep.mubr.msk.f32.mxu0 %vm384_vm0, %v11406_v9  ;;  %v11417_v9 = vld [vmem:[#allocation2 + $0x38a] sm:$0xff] }
 0x672   : > { %25172 = vmatmul.mubr.msk.f32.gmra.mrb[72].mxu0 %vm384_vm0, %v11407_v36  ;;  %v11418_v36 = vld [vmem:[#allocation2 + $0x39a] sm:$0xff] }
 0x673   : > { %25174 = vmatprep.mubr.msk.f32.mxu0 %vm384_vm0, %v11408_v16  ;;  %v11419_v16 = vld [vmem:[#allocation2 + $0x3a2] sm:$0xff] }
 0x676   : > { %25175 = vmatmul.mubr.msk.f32.gmra.mrb[74].mxu0 %vm384_vm0, %v11409_v52  ;;  %v11420_v52 = vld [vmem:[#allocation2 + $0x3aa] sm:$0xff] }
 0x677   : > { %25177 = vmatprep.mubr.msk.f32.mxu0 %vm384_vm0, %v11410_v32  ;;  %v11421_v32 = vld [vmem:[#allocation2 + $0x3b2] sm:$0xff] }
 0x67a   : > { %25178 = vmatmul.mubr.msk.f32.gmra.mrb[76].mxu0 %vm384_vm0, %v11411_v11  ;;  %v11422_v11 = vld [vmem:[#allocation2 + $0x3c2] sm:$0xff] }
 0x67b   : > { %25180 = vmatprep.mubr.msk.f32.mxu0 %vm384_vm0, %v11412_v28  ;;  %v11423_v28 = vld [vmem:[#allocation2 + $0x3ca] sm:$0xff] }
 0x67e   : > { %25181 = vmatmul.mubr.msk.f32.gmra.mrb[78].mxu0 %vm384_vm0, %v11413_v22  ;;  %v11424_v22 = vld [vmem:[#allocation2 + $0x3d2] sm:$0xff] }
 0x67f   : > { %25183 = vmatprep.mubr.msk.f32.mxu0 %vm384_vm0, %v11414_v63  ;;  %v11425_v63 = vld [vmem:[#allocation2 + $0x3da] sm:$0xff] }
 0x682   : > { %25184 = vmatmul.mubr.msk.f32.gmra.mrb[80].mxu0 %vm384_vm0, %v11415_v44  ;;  %v11426_v44 = vld [vmem:[#allocation2 + $0x3ea] sm:$0xff] }
 0x683   : > { %25186 = vmatprep.mubr.msk.f32.mxu0 %vm384_vm0, %v11416_v26  ;;  %v11427_v26 = vld [vmem:[#allocation2 + $0x3f2] sm:$0xff] }
 0x686   : > { %25187 = vmatmul.mubr.msk.f32.gmra.mrb[82].mxu0 %vm384_vm0, %v11417_v9  ;;  %v11428_v9 = vld [vmem:[#allocation2 + $0x3fa] sm:$0xff] }
 0x687   : > { %25189 = vmatprep.mubr.msk.f32.mxu0 %vm384_vm0, %v11418_v36  ;;  %v11429_v36 = vld [vmem:[#allocation2 + $0x402] sm:$0xff] }
 0x68a   : > { %25190 = vmatmul.mubr.msk.f32.gmra.mrb[84].mxu0 %vm384_vm0, %v11419_v16  ;;  %v11430_v16 = vld [vmem:[#allocation2 + $0x412] sm:$0xff] }
 0x68b   : > { %25192 = vmatprep.mubr.msk.f32.mxu0 %vm384_vm0, %v11420_v52  ;;  %v11431_v52 = vld [vmem:[#allocation2 + $0x41a] sm:$0xff] }
 0x68e   : > { %25193 = vmatmul.mubr.msk.f32.gmra.mrb[86].mxu0 %vm384_vm0, %v11421_v32  ;;  %v11432_v32 = vld [vmem:[#allocation2 + $0x422] sm:$0xff] }
 0x68f   : > { %25195 = vmatprep.mubr.msk.f32.mxu0 %vm384_vm0, %v11422_v11  ;;  %v11433_v11 = vld [vmem:[#allocation2 + $0x42a] sm:$0xff] }
 0x692   : > { %25196 = vmatmul.mubr.msk.f32.gmra.mrb[88].mxu0 %vm384_vm0, %v11423_v28  ;;  %v11434_v28 = vld [vmem:[#allocation2 + $0x43a] sm:$0xff] }
 0x693   : > { %25198 = vmatprep.mubr.msk.f32.mxu0 %vm384_vm0, %v11424_v22  ;;  %v11435_v22 = vld [vmem:[#allocation2 + $0x442] sm:$0xff] }
 0x696   : > { %25199 = vmatmul.mubr.msk.f32.gmra.mrb[90].mxu0 %vm384_vm0, %v11425_v63  ;;  %v11436_v63 = vld [vmem:[#allocation2 + $0x44a] sm:$0xff] }
 0x697   : > { %25201 = vmatprep.mubr.msk.f32.mxu0 %vm384_vm0, %v11426_v44  ;;  %v11437_v44 = vld [vmem:[#allocation2 + $0x452] sm:$0xff] }
 0x69a   : > { %25202 = vmatmul.mubr.msk.f32.gmra.mrb[92].mxu0 %vm384_vm0, %v11427_v26  ;;  %v11438_v26 = vld [vmem:[#allocation2 + $0x462] sm:$0xff] }
 0x69b   : > { %25204 = vmatprep.mubr.msk.f32.mxu0 %vm384_vm0, %v11428_v9  ;;  %v11439_v9 = vld [vmem:[#allocation2 + $0x46a] sm:$0xff] }
 0x69e   : > { %25205 = vmatmul.mubr.msk.f32.gmra.mrb[94].mxu0 %vm384_vm0, %v11429_v36  ;;  %v11440_v36 = vld [vmem:[#allocation2 + $0x472] sm:$0xff] }
 0x69f   : > { %25207 = vmatprep.mubr.msk.f32.mxu0 %vm384_vm0, %v11430_v16  ;;  %v11441_v16 = vld [vmem:[#allocation2 + $0x47a] sm:$0xff] }
 0x6a2   : > { %25208 = vmatmul.mubr.msk.f32.gmra.mrb[96].mxu0 %vm384_vm0, %v11431_v52  ;;  %v11442_v52 = vld [vmem:[#allocation2 + $0x48a] sm:$0xff] }
 0x6a3   : > { %25210 = vmatprep.mubr.msk.f32.mxu0 %vm384_vm0, %v11432_v32 }
 0x6a6   : > { %25211 = vmatmul.mubr.msk.f32.gmra.mrb[98].mxu0 %vm384_vm0, %v11433_v11  ;;  %v31308_v11 = vld [vmem:[%s33566_s2] ss:$0 sm:$0xff] }
 0x6a7   : > { %25213 = vmatprep.mubr.msk.f32.mxu0 %vm384_vm0, %v11434_v28 }
 0x6aa   : > { %25214 = vmatmul.mubr.msk.f32.gmra.mrb[100].mxu0 %vm384_vm0, %v11435_v22 }
 0x6ab   : > { %25216 = vmatprep.mubr.msk.f32.mxu0 %vm384_vm0, %v11436_v63 }
 0x6ae   : > { %25217 = vmatmul.mubr.msk.f32.gmra.mrb[102].mxu0 %vm384_vm0, %v11437_v44  ;;  %v11443_v44 = vld [vmem:[#allocation2 + $0x492] sm:$0xff] }
 0x6af   : > { %25219 = vmatprep.mubr.msk.f32.mxu0 %vm384_vm0, %v11438_v26 }
 0x6b2   : > { %25220 = vmatmul.mubr.msk.f32.gmra.mrb[104].mxu0 %vm384_vm0, %v11439_v9  ;;  %v11444_v9 = vld [vmem:[#allocation2 + $0x49a] sm:$0xff] }
 0x6b3   : > { %25222 = vmatprep.mubr.msk.f32.mxu0 %vm384_vm0, %v11440_v36 }
 0x6b5   : > { %v25065_v32 = vpop.f32.mrb[0].mxu0 }
 0x6b6   : > { %v26568_v28 = vadd.f32 %v25065_v32, %v30627_v3  ;;  %v11914_v22 = vpop.f32.mrb[1].mxu0  ;;  %25223 = vmatmul.mubr.msk.f32.gmra.mrb[106].mxu0 %vm384_vm0, %v11441_v16  ;;  %v11446_v32 = vld [vmem:[#allocation2 + $0x4b2] sm:$0xff] }
 0x6b7   : > { %v26569_v63 = vadd.f32 %v11914_v22, %v30632_v59  ;;  %25225 = vmatprep.mubr.msk.f32.mxu0 %vm384_vm0, %v11442_v52  ;;  %v11445_v59 = vld [vmem:[#allocation2 + $0x4a2] sm:$0xff] }
 0x6b8   : > { %v12689_v26 = vadd.f32 %v26568_v28, %v31308_v11 }
 0x6b9   : > { %v12688_v36 = vadd.f32 %v26569_v63, %v31308_v11  ;;  %v25068_v6 = vpop.f32.mrb[2].mxu0 }
 0x6ba   : > { %v12817_v18 = vmax.f32 %v12689_v26, 0.0  ;;  %v26570_v46 = vadd.f32 %v25068_v6, %v30637_v7  ;;  %v11924_v54 = vpop.f32.mrb[3].mxu0  ;;  %25226 = vmatmul.mubr.msk.f32.gmra.mrb[108].mxu0 %vm384_vm0, %v11443_v44  ;;  %v11448_v44 = vld [vmem:[#allocation2 + $0x4c2] sm:$0xff] }
 0x6bb   : > { %v12816_v3 = vmax.f32 %v12688_v36, 0.0  ;;  %v26571_v16 = vadd.f32 %v11924_v54, %v30642_v8  ;;  %25228 = vmatprep.mubr.msk.f32.mxu0 %vm384_vm0, %v11444_v9 }
 0x6bc   : > { %12946 = vst.msk [vmem:[#allocation3 + $0x8] sm:$0xff] %vm12944_vm3, %v12817_v18  ;;  %v12691_v52 = vadd.f32 %v26570_v46, %v31308_v11  ;;  %v11447_v18 = vld [vmem:[#allocation2 + $0x4ba] sm:$0xff] }
 0x6bd   : > { %12945 = vst.msk [vmem:[#allocation3] sm:$0xff] %vm12944_vm3, %v12816_v3  ;;  %v12690_v28 = vadd.f32 %v26571_v16, %v31308_v11  ;;  %v25071_v22 = vpop.f32.mrb[4].mxu0 }
 0x6be   : > { %v12819_v7 = vmax.f32 %v12691_v52, 0.0  ;;  %v26572_v6 = vadd.f32 %v25071_v22, %v30647_v12  ;;  %v11934_v63 = vpop.f32.mrb[5].mxu0  ;;  %25229 = vmatmul.mubr.msk.f32.gmra.mrb[110].mxu0 %vm384_vm0, %v11445_v59  ;;  %v11449_v59 = vld [vmem:[#allocation2 + $0x4ca] sm:$0xff] }
 0x6bf   : > { %v12818_v8 = vmax.f32 %v12690_v28, 0.0  ;;  %v26573_v54 = vadd.f32 %v11934_v63, %v30652_v45  ;;  %25231 = vmatprep.mubr.msk.f32.mxu0 %vm384_vm0, %v11446_v32  ;;  %v11450_v32 = vld [vmem:[#allocation2 + $0x4da] sm:$0xff] }
 0x6c0   : > { %12948 = vst.msk [vmem:[#allocation3 + $0x18] sm:$0xff] %vm12944_vm3, %v12819_v7  ;;  %v12693_v46 = vadd.f32 %v26572_v6, %v31308_v11 }
 0x6c1   : > { %12947 = vst.msk [vmem:[#allocation3 + $0x10] sm:$0xff] %vm12944_vm3, %v12818_v8  ;;  %v12692_v26 = vadd.f32 %v26573_v54, %v31308_v11  ;;  %v25074_v9 = vpop.f32.mrb[6].mxu0  ;;  %v11451_v8 = vld [vmem:[#allocation2 + $0x4e2] sm:$0xff] }
 0x6c2   : > { %v12821_v12 = vmax.f32 %v12693_v46, 0.0  ;;  %v26574_v36 = vadd.f32 %v25074_v9, %v30657_v15  ;;  %v11944_v3 = vpop.f32.mrb[7].mxu0  ;;  %25232 = vmatmul.mubr.msk.f32.gmra.mrb[112].mxu0 %vm384_vm0, %v11447_v18  ;;  %v11452_v18 = vld [vmem:[#allocation2 + $0x4ea] sm:$0xff] }
 0x6c3   : > { %v12820_v45 = vmax.f32 %v12692_v26, 0.0  ;;  %v26575_v16 = vadd.f32 %v11944_v3, %v30662_v0  ;;  %25234 = vmatprep.mubr.msk.f32.mxu0 %vm384_vm0, %v11448_v44 }
 0x6c4   : > { %12950 = vst.msk [vmem:[#allocation3 + $0x28] sm:$0xff] %vm12944_vm3, %v12821_v12  ;;  %v12695_v52 = vadd.f32 %v26574_v36, %v31308_v11  ;;  %v13201_v26 = vld [vmem:[#allocation3 + $0x1] ss:$2 sm:$0xff] }
 0x6c5   : > { %12949 = vst.msk [vmem:[#allocation3 + $0x20] sm:$0xff] %vm12944_vm3, %v12820_v45  ;;  %v12694_v28 = vadd.f32 %v26575_v16, %v31308_v11  ;;  %v25077_v22 = vpop.f32.mrb[8].mxu0  ;;  %v11453_v45 = vld [vmem:[#allocation2 + $0x4f2] sm:$0xff] }
 0x6c6   : > { %v12823_v15 = vmax.f32 %v12695_v52, 0.0  ;;  %v26576_v7 = vadd.f32 %v25077_v22, %v30667_v13  ;;  %v11954_v6 = vpop.f32.mrb[9].mxu0  ;;  %25235 = vmatmul.mubr.msk.f32.gmra.mrb[114].mxu0 %vm384_vm0, %v11449_v59  ;;  %v13073_v13 = vld [vmem:[#allocation3] ss:$2 sm:$0xff] }
 0x6c7   : > { %v12822_v0 = vmax.f32 %v12694_v28, 0.0  ;;  %v26577_v63 = vadd.f32 %v11954_v6, %v30672_v2  ;;  %25237 = vmatprep.mubr.msk.f32.mxu0 %vm384_vm0, %v11450_v32  ;;  %v11454_v32 = vld [vmem:[#allocation2 + $0x502] sm:$0xff]  ;;  %v13328_v28 = vmax.f32 %v13073_v13, %v13201_v26 }
 0x6c8   : > { %12952 = vst.msk [vmem:[#allocation3 + $0x38] sm:$0xff] %vm12944_vm3, %v12823_v15  ;;  %v12697_v54 = vadd.f32 %v26576_v7, %v31308_v11  ;;  %v13075_v7 = vld [vmem:[#allocation3 + $0x10] ss:$2 sm:$0xff]  ;;  %v13203_v6 = vld [vmem:[#allocation3 + $0x11] ss:$2 sm:$0xff] }
 0x6c9   : > { %12951 = vst.msk [vmem:[#allocation3 + $0x30] sm:$0xff] %vm12944_vm3, %v12822_v0  ;;  %v12696_v46 = vadd.f32 %v26577_v63, %v31308_v11  ;;  %v25080_v44 = vpop.f32.mrb[10].mxu0 }
 0x6ca   : > { %v12825_v9 = vmax.f32 %v12697_v54, 0.0  ;;  %v26578_v12 = vadd.f32 %v25080_v44, %v30677_v25  ;;  %v11964_v36 = vpop.f32.mrb[11].mxu0  ;;  %25238 = vmatmul.mubr.msk.f32.gmra.mrb[116].mxu0 %vm384_vm0, %v11451_v8 }
 0x6cb   : > { %v12824_v2 = vmax.f32 %v12696_v46, 0.0  ;;  %v26579_v3 = vadd.f32 %v11964_v36, %v30682_v30  ;;  %25240 = vmatprep.mubr.msk.f32.mxu0 %vm384_vm0, %v11452_v18  ;;  %v11455_v46 = vld [vmem:[#allocation2 + $0x50a] sm:$0xff] }
 0x6cc   : > { %v13077_v16 = vld [vmem:[#allocation3 + $0x20] ss:$2 sm:$0xff]  ;;  %v13205_v59 = vld [vmem:[#allocation3 + $0x21] ss:$2 sm:$0xff]  ;;  %12954 = vst.msk [vmem:[#allocation3 + $0x48] sm:$0xff] %vm12944_vm3, %v12825_v9  ;;  %v12699_v52 = vadd.f32 %v26578_v12, %v31308_v11  ;;  %v13329_v12 = vmax.f32 %v13075_v7, %v13203_v6 }
 0x6cd   : > { %v13330_v22 = vmax.f32 %v13077_v16, %v13205_v59  ;;  %12953 = vst.msk [vmem:[#allocation3 + $0x40] sm:$0xff] %vm12944_vm3, %v12824_v2  ;;  %v12698_v25 = vadd.f32 %v26579_v3, %v31308_v11  ;;  %v25083_v15 = vpop.f32.mrb[12].mxu0  ;;  %v11456_v9 = vld [vmem:[#allocation2 + $0x512] sm:$0xff] }
 0x6ce   : > { %v12827_v30 = vmax.f32 %v12699_v52, 0.0  ;;  %v26580_v0 = vadd.f32 %v25083_v15, %v30687_v34  ;;  %v11974_v63 = vpop.f32.mrb[13].mxu0  ;;  %25241 = vmatmul.mubr.msk.f32.gmra.mrb[118].mxu0 %vm384_vm0, %v11453_v45 }
 0x6cf   : > { %v13392_v8 = vmax.f32 %v13328_v28, %v13330_v22  ;;  %v12826_v54 = vmax.f32 %v12698_v25, 0.0  ;;  %v26581_v18 = vadd.f32 %v11974_v63, %v30692_v1  ;;  %25243 = vmatprep.mubr.msk.f32.mxu0 %vm384_vm0, %v11454_v32  ;;  %v11457_v32 = vld [vmem:[#allocation2 + $0x51a] sm:$0xff]  ;;  %v11458_v22 = vld [vmem:[#allocation2 + $0x52a] sm:$0xff] }
 0x6d0   : > { %v13079_v44 = vld [vmem:[#allocation3 + $0x30] ss:$2 sm:$0xff]  ;;  %v13207_v13 = vld [vmem:[#allocation3 + $0x31] ss:$2 sm:$0xff]  ;;  %12956 = vst.msk [vmem:[#allocation3 + $0x58] sm:$0xff] %vm12944_vm3, %v12827_v30  ;;  %v12701_v26 = vadd.f32 %v26580_v0, %v31308_v11  ;;  %v11459_v0 = vld [vmem:[#allocation2 + $0x532] sm:$0xff] }
 0x6d1   : > { %13480 = vst.msk [vmem:[#allocation4 + $0x19] sm:$0xff] %vm12944_vm3, %v13392_v8  ;;  %v13331_v34 = vmax.f32 %v13079_v44, %v13207_v13  ;;  %12955 = vst.msk [vmem:[#allocation3 + $0x50] sm:$0xff] %vm12944_vm3, %v12826_v54  ;;  %v12700_v36 = vadd.f32 %v26581_v18, %v31308_v11  ;;  %v25086_v2 = vpop.f32.mrb[14].mxu0  ;;  %v11460_v54 = vld [vmem:[#allocation2 + $0x53a] sm:$0xff] }
 0x6d2   : > { %v12829_v1 = vmax.f32 %v12701_v26, 0.0  ;;  %v26582_v3 = vadd.f32 %v25086_v2, %v30697_v42  ;;  %v11984_v45 = vpop.f32.mrb[15].mxu0  ;;  %25244 = vmatmul.mubr.msk.f32.gmra.mrb[120].mxu0 %vm384_vm0, %v11455_v46 }
 0x6d3   : > { %v13393_v16 = vmax.f32 %v13329_v12, %v13331_v34  ;;  %v12828_v59 = vmax.f32 %v12700_v36, 0.0  ;;  %v26583_v52 = vadd.f32 %v11984_v45, %v30702_v17  ;;  %25246 = vmatprep.mubr.msk.f32.mxu0 %vm384_vm0, %v11456_v9  ;;  %v11461_v34 = vld [vmem:[#allocation2 + $0x542] sm:$0xff] }
 0x6d4   : > { %12958 = vst.msk [vmem:[#allocation3 + $0x68] sm:$0xff] %vm12944_vm3, %v12829_v1  ;;  %v12703_v28 = vadd.f32 %v26582_v3, %v31308_v11  ;;  %v13081_v46 = vld [vmem:[#allocation3 + $0x40] ss:$2 sm:$0xff]  ;;  %v13209_v44 = vld [vmem:[#allocation3 + $0x41] ss:$2 sm:$0xff] }
 0x6d5   : > { %12957 = vst.msk [vmem:[#allocation3 + $0x60] sm:$0xff] %vm12944_vm3, %v12828_v59  ;;  %v12702_v25 = vadd.f32 %v26583_v52, %v31308_v11  ;;  %v25089_v42 = vpop.f32.mrb[16].mxu0  ;;  %13481 = vst.msk [vmem:[#allocation4 + $0x21] sm:$0xff] %vm12944_vm3, %v13393_v16  ;;  %v13332_v45 = vmax.f32 %v13081_v46, %v13209_v44 }
 0x6d6   : > { %v12831_v15 = vmax.f32 %v12703_v28, 0.0  ;;  %v26584_v7 = vadd.f32 %v25089_v42, %v30707_v50  ;;  %v11994_v6 = vpop.f32.mrb[17].mxu0  ;;  %25247 = vmatmul.mubr.msk.f32.gmra.mrb[122].mxu0 %vm384_vm0, %v11457_v32 }
 0x6d7   : > { %v12830_v17 = vmax.f32 %v12702_v25, 0.0  ;;  %v26585_v30 = vadd.f32 %v11994_v6, %v30712_v19  ;;  %25249 = vmatprep.mubr.msk.f32.mxu0 %vm384_vm0, %v11458_v22 }
 0x6d8   : > { %12960 = vst.msk [vmem:[#allocation3 + $0x78] sm:$0xff] %vm12944_vm3, %v12831_v15  ;;  %v12705_v63 = vadd.f32 %v26584_v7, %v31308_v11  ;;  %v13548_v8 = vld [vmem:[#allocation4 + $0x19] sm:$0xff] }
 0x6d9   : > { %12959 = vst.msk [vmem:[#allocation3 + $0x70] sm:$0xff] %vm12944_vm3, %v12830_v17  ;;  %v12704_v18 = vadd.f32 %v26585_v30, %v31308_v11  ;;  %v25092_v50 = vpop.f32.mrb[18].mxu0  ;;  %25262 = vmatprep.mubr.msk.f32.mxu1 %vm12944_vm3, %v13548_v8  ;;  %v13211_v52 = vld [vmem:[#allocation3 + $0x51] ss:$2 sm:$0xff] }
 0x6da   : > { %v12833_v13 = vmax.f32 %v12705_v63, 0.0  ;;  %v26586_v19 = vadd.f32 %v25092_v50, %v30717_v61  ;;  %v12004_v26 = vpop.f32.mrb[19].mxu0  ;;  %25250 = vmatmul.mubr.msk.f32.gmra.mrb[124].mxu0 %vm384_vm0, %v11459_v0 }
 0x6db   : > { %v12832_v9 = vmax.f32 %v12704_v18, 0.0  ;;  %v26587_v12 = vadd.f32 %v12004_v26, %v30722_v29  ;;  %25252 = vmatprep.mubr.msk.f32.mxu0 %vm384_vm0, %v11460_v54  ;;  %v13083_v29 = vld [vmem:[#allocation3 + $0x50] ss:$2 sm:$0xff] }
 0x6dc   : > { %v13085_v36 = vld [vmem:[#allocation3 + $0x60] ss:$2 sm:$0xff]  ;;  %v13213_v2 = vld [vmem:[#allocation3 + $0x61] ss:$2 sm:$0xff]  ;;  %12962 = vst.msk [vmem:[#allocation3 + $0x88] sm:$0xff] %vm12944_vm3, %v12833_v13  ;;  %v12707_v1 = vadd.f32 %v26586_v19, %v31308_v11  ;;  %v13333_v30 = vmax.f32 %v13083_v29, %v13211_v52 }
 0x6dd   : > { %v13549_v3 = vld [vmem:[#allocation4 + $0x21] sm:$0xff]  ;;  %v13334_v16 = vmax.f32 %v13085_v36, %v13213_v2  ;;  %12961 = vst.msk [vmem:[#allocation3 + $0x80] sm:$0xff] %vm12944_vm3, %v12832_v9  ;;  %v12706_v61 = vadd.f32 %v26587_v12, %v31308_v11  ;;  %v25095_v59 = vpop.f32.mrb[20].mxu0 }
 0x6de   : > { %25263 = vmatmul.mubr.msk.f32.gmra.mrb[130].mxu1 %vm12944_vm3, %v13549_v3  ;;  %v12835_v32 = vmax.f32 %v12707_v1, 0.0  ;;  %v26588_v28 = vadd.f32 %v25095_v59, %v30727_v23  ;;  %v12014_v22 = vpop.f32.mrb[21].mxu0  ;;  %25253 = vmatmul.mubr.msk.f32.gmra.mrb[126].mxu0 %vm384_vm0, %v11461_v34 }
 0x6df   : > { %v13394_v25 = vmax.f32 %v13332_v45, %v13334_v16  ;;  %v12834_v42 = vmax.f32 %v12706_v61, 0.0  ;;  %v26589_v15 = vadd.f32 %v12014_v22, %v30731_v5 }
 0x6e0   : > { %v13087_v7 = vld [vmem:[#allocation3 + $0x70] ss:$2 sm:$0xff]  ;;  %v13215_v6 = vld [vmem:[#allocation3 + $0x71] ss:$2 sm:$0xff]  ;;  %12964 = vst.msk [vmem:[#allocation3 + $0x98] sm:$0xff] %vm12944_vm3, %v12835_v32  ;;  %v12709_v17 = vadd.f32 %v26588_v28, %v31308_v11 }
 0x6e1   : > { %13482 = vst.msk [vmem:[#allocation4 + $0x31] sm:$0xff] %vm12944_vm3, %v13394_v25  ;;  %v13335_v0 = vmax.f32 %v13087_v7, %v13215_v6  ;;  %12963 = vst.msk [vmem:[#allocation3 + $0x90] sm:$0xff] %vm12944_vm3, %v12834_v42  ;;  %v12708_v23 = vadd.f32 %v26589_v15, %v31308_v11  ;;  %v25098_v63 = vpop.f32.mrb[22].mxu0 }
 0x6e2   : > { %v12837_v8 = vmax.f32 %v12709_v17, 0.0  ;;  %v26590_v54 = vadd.f32 %v25098_v63, %v30735_v33  ;;  %v12024_v18 = vpop.f32.mrb[23].mxu0 }
 0x6e3   : > { %v13395_v5 = vmax.f32 %v13333_v30, %v13335_v0  ;;  %v12836_v50 = vmax.f32 %v12708_v23, 0.0  ;;  %v26591_v46 = vadd.f32 %v12024_v18, %v30738_v35 }
 0x6e4   : > { %12966 = vst.msk [vmem:[#allocation3 + $0xa8] sm:$0xff] %vm12944_vm3, %v12837_v8  ;;  %v12711_v44 = vadd.f32 %v26590_v54, %v31308_v11  ;;  %v13089_v3 = vld [vmem:[#allocation3 + $0x80] ss:$2 sm:$0xff]  ;;  %v13217_v45 = vld [vmem:[#allocation3 + $0x81] ss:$2 sm:$0xff] }
 0x6e5   : > { %13483 = vst.msk [vmem:[#allocation4 + $0x39] sm:$0xff] %vm12944_vm3, %v13395_v5  ;;  %12965 = vst.msk [vmem:[#allocation3 + $0xa0] sm:$0xff] %vm12944_vm3, %v12836_v50  ;;  %v12710_v13 = vadd.f32 %v26591_v46, %v31308_v11  ;;  %v25101_v19 = vpop.f32.mrb[24].mxu0  ;;  %v13336_v22 = vmax.f32 %v13089_v3, %v13217_v45 }
 0x6e6   : > { %v12839_v26 = vmax.f32 %v12711_v44, 0.0  ;;  %v26592_v9 = vadd.f32 %v25101_v19, %v30741_v39  ;;  %v12034_v33 = vpop.f32.mrb[25].mxu0 }
 0x6e7   : > { %v12838_v12 = vmax.f32 %v12710_v13, 0.0  ;;  %v26593_v34 = vadd.f32 %v12034_v33, %v30744_v43 }
 0x6e8   : > { %12968 = vst.msk [vmem:[#allocation3 + $0xb8] sm:$0xff] %vm12944_vm3, %v12839_v26  ;;  %v12713_v35 = vadd.f32 %v26592_v9, %v31308_v11  ;;  %v13550_v36 = vld [vmem:[#allocation4 + $0x31] sm:$0xff] }
 0x6e9   : > { %12967 = vst.msk [vmem:[#allocation3 + $0xb0] sm:$0xff] %vm12944_vm3, %v12838_v12  ;;  %v12712_v2 = vadd.f32 %v26593_v34, %v31308_v11  ;;  %v25104_v1 = vpop.f32.mrb[26].mxu0  ;;  %25265 = vmatprep.mubr.msk.f32.mxu1 %vm12944_vm3, %v13550_v36  ;;  %v13219_v7 = vld [vmem:[#allocation3 + $0x91] ss:$2 sm:$0xff] }
 0x6ea   : > { %v12841_v16 = vmax.f32 %v12713_v35, 0.0  ;;  %v26594_v39 = vadd.f32 %v25104_v1, %v30747_v47  ;;  %v12044_v61 = vpop.f32.mrb[27].mxu0  ;;  %v13091_v47 = vld [vmem:[#allocation3 + $0x90] ss:$2 sm:$0xff] }
 0x6eb   : > { %v12840_v59 = vmax.f32 %v12712_v2, 0.0  ;;  %v26595_v43 = vadd.f32 %v12044_v61, %v30750_v51  ;;  %v13337_v18 = vmax.f32 %v13091_v47, %v13219_v7 }
 0x6ec   : > { %v13093_v29 = vld [vmem:[#allocation3 + $0xa0] ss:$2 sm:$0xff]  ;;  %v13221_v52 = vld [vmem:[#allocation3 + $0xa1] ss:$2 sm:$0xff]  ;;  %12970 = vst.msk [vmem:[#allocation3 + $0xc8] sm:$0xff] %vm12944_vm3, %v12841_v16  ;;  %v12715_v32 = vadd.f32 %v26594_v39, %v31308_v11 }
 0x6ed   : > { %v13551_v28 = vld [vmem:[#allocation4 + $0x39] sm:$0xff]  ;;  %v13338_v25 = vmax.f32 %v13093_v29, %v13221_v52  ;;  %12969 = vst.msk [vmem:[#allocation3 + $0xc0] sm:$0xff] %vm12944_vm3, %v12840_v59  ;;  %v12714_v42 = vadd.f32 %v26595_v43, %v31308_v11  ;;  %v25107_v15 = vpop.f32.mrb[28].mxu0 }
 0x6ee   : > { %25266 = vmatmul.mubr.msk.f32.gmra.mrb[132].mxu1 %vm12944_vm3, %v13551_v28  ;;  %v12843_v6 = vmax.f32 %v12715_v32, 0.0  ;;  %v26596_v51 = vadd.f32 %v25107_v15, %v30753_v55  ;;  %v12054_v17 = vpop.f32.mrb[29].mxu0 }
 0x6ef   : > { %v13396_v30 = vmax.f32 %v13336_v22, %v13338_v25  ;;  %v12842_v0 = vmax.f32 %v12714_v42, 0.0  ;;  %v26597_v23 = vadd.f32 %v12054_v17, %v30756_v62 }
 0x6f0   : > { %v13095_v63 = vld [vmem:[#allocation3 + $0xb0] ss:$2 sm:$0xff]  ;;  %v13223_v8 = vld [vmem:[#allocation3 + $0xb1] ss:$2 sm:$0xff]  ;;  %12972 = vst.msk [vmem:[#allocation3 + $0xd8] sm:$0xff] %vm12944_vm3, %v12843_v6  ;;  %v12717_v54 = vadd.f32 %v26596_v51, %v31308_v11 }
 0x6f1   : > { %13484 = vst.msk [vmem:[#allocation4 + $0x49] sm:$0xff] %vm12944_vm3, %v13396_v30  ;;  %v13339_v5 = vmax.f32 %v13095_v63, %v13223_v8  ;;  %12971 = vst.msk [vmem:[#allocation3 + $0xd0] sm:$0xff] %vm12944_vm3, %v12842_v0  ;;  %v12716_v50 = vadd.f32 %v26597_v23, %v31308_v11  ;;  %v25110_v55 = vpop.f32.mrb[30].mxu0 }
 0x6f2   : > { %v12845_v46 = vmax.f32 %v12717_v54, 0.0  ;;  %v26598_v44 = vadd.f32 %v25110_v55, %v30759_v4  ;;  %v12064_v13 = vpop.f32.mrb[31].mxu0 }
 0x6f3   : > { %v13397_v62 = vmax.f32 %v13337_v18, %v13339_v5  ;;  %v12844_v19 = vmax.f32 %v12716_v50, 0.0  ;;  %v26599_v26 = vadd.f32 %v12064_v13, %v30763_v53 }
 0x6f4   : > { %12974 = vst.msk [vmem:[#allocation3 + $0xe8] sm:$0xff] %vm12944_vm3, %v12845_v46  ;;  %v12719_v9 = vadd.f32 %v26598_v44, %v31308_v11  ;;  %v13097_v16 = vld [vmem:[#allocation3 + $0xc0] ss:$2 sm:$0xff]  ;;  %v13225_v39 = vld [vmem:[#allocation3 + $0xc1] ss:$2 sm:$0xff] }
 0x6f5   : > { %13485 = vst.msk [vmem:[#allocation4 + $0x51] sm:$0xff] %vm12944_vm3, %v13397_v62  ;;  %12973 = vst.msk [vmem:[#allocation3 + $0xe0] sm:$0xff] %vm12944_vm3, %v12844_v19  ;;  %v12718_v33 = vadd.f32 %v26599_v26, %v31308_v11  ;;  %v25113_v12 = vpop.f32.mrb[32].mxu0  ;;  %v13340_v22 = vmax.f32 %v13097_v16, %v13225_v39 }
 0x6f6   : > { %v12847_v34 = vmax.f32 %v12719_v9, 0.0  ;;  %v26600_v35 = vadd.f32 %v25113_v12, %v30766_v21  ;;  %v12074_v4 = vpop.f32.mrb[33].mxu0 }
 0x6f7   : > { %v12846_v36 = vmax.f32 %v12718_v33, 0.0  ;;  %v26601_v2 = vadd.f32 %v12074_v4, %v30769_v10 }
 0x6f8   : > { %12976 = vst.msk [vmem:[#allocation3 + $0xf8] sm:$0xff] %vm12944_vm3, %v12847_v34  ;;  %v12721_v53 = vadd.f32 %v26600_v35, %v31308_v11  ;;  %v13552_v1 = vld [vmem:[#allocation4 + $0x49] sm:$0xff]  ;;  %v13227_v47 = vld [vmem:[#allocation3 + $0xd1] ss:$2 sm:$0xff] }
 0x6f9   : > { %12975 = vst.msk [vmem:[#allocation3 + $0xf0] sm:$0xff] %vm12944_vm3, %v12846_v36  ;;  %v12720_v3 = vadd.f32 %v26601_v2, %v31308_v11  ;;  %v25116_v45 = vpop.f32.mrb[34].mxu0  ;;  %25268 = vmatprep.mubr.msk.f32.mxu1 %vm12944_vm3, %v13552_v1 }
 0x6fa   : > { %v12849_v61 = vmax.f32 %v12721_v53, 0.0  ;;  %v26602_v21 = vadd.f32 %v25116_v45, %v30772_v38  ;;  %v12084_v59 = vpop.f32.mrb[35].mxu0  ;;  %v13099_v38 = vld [vmem:[#allocation3 + $0xd0] ss:$2 sm:$0xff] }
 0x6fb   : > { %v12848_v43 = vmax.f32 %v12720_v3, 0.0  ;;  %v26603_v10 = vadd.f32 %v12084_v59, %v30775_v24  ;;  %v13341_v8 = vmax.f32 %v13099_v38, %v13227_v47 }
 0x6fc   : > { %v13101_v29 = vld [vmem:[#allocation3 + $0xe0] ss:$2 sm:$0xff]  ;;  %v13229_v52 = vld [vmem:[#allocation3 + $0xe1] ss:$2 sm:$0xff]  ;;  %12978 = vst.msk [vmem:[#allocation3 + $0x108] sm:$0xff] %vm12944_vm3, %v12849_v61  ;;  %v12723_v32 = vadd.f32 %v26602_v21, %v31308_v11  ;;  %v13553_v28 = vld [vmem:[#allocation4 + $0x51] sm:$0xff] }
 0x6fd   : > { %v13342_v25 = vmax.f32 %v13101_v29, %v13229_v52  ;;  %12977 = vst.msk [vmem:[#allocation3 + $0x100] sm:$0xff] %vm12944_vm3, %v12848_v43  ;;  %v12722_v42 = vadd.f32 %v26603_v10, %v31308_v11  ;;  %v25119_v15 = vpop.f32.mrb[36].mxu0  ;;  %25269 = vmatmul.mubr.msk.f32.gmra.mrb[134].mxu1 %vm12944_vm3, %v13553_v28 }
 0x6fe   : > { %v12851_v7 = vmax.f32 %v12723_v32, 0.0  ;;  %v26604_v24 = vadd.f32 %v25119_v15, %v30778_v31  ;;  %v12094_v6 = vpop.f32.mrb[37].mxu0 }
 0x6ff   : > { %v13398_v51 = vmax.f32 %v13340_v22, %v13342_v25  ;;  %v12850_v17 = vmax.f32 %v12722_v42, 0.0  ;;  %v26605_v30 = vadd.f32 %v12094_v6, %v30781_v41  ;;  %v13544_v6 = vld [vmem:[%s33567_s3] sm:$0xff] }
 0x700   : > { %v13103_v0 = vld [vmem:[#allocation3 + $0xf0] ss:$2 sm:$0xff]  ;;  %v13231_v23 = vld [vmem:[#allocation3 + $0xf1] ss:$2 sm:$0xff]  ;;  %12980 = vst.msk [vmem:[#allocation3 + $0x118] sm:$0xff] %vm12944_vm3, %v12851_v7  ;;  %v12725_v63 = vadd.f32 %v26604_v24, %v31308_v11 }
 0x701   : > { %13486 = vst.msk [vmem:[#allocation4 + $0x61] sm:$0xff] %vm12944_vm3, %v13398_v51  ;;  %v13343_v54 = vmax.f32 %v13103_v0, %v13231_v23  ;;  %12979 = vst.msk [vmem:[#allocation3 + $0x110] sm:$0xff] %vm12944_vm3, %v12850_v17  ;;  %v12724_v18 = vadd.f32 %v26605_v30, %v31308_v11  ;;  %v25122_v31 = vpop.f32.mrb[38].mxu0 }
 0x702   : > { %v12853_v5 = vmax.f32 %v12725_v63, 0.0  ;;  %v26606_v50 = vadd.f32 %v25122_v31, %v30784_v49  ;;  %v12104_v55 = vpop.f32.mrb[39].mxu0 }
 0x703   : > { %v13399_v41 = vmax.f32 %v13341_v8, %v13343_v54  ;;  %v12852_v46 = vmax.f32 %v12724_v18, 0.0  ;;  %v26607_v44 = vadd.f32 %v12104_v55, %v30787_v57 }
 0x704   : > { %12982 = vst.msk [vmem:[#allocation3 + $0x128] sm:$0xff] %vm12944_vm3, %v12853_v5  ;;  %v12727_v13 = vadd.f32 %v26606_v50, %v31308_v11  ;;  %v13105_v36 = vld [vmem:[#allocation3 + $0x100] ss:$2 sm:$0xff]  ;;  %v13233_v2 = vld [vmem:[#allocation3 + $0x101] ss:$2 sm:$0xff] }
 0x705   : > { %13487 = vst.msk [vmem:[#allocation4 + $0x69] sm:$0xff] %vm12944_vm3, %v13399_v41  ;;  %12981 = vst.msk [vmem:[#allocation3 + $0x120] sm:$0xff] %vm12944_vm3, %v12852_v46  ;;  %v12726_v62 = vadd.f32 %v26607_v44, %v31308_v11  ;;  %v25125_v19 = vpop.f32.mrb[40].mxu0  ;;  %v13344_v21 = vmax.f32 %v13105_v36, %v13233_v2  ;;  %v33730_v41 = vld [vmem:[#allocation11_spill] sm:$0xff] }
 0x706   : > { %v12855_v26 = vmax.f32 %v12727_v13, 0.0  ;;  %v26608_v9 = vadd.f32 %v25125_v19, %v30790_v58  ;;  %v12114_v49 = vpop.f32.mrb[41].mxu0 }
 0x707   : > { %v12854_v33 = vmax.f32 %v12726_v62, 0.0  ;;  %v26609_v12 = vadd.f32 %v12114_v49, %v30793_v60 }
 0x708   : > { %12984 = vst.msk [vmem:[#allocation3 + $0x138] sm:$0xff] %vm12944_vm3, %v12855_v26  ;;  %v12729_v57 = vadd.f32 %v26608_v9, %v31308_v11  ;;  %v13554_v34 = vld [vmem:[#allocation4 + $0x61] sm:$0xff]  ;;  %v13235_v29 = vld [vmem:[#allocation3 + $0x111] ss:$2 sm:$0xff] }
 0x709   : > { %12983 = vst.msk [vmem:[#allocation3 + $0x130] sm:$0xff] %vm12944_vm3, %v12854_v33  ;;  %v12728_v35 = vadd.f32 %v26609_v12, %v31308_v11  ;;  %v25128_v4 = vpop.f32.mrb[42].mxu0  ;;  %25271 = vmatprep.mubr.msk.f32.mxu1 %vm12944_vm3, %v13554_v34 }
 0x70a   : > { %v12857_v53 = vmax.f32 %v12729_v57, 0.0  ;;  %v26610_v58 = vadd.f32 %v25128_v4, %v30796_v27  ;;  %v12124_v1 = vpop.f32.mrb[43].mxu0  ;;  %v13107_v27 = vld [vmem:[#allocation3 + $0x110] ss:$2 sm:$0xff]  ;;  %v33732_v57 = vld [vmem:[#allocation13_spill] sm:$0xff] }
 0x70b   : > { %v12856_v3 = vmax.f32 %v12728_v35, 0.0  ;;  %v26611_v60 = vadd.f32 %v12124_v1, %v30799_v20  ;;  %v13345_v47 = vmax.f32 %v13107_v27, %v13235_v29 }
 0x70c   : > { %v13109_v45 = vld [vmem:[#allocation3 + $0x120] ss:$2 sm:$0xff]  ;;  %v13237_v16 = vld [vmem:[#allocation3 + $0x121] ss:$2 sm:$0xff]  ;;  %12986 = vst.msk [vmem:[#allocation3 + $0x148] sm:$0xff] %vm12944_vm3, %v12857_v53  ;;  %v12731_v39 = vadd.f32 %v26610_v58, %v31308_v11 }
 0x70d   : > { %v13555_v61 = vld [vmem:[#allocation4 + $0x69] sm:$0xff]  ;;  %v13346_v59 = vmax.f32 %v13109_v45, %v13237_v16  ;;  %12985 = vst.msk [vmem:[#allocation3 + $0x140] sm:$0xff] %vm12944_vm3, %v12856_v3  ;;  %v12730_v43 = vadd.f32 %v26611_v60, %v31308_v11  ;;  %v25131_v10 = vpop.f32.mrb[44].mxu0 }
 0x70e   : > { %25272 = vmatmul.mubr.msk.f32.gmra.mrb[136].mxu1 %vm12944_vm3, %v13555_v61  ;;  %v12859_v52 = vmax.f32 %v12731_v39, 0.0  ;;  %v26612_v20 = vadd.f32 %v25131_v10, %v30802_v40  ;;  %v12134_v32 = vpop.f32.mrb[45].mxu0  ;;  %v33733_v39 = vld [vmem:[#allocation14_spill] sm:$0xff]  ;;  %v33734_v10 = vld [vmem:[#allocation15_spill] sm:$0xff] }
 0x70f   : > { %v13400_v28 = vmax.f32 %v13344_v21, %v13346_v59  ;;  %v12858_v22 = vmax.f32 %v12730_v43, 0.0  ;;  %v26613_v25 = vadd.f32 %v12134_v32, %v30805_v48  ;;  %v13545_v48 = vld [vmem:[%s33567_s3 + $0x8] sm:$0xff] }
 0x710   : > { %v13111_v42 = vld [vmem:[#allocation3 + $0x130] ss:$2 sm:$0xff]  ;;  %v13239_v15 = vld [vmem:[#allocation3 + $0x131] ss:$2 sm:$0xff]  ;;  %12988 = vst.msk [vmem:[#allocation3 + $0x158] sm:$0xff] %vm12944_vm3, %v12859_v52  ;;  %v12733_v38 = vadd.f32 %v26612_v20, %v31308_v11  ;;  %v26246_v0 = vpack.c.bf16 %v13545_v48, %v13544_v6 }
 0x711   : > { %13488 = vst.msk [vmem:[#allocation4 + $0x79] sm:$0xff] %vm12944_vm3, %v13400_v28  ;;  %v13347_v7 = vmax.f32 %v13111_v42, %v13239_v15  ;;  %12987 = vst.msk [vmem:[#allocation3 + $0x150] sm:$0xff] %vm12944_vm3, %v12858_v22  ;;  %v12732_v24 = vadd.f32 %v26613_v25, %v31308_v11  ;;  %v25134_v40 = vpop.f32.mrb[46].mxu0  ;;  %v33735_v15 = vld [vmem:[#allocation16_spill] sm:$0xff] }
 0x712   : > { %v12861_v51 = vmax.f32 %v12733_v38, 0.0  ;;  %v26614_v17 = vadd.f32 %v25134_v40, %v30808_v56  ;;  %v12144_v30 = vpop.f32.mrb[47].mxu0  ;;  %26247 = vmatprep.subr.bf16.mxu1 %v26246_v0  ;;  %v33736_v40 = vld [vmem:[#allocation17_spill] sm:$0xff] }
 0x713   : > { %v13401_v23 = vmax.f32 %v13345_v47, %v13347_v7  ;;  %v12860_v63 = vmax.f32 %v12732_v24, 0.0  ;;  %v26615_v8 = vadd.f32 %v12144_v30, %v30811_v37  ;;  %26249 = vmatpush3.bf16.msra.mxu1 %v26246_v0  ;;  %v33737_v0 = vld [vmem:[#allocation18_spill] sm:$0xff] }
 0x714   : > { %12990 = vst.msk [vmem:[#allocation3 + $0x168] sm:$0xff] %vm12944_vm3, %v12861_v51  ;;  %v12735_v54 = vadd.f32 %v26614_v17, %v31308_v11  ;;  %v13113_v19 = vld [vmem:[#allocation3 + $0x140] ss:$2 sm:$0xff]  ;;  %v13241_v26 = vld [vmem:[#allocation3 + $0x141] ss:$2 sm:$0xff] }
 0x715   : > { %13489 = vst.msk [vmem:[#allocation4 + $0x81] sm:$0xff] %vm12944_vm3, %v13401_v23  ;;  %12989 = vst.msk [vmem:[#allocation3 + $0x160] sm:$0xff] %vm12944_vm3, %v12860_v63  ;;  %v12734_v18 = vadd.f32 %v26615_v8, %v31308_v11  ;;  %v25137_v31 = vpop.f32.mrb[48].mxu0  ;;  %v13348_v53 = vmax.f32 %v13113_v19, %v13241_v26  ;;  %v33740_v19 = vld [vmem:[#allocation21_spill] sm:$0xff] }
 0x716   : > { %v12863_v56 = vmax.f32 %v12735_v54, 0.0  ;;  %v26616_v5 = vadd.f32 %v25137_v31, %v30814_v14  ;;  %v12154_v50 = vpop.f32.mrb[49].mxu0  ;;  %v33731_v14 = vld [vmem:[#allocation12_spill] sm:$0xff]  ;;  %v33738_v54 = vld [vmem:[#allocation19_spill] sm:$0xff] }
 0x717   : > { %v12862_v55 = vmax.f32 %v12734_v18, 0.0  ;;  %v26617_v37 = vadd.f32 %v12154_v50, %v33730_v41 }
 0x718   : > { %12992 = vst.msk [vmem:[#allocation3 + $0x178] sm:$0xff] %vm12944_vm3, %v12863_v56  ;;  %v12737_v46 = vadd.f32 %v26616_v5, %v31308_v11  ;;  %v13556_v44 = vld [vmem:[#allocation4 + $0x79] sm:$0xff] }
 0x719   : > { %12991 = vst.msk [vmem:[#allocation3 + $0x170] sm:$0xff] %vm12944_vm3, %v12862_v55  ;;  %v12736_v13 = vadd.f32 %v26617_v37, %v31308_v11  ;;  %v25140_v62 = vpop.f32.mrb[50].mxu0  ;;  %25274 = vmatprep.mubr.msk.f32.mxu1 %vm12944_vm3, %v13556_v44  ;;  %v13115_v60 = vld [vmem:[#allocation3 + $0x150] ss:$2 sm:$0xff]  ;;  %v13243_v45 = vld [vmem:[#allocation3 + $0x151] ss:$2 sm:$0xff] }
 0x71a   : > { %v12865_v9 = vmax.f32 %v12737_v46, 0.0  ;;  %v26618_v49 = vadd.f32 %v25140_v62, %v33731_v14  ;;  %v12164_v33 = vpop.f32.mrb[51].mxu0  ;;  %v13349_v32 = vmax.f32 %v13115_v60, %v13243_v45  ;;  %v33739_v46 = vld [vmem:[#allocation20_spill] sm:$0xff]  ;;  %v33742_v45 = vld [vmem:[#allocation23_spill] sm:$0xff] }
 0x71b   : > { %v12864_v12 = vmax.f32 %v12736_v13, 0.0  ;;  %v26619_v34 = vadd.f32 %v12164_v33, %v33732_v57 }
 0x71c   : > { %v13117_v35 = vld [vmem:[#allocation3 + $0x160] ss:$2 sm:$0xff]  ;;  %v13245_v4 = vld [vmem:[#allocation3 + $0x161] ss:$2 sm:$0xff]  ;;  %12994 = vst.msk [vmem:[#allocation3 + $0x188] sm:$0xff] %vm12944_vm3, %v12865_v9  ;;  %v12739_v36 = vadd.f32 %v26618_v49, %v31308_v11 }
 0x71d   : > { %v13557_v2 = vld [vmem:[#allocation4 + $0x81] sm:$0xff]  ;;  %v13350_v58 = vmax.f32 %v13117_v35, %v13245_v4  ;;  %12993 = vst.msk [vmem:[#allocation3 + $0x180] sm:$0xff] %vm12944_vm3, %v12864_v12  ;;  %v12738_v1 = vadd.f32 %v26619_v34, %v31308_v11  ;;  %v25143_v3 = vpop.f32.mrb[52].mxu0 }
 0x71e   : > { %25275 = vmatmul.mubr.msk.f32.gmra.mrb[138].mxu1 %vm12944_vm3, %v13557_v2  ;;  %v12867_v16 = vmax.f32 %v12739_v36, 0.0  ;;  %v26620_v61 = vadd.f32 %v25143_v3, %v33733_v39  ;;  %v12174_v21 = vpop.f32.mrb[53].mxu0 }
 0x71f   : > { %v13402_v59 = vmax.f32 %v13348_v53, %v13350_v58  ;;  %v12866_v43 = vmax.f32 %v12738_v1, 0.0  ;;  %v26621_v27 = vadd.f32 %v12174_v21, %v33734_v10  ;;  %v33741_v53 = vld [vmem:[#allocation22_spill] sm:$0xff] }
 0x720   : > { %v13119_v29 = vld [vmem:[#allocation3 + $0x170] ss:$2 sm:$0xff]  ;;  %v13247_v52 = vld [vmem:[#allocation3 + $0x171] ss:$2 sm:$0xff]  ;;  %12996 = vst.msk [vmem:[#allocation3 + $0x198] sm:$0xff] %vm12944_vm3, %v12867_v16  ;;  %v12741_v20 = vadd.f32 %v26620_v61, %v31308_v11 }
 0x721   : > { %13490 = vst.msk [vmem:[#allocation4 + $0x91] sm:$0xff] %vm12944_vm3, %v13402_v59  ;;  %v13351_v28 = vmax.f32 %v13119_v29, %v13247_v52  ;;  %12995 = vst.msk [vmem:[#allocation3 + $0x190] sm:$0xff] %vm12944_vm3, %v12866_v43  ;;  %v12740_v22 = vadd.f32 %v26621_v27, %v31308_v11  ;;  %v25146_v25 = vpop.f32.mrb[54].mxu0  ;;  %v33743_v52 = vld [vmem:[#allocation24_spill] sm:$0xff] }
 0x722   : > { %v12869_v42 = vmax.f32 %v12741_v20, 0.0  ;;  %v26622_v38 = vadd.f32 %v25146_v25, %v33735_v15  ;;  %v12184_v47 = vpop.f32.mrb[55].mxu0  ;;  %v33744_v25 = vld [vmem:[#allocation25_spill] sm:$0xff] }
 0x723   : > { %v13403_v7 = vmax.f32 %v13349_v32, %v13351_v28  ;;  %v12868_v24 = vmax.f32 %v12740_v22, 0.0  ;;  %v26623_v6 = vadd.f32 %v12184_v47, %v33736_v40 }
 0x724   : > { %12998 = vst.msk [vmem:[#allocation3 + $0x1a8] sm:$0xff] %vm12944_vm3, %v12869_v42  ;;  %v12743_v48 = vadd.f32 %v26622_v38, %v31308_v11  ;;  %v13121_v55 = vld [vmem:[#allocation3 + $0x180] ss:$2 sm:$0xff]  ;;  %v13249_v41 = vld [vmem:[#allocation3 + $0x181] ss:$2 sm:$0xff] }
 0x725   : > { %13491 = vst.msk [vmem:[#allocation4 + $0x99] sm:$0xff] %vm12944_vm3, %v13403_v7  ;;  %12997 = vst.msk [vmem:[#allocation3 + $0x1a0] sm:$0xff] %vm12944_vm3, %v12868_v24  ;;  %v12742_v51 = vadd.f32 %v26623_v6, %v31308_v11  ;;  %v25149_v17 = vpop.f32.mrb[56].mxu0  ;;  %v13352_v12 = vmax.f32 %v13121_v55, %v13249_v41  ;;  %v33745_v24 = vld [vmem:[#allocation26_spill] sm:$0xff]  ;;  %v33748_v55 = vld [vmem:[#allocation29_spill] sm:$0xff] }
 0x726   : > { %v12871_v30 = vmax.f32 %v12743_v48, 0.0  ;;  %v26624_v23 = vadd.f32 %v25149_v17, %v33737_v0  ;;  %v12194_v63 = vpop.f32.mrb[57].mxu0 }
 0x727   : > { %v12870_v8 = vmax.f32 %v12742_v51, 0.0  ;;  %v26625_v18 = vadd.f32 %v12194_v63, %v33738_v54  ;;  %v33746_v51 = vld [vmem:[#allocation27_spill] sm:$0xff] }
 0x728   : > { %13000 = vst.msk [vmem:[#allocation3 + $0x1b8] sm:$0xff] %vm12944_vm3, %v12871_v30  ;;  %v12745_v31 = vadd.f32 %v26624_v23, %v31308_v11  ;;  %v13558_v56 = vld [vmem:[#allocation4 + $0x91] sm:$0xff] }
 0x729   : > { %12999 = vst.msk [vmem:[#allocation3 + $0x1b0] sm:$0xff] %vm12944_vm3, %v12870_v8  ;;  %v12744_v5 = vadd.f32 %v26625_v18, %v31308_v11  ;;  %v25152_v50 = vpop.f32.mrb[58].mxu0  ;;  %25277 = vmatprep.mubr.msk.f32.mxu1 %vm12944_vm3, %v13558_v56  ;;  %v13123_v4 = vld [vmem:[#allocation3 + $0x190] ss:$2 sm:$0xff]  ;;  %v13251_v36 = vld [vmem:[#allocation3 + $0x191] ss:$2 sm:$0xff] }
 0x72a   : > { %v12873_v37 = vmax.f32 %v12745_v31, 0.0  ;;  %v26626_v44 = vadd.f32 %v25152_v50, %v33739_v46  ;;  %v12204_v13 = vpop.f32.mrb[59].mxu0  ;;  %v13353_v59 = vmax.f32 %v13123_v4, %v13251_v36  ;;  %v33747_v31 = vld [vmem:[#allocation28_spill] sm:$0xff]  ;;  %v33750_v36 = vld [vmem:[#allocation31_spill] sm:$0xff] }
 0x72b   : > { %v12872_v62 = vmax.f32 %v12744_v5, 0.0  ;;  %v26627_v26 = vadd.f32 %v12204_v13, %v33740_v19 }
 0x72c   : > { %v13125_v9 = vld [vmem:[#allocation3 + $0x1a0] ss:$2 sm:$0xff]  ;;  %v13253_v14 = vld [vmem:[#allocation3 + $0x1a1] ss:$2 sm:$0xff]  ;;  %13002 = vst.msk [vmem:[#allocation3 + $0x1c8] sm:$0xff] %vm12944_vm3, %v12873_v37  ;;  %v12747_v49 = vadd.f32 %v26626_v44, %v31308_v11 }
 0x72d   : > { %v13559_v33 = vld [vmem:[#allocation4 + $0x99] sm:$0xff]  ;;  %v13354_v57 = vmax.f32 %v13125_v9, %v13253_v14  ;;  %13001 = vst.msk [vmem:[#allocation3 + $0x1c0] sm:$0xff] %vm12944_vm3, %v12872_v62  ;;  %v12746_v34 = vadd.f32 %v26627_v26, %v31308_v11  ;;  %v25155_v35 = vpop.f32.mrb[60].mxu0 }
 0x72e   : > { %25278 = vmatmul.mubr.msk.f32.gmra.mrb[140].mxu1 %vm12944_vm3, %v13559_v33  ;;  %v12875_v2 = vmax.f32 %v12747_v49, 0.0  ;;  %v26628_v58 = vadd.f32 %v25155_v35, %v33741_v53  ;;  %v12214_v1 = vpop.f32.mrb[61].mxu0 }
 0x72f   : > { %v13404_v3 = vmax.f32 %v13352_v12, %v13354_v57  ;;  %v12874_v60 = vmax.f32 %v12746_v34, 0.0  ;;  %v26629_v16 = vadd.f32 %v12214_v1, %v33742_v45  ;;  %v33749_v12 = vld [vmem:[#allocation30_spill] sm:$0xff] }
 0x730   : > { %v13127_v39 = vld [vmem:[#allocation3 + $0x1b0] ss:$2 sm:$0xff]  ;;  %v13255_v61 = vld [vmem:[#allocation3 + $0x1b1] ss:$2 sm:$0xff]  ;;  %13004 = vst.msk [vmem:[#allocation3 + $0x1d8] sm:$0xff] %vm12944_vm3, %v12875_v2  ;;  %v12749_v21 = vadd.f32 %v26628_v58, %v31308_v11 }
 0x731   : > { %13492 = vst.msk [vmem:[#allocation4 + $0xa9] sm:$0xff] %vm12944_vm3, %v13404_v3  ;;  %v13355_v43 = vmax.f32 %v13127_v39, %v13255_v61  ;;  %13003 = vst.msk [vmem:[#allocation3 + $0x1d0] sm:$0xff] %vm12944_vm3, %v12874_v60  ;;  %v12748_v10 = vadd.f32 %v26629_v16, %v31308_v11  ;;  %v25158_v27 = vpop.f32.mrb[62].mxu0  ;;  %v33751_v61 = vld [vmem:[#allocation32_spill] sm:$0xff] }
 0x732   : > { %v12877_v29 = vmax.f32 %v12749_v21, 0.0  ;;  %v26630_v20 = vadd.f32 %v25158_v27, %v33743_v52  ;;  %v12224_v32 = vpop.f32.mrb[63].mxu0  ;;  %v33752_v27 = vld [vmem:[#allocation33_spill] sm:$0xff] }
 0x733   : > { %v13405_v28 = vmax.f32 %v13353_v59, %v13355_v43  ;;  %v12876_v22 = vmax.f32 %v12748_v10, 0.0  ;;  %v26631_v42 = vadd.f32 %v12224_v32, %v33744_v25 }
 0x734   : > { %13006 = vst.msk [vmem:[#allocation3 + $0x1e8] sm:$0xff] %vm12944_vm3, %v12877_v29  ;;  %v12751_v15 = vadd.f32 %v26630_v20, %v31308_v11  ;;  %v13129_v8 = vld [vmem:[#allocation3 + $0x1c0] ss:$2 sm:$0xff]  ;;  %v13257_v54 = vld [vmem:[#allocation3 + $0x1c1] ss:$2 sm:$0xff] }
 0x735   : > { %13493 = vst.msk [vmem:[#allocation4 + $0xb1] sm:$0xff] %vm12944_vm3, %v13405_v28  ;;  %13005 = vst.msk [vmem:[#allocation3 + $0x1e0] sm:$0xff] %vm12944_vm3, %v12876_v22  ;;  %v12750_v38 = vadd.f32 %v26631_v42, %v31308_v11  ;;  %v25161_v47 = vpop.f32.mrb[64].mxu0  ;;  %v13356_v62 = vmax.f32 %v13129_v8, %v13257_v54  ;;  %v21289_v28 = vld [vmem:[%s33567_s3 + $0x20] sm:$0xff]  ;;  %v21290_v22 = vld [vmem:[%s33567_s3 + $0x28] sm:$0xff] }
 0x736   : > { %v12879_v7 = vmax.f32 %v12751_v15, 0.0  ;;  %v26632_v40 = vadd.f32 %v25161_v47, %v33745_v24  ;;  %v12234_v6 = vpop.f32.mrb[65].mxu0  ;;  %v33753_v42 = vld [vmem:[#allocation34_spill] sm:$0xff]  ;;  %v31593_v47 = vpack.c.bf16 %v21290_v22, %v21289_v28  ;;  %v33754_v24 = vld [vmem:[#allocation35_spill] sm:$0xff] }
 0x737   : > { %v12878_v48 = vmax.f32 %v12750_v38, 0.0  ;;  %v26633_v17 = vadd.f32 %v12234_v6, %v33746_v51  ;;  %v33762_v22 = vld [vmem:[#allocation43_spill] sm:$0xff] }
 0x738   : > { %13008 = vst.msk [vmem:[#allocation3 + $0x1f8] sm:$0xff] %vm12944_vm3, %v12879_v7  ;;  %v12753_v30 = vadd.f32 %v26632_v40, %v31308_v11  ;;  %v13560_v0 = vld [vmem:[#allocation4 + $0xa9] sm:$0xff]  ;;  %v13259_v49 = vld [vmem:[#allocation3 + $0x1d1] ss:$2 sm:$0xff]  ;;  %26251 = vmatprep.subr.bf16.mxu1 %v31593_v47 }
 0x739   : > { %13007 = vst.msk [vmem:[#allocation3 + $0x1f0] sm:$0xff] %vm12944_vm3, %v12878_v48  ;;  %v12752_v23 = vadd.f32 %v26633_v17, %v31308_v11  ;;  %v25164_v63 = vpop.f32.mrb[66].mxu0  ;;  %25280 = vmatprep.mubr.msk.f32.mxu1 %vm12944_vm3, %v13560_v0  ;;  %v31566_v11 = vld [vmem:[%s33566_s2] ss:$0 sm:$0xff] }
 0x73a   : > { %v12881_v18 = vmax.f32 %v12753_v30, 0.0  ;;  %v26634_v56 = vadd.f32 %v25164_v63, %v33747_v31  ;;  %v12244_v5 = vpop.f32.mrb[67].mxu0  ;;  %v13131_v14 = vld [vmem:[#allocation3 + $0x1d0] ss:$2 sm:$0xff]  ;;  %v33756_v31 = vld [vmem:[#allocation37_spill] sm:$0xff] }
 0x73b   : > { %v12880_v50 = vmax.f32 %v12752_v23, 0.0  ;;  %v26635_v41 = vadd.f32 %v12244_v5, %v33748_v55  ;;  %v13357_v3 = vmax.f32 %v13131_v14, %v13259_v49  ;;  %v33755_v63 = vld [vmem:[#allocation36_spill] sm:$0xff] }
 0x73c   : > { %v13133_v37 = vld [vmem:[#allocation3 + $0x1e0] ss:$2 sm:$0xff]  ;;  %v13261_v46 = vld [vmem:[#allocation3 + $0x1e1] ss:$2 sm:$0xff]  ;;  %13010 = vst.msk [vmem:[#allocation3 + $0x208] sm:$0xff] %vm12944_vm3, %v12881_v18  ;;  %v12755_v44 = vadd.f32 %v31566_v11, %v26634_v56  ;;  %v13561_v13 = vld [vmem:[#allocation4 + $0xb1] sm:$0xff] }
 0x73d   : > { %v13358_v19 = vmax.f32 %v13133_v37, %v13261_v46  ;;  %13009 = vst.msk [vmem:[#allocation3 + $0x200] sm:$0xff] %vm12944_vm3, %v12880_v50  ;;  %v12754_v26 = vadd.f32 %v31566_v11, %v26635_v41  ;;  %v25167_v9 = vpop.f32.mrb[68].mxu0  ;;  %25281 = vmatmul.mubr.msk.f32.gmra.mrb[142].mxu1 %vm12944_vm3, %v13561_v13 }
 0x73e   : > { %v12883_v33 = vmax.f32 %v12755_v44, 0.0  ;;  %v26636_v57 = vadd.f32 %v25167_v9, %v33749_v12  ;;  %v12254_v34 = vpop.f32.mrb[69].mxu0  ;;  %v33757_v9 = vld [vmem:[#allocation38_spill] sm:$0xff] }
 0x73f   : > { %v13406_v35 = vmax.f32 %v13356_v62, %v13358_v19  ;;  %v12882_v4 = vmax.f32 %v12754_v26, 0.0  ;;  %v26637_v2 = vadd.f32 %v12254_v34, %v33750_v36 }
 0x740   : > { %v13135_v53 = vld [vmem:[#allocation3 + $0x1f0] ss:$2 sm:$0xff]  ;;  %v13263_v58 = vld [vmem:[#allocation3 + $0x1f1] ss:$2 sm:$0xff]  ;;  %13012 = vst.msk [vmem:[#allocation3 + $0x218] sm:$0xff] %vm12944_vm3, %v12883_v33  ;;  %v12757_v1 = vadd.f32 %v31566_v11, %v26636_v57 }
 0x741   : > { %13494 = vst.msk [vmem:[#allocation4 + $0xc1] sm:$0xff] %vm12944_vm3, %v13406_v35  ;;  %v13359_v60 = vmax.f32 %v13135_v53, %v13263_v58  ;;  %13011 = vst.msk [vmem:[#allocation3 + $0x210] sm:$0xff] %vm12944_vm3, %v12882_v4  ;;  %v12756_v45 = vadd.f32 %v31566_v11, %v26637_v2  ;;  %v25170_v16 = vpop.f32.mrb[70].mxu0  ;;  %v33758_v57 = vld [vmem:[#allocation39_spill] sm:$0xff] }
 0x742   : > { %v12885_v39 = vmax.f32 %v12757_v1, 0.0  ;;  %v26638_v21 = vadd.f32 %v25170_v16, %v33751_v61  ;;  %v12264_v59 = vpop.f32.mrb[71].mxu0 }
 0x743   : > { %v13407_v43 = vmax.f32 %v13357_v3, %v13359_v60  ;;  %v12884_v10 = vmax.f32 %v12756_v45, 0.0  ;;  %v26639_v29 = vadd.f32 %v12264_v59, %v33752_v27  ;;  %v33759_v60 = vld [vmem:[#allocation40_spill] sm:$0xff] }
 0x744   : > { %13014 = vst.msk [vmem:[#allocation3 + $0x228] sm:$0xff] %vm12944_vm3, %v12885_v39  ;;  %v12759_v52 = vadd.f32 %v31566_v11, %v26638_v21  ;;  %v13137_v30 = vld [vmem:[#allocation3 + $0x200] ss:$2 sm:$0xff]  ;;  %v13265_v0 = vld [vmem:[#allocation3 + $0x201] ss:$2 sm:$0xff] }
 0x745   : > { %13495 = vst.msk [vmem:[#allocation4 + $0xc9] sm:$0xff] %vm12944_vm3, %v13407_v43  ;;  %13013 = vst.msk [vmem:[#allocation3 + $0x220] sm:$0xff] %vm12944_vm3, %v12884_v10  ;;  %v12758_v20 = vadd.f32 %v31566_v11, %v26639_v29  ;;  %v25173_v32 = vpop.f32.mrb[72].mxu0  ;;  %v13360_v37 = vmax.f32 %v13137_v30, %v13265_v0  ;;  %v33760_v21 = vld [vmem:[#allocation41_spill] sm:$0xff] }
 0x746   : > { %v12887_v25 = vmax.f32 %v12759_v52, 0.0  ;;  %v26640_v15 = vadd.f32 %v25173_v32, %v33753_v42  ;;  %v12274_v38 = vpop.f32.mrb[73].mxu0  ;;  %v33761_v52 = vld [vmem:[#allocation42_spill] sm:$0xff]  ;;  %v33764_v0 = vld [vmem:[#allocation45_spill] sm:$0xff] }
 0x747   : > { %v12886_v7 = vmax.f32 %v12758_v20, 0.0  ;;  %v26641_v40 = vadd.f32 %v12274_v38, %v33754_v24 }
 0x748   : > { %13016 = vst.msk [vmem:[#allocation3 + $0x238] sm:$0xff] %vm12944_vm3, %v12887_v25  ;;  %v12761_v6 = vadd.f32 %v31566_v11, %v26640_v15  ;;  %v13562_v48 = vld [vmem:[#allocation4 + $0xc1] sm:$0xff]  ;;  %v13139_v62 = vld [vmem:[#allocation3 + $0x210] ss:$2 sm:$0xff]  ;;  %v13267_v19 = vld [vmem:[#allocation3 + $0x211] ss:$2 sm:$0xff] }
 0x749   : > { %13015 = vst.msk [vmem:[#allocation3 + $0x230] sm:$0xff] %vm12944_vm3, %v12886_v7  ;;  %v12760_v51 = vadd.f32 %v31566_v11, %v26641_v40  ;;  %v25176_v17 = vpop.f32.mrb[74].mxu0  ;;  %25283 = vmatprep.mubr.msk.f32.mxu1 %vm12944_vm3, %v13562_v48  ;;  %v13361_v2 = vmax.f32 %v13139_v62, %v13267_v19  ;;  %v33763_v48 = vld [vmem:[#allocation44_spill] sm:$0xff] }
 0x74a   : > { %v12889_v23 = vmax.f32 %v12761_v6, 0.0  ;;  %v26642_v8 = vadd.f32 %v25176_v17, %v33755_v63  ;;  %v12284_v54 = vpop.f32.mrb[75].mxu0 }
 0x74b   : > { %v12888_v18 = vmax.f32 %v12760_v51, 0.0  ;;  %v26643_v56 = vadd.f32 %v12284_v54, %v33756_v31 }
 0x74c   : > { %v13141_v5 = vld [vmem:[#allocation3 + $0x220] ss:$2 sm:$0xff]  ;;  %v13269_v50 = vld [vmem:[#allocation3 + $0x221] ss:$2 sm:$0xff]  ;;  %13018 = vst.msk [vmem:[#allocation3 + $0x248] sm:$0xff] %vm12944_vm3, %v12889_v23  ;;  %v12763_v55 = vadd.f32 %v31566_v11, %v26642_v8 }
 0x74d   : > { %v13563_v41 = vld [vmem:[#allocation4 + $0xc9] sm:$0xff]  ;;  %v13362_v46 = vmax.f32 %v13141_v5, %v13269_v50  ;;  %13017 = vst.msk [vmem:[#allocation3 + $0x240] sm:$0xff] %vm12944_vm3, %v12888_v18  ;;  %v12762_v44 = vadd.f32 %v31566_v11, %v26643_v56  ;;  %v25179_v13 = vpop.f32.mrb[76].mxu0 }
 0x74e   : > { %25284 = vmatmul.mubr.msk.f32.gmra.mrb[144].mxu1 %vm12944_vm3, %v13563_v41  ;;  %v12891_v26 = vmax.f32 %v12763_v55, 0.0  ;;  %v26644_v14 = vadd.f32 %v25179_v13, %v33757_v9  ;;  %v12294_v49 = vpop.f32.mrb[77].mxu0 }
 0x74f   : > { %v13408_v33 = vmax.f32 %v13360_v37, %v13362_v46  ;;  %v12890_v12 = vmax.f32 %v12762_v44, 0.0  ;;  %v26645_v34 = vadd.f32 %v12294_v49, %v33758_v57  ;;  %v33765_v46 = vld [vmem:[#allocation46_spill] sm:$0xff] }
 0x750   : > { %v13143_v35 = vld [vmem:[#allocation3 + $0x230] ss:$2 sm:$0xff]  ;;  %v13271_v4 = vld [vmem:[#allocation3 + $0x231] ss:$2 sm:$0xff]  ;;  %13020 = vst.msk [vmem:[#allocation3 + $0x258] sm:$0xff] %vm12944_vm3, %v12891_v26  ;;  %v12765_v36 = vadd.f32 %v31566_v11, %v26644_v14 }
 0x751   : > { %13496 = vst.msk [vmem:[#allocation4 + $0xd9] sm:$0xff] %vm12944_vm3, %v13408_v33  ;;  %v13363_v53 = vmax.f32 %v13143_v35, %v13271_v4  ;;  %13019 = vst.msk [vmem:[#allocation3 + $0x250] sm:$0xff] %vm12944_vm3, %v12890_v12  ;;  %v12764_v58 = vadd.f32 %v31566_v11, %v26645_v34  ;;  %v25182_v1 = vpop.f32.mrb[78].mxu0  ;;  %v33766_v26 = vld [vmem:[#allocation47_spill] sm:$0xff] }
 0x752   : > { %v12893_v3 = vmax.f32 %v12765_v36, 0.0  ;;  %v26646_v45 = vadd.f32 %v25182_v1, %v33759_v60  ;;  %v12304_v16 = vpop.f32.mrb[79].mxu0  ;;  %v33767_v36 = vld [vmem:[#allocation48_spill] sm:$0xff] }
 0x753   : > { %v13409_v39 = vmax.f32 %v13361_v2, %v13363_v53  ;;  %v12892_v61 = vmax.f32 %v12764_v58, 0.0  ;;  %v26647_v59 = vadd.f32 %v12304_v16, %v33760_v21  ;;  %v33769_v21 = vld [vmem:[#allocation50_spill] sm:$0xff] }
 0x754   : > { %13022 = vst.msk [vmem:[#allocation3 + $0x268] sm:$0xff] %vm12944_vm3, %v12893_v3  ;;  %v12767_v43 = vadd.f32 %v31566_v11, %v26646_v45  ;;  %v13145_v24 = vld [vmem:[#allocation3 + $0x240] ss:$2 sm:$0xff]  ;;  %v13273_v40 = vld [vmem:[#allocation3 + $0x241] ss:$2 sm:$0xff] }
 0x755   : > { %13497 = vst.msk [vmem:[#allocation4 + $0xe1] sm:$0xff] %vm12944_vm3, %v13409_v39  ;;  %13021 = vst.msk [vmem:[#allocation3 + $0x260] sm:$0xff] %vm12944_vm3, %v12892_v61  ;;  %v12766_v10 = vadd.f32 %v31566_v11, %v26647_v59  ;;  %v25185_v27 = vpop.f32.mrb[80].mxu0  ;;  %v13364_v31 = vmax.f32 %v13145_v24, %v13273_v40  ;;  %v33768_v3 = vld [vmem:[#allocation49_spill] sm:$0xff] }
 0x756   : > { %v12895_v29 = vmax.f32 %v12767_v43, 0.0  ;;  %v26648_v20 = vadd.f32 %v25185_v27, %v33761_v52  ;;  %v12314_v32 = vpop.f32.mrb[81].mxu0  ;;  %v33770_v27 = vld [vmem:[#allocation51_spill] sm:$0xff]  ;;  %v33772_v40 = vld [vmem:[#allocation53_spill] sm:$0xff] }
 0x757   : > { %v12894_v28 = vmax.f32 %v12766_v10, 0.0  ;;  %v26649_v25 = vadd.f32 %v12314_v32, %v33762_v22 }
 0x758   : > { %13024 = vst.msk [vmem:[#allocation3 + $0x278] sm:$0xff] %vm12944_vm3, %v12895_v29  ;;  %v12769_v42 = vadd.f32 %v31566_v11, %v26648_v20  ;;  %v13564_v15 = vld [vmem:[#allocation4 + $0xd9] sm:$0xff] }
 0x759   : > { %13023 = vst.msk [vmem:[#allocation3 + $0x270] sm:$0xff] %vm12944_vm3, %v12894_v28  ;;  %v12768_v38 = vadd.f32 %v31566_v11, %v26649_v25  ;;  %v25188_v7 = vpop.f32.mrb[82].mxu0  ;;  %25286 = vmatprep.mubr.msk.f32.mxu1 %vm12944_vm3, %v13564_v15  ;;  %v13147_v55 = vld [vmem:[#allocation3 + $0x250] ss:$2 sm:$0xff]  ;;  %v13275_v41 = vld [vmem:[#allocation3 + $0x251] ss:$2 sm:$0xff] }
 0x75a   : > { %v12897_v6 = vmax.f32 %v12769_v42, 0.0  ;;  %v26650_v51 = vadd.f32 %v25188_v7, %v33763_v48  ;;  %v12324_v17 = vpop.f32.mrb[83].mxu0  ;;  %v13365_v12 = vmax.f32 %v13147_v55, %v13275_v41  ;;  %v33771_v15 = vld [vmem:[#allocation52_spill] sm:$0xff] }
 0x75b   : > { %v12896_v30 = vmax.f32 %v12768_v38, 0.0  ;;  %v26651_v23 = vadd.f32 %v12324_v17, %v33764_v0 }
 0x75c   : > { %v13149_v63 = vld [vmem:[#allocation3 + $0x260] ss:$2 sm:$0xff]  ;;  %v13277_v8 = vld [vmem:[#allocation3 + $0x261] ss:$2 sm:$0xff]  ;;  %13026 = vst.msk [vmem:[#allocation3 + $0x288] sm:$0xff] %vm12944_vm3, %v12897_v6  ;;  %v12771_v54 = vadd.f32 %v31566_v11, %v26650_v51 }
 0x75d   : > { %v13565_v18 = vld [vmem:[#allocation4 + $0xe1] sm:$0xff]  ;;  %v13366_v56 = vmax.f32 %v13149_v63, %v13277_v8  ;;  %13025 = vst.msk [vmem:[#allocation3 + $0x280] sm:$0xff] %vm12944_vm3, %v12896_v30  ;;  %v12770_v5 = vadd.f32 %v31566_v11, %v26651_v23  ;;  %v25191_v50 = vpop.f32.mrb[84].mxu0 }
 0x75e   : > { %25287 = vmatmul.mubr.msk.f32.gmra.mrb[146].mxu1 %vm12944_vm3, %v13565_v18  ;;  %v12899_v37 = vmax.f32 %v12771_v54, 0.0  ;;  %v26652_v44 = vadd.f32 %v25191_v50, %v33765_v46  ;;  %v12334_v13 = vpop.f32.mrb[85].mxu0 }
 0x75f   : > { %v13410_v62 = vmax.f32 %v13364_v31, %v13366_v56  ;;  %v12898_v19 = vmax.f32 %v12770_v5, 0.0  ;;  %v26653_v9 = vadd.f32 %v12334_v13, %v33766_v26  ;;  %v33773_v56 = vld [vmem:[#allocation54_spill] sm:$0xff] }
 0x760   : > { %v13151_v14 = vld [vmem:[#allocation3 + $0x270] ss:$2 sm:$0xff]  ;;  %v13279_v49 = vld [vmem:[#allocation3 + $0x271] ss:$2 sm:$0xff]  ;;  %13028 = vst.msk [vmem:[#allocation3 + $0x298] sm:$0xff] %vm12944_vm3, %v12899_v37  ;;  %v12773_v33 = vadd.f32 %v31566_v11, %v26652_v44 }
 0x761   : > { %13498 = vst.msk [vmem:[#allocation4 + $0xf1] sm:$0xff] %vm12944_vm3, %v13410_v62  ;;  %v13367_v57 = vmax.f32 %v13151_v14, %v13279_v49  ;;  %13027 = vst.msk [vmem:[#allocation3 + $0x290] sm:$0xff] %vm12944_vm3, %v12898_v19  ;;  %v12772_v34 = vadd.f32 %v31566_v11, %v26653_v9  ;;  %v25194_v35 = vpop.f32.mrb[86].mxu0  ;;  %v33774_v37 = vld [vmem:[#allocation55_spill] sm:$0xff] }
 0x762   : > { %v12901_v4 = vmax.f32 %v12773_v33, 0.0  ;;  %v26654_v2 = vadd.f32 %v25194_v35, %v33767_v36  ;;  %v12344_v53 = vpop.f32.mrb[87].mxu0  ;;  %v33775_v33 = vld [vmem:[#allocation56_spill] sm:$0xff] }
 0x763   : > { %v13411_v58 = vmax.f32 %v13365_v12, %v13367_v57  ;;  %v12900_v1 = vmax.f32 %v12772_v34, 0.0  ;;  %v26655_v60 = vadd.f32 %v12344_v53, %v33768_v3  ;;  %v33777_v3 = vld [vmem:[#allocation58_spill] sm:$0xff] }
 0x764   : > { %13030 = vst.msk [vmem:[#allocation3 + $0x2a8] sm:$0xff] %vm12944_vm3, %v12901_v4  ;;  %v12775_v45 = vadd.f32 %v31566_v11, %v26654_v2  ;;  %v13153_v22 = vld [vmem:[#allocation3 + $0x280] ss:$2 sm:$0xff]  ;;  %v13281_v25 = vld [vmem:[#allocation3 + $0x281] ss:$2 sm:$0xff] }
 0x765   : > { %13499 = vst.msk [vmem:[#allocation4 + $0xf9] sm:$0xff] %vm12944_vm3, %v13411_v58  ;;  %13029 = vst.msk [vmem:[#allocation3 + $0x2a0] sm:$0xff] %vm12944_vm3, %v12900_v1  ;;  %v12774_v16 = vadd.f32 %v31566_v11, %v26655_v60  ;;  %v25197_v39 = vpop.f32.mrb[88].mxu0  ;;  %v13368_v0 = vmax.f32 %v13153_v22, %v13281_v25  ;;  %v33776_v4 = vld [vmem:[#allocation57_spill] sm:$0xff] }
 0x766   : > { %v12903_v61 = vmax.f32 %v12775_v45, 0.0  ;;  %v26656_v59 = vadd.f32 %v25197_v39, %v33769_v21  ;;  %v12354_v43 = vpop.f32.mrb[89].mxu0  ;;  %v33778_v39 = vld [vmem:[#allocation59_spill] sm:$0xff]  ;;  %v33780_v25 = vld [vmem:[#allocation61_spill] sm:$0xff] }
 0x767   : > { %v12902_v10 = vmax.f32 %v12774_v16, 0.0  ;;  %v26657_v29 = vadd.f32 %v12354_v43, %v33770_v27 }
 0x768   : > { %13032 = vst.msk [vmem:[#allocation3 + $0x2b8] sm:$0xff] %vm12944_vm3, %v12903_v61  ;;  %v12777_v52 = vadd.f32 %v31566_v11, %v26656_v59  ;;  %v13566_v20 = vld [vmem:[#allocation4 + $0xf1] sm:$0xff] }
 0x769   : > { %13031 = vst.msk [vmem:[#allocation3 + $0x2b0] sm:$0xff] %vm12944_vm3, %v12902_v10  ;;  %v12776_v32 = vadd.f32 %v31566_v11, %v26657_v29  ;;  %v25200_v28 = vpop.f32.mrb[90].mxu0  ;;  %25289 = vmatprep.mubr.msk.f32.mxu1 %vm12944_vm3, %v13566_v20  ;;  %v13155_v54 = vld [vmem:[#allocation3 + $0x290] ss:$2 sm:$0xff]  ;;  %v13283_v18 = vld [vmem:[#allocation3 + $0x291] ss:$2 sm:$0xff] }
 0x76a   : > { %v12905_v42 = vmax.f32 %v12777_v52, 0.0  ;;  %v26658_v38 = vadd.f32 %v25200_v28, %v33771_v15  ;;  %v12364_v7 = vpop.f32.mrb[91].mxu0  ;;  %v13369_v19 = vmax.f32 %v13155_v54, %v13283_v18  ;;  %v33779_v20 = vld [vmem:[#allocation60_spill] sm:$0xff] }
 0x76b   : > { %v12904_v24 = vmax.f32 %v12776_v32, 0.0  ;;  %v26659_v6 = vadd.f32 %v12364_v7, %v33772_v40 }
 0x76c   : > { %v13157_v48 = vld [vmem:[#allocation3 + $0x2a0] ss:$2 sm:$0xff]  ;;  %v13285_v51 = vld [vmem:[#allocation3 + $0x2a1] ss:$2 sm:$0xff]  ;;  %13034 = vst.msk [vmem:[#allocation3 + $0x2c8] sm:$0xff] %vm12944_vm3, %v12905_v42  ;;  %v12779_v17 = vadd.f32 %v31566_v11, %v26658_v38 }
 0x76d   : > { %v13567_v30 = vld [vmem:[#allocation4 + $0xf9] sm:$0xff]  ;;  %v13370_v23 = vmax.f32 %v13157_v48, %v13285_v51  ;;  %13033 = vst.msk [vmem:[#allocation3 + $0x2c0] sm:$0xff] %vm12944_vm3, %v12904_v24  ;;  %v12778_v63 = vadd.f32 %v31566_v11, %v26659_v6  ;;  %v25203_v8 = vpop.f32.mrb[92].mxu0 }
 0x76e   : > { %25290 = vmatmul.mubr.msk.f32.gmra.mrb[148].mxu1 %vm12944_vm3, %v13567_v30  ;;  %v12907_v31 = vmax.f32 %v12779_v17, 0.0  ;;  %v26660_v5 = vadd.f32 %v25203_v8, %v33773_v56  ;;  %v12374_v50 = vpop.f32.mrb[93].mxu0 }
 0x76f   : > { %v13412_v55 = vmax.f32 %v13368_v0, %v13370_v23  ;;  %v12906_v41 = vmax.f32 %v12778_v63, 0.0  ;;  %v26661_v46 = vadd.f32 %v12374_v50, %v33774_v37  ;;  %v33781_v23 = vld [vmem:[#allocation62_spill] sm:$0xff] }
 0x770   : > { %v13159_v44 = vld [vmem:[#allocation3 + $0x2b0] ss:$2 sm:$0xff]  ;;  %v13287_v13 = vld [vmem:[#allocation3 + $0x2b1] ss:$2 sm:$0xff]  ;;  %13036 = vst.msk [vmem:[#allocation3 + $0x2d8] sm:$0xff] %vm12944_vm3, %v12907_v31  ;;  %v12781_v62 = vadd.f32 %v31566_v11, %v26660_v5 }
 0x771   : > { %13500 = vst.msk [vmem:[#allocation4 + $0x109] sm:$0xff] %vm12944_vm3, %v13412_v55  ;;  %v13371_v26 = vmax.f32 %v13159_v44, %v13287_v13  ;;  %13035 = vst.msk [vmem:[#allocation3 + $0x2d0] sm:$0xff] %vm12944_vm3, %v12906_v41  ;;  %v12780_v9 = vadd.f32 %v31566_v11, %v26661_v46  ;;  %v25206_v14 = vpop.f32.mrb[94].mxu0  ;;  %v33782_v31 = vld [vmem:[#allocation63_spill] sm:$0xff] }
 0x772   : > { %v12909_v49 = vmax.f32 %v12781_v62, 0.0  ;;  %v26662_v12 = vadd.f32 %v25206_v14, %v33775_v33  ;;  %v12384_v57 = vpop.f32.mrb[95].mxu0  ;;  %v33783_v62 = vld [vmem:[#allocation64_spill] sm:$0xff] }
 0x773   : > { %v13413_v34 = vmax.f32 %v13369_v19, %v13371_v26  ;;  %v12908_v35 = vmax.f32 %v12780_v9, 0.0  ;;  %v26663_v36 = vadd.f32 %v12384_v57, %v33776_v4  ;;  %v33785_v4 = vld [vmem:[#allocation66_spill] sm:$0xff] }
 0x774   : > { %13038 = vst.msk [vmem:[#allocation3 + $0x2e8] sm:$0xff] %vm12944_vm3, %v12909_v49  ;;  %v12783_v2 = vadd.f32 %v31566_v11, %v26662_v12  ;;  %v13161_v27 = vld [vmem:[#allocation3 + $0x2c0] ss:$2 sm:$0xff]  ;;  %v13289_v29 = vld [vmem:[#allocation3 + $0x2c1] ss:$2 sm:$0xff] }
 0x775   : > { %13501 = vst.msk [vmem:[#allocation4 + $0x111] sm:$0xff] %vm12944_vm3, %v13413_v34  ;;  %13037 = vst.msk [vmem:[#allocation3 + $0x2e0] sm:$0xff] %vm12944_vm3, %v12908_v35  ;;  %v12782_v53 = vadd.f32 %v31566_v11, %v26663_v36  ;;  %v25209_v58 = vpop.f32.mrb[96].mxu0  ;;  %v13372_v40 = vmax.f32 %v13161_v27, %v13289_v29  ;;  %v33784_v49 = vld [vmem:[#allocation65_spill] sm:$0xff] }
 0x776   : > { %v12911_v1 = vmax.f32 %v12783_v2, 0.0  ;;  %v26664_v60 = vadd.f32 %v25209_v58, %v33777_v3  ;;  %v12394_v45 = vpop.f32.mrb[97].mxu0  ;;  %v33786_v58 = vld [vmem:[#allocation67_spill] sm:$0xff] }
 0x777   : > { %v12910_v16 = vmax.f32 %v12782_v53, 0.0  ;;  %v26665_v61 = vadd.f32 %v12394_v45, %v33778_v39 }
 0x778   : > { %13040 = vst.msk [vmem:[#allocation3 + $0x2f8] sm:$0xff] %vm12944_vm3, %v12911_v1  ;;  %v12785_v21 = vadd.f32 %v31566_v11, %v26664_v60  ;;  %v31683_v59 = vld [vmem:[#allocation4 + $0x109] sm:$0xff]  ;;  %v13291_v30 = vld [vmem:[#allocation3 + $0x2d1] ss:$2 sm:$0xff] }
 0x779   : > { %13039 = vst.msk [vmem:[#allocation3 + $0x2f0] sm:$0xff] %vm12944_vm3, %v12910_v16  ;;  %v12784_v43 = vadd.f32 %v31566_v11, %v26665_v61  ;;  %v25212_v10 = vpop.f32.mrb[98].mxu0  ;;  %25292 = vmatprep.mubr.msk.f32.mxu1 %vm12944_vm3, %v31683_v59  ;;  %v13163_v17 = vld [vmem:[#allocation3 + $0x2d0] ss:$2 sm:$0xff] }
 0x77a   : > { %v12913_v52 = vmax.f32 %v12785_v21, 0.0  ;;  %v26666_v32 = vadd.f32 %v25212_v10, %v33779_v20  ;;  %v12404_v28 = vpop.f32.mrb[99].mxu0  ;;  %v13373_v41 = vmax.f32 %v13163_v17, %v13291_v30 }
 0x77b   : > { %v12912_v22 = vmax.f32 %v12784_v43, 0.0  ;;  %v26667_v42 = vadd.f32 %v12404_v28, %v33780_v25  ;;  %v33787_v43 = vld [vmem:[#allocation68_spill] sm:$0xff] }
 0x77c   : > { %v13165_v15 = vld [vmem:[#allocation3 + $0x2e0] ss:$2 sm:$0xff]  ;;  %v13293_v38 = vld [vmem:[#allocation3 + $0x2e1] ss:$2 sm:$0xff]  ;;  %13042 = vst.msk [vmem:[#allocation3 + $0x308] sm:$0xff] %vm12944_vm3, %v12913_v52  ;;  %v12787_v7 = vadd.f32 %v31566_v11, %v26666_v32  ;;  %v31693_v24 = vld [vmem:[#allocation4 + $0x111] sm:$0xff] }
 0x77d   : > { %v13374_v6 = vmax.f32 %v13165_v15, %v13293_v38  ;;  %13041 = vst.msk [vmem:[#allocation3 + $0x300] sm:$0xff] %vm12944_vm3, %v12912_v22  ;;  %v12786_v48 = vadd.f32 %v31566_v11, %v26667_v42  ;;  %v25215_v51 = vpop.f32.mrb[100].mxu0  ;;  %25293 = vmatmul.mubr.msk.f32.gmra.mrb[150].mxu1 %vm12944_vm3, %v31693_v24  ;;  %v33788_v52 = vld [vmem:[#allocation69_spill] sm:$0xff] }
 0x77e   : > { %v12915_v0 = vmax.f32 %v12787_v7, 0.0  ;;  %v26668_v63 = vadd.f32 %v25215_v51, %v33781_v23  ;;  %v12414_v8 = vpop.f32.mrb[101].mxu0  ;;  %v33789_v51 = vld [vmem:[#allocation70_spill] sm:$0xff] }
 0x77f   : > { %v13414_v54 = vmax.f32 %v13372_v40, %v13374_v6  ;;  %v12914_v18 = vmax.f32 %v12786_v48, 0.0  ;;  %v26669_v56 = vadd.f32 %v12414_v8, %v33782_v31 }
 0x780   : > { %v13167_v5 = vld [vmem:[#allocation3 + $0x2f0] ss:$2 sm:$0xff]  ;;  %v13295_v50 = vld [vmem:[#allocation3 + $0x2f1] ss:$2 sm:$0xff]  ;;  %13044 = vst.msk [vmem:[#allocation3 + $0x318] sm:$0xff] %vm12944_vm3, %v12915_v0  ;;  %v12789_v55 = vadd.f32 %v31566_v11, %v26668_v63 }
 0x781   : > { %13502 = vst.msk [vmem:[#allocation4 + $0x121] sm:$0xff] %vm12944_vm3, %v13414_v54  ;;  %v13375_v37 = vmax.f32 %v13167_v5, %v13295_v50  ;;  %13043 = vst.msk [vmem:[#allocation3 + $0x310] sm:$0xff] %vm12944_vm3, %v12914_v18  ;;  %v12788_v46 = vadd.f32 %v31566_v11, %v26669_v56  ;;  %v25218_v44 = vpop.f32.mrb[102].mxu0  ;;  %v33790_v63 = vld [vmem:[#allocation71_spill] sm:$0xff] }
 0x782   : > { %v12917_v13 = vmax.f32 %v12789_v55, 0.0  ;;  %v26670_v19 = vadd.f32 %v25218_v44, %v33783_v62  ;;  %v12424_v26 = vpop.f32.mrb[103].mxu0 }
 0x783   : > { %v13415_v9 = vmax.f32 %v13373_v41, %v13375_v37  ;;  %v12916_v14 = vmax.f32 %v12788_v46, 0.0  ;;  %v26671_v33 = vadd.f32 %v12424_v26, %v33784_v49  ;;  %v33791_v37 = vld [vmem:[#allocation72_spill] sm:$0xff] }
 0x784   : > { %13046 = vst.msk [vmem:[#allocation3 + $0x328] sm:$0xff] %vm12944_vm3, %v12917_v13  ;;  %v12791_v12 = vadd.f32 %v31566_v11, %v26670_v19  ;;  %v13169_v39 = vld [vmem:[#allocation3 + $0x300] ss:$2 sm:$0xff]  ;;  %v13297_v61 = vld [vmem:[#allocation3 + $0x301] ss:$2 sm:$0xff] }
 0x785   : > { %13503 = vst.msk [vmem:[#allocation4 + $0x129] sm:$0xff] %vm12944_vm3, %v13415_v9  ;;  %13045 = vst.msk [vmem:[#allocation3 + $0x320] sm:$0xff] %vm12944_vm3, %v12916_v14  ;;  %v12790_v57 = vadd.f32 %v31566_v11, %v26671_v33  ;;  %v25221_v34 = vpop.f32.mrb[104].mxu0  ;;  %v13376_v42 = vmax.f32 %v13169_v39, %v13297_v61  ;;  %v33792_v19 = vld [vmem:[#allocation73_spill] sm:$0xff]  ;;  %v33795_v39 = vld [vmem:[#allocation76_spill] sm:$0xff] }
 0x786   : > { %v12919_v35 = vmax.f32 %v12791_v12, 0.0  ;;  %v26672_v36 = vadd.f32 %v25221_v34, %v33785_v4  ;;  %v12434_v2 = vpop.f32.mrb[105].mxu0  ;;  %v33793_v12 = vld [vmem:[#allocation74_spill] sm:$0xff]  ;;  %v33794_v4 = vld [vmem:[#allocation75_spill] sm:$0xff] }
 0x787   : > { %v12918_v53 = vmax.f32 %v12790_v57, 0.0  ;;  %v26673_v1 = vadd.f32 %v12434_v2, %v33786_v58 }
 0x788   : > { %13048 = vst.msk [vmem:[#allocation3 + $0x338] sm:$0xff] %vm12944_vm3, %v12919_v35  ;;  %v12793_v3 = vadd.f32 %v31566_v11, %v26672_v36  ;;  %v31717_v60 = vld [vmem:[#allocation4 + $0x121] sm:$0xff]  ;;  %v13171_v40 = vld [vmem:[#allocation3 + $0x310] ss:$2 sm:$0xff]  ;;  %v13299_v6 = vld [vmem:[#allocation3 + $0x311] ss:$2 sm:$0xff] }
 0x789   : > { %13047 = vst.msk [vmem:[#allocation3 + $0x330] sm:$0xff] %vm12944_vm3, %v12918_v53  ;;  %v12792_v45 = vadd.f32 %v31566_v11, %v26673_v1  ;;  %v25224_v16 = vpop.f32.mrb[106].mxu0  ;;  %25295 = vmatprep.mubr.msk.f32.mxu1 %vm12944_vm3, %v31717_v60  ;;  %v13377_v56 = vmax.f32 %v13171_v40, %v13299_v6  ;;  %v33797_v6 = vld [vmem:[#allocation78_spill] sm:$0xff] }
 0x78a   : > { %v12921_v21 = vmax.f32 %v12793_v3, 0.0  ;;  %v26674_v10 = vadd.f32 %v25224_v16, %v33787_v43  ;;  %v12444_v27 = vpop.f32.mrb[107].mxu0 }
 0x78b   : > { %v12920_v29 = vmax.f32 %v12792_v45, 0.0  ;;  %v26675_v20 = vadd.f32 %v12444_v27, %v33788_v52 }
 0x78c   : > { %v13173_v32 = vld [vmem:[#allocation3 + $0x320] ss:$2 sm:$0xff]  ;;  %v13301_v28 = vld [vmem:[#allocation3 + $0x321] ss:$2 sm:$0xff]  ;;  %13050 = vst.msk [vmem:[#allocation3 + $0x348] sm:$0xff] %vm12944_vm3, %v12921_v21  ;;  %v12795_v22 = vadd.f32 %v31566_v11, %v26674_v10 }
 0x78d   : > { %v31727_v25 = vld [vmem:[#allocation4 + $0x129] sm:$0xff]  ;;  %v13378_v15 = vmax.f32 %v13173_v32, %v13301_v28  ;;  %13049 = vst.msk [vmem:[#allocation3 + $0x340] sm:$0xff] %vm12944_vm3, %v12920_v29  ;;  %v12794_v38 = vadd.f32 %v31566_v11, %v26675_v20  ;;  %v25227_v7 = vpop.f32.mrb[108].mxu0 }
 0x78e   : > { %25296 = vmatmul.mubr.msk.f32.gmra.mrb[152].mxu1 %vm12944_vm3, %v31727_v25  ;;  %v12923_v48 = vmax.f32 %v12795_v22, 0.0  ;;  %v26676_v17 = vadd.f32 %v25227_v7, %v33789_v51  ;;  %v12454_v30 = vpop.f32.mrb[109].mxu0  ;;  %v33796_v10 = vld [vmem:[#allocation77_spill] sm:$0xff] }
 0x78f   : > { %v13416_v0 = vmax.f32 %v13376_v42, %v13378_v15  ;;  %v12922_v23 = vmax.f32 %v12794_v38, 0.0  ;;  %v26677_v8 = vadd.f32 %v12454_v30, %v33790_v63 }
 0x790   : > { %v13175_v54 = vld [vmem:[#allocation3 + $0x330] ss:$2 sm:$0xff]  ;;  %v13303_v18 = vld [vmem:[#allocation3 + $0x331] ss:$2 sm:$0xff]  ;;  %13052 = vst.msk [vmem:[#allocation3 + $0x358] sm:$0xff] %vm12944_vm3, %v12923_v48  ;;  %v12797_v31 = vadd.f32 %v31566_v11, %v26676_v17 }
 0x791   : > { %13504 = vst.msk [vmem:[#allocation4 + $0x139] sm:$0xff] %vm12944_vm3, %v13416_v0  ;;  %v13379_v5 = vmax.f32 %v13175_v54, %v13303_v18  ;;  %13051 = vst.msk [vmem:[#allocation3 + $0x350] sm:$0xff] %vm12944_vm3, %v12922_v23  ;;  %v12796_v50 = vadd.f32 %v31566_v11, %v26677_v8  ;;  %v25230_v55 = vpop.f32.mrb[110].mxu0  ;;  %v33798_v0 = vld [vmem:[#allocation79_spill] sm:$0xff] }
 0x792   : > { %v12925_v41 = vmax.f32 %v12797_v31, 0.0  ;;  %v26678_v46 = vadd.f32 %v25230_v55, %v33791_v37  ;;  %v12464_v44 = vpop.f32.mrb[111].mxu0  ;;  %v33799_v55 = vld [vmem:[#allocation80_spill] sm:$0xff] }
 0x793   : > { %v13417_v13 = vmax.f32 %v13377_v56, %v13379_v5  ;;  %v12924_v62 = vmax.f32 %v12796_v50, 0.0  ;;  %v26679_v26 = vadd.f32 %v12464_v44, %v33792_v19 }
 0x794   : > { %13054 = vst.msk [vmem:[#allocation3 + $0x368] sm:$0xff] %vm12944_vm3, %v12925_v41  ;;  %v12799_v9 = vadd.f32 %v31566_v11, %v26678_v46  ;;  %v13177_v3 = vld [vmem:[#allocation3 + $0x340] ss:$2 sm:$0xff]  ;;  %v13305_v45 = vld [vmem:[#allocation3 + $0x341] ss:$2 sm:$0xff] }
 0x795   : > { %13505 = vst.msk [vmem:[#allocation4 + $0x141] sm:$0xff] %vm12944_vm3, %v13417_v13  ;;  %13053 = vst.msk [vmem:[#allocation3 + $0x360] sm:$0xff] %vm12944_vm3, %v12924_v62  ;;  %v12798_v14 = vadd.f32 %v31566_v11, %v26679_v26  ;;  %v25233_v49 = vpop.f32.mrb[112].mxu0  ;;  %v13380_v28 = vmax.f32 %v13177_v3, %v13305_v45  ;;  %v33800_v13 = vld [vmem:[#allocation81_spill] sm:$0xff] }
 0x796   : > { %v12927_v33 = vmax.f32 %v12799_v9, 0.0  ;;  %v26680_v57 = vadd.f32 %v25233_v49, %v33793_v12  ;;  %v12474_v34 = vpop.f32.mrb[113].mxu0  ;;  %v33801_v49 = vld [vmem:[#allocation82_spill] sm:$0xff] }
 0x797   : > { %v12926_v35 = vmax.f32 %v12798_v14, 0.0  ;;  %v26681_v36 = vadd.f32 %v12474_v34, %v33794_v4  ;;  %v33802_v34 = vld [vmem:[#allocation83_spill] sm:$0xff] }
 0x798   : > { %13056 = vst.msk [vmem:[#allocation3 + $0x378] sm:$0xff] %vm12944_vm3, %v12927_v33  ;;  %v12801_v2 = vadd.f32 %v31566_v11, %v26680_v57  ;;  %v31751_v53 = vld [vmem:[#allocation4 + $0x139] sm:$0xff] }
 0x799   : > { %13055 = vst.msk [vmem:[#allocation3 + $0x370] sm:$0xff] %vm12944_vm3, %v12926_v35  ;;  %v12800_v58 = vadd.f32 %v31566_v11, %v26681_v36  ;;  %v25236_v1 = vpop.f32.mrb[114].mxu0  ;;  %25298 = vmatprep.mubr.msk.f32.mxu1 %vm12944_vm3, %v31751_v53  ;;  %v13179_v38 = vld [vmem:[#allocation3 + $0x350] ss:$2 sm:$0xff]  ;;  %v13307_v7 = vld [vmem:[#allocation3 + $0x351] ss:$2 sm:$0xff] }
 0x79a   : > { %v12929_v16 = vmax.f32 %v12801_v2, 0.0  ;;  %v26682_v61 = vadd.f32 %v25236_v1, %v33795_v39  ;;  %v12484_v21 = vpop.f32.mrb[115].mxu0  ;;  %v13381_v18 = vmax.f32 %v13179_v38, %v13307_v7 }
 0x79b   : > { %v12928_v43 = vmax.f32 %v12800_v58, 0.0  ;;  %v26683_v27 = vadd.f32 %v12484_v21, %v33796_v10 }
 0x79c   : > { %v13181_v29 = vld [vmem:[#allocation3 + $0x360] ss:$2 sm:$0xff]  ;;  %v13309_v52 = vld [vmem:[#allocation3 + $0x361] ss:$2 sm:$0xff]  ;;  %13058 = vst.msk [vmem:[#allocation3 + $0x388] sm:$0xff] %vm12944_vm3, %v12929_v16  ;;  %v12803_v20 = vadd.f32 %v31566_v11, %v26682_v61 }
 0x79d   : > { %v31761_v32 = vld [vmem:[#allocation4 + $0x141] sm:$0xff]  ;;  %v13382_v22 = vmax.f32 %v13181_v29, %v13309_v52  ;;  %13057 = vst.msk [vmem:[#allocation3 + $0x380] sm:$0xff] %vm12944_vm3, %v12928_v43  ;;  %v12802_v42 = vadd.f32 %v31566_v11, %v26683_v27  ;;  %v25239_v15 = vpop.f32.mrb[116].mxu0 }
 0x79e   : > { %25299 = vmatmul.mubr.msk.f32.gmra.mrb[154].mxu1 %vm12944_vm3, %v31761_v32  ;;  %v12931_v40 = vmax.f32 %v12803_v20, 0.0  ;;  %v26684_v48 = vadd.f32 %v25239_v15, %v33797_v6  ;;  %v12494_v51 = vpop.f32.mrb[117].mxu0  ;;  %v33803_v16 = vld [vmem:[#allocation84_spill] sm:$0xff]  ;;  %v33804_v43 = vld [vmem:[#allocation85_spill] sm:$0xff]  ;;  %v33805_v6 = vld [vmem:[#allocation86_spill] sm:$0xff] }
 0x79f   : > { %v13418_v17 = vmax.f32 %v13380_v28, %v13382_v22  ;;  %v12930_v30 = vmax.f32 %v12802_v42, 0.0  ;;  %v26685_v23 = vadd.f32 %v12494_v51, %v33798_v0  ;;  %v33806_v0 = vld [vmem:[#allocation87_spill] sm:$0xff] }
 0x7a0   : > { %v13183_v63 = vld [vmem:[#allocation3 + $0x370] ss:$2 sm:$0xff]  ;;  %v13311_v8 = vld [vmem:[#allocation3 + $0x371] ss:$2 sm:$0xff]  ;;  %13060 = vst.msk [vmem:[#allocation3 + $0x398] sm:$0xff] %vm12944_vm3, %v12931_v40  ;;  %v12805_v54 = vadd.f32 %v31566_v11, %v26684_v48 }
 0x7a1   : > { %13506 = vst.msk [vmem:[#allocation4 + $0x151] sm:$0xff] %vm12944_vm3, %v13418_v17  ;;  %v13383_v31 = vmax.f32 %v13183_v63, %v13311_v8  ;;  %13059 = vst.msk [vmem:[#allocation3 + $0x390] sm:$0xff] %vm12944_vm3, %v12930_v30  ;;  %v12804_v56 = vadd.f32 %v31566_v11, %v26685_v23  ;;  %v25242_v5 = vpop.f32.mrb[118].mxu0 }
 0x7a2   : > { %v12933_v50 = vmax.f32 %v12805_v54, 0.0  ;;  %v26686_v41 = vadd.f32 %v25242_v5, %v33799_v55  ;;  %v12504_v37 = vpop.f32.mrb[119].mxu0  ;;  %v33807_v55 = vld [vmem:[#allocation88_spill] sm:$0xff] }
 0x7a3   : > { %v13419_v46 = vmax.f32 %v13381_v18, %v13383_v31  ;;  %v12932_v44 = vmax.f32 %v12804_v56, 0.0  ;;  %v26687_v62 = vadd.f32 %v12504_v37, %v33800_v13  ;;  %v33808_v13 = vld [vmem:[#allocation89_spill] sm:$0xff] }
 0x7a4   : > { %13062 = vst.msk [vmem:[#allocation3 + $0x3a8] sm:$0xff] %vm12944_vm3, %v12933_v50  ;;  %v12807_v19 = vadd.f32 %v31566_v11, %v26686_v41  ;;  %v13185_v1 = vld [vmem:[#allocation3 + $0x380] ss:$2 sm:$0xff]  ;;  %v13313_v3 = vld [vmem:[#allocation3 + $0x381] ss:$2 sm:$0xff] }
 0x7a5   : > { %13507 = vst.msk [vmem:[#allocation4 + $0x159] sm:$0xff] %vm12944_vm3, %v13419_v46  ;;  %13061 = vst.msk [vmem:[#allocation3 + $0x3a0] sm:$0xff] %vm12944_vm3, %v12932_v44  ;;  %v12806_v26 = vadd.f32 %v31566_v11, %v26687_v62  ;;  %v25245_v9 = vpop.f32.mrb[120].mxu0  ;;  %v13384_v28 = vmax.f32 %v13185_v1, %v13313_v3 }
 0x7a6   : > { %v12935_v14 = vmax.f32 %v12807_v19, 0.0  ;;  %v26688_v33 = vadd.f32 %v25245_v9, %v33801_v49  ;;  %v12514_v12 = vpop.f32.mrb[121].mxu0 }
 0x7a7   : > { %v12934_v57 = vmax.f32 %v12806_v26, 0.0  ;;  %v26689_v35 = vadd.f32 %v12514_v12, %v33802_v34  ;;  %v21323_v34 = vld [vmem:[%s33567_s3 + $0x30] sm:$0xff] }
 0x7a8   : > { %13064 = vst.msk [vmem:[#allocation3 + $0x3b8] sm:$0xff] %vm12944_vm3, %v12935_v14  ;;  %v12809_v4 = vadd.f32 %v31566_v11, %v26688_v33  ;;  %v31785_v36 = vld [vmem:[#allocation4 + $0x151] sm:$0xff] }
 0x7a9   : > { %13063 = vst.msk [vmem:[#allocation3 + $0x3b0] sm:$0xff] %vm12944_vm3, %v12934_v57  ;;  %v12808_v2 = vadd.f32 %v31566_v11, %v26689_v35  ;;  %v25248_v58 = vpop.f32.mrb[122].mxu0  ;;  %25301 = vmatprep.mubr.msk.f32.mxu1 %vm12944_vm3, %v31785_v36  ;;  %v13187_v38 = vld [vmem:[#allocation3 + $0x390] ss:$2 sm:$0xff]  ;;  %v13315_v7 = vld [vmem:[#allocation3 + $0x391] ss:$2 sm:$0xff] }
 0x7aa   : > { %v12937_v45 = vmax.f32 %v12809_v4, 0.0  ;;  %v26690_v39 = vadd.f32 %v25248_v58, %v33803_v16  ;;  %v12524_v61 = vpop.f32.mrb[123].mxu0  ;;  %v13385_v18 = vmax.f32 %v13187_v38, %v13315_v7  ;;  %v13512_v57 = vld [vmem:[#allocation4] sm:$0xff]  ;;  %v13513_v16 = vld [vmem:[#allocation4 + $0x8] sm:$0xff] }
 0x7ab   : > { %v12936_v21 = vmax.f32 %v12808_v2, 0.0  ;;  %v26691_v10 = vadd.f32 %v12524_v61, %v33804_v43  ;;  %v31863_v38 = vld [vmem:[#allocation4 + $0x60] sm:$0xff]  ;;  %v31867_v7 = vld [vmem:[#allocation4 + $0x68] sm:$0xff] }
 0x7ac   : > { %v13189_v27 = vld [vmem:[#allocation3 + $0x3a0] ss:$2 sm:$0xff]  ;;  %v13317_v29 = vld [vmem:[#allocation3 + $0x3a1] ss:$2 sm:$0xff]  ;;  %13066 = vst.msk [vmem:[#allocation3 + $0x3c8] sm:$0xff] %vm12944_vm3, %v12937_v45  ;;  %v12811_v52 = vadd.f32 %v31566_v11, %v26690_v39 }
 0x7ad   : > { %v31795_v20 = vld [vmem:[#allocation4 + $0x159] sm:$0xff]  ;;  %v13386_v22 = vmax.f32 %v13189_v27, %v13317_v29  ;;  %13065 = vst.msk [vmem:[#allocation3 + $0x3c0] sm:$0xff] %vm12944_vm3, %v12936_v21  ;;  %v12810_v42 = vadd.f32 %v31566_v11, %v26691_v10  ;;  %v25251_v15 = vpop.f32.mrb[124].mxu0 }
 0x7ae   : > { %25302 = vmatmul.mubr.msk.f32.gmra.mrb[156].mxu1 %vm12944_vm3, %v31795_v20  ;;  %v12939_v40 = vmax.f32 %v12811_v52, 0.0  ;;  %v26692_v48 = vadd.f32 %v25251_v15, %v33805_v6  ;;  %v12534_v51 = vpop.f32.mrb[125].mxu0  ;;  %v31836_v29 = vld [vmem:[#allocation4 + $0x18] sm:$0xff]  ;;  %v31859_v15 = vld [vmem:[#allocation4 + $0x50] sm:$0xff]  ;;  %v31875_v6 = vld [vmem:[#allocation4 + $0x80] sm:$0xff] }
 0x7af   : > { %v13420_v17 = vmax.f32 %v13384_v28, %v13386_v22  ;;  %v12938_v30 = vmax.f32 %v12810_v42, 0.0  ;;  %v26693_v23 = vadd.f32 %v12534_v51, %v33806_v0  ;;  %v31842_v28 = vld [vmem:[#allocation4 + $0x20] sm:$0xff]  ;;  %v31847_v22 = vld [vmem:[#allocation4 + $0x30] sm:$0xff]  ;;  %v31851_v42 = vld [vmem:[#allocation4 + $0x38] sm:$0xff] }
 0x7b0   : > { %v13191_v63 = vld [vmem:[#allocation3 + $0x3b0] ss:$2 sm:$0xff]  ;;  %v13319_v8 = vld [vmem:[#allocation3 + $0x3b1] ss:$2 sm:$0xff]  ;;  %13068 = vst.msk [vmem:[#allocation3 + $0x3d8] sm:$0xff] %vm12944_vm3, %v12939_v40  ;;  %v12813_v54 = vadd.f32 %v31566_v11, %v26692_v48  ;;  %v31895_v0 = vld [vmem:[#allocation4 + $0xc0] sm:$0xff] }
 0x7b1   : > { %13508 = vst.msk [vmem:[#allocation4 + $0x169] sm:$0xff] %vm12944_vm3, %v13420_v17  ;;  %v13387_v31 = vmax.f32 %v13191_v63, %v13319_v8  ;;  %13067 = vst.msk [vmem:[#allocation3 + $0x3d0] sm:$0xff] %vm12944_vm3, %v12938_v30  ;;  %v12812_v56 = vadd.f32 %v31566_v11, %v26693_v23  ;;  %v25254_v5 = vpop.f32.mrb[126].mxu0  ;;  %v31871_v40 = vld [vmem:[#allocation4 + $0x78] sm:$0xff]  ;;  %v31879_v48 = vld [vmem:[#allocation4 + $0x90] sm:$0xff] }
 0x7b2   : > { %v12941_v50 = vmax.f32 %v12813_v54, 0.0  ;;  %v26694_v41 = vadd.f32 %v25254_v5, %v33807_v55  ;;  %v12544_v37 = vpop.f32.mrb[127].mxu0  ;;  %v31883_v51 = vld [vmem:[#allocation4 + $0x98] sm:$0xff]  ;;  %v31887_v17 = vld [vmem:[#allocation4 + $0xa8] sm:$0xff]  ;;  %v31891_v30 = vld [vmem:[#allocation4 + $0xb0] sm:$0xff] }
 0x7b3   : > { %v13421_v46 = vmax.f32 %v13385_v18, %v13387_v31  ;;  %v12940_v44 = vmax.f32 %v12812_v56, 0.0  ;;  %v26695_v62 = vadd.f32 %v12544_v37, %v33808_v13  ;;  %v31899_v23 = vld [vmem:[#allocation4 + $0xc8] sm:$0xff]  ;;  %v31903_v63 = vld [vmem:[#allocation4 + $0xd8] sm:$0xff]  ;;  %v31907_v8 = vld [vmem:[#allocation4 + $0xe0] sm:$0xff] }
 0x7b4   : > { %13070 = vst.msk [vmem:[#allocation3 + $0x3e8] sm:$0xff] %vm12944_vm3, %v12941_v50  ;;  %v12815_v19 = vadd.f32 %v31566_v11, %v26694_v41  ;;  %v13193_v33 = vld [vmem:[#allocation3 + $0x3c0] ss:$2 sm:$0xff]  ;;  %v13321_v12 = vld [vmem:[#allocation3 + $0x3c1] ss:$2 sm:$0xff]  ;;  %v31911_v54 = vld [vmem:[#allocation4 + $0xf0] sm:$0xff] }
 0x7b5   : > { %13509 = vst.msk [vmem:[#allocation4 + $0x171] sm:$0xff] %vm12944_vm3, %v13421_v46  ;;  %13069 = vst.msk [vmem:[#allocation3 + $0x3e0] sm:$0xff] %vm12944_vm3, %v12940_v44  ;;  %v12814_v26 = vadd.f32 %v31566_v11, %v26695_v62  ;;  %v21324_v11 = vld [vmem:[%s33567_s3 + $0x38] sm:$0xff]  ;;  %v13388_v58 = vmax.f32 %v13193_v33, %v13321_v12  ;;  %v31915_v18 = vld [vmem:[#allocation4 + $0xf8] sm:$0xff] }
 0x7b6   : > { %v12943_v9 = vmax.f32 %v12815_v19, 0.0  ;;  %v31832_v61 = vpack.c.bf16 %v21324_v11, %v21323_v34  ;;  %v31919_v31 = vld [vmem:[#allocation4 + $0x108] sm:$0xff]  ;;  %v31923_v56 = vld [vmem:[#allocation4 + $0x110] sm:$0xff]  ;;  %v31927_v5 = vld [vmem:[#allocation4 + $0x120] sm:$0xff] }
 0x7b7   : > { %v12942_v14 = vmax.f32 %v12814_v26, 0.0  ;;  %v31931_v50 = vld [vmem:[#allocation4 + $0x128] sm:$0xff]  ;;  %v31935_v55 = vld [vmem:[#allocation4 + $0x138] sm:$0xff]  ;;  %v31939_v41 = vld [vmem:[#allocation4 + $0x140] sm:$0xff] }
 0x7b8   : > { %13072 = vst.msk [vmem:[#allocation3 + $0x3f8] sm:$0xff] %vm12944_vm3, %v12943_v9  ;;  %v31816_v49 = vld [vmem:[#allocation4 + $0x169] sm:$0xff]  ;;  %v13323_v45 = vld [vmem:[#allocation3 + $0x3d1] ss:$2 sm:$0xff] }
 0x7b9   : > { %13071 = vst.msk [vmem:[#allocation3 + $0x3f0] sm:$0xff] %vm12944_vm3, %v12942_v14  ;;  %25304 = vmatprep.mubr.msk.f32.mxu1 %vm12944_vm3, %v31816_v49  ;;  %v13195_v3 = vld [vmem:[#allocation3 + $0x3d0] ss:$2 sm:$0xff]  ;;  %v31951_v44 = vld [vmem:[#allocation4 + $0x168] sm:$0xff] }
 0x7ba   : > { %v13389_v10 = vmax.f32 %v13195_v3, %v13323_v45  ;;  %v31943_v37 = vld [vmem:[#allocation4 + $0x150] sm:$0xff]  ;;  %v31947_v46 = vld [vmem:[#allocation4 + $0x158] sm:$0xff]  ;;  %33810 = vst [vmem:[#allocation12_spill] sm:$0xff] %v31951_v44  ;;  %v14223_v13 = vld [vmem:[#allocation4 + $0x2] sm:$0xff] }
 0x7bb   : > { %33809 = vst [vmem:[#allocation11_spill] sm:$0xff] %v31947_v46  ;;  %v21357_v19 = vld [vmem:[%s33567_s3 + $0x40] sm:$0xff]  ;;  %v21358_v26 = vld [vmem:[%s33567_s3 + $0x48] sm:$0xff]  ;;  %v31975_v12 = vld [vmem:[#allocation4 + $0x22] sm:$0xff] }
 0x7bc   : > { %v13197_v35 = vld [vmem:[#allocation3 + $0x3e0] ss:$2 sm:$0xff]  ;;  %v13325_v4 = vld [vmem:[#allocation3 + $0x3e1] ss:$2 sm:$0xff]  ;;  %v31827_v2 = vld [vmem:[#allocation4 + $0x171] sm:$0xff]  ;;  %v31966_v14 = vpack.c.bf16 %v21358_v26, %v21357_v19 }
 0x7bd   : > { %v13390_v1 = vmax.f32 %v13197_v35, %v13325_v4  ;;  %25305 = vmatmul.mubr.msk.f32.gmra.mrb[158].mxu1 %vm12944_vm3, %v31827_v2  ;;  %v31955_v62 = vld [vmem:[#allocation4 + $0x170] sm:$0xff]  ;;  %v31969_v33 = vld [vmem:[#allocation4 + $0x1a] sm:$0xff]  ;;  %v31995_v4 = vld [vmem:[#allocation4 + $0x62] sm:$0xff] }
 0x7be   : > { %25311 = vmatprep.mubr.msk.f32.mxu1 %vm12944_vm3, %v13512_v57  ;;  %33811 = vst [vmem:[#allocation13_spill] sm:$0xff] %v31955_v62  ;;  %v14224_v9 = vld [vmem:[#allocation4 + $0xa] sm:$0xff]  ;;  %v31979_v57 = vld [vmem:[#allocation4 + $0x32] sm:$0xff]  ;;  %v31983_v34 = vld [vmem:[#allocation4 + $0x3a] sm:$0xff] }
 0x7bf   : > { %v13422_v39 = vmax.f32 %v13388_v58, %v13390_v1  ;;  %v31987_v11 = vld [vmem:[#allocation4 + $0x4a] sm:$0xff]  ;;  %v31991_v35 = vld [vmem:[#allocation4 + $0x52] sm:$0xff]  ;;  %v32003_v1 = vld [vmem:[#allocation4 + $0x7a] sm:$0xff] }
 0x7c0   : > { %v13199_v21 = vld [vmem:[#allocation3 + $0x3f0] ss:$2 sm:$0xff]  ;;  %v13327_v43 = vld [vmem:[#allocation3 + $0x3f1] ss:$2 sm:$0xff]  ;;  %v32007_v3 = vld [vmem:[#allocation4 + $0x82] sm:$0xff] }
 0x7c1   : > { %13510 = vst.msk [vmem:[#allocation4 + $0x181] sm:$0xff] %vm12944_vm3, %v13422_v39  ;;  %v13391_v27 = vmax.f32 %v13199_v21, %v13327_v43  ;;  %25312 = vmatmul.mubr.msk.f32.vlgmr.msra.gmra.mrb[128].mxu1 %vm12944_vm3, %v13513_v16  ;;  %v31999_v58 = vld [vmem:[#allocation4 + $0x6a] sm:$0xff]  ;;  %v32011_v45 = vld [vmem:[#allocation4 + $0x92] sm:$0xff]  ;;  %v32015_v16 = vld [vmem:[#allocation4 + $0x9a] sm:$0xff] }
 0x7c2   : > { %26253 = vmatpush3.bf16.msra.mxu1 %v31593_v47  ;;  %25314 = vmatprep.mubr.msk.f32.mxu1 %vm12944_vm3, %v31836_v29  ;;  %v31855_v47 = vld [vmem:[#allocation4 + $0x48] sm:$0xff]  ;;  %v32055_v26 = vld [vmem:[#allocation4 + $0x112] sm:$0xff] }
 0x7c3   : > { %v13423_v52 = vmax.f32 %v13389_v10, %v13391_v27  ;;  %26255 = vmatprep.subr.bf16.mxu1 %v31832_v61  ;;  %v32019_v39 = vld [vmem:[#allocation4 + $0xaa] sm:$0xff]  ;;  %v32027_v21 = vld [vmem:[#allocation4 + $0xc2] sm:$0xff]  ;;  %v32035_v10 = vld [vmem:[#allocation4 + $0xda] sm:$0xff]  ;;  %33816 = vst [vmem:[#allocation18_spill] sm:$0xff] %v32055_v26 }
 0x7c4   : > { %v32031_v43 = vld [vmem:[#allocation4 + $0xca] sm:$0xff]  ;;  %v32039_v27 = vld [vmem:[#allocation4 + $0xe2] sm:$0xff] }
 0x7c5   : > { %13511 = vst.msk [vmem:[#allocation4 + $0x189] sm:$0xff] %vm12944_vm3, %v13423_v52  ;;  %25315 = vmatmul.mubr.msk.f32.gmra.mrb[130].mxu1 %vm12944_vm3, %v31842_v28  ;;  %33812 = vst [vmem:[#allocation14_spill] sm:$0xff] %v32039_v27  ;;  %v32043_v52 = vld [vmem:[#allocation4 + $0xf2] sm:$0xff]  ;;  %v32051_v19 = vld [vmem:[#allocation4 + $0x10a] sm:$0xff] }
 0x7c6   : > { %25317 = vmatprep.mubr.msk.f32.mxu1 %vm12944_vm3, %v31847_v22  ;;  %33813 = vst [vmem:[#allocation15_spill] sm:$0xff] %v32043_v52  ;;  %33815 = vst [vmem:[#allocation17_spill] sm:$0xff] %v32051_v19 }
 0x7c9   : > { %25318 = vmatmul.mubr.msk.f32.gmra.mrb[132].mxu1 %vm12944_vm3, %v31851_v42 }
 0x7ca   : > { %25320 = vmatprep.mubr.msk.f32.mxu1 %vm12944_vm3, %v31855_v47 }
 0x7cd   : > { %25321 = vmatmul.mubr.msk.f32.gmra.mrb[134].mxu1 %vm12944_vm3, %v31859_v15 }
 0x7ce   : > { %25323 = vmatprep.mubr.msk.f32.mxu1 %vm12944_vm3, %v31863_v38 }
 0x7d1   : > { %25324 = vmatmul.mubr.msk.f32.gmra.mrb[136].mxu1 %vm12944_vm3, %v31867_v7 }
 0x7d2   : > { %25326 = vmatprep.mubr.msk.f32.mxu1 %vm12944_vm3, %v31871_v40 }
 0x7d5   : > { %25327 = vmatmul.mubr.msk.f32.gmra.mrb[138].mxu1 %vm12944_vm3, %v31875_v6 }
 0x7d6   : > { %25329 = vmatprep.mubr.msk.f32.mxu1 %vm12944_vm3, %v31879_v48 }
 0x7d9   : > { %25330 = vmatmul.mubr.msk.f32.gmra.mrb[140].mxu1 %vm12944_vm3, %v31883_v51 }
 0x7da   : > { %25332 = vmatprep.mubr.msk.f32.mxu1 %vm12944_vm3, %v31887_v17 }
 0x7dd   : > { %25333 = vmatmul.mubr.msk.f32.gmra.mrb[142].mxu1 %vm12944_vm3, %v31891_v30 }
 0x7de   : > { %25335 = vmatprep.mubr.msk.f32.mxu1 %vm12944_vm3, %v31895_v0 }
 0x7e1   : > { %25336 = vmatmul.mubr.msk.f32.gmra.mrb[144].mxu1 %vm12944_vm3, %v31899_v23 }
 0x7e2   : > { %25338 = vmatprep.mubr.msk.f32.mxu1 %vm12944_vm3, %v31903_v63 }
 0x7e5   : > { %25339 = vmatmul.mubr.msk.f32.gmra.mrb[146].mxu1 %vm12944_vm3, %v31907_v8 }
 0x7e6   : > { %25341 = vmatprep.mubr.msk.f32.mxu1 %vm12944_vm3, %v31911_v54 }
 0x7e9   : > { %25342 = vmatmul.mubr.msk.f32.gmra.mrb[148].mxu1 %vm12944_vm3, %v31915_v18 }
 0x7ea   : > { %25344 = vmatprep.mubr.msk.f32.mxu1 %vm12944_vm3, %v31919_v31 }
 0x7ed   : > { %25345 = vmatmul.mubr.msk.f32.gmra.mrb[150].mxu1 %vm12944_vm3, %v31923_v56 }
 0x7ee   : > { %25347 = vmatprep.mubr.msk.f32.mxu1 %vm12944_vm3, %v31927_v5 }
 0x7f1   : > { %25348 = vmatmul.mubr.msk.f32.gmra.mrb[152].mxu1 %vm12944_vm3, %v31931_v50 }
 0x7f2   : > { %25350 = vmatprep.mubr.msk.f32.mxu1 %vm12944_vm3, %v31935_v55 }
 0x7f5   : > { %25351 = vmatmul.mubr.msk.f32.gmra.mrb[154].mxu1 %vm12944_vm3, %v31939_v41 }
 0x7f6   : > { %25353 = vmatprep.mubr.msk.f32.mxu1 %vm12944_vm3, %v31943_v37 }
 0x7f9   : > { %25354 = vmatmul.mubr.msk.f32.gmra.mrb[156].mxu1 %vm12944_vm3, %v31947_v46 }
 0x7fa   : > { %25356 = vmatprep.mubr.msk.f32.mxu1 %vm12944_vm3, %v31951_v44 }
 0x7fd   : > { %25357 = vmatmul.mubr.msk.f32.gmra.mrb[158].mxu1 %vm12944_vm3, %v31955_v62 }
 0x7fe   : > { %25363 = vmatprep.mubr.msk.f32.mxu1 %vm12944_vm3, %v14223_v13  ;;  %v32047_v13 = vld [vmem:[#allocation4 + $0xfa] sm:$0xff] }
 0x7ff   : > { %33814 = vst [vmem:[#allocation16_spill] sm:$0xff] %v32047_v13 }
 0x801   : > { %25364 = vmatmul.mubr.msk.f32.vlgmr.msra.gmra.mrb[128].mxu1 %vm12944_vm3, %v14224_v9  ;;  %v32059_v9 = vld [vmem:[#allocation4 + $0x122] sm:$0xff] }
 0x802   : > { %26257 = vmatpush3.bf16.msra.mxu1 %v31832_v61  ;;  %25366 = vmatprep.mubr.msk.f32.mxu1 %vm12944_vm3, %v31969_v33  ;;  %v32023_v61 = vld [vmem:[#allocation4 + $0xb2] sm:$0xff]  ;;  %33817 = vst [vmem:[#allocation19_spill] sm:$0xff] %v32059_v9 }
 0x803   : > { %26259 = vmatprep.subr.bf16.mxu1 %v31966_v14 }
 0x805   : > { %25367 = vmatmul.mubr.msk.f32.gmra.mrb[130].mxu1 %vm12944_vm3, %v31975_v12 }
 0x806   : > { %25369 = vmatprep.mubr.msk.f32.mxu1 %vm12944_vm3, %v31979_v57 }
 0x809   : > { %25370 = vmatmul.mubr.msk.f32.gmra.mrb[132].mxu1 %vm12944_vm3, %v31983_v34 }
 0x80a   : > { %25372 = vmatprep.mubr.msk.f32.mxu1 %vm12944_vm3, %v31987_v11 }
 0x80d   : > { %25373 = vmatmul.mubr.msk.f32.gmra.mrb[134].mxu1 %vm12944_vm3, %v31991_v35 }
 0x80e   : > { %25375 = vmatprep.mubr.msk.f32.mxu1 %vm12944_vm3, %v31995_v4 }
 0x811   : > { %25376 = vmatmul.mubr.msk.f32.gmra.mrb[136].mxu1 %vm12944_vm3, %v31999_v58 }
 0x812   : > { %25378 = vmatprep.mubr.msk.f32.mxu1 %vm12944_vm3, %v32003_v1 }
 0x815   : > { %25379 = vmatmul.mubr.msk.f32.gmra.mrb[138].mxu1 %vm12944_vm3, %v32007_v3 }
 0x816   : > { %25381 = vmatprep.mubr.msk.f32.mxu1 %vm12944_vm3, %v32011_v45 }
 0x819   : > { %25382 = vmatmul.mubr.msk.f32.gmra.mrb[140].mxu1 %vm12944_vm3, %v32015_v16 }
 0x81a   : > { %25384 = vmatprep.mubr.msk.f32.mxu1 %vm12944_vm3, %v32019_v39 }
 0x81d   : > { %25385 = vmatmul.mubr.msk.f32.gmra.mrb[142].mxu1 %vm12944_vm3, %v32023_v61 }
 0x81e   : > { %25387 = vmatprep.mubr.msk.f32.mxu1 %vm12944_vm3, %v32027_v21 }
 0x821   : > { %25388 = vmatmul.mubr.msk.f32.gmra.mrb[144].mxu1 %vm12944_vm3, %v32031_v43 }
 0x822   : > { %25390 = vmatprep.mubr.msk.f32.mxu1 %vm12944_vm3, %v32035_v10 }
 0x825   : > { %25391 = vmatmul.mubr.msk.f32.gmra.mrb[146].mxu1 %vm12944_vm3, %v32039_v27 }
 0x826   : > { %25393 = vmatprep.mubr.msk.f32.mxu1 %vm12944_vm3, %v32043_v52  ;;  %v32063_v52 = vld [vmem:[#allocation4 + $0x12a] sm:$0xff] }
 0x827   : > { %33818 = vst [vmem:[#allocation20_spill] sm:$0xff] %v32063_v52 }
 0x829   : > { %25394 = vmatmul.mubr.msk.f32.gmra.mrb[148].mxu1 %vm12944_vm3, %v32047_v13  ;;  %v32067_v13 = vld [vmem:[#allocation4 + $0x13a] sm:$0xff] }
 0x82a   : > { %25396 = vmatprep.mubr.msk.f32.mxu1 %vm12944_vm3, %v32051_v19  ;;  %33819 = vst [vmem:[#allocation21_spill] sm:$0xff] %v32067_v13  ;;  %v32071_v19 = vld [vmem:[#allocation4 + $0x142] sm:$0xff] }
 0x82b   : > { %33820 = vst [vmem:[#allocation22_spill] sm:$0xff] %v32071_v19 }
 0x82d   : > { %25397 = vmatmul.mubr.msk.f32.gmra.mrb[150].mxu1 %vm12944_vm3, %v32055_v26  ;;  %v32075_v26 = vld [vmem:[#allocation4 + $0x152] sm:$0xff] }
 0x82e   : > { %25399 = vmatprep.mubr.msk.f32.mxu1 %vm12944_vm3, %v32059_v9  ;;  %33821 = vst [vmem:[#allocation23_spill] sm:$0xff] %v32075_v26  ;;  %v32079_v9 = vld [vmem:[#allocation4 + $0x15a] sm:$0xff] }
 0x82f   : > { %33822 = vst [vmem:[#allocation24_spill] sm:$0xff] %v32079_v9 }
 0x831   : > { %25400 = vmatmul.mubr.msk.f32.gmra.mrb[152].mxu1 %vm12944_vm3, %v32063_v52  ;;  %v32083_v52 = vld [vmem:[#allocation4 + $0x16a] sm:$0xff] }
 0x832   : > { %25402 = vmatprep.mubr.msk.f32.mxu1 %vm12944_vm3, %v32067_v13  ;;  %v32087_v13 = vld [vmem:[#allocation4 + $0x172] sm:$0xff] }
 0x833   : > { %33823 = vst [vmem:[#allocation25_spill] sm:$0xff] %v32087_v13 }
 0x835   : > { %25403 = vmatmul.mubr.msk.f32.gmra.mrb[154].mxu1 %vm12944_vm3, %v32071_v19  ;;  %v21391_v19 = vld [vmem:[%s33567_s3 + $0x50] sm:$0xff] }
 0x836   : > { %25405 = vmatprep.mubr.msk.f32.mxu1 %vm12944_vm3, %v32075_v26  ;;  %v21392_v26 = vld [vmem:[%s33567_s3 + $0x58] sm:$0xff] }
 0x839   : > { %25406 = vmatmul.mubr.msk.f32.gmra.mrb[156].mxu1 %vm12944_vm3, %v32079_v9  ;;  %v26262_v9 = vpack.c.bf16 %v21392_v26, %v21391_v19  ;;  %v21426_v19 = vld [vmem:[%s33567_s3 + $0x68] sm:$0xff] }
 0x83a   : > { %25408 = vmatprep.mubr.msk.f32.mxu1 %vm12944_vm3, %v32083_v52  ;;  %v14999_v26 = vld [vmem:[#allocation4 + $0x19] sm:$0xff] }
 0x83d   : > { %25409 = vmatmul.mubr.msk.f32.gmra.mrb[158].mxu1 %vm12944_vm3, %v32087_v13 }
 0x83e   : > { %25415 = vmatprep.mubr.msk.f32.mxu1 %vm12944_vm3, %v31836_v29  ;;  %v32158_v29 = vld [vmem:[#allocation4 + $0x180] sm:$0xff] }
 0x83f   : > { %33824 = vst [vmem:[#allocation26_spill] sm:$0xff] %v32158_v29 }
 0x841   : > { %25416 = vmatmul.mubr.msk.f32.vlgmr.msra.gmra.mrb[128].mxu1 %vm12944_vm3, %v31842_v28  ;;  %v32162_v28 = vld [vmem:[#allocation4 + $0x188] sm:$0xff] }
 0x842   : > { %26261 = vmatpush3.bf16.msra.mxu1 %v31966_v14  ;;  %25418 = vmatprep.mubr.msk.f32.mxu1 %vm12944_vm3, %v31847_v22  ;;  %33825 = vst [vmem:[#allocation27_spill] sm:$0xff] %v32162_v28  ;;  %v21425_v14 = vld [vmem:[%s33567_s3 + $0x60] sm:$0xff] }
 0x843   : > { %26263 = vmatprep.subr.bf16.mxu1 %v26262_v9 }
 0x845   : > { %25419 = vmatmul.mubr.msk.f32.gmra.mrb[130].mxu1 %vm12944_vm3, %v31851_v42 }
 0x846   : > { %25421 = vmatprep.mubr.msk.f32.mxu1 %vm12944_vm3, %v31855_v47 }
 0x849   : > { %25422 = vmatmul.mubr.msk.f32.gmra.mrb[132].mxu1 %vm12944_vm3, %v31859_v15 }
 0x84a   : > { %25424 = vmatprep.mubr.msk.f32.mxu1 %vm12944_vm3, %v31863_v38 }
 0x84d   : > { %25425 = vmatmul.mubr.msk.f32.gmra.mrb[134].mxu1 %vm12944_vm3, %v31867_v7 }
 0x84e   : > { %25427 = vmatprep.mubr.msk.f32.mxu1 %vm12944_vm3, %v31871_v40 }
 0x851   : > { %25428 = vmatmul.mubr.msk.f32.gmra.mrb[136].mxu1 %vm12944_vm3, %v31875_v6 }
 0x852   : > { %25430 = vmatprep.mubr.msk.f32.mxu1 %vm12944_vm3, %v31879_v48 }
 0x855   : > { %25431 = vmatmul.mubr.msk.f32.gmra.mrb[138].mxu1 %vm12944_vm3, %v31883_v51 }
 0x856   : > { %25433 = vmatprep.mubr.msk.f32.mxu1 %vm12944_vm3, %v31887_v17 }
 0x859   : > { %25434 = vmatmul.mubr.msk.f32.gmra.mrb[140].mxu1 %vm12944_vm3, %v31891_v30 }
 0x85a   : > { %25436 = vmatprep.mubr.msk.f32.mxu1 %vm12944_vm3, %v31895_v0 }
 0x85d   : > { %25437 = vmatmul.mubr.msk.f32.gmra.mrb[142].mxu1 %vm12944_vm3, %v31899_v23 }
 0x85e   : > { %25439 = vmatprep.mubr.msk.f32.mxu1 %vm12944_vm3, %v31903_v63 }
 0x861   : > { %25440 = vmatmul.mubr.msk.f32.gmra.mrb[144].mxu1 %vm12944_vm3, %v31907_v8 }
 0x862   : > { %25442 = vmatprep.mubr.msk.f32.mxu1 %vm12944_vm3, %v31911_v54 }
 0x865   : > { %25443 = vmatmul.mubr.msk.f32.gmra.mrb[146].mxu1 %vm12944_vm3, %v31915_v18 }
 0x866   : > { %25445 = vmatprep.mubr.msk.f32.mxu1 %vm12944_vm3, %v31919_v31 }
 0x869   : > { %25446 = vmatmul.mubr.msk.f32.gmra.mrb[148].mxu1 %vm12944_vm3, %v31923_v56 }
 0x86a   : > { %25448 = vmatprep.mubr.msk.f32.mxu1 %vm12944_vm3, %v31927_v5 }
 0x86d   : > { %25449 = vmatmul.mubr.msk.f32.gmra.mrb[150].mxu1 %vm12944_vm3, %v31931_v50 }
 0x86e   : > { %25451 = vmatprep.mubr.msk.f32.mxu1 %vm12944_vm3, %v31935_v55 }
 0x871   : > { %25452 = vmatmul.mubr.msk.f32.gmra.mrb[152].mxu1 %vm12944_vm3, %v31939_v41 }
 0x872   : > { %25454 = vmatprep.mubr.msk.f32.mxu1 %vm12944_vm3, %v31943_v37 }
 0x875   : > { %25455 = vmatmul.mubr.msk.f32.gmra.mrb[154].mxu1 %vm12944_vm3, %v31947_v46  ;;  %v32178_v46 = vld [vmem:[#allocation4 + $0x39] sm:$0xff] }
 0x876   : > { %25457 = vmatprep.mubr.msk.f32.mxu1 %vm12944_vm3, %v31951_v44  ;;  %v15000_v44 = vld [vmem:[#allocation4 + $0x21] sm:$0xff] }
 0x879   : > { %25458 = vmatmul.mubr.msk.f32.gmra.mrb[156].mxu1 %vm12944_vm3, %v31955_v62  ;;  %v26266_v62 = vpack.c.bf16 %v21426_v19, %v21425_v14  ;;  %v32186_v14 = vld [vmem:[#allocation4 + $0x51] sm:$0xff]  ;;  %v32198_v19 = vld [vmem:[#allocation4 + $0x79] sm:$0xff] }
 0x87a   : > { %25460 = vmatprep.mubr.msk.f32.mxu1 %vm12944_vm3, %v32158_v29  ;;  %v32174_v29 = vld [vmem:[#allocation4 + $0x31] sm:$0xff]  ;;  %33826 = vst [vmem:[#allocation28_spill] sm:$0xff] %v32186_v14  ;;  %33829 = vst [vmem:[#allocation31_spill] sm:$0xff] %v32198_v19 }
 0x87d   : > { %25461 = vmatmul.mubr.msk.f32.gmra.mrb[158].mxu1 %vm12944_vm3, %v32162_v28  ;;  %v32182_v28 = vld [vmem:[#allocation4 + $0x49] sm:$0xff] }
 0x87e   : > { %25467 = vmatprep.mubr.msk.f32.mxu1 %vm12944_vm3, %v14999_v26  ;;  %v32202_v26 = vld [vmem:[#allocation4 + $0x81] sm:$0xff] }
 0x87f   : > { %33830 = vst [vmem:[#allocation32_spill] sm:$0xff] %v32202_v26 }
 0x881   : > { %25468 = vmatmul.mubr.msk.f32.vlgmr.msra.gmra.mrb[128].mxu1 %vm12944_vm3, %v15000_v44  ;;  %v32190_v44 = vld [vmem:[#allocation4 + $0x61] sm:$0xff] }
 0x882   : > { %26265 = vmatpush3.bf16.msra.mxu1 %v26262_v9  ;;  %25470 = vmatprep.mubr.msk.f32.mxu1 %vm12944_vm3, %v32174_v29  ;;  %33827 = vst [vmem:[#allocation29_spill] sm:$0xff] %v32190_v44  ;;  %v32194_v9 = vld [vmem:[#allocation4 + $0x69] sm:$0xff] }
 0x883   : > { %26267 = vmatprep.subr.bf16.mxu1 %v26266_v62  ;;  %33828 = vst [vmem:[#allocation30_spill] sm:$0xff] %v32194_v9 }
 0x885   : > { %25471 = vmatmul.mubr.msk.f32.gmra.mrb[130].mxu1 %vm12944_vm3, %v32178_v46 }
 0x886   : > { %25473 = vmatprep.mubr.msk.f32.mxu1 %vm12944_vm3, %v32182_v28 }
 0x889   : > { %25474 = vmatmul.mubr.msk.f32.gmra.mrb[132].mxu1 %vm12944_vm3, %v32186_v14  ;;  %v32206_v14 = vld [vmem:[#allocation4 + $0x91] sm:$0xff] }
 0x88a   : > { %25476 = vmatprep.mubr.msk.f32.mxu1 %vm12944_vm3, %v32190_v44  ;;  %33831 = vst [vmem:[#allocation33_spill] sm:$0xff] %v32206_v14  ;;  %v32210_v44 = vld [vmem:[#allocation4 + $0x99] sm:$0xff] }
 0x88b   : > { %33832 = vst [vmem:[#allocation34_spill] sm:$0xff] %v32210_v44 }
 0x88d   : > { %25477 = vmatmul.mubr.msk.f32.gmra.mrb[134].mxu1 %vm12944_vm3, %v32194_v9  ;;  %v32214_v9 = vld [vmem:[#allocation4 + $0xa9] sm:$0xff] }
 0x88e   : > { %25479 = vmatprep.mubr.msk.f32.mxu1 %vm12944_vm3, %v32198_v19  ;;  %33833 = vst [vmem:[#allocation35_spill] sm:$0xff] %v32214_v9  ;;  %v32218_v19 = vld [vmem:[#allocation4 + $0xb1] sm:$0xff] }
 0x88f   : > { %33834 = vst [vmem:[#allocation36_spill] sm:$0xff] %v32218_v19 }
 0x891   : > { %25480 = vmatmul.mubr.msk.f32.gmra.mrb[136].mxu1 %vm12944_vm3, %v32202_v26  ;;  %v32222_v26 = vld [vmem:[#allocation4 + $0xc1] sm:$0xff] }
 0x892   : > { %25482 = vmatprep.mubr.msk.f32.mxu1 %vm12944_vm3, %v32206_v14  ;;  %33835 = vst [vmem:[#allocation37_spill] sm:$0xff] %v32222_v26  ;;  %v32226_v14 = vld [vmem:[#allocation4 + $0xc9] sm:$0xff] }
 0x895   : > { %25483 = vmatmul.mubr.msk.f32.gmra.mrb[138].mxu1 %vm12944_vm3, %v32210_v44  ;;  %v32230_v44 = vld [vmem:[#allocation4 + $0xd9] sm:$0xff] }
 0x896   : > { %25485 = vmatprep.mubr.msk.f32.mxu1 %vm12944_vm3, %v32214_v9  ;;  %v32234_v9 = vld [vmem:[#allocation4 + $0xe1] sm:$0xff] }
 0x899   : > { %25486 = vmatmul.mubr.msk.f32.gmra.mrb[140].mxu1 %vm12944_vm3, %v32218_v19  ;;  %v32238_v19 = vld [vmem:[#allocation4 + $0xf1] sm:$0xff] }
 0x89a   : > { %25488 = vmatprep.mubr.msk.f32.mxu1 %vm12944_vm3, %v32222_v26  ;;  %v32242_v26 = vld [vmem:[#allocation4 + $0xf9] sm:$0xff] }
 0x89d   : > { %25489 = vmatmul.mubr.msk.f32.gmra.mrb[142].mxu1 %vm12944_vm3, %v32226_v14 }
 0x89e   : > { %25491 = vmatprep.mubr.msk.f32.mxu1 %vm12944_vm3, %v32230_v44 }
 0x8a1   : > { %25492 = vmatmul.mubr.msk.f32.gmra.mrb[144].mxu1 %vm12944_vm3, %v32234_v9 }
 0x8a2   : > { %25494 = vmatprep.mubr.msk.f32.mxu1 %vm12944_vm3, %v32238_v19 }
 0x8a5   : > { %25495 = vmatmul.mubr.msk.f32.gmra.mrb[146].mxu1 %vm12944_vm3, %v32242_v26 }
 0x8a6   : > { %25497 = vmatprep.mubr.msk.f32.mxu1 %vm12944_vm3, %v31683_v59  ;;  %v32266_v59 = vld [vmem:[#allocation4 + $0x181] sm:$0xff] }
 0x8a9   : > { %25498 = vmatmul.mubr.msk.f32.gmra.mrb[148].mxu1 %vm12944_vm3, %v31693_v24  ;;  %v32270_v24 = vld [vmem:[#allocation4 + $0x189] sm:$0xff] }
 0x8aa   : > { %25500 = vmatprep.mubr.msk.f32.mxu1 %vm12944_vm3, %v31717_v60  ;;  %v21459_v60 = vld [vmem:[%s33567_s3 + $0x70] sm:$0xff] }
 0x8ad   : > { %25501 = vmatmul.mubr.msk.f32.gmra.mrb[150].mxu1 %vm12944_vm3, %v31727_v25  ;;  %v21460_v25 = vld [vmem:[%s33567_s3 + $0x78] sm:$0xff] }
 0x8ae   : > { %25503 = vmatprep.mubr.msk.f32.mxu1 %vm12944_vm3, %v31751_v53  ;;  %v26270_v53 = vpack.c.bf16 %v21460_v25, %v21459_v60  ;;  %v33841_v60 = vld [vmem:[#allocation20_spill] sm:$0xff]  ;;  %v33842_v25 = vld [vmem:[#allocation21_spill] sm:$0xff] }
 0x8b1   : > { %25504 = vmatmul.mubr.msk.f32.gmra.mrb[152].mxu1 %vm12944_vm3, %v31761_v32  ;;  %v33836_v32 = vld [vmem:[#allocation15_spill] sm:$0xff] }
 0x8b2   : > { %25506 = vmatprep.mubr.msk.f32.mxu1 %vm12944_vm3, %v31785_v36  ;;  %v33837_v36 = vld [vmem:[#allocation16_spill] sm:$0xff] }
 0x8b5   : > { %25507 = vmatmul.mubr.msk.f32.gmra.mrb[154].mxu1 %vm12944_vm3, %v31795_v20 }
 0x8b6   : > { %25509 = vmatprep.mubr.msk.f32.mxu1 %vm12944_vm3, %v31816_v49 }
 0x8b9   : > { %25510 = vmatmul.mubr.msk.f32.gmra.mrb[156].mxu1 %vm12944_vm3, %v31827_v2 }
 0x8ba   : > { %25512 = vmatprep.mubr.msk.f32.mxu1 %vm12944_vm3, %v32266_v59 }
 0x8bd   : > { %25513 = vmatmul.mubr.msk.f32.gmra.mrb[158].mxu1 %vm12944_vm3, %v32270_v24 }
 0x8be   : > { %25519 = vmatprep.mubr.msk.f32.mxu1 %vm12944_vm3, %v31969_v33  ;;  %v33839_v33 = vld [vmem:[#allocation18_spill] sm:$0xff] }
 0x8c1   : > { %25520 = vmatmul.mubr.msk.f32.vlgmr.msra.gmra.mrb[128].mxu1 %vm12944_vm3, %v31975_v12  ;;  %v33840_v12 = vld [vmem:[#allocation19_spill] sm:$0xff] }
 0x8c2   : > { %26269 = vmatpush3.bf16.msra.mxu1 %v26266_v62  ;;  %25522 = vmatprep.mubr.msk.f32.mxu1 %vm12944_vm3, %v31979_v57  ;;  %v33838_v62 = vld [vmem:[#allocation17_spill] sm:$0xff] }
 0x8c3   : > { %26271 = vmatprep.subr.bf16.mxu1 %v26270_v53 }
 0x8c5   : > { %25523 = vmatmul.mubr.msk.f32.gmra.mrb[130].mxu1 %vm12944_vm3, %v31983_v34 }
 0x8c6   : > { %25525 = vmatprep.mubr.msk.f32.mxu1 %vm12944_vm3, %v31987_v11 }
 0x8c9   : > { %25526 = vmatmul.mubr.msk.f32.gmra.mrb[132].mxu1 %vm12944_vm3, %v31991_v35 }
 0x8ca   : > { %25528 = vmatprep.mubr.msk.f32.mxu1 %vm12944_vm3, %v31995_v4 }
 0x8cd   : > { %25529 = vmatmul.mubr.msk.f32.gmra.mrb[134].mxu1 %vm12944_vm3, %v31999_v58 }
 0x8ce   : > { %25531 = vmatprep.mubr.msk.f32.mxu1 %vm12944_vm3, %v32003_v1 }
 0x8d1   : > { %25532 = vmatmul.mubr.msk.f32.gmra.mrb[136].mxu1 %vm12944_vm3, %v32007_v3 }
 0x8d2   : > { %25534 = vmatprep.mubr.msk.f32.mxu1 %vm12944_vm3, %v32011_v45 }
 0x8d5   : > { %25535 = vmatmul.mubr.msk.f32.gmra.mrb[138].mxu1 %vm12944_vm3, %v32015_v16 }
 0x8d6   : > { %25537 = vmatprep.mubr.msk.f32.mxu1 %vm12944_vm3, %v32019_v39 }
 0x8d9   : > { %25538 = vmatmul.mubr.msk.f32.gmra.mrb[140].mxu1 %vm12944_vm3, %v32023_v61 }
 0x8da   : > { %25540 = vmatprep.mubr.msk.f32.mxu1 %vm12944_vm3, %v32027_v21 }
 0x8dd   : > { %25541 = vmatmul.mubr.msk.f32.gmra.mrb[142].mxu1 %vm12944_vm3, %v32031_v43 }
 0x8de   : > { %25543 = vmatprep.mubr.msk.f32.mxu1 %vm12944_vm3, %v32035_v10 }
 0x8e1   : > { %25544 = vmatmul.mubr.msk.f32.gmra.mrb[144].mxu1 %vm12944_vm3, %v32039_v27  ;;  %v33843_v27 = vld [vmem:[#allocation22_spill] sm:$0xff] }
 0x8e2   : > { %25546 = vmatprep.mubr.msk.f32.mxu1 %vm12944_vm3, %v33836_v32  ;;  %v33844_v32 = vld [vmem:[#allocation23_spill] sm:$0xff] }
 0x8e5   : > { %25547 = vmatmul.mubr.msk.f32.gmra.mrb[146].mxu1 %vm12944_vm3, %v33837_v36  ;;  %v33845_v36 = vld [vmem:[#allocation24_spill] sm:$0xff] }
 0x8e6   : > { %25549 = vmatprep.mubr.msk.f32.mxu1 %vm12944_vm3, %v33838_v62 }
 0x8e9   : > { %25550 = vmatmul.mubr.msk.f32.gmra.mrb[148].mxu1 %vm12944_vm3, %v33839_v33 }
 0x8ea   : > { %25552 = vmatprep.mubr.msk.f32.mxu1 %vm12944_vm3, %v33840_v12  ;;  %v32340_v12 = vld [vmem:[#allocation4 + $0x182] sm:$0xff] }
 0x8ed   : > { %25553 = vmatmul.mubr.msk.f32.gmra.mrb[150].mxu1 %vm12944_vm3, %v33841_v60 }
 0x8ee   : > { %25555 = vmatprep.mubr.msk.f32.mxu1 %vm12944_vm3, %v33842_v25  ;;  %v32344_v25 = vld [vmem:[#allocation4 + $0x18a] sm:$0xff] }
 0x8f1   : > { %25556 = vmatmul.mubr.msk.f32.gmra.mrb[152].mxu1 %vm12944_vm3, %v33843_v27 }
 0x8f2   : > { %25558 = vmatprep.mubr.msk.f32.mxu1 %vm12944_vm3, %v33844_v32  ;;  %v21493_v32 = vld [vmem:[%s33567_s3 + $0x80] sm:$0xff] }
 0x8f5   : > { %25559 = vmatmul.mubr.msk.f32.gmra.mrb[154].mxu1 %vm12944_vm3, %v33845_v36  ;;  %v21494_v36 = vld [vmem:[%s33567_s3 + $0x88] sm:$0xff] }
 0x8f6   : > { %25561 = vmatprep.mubr.msk.f32.mxu1 %vm12944_vm3, %v32083_v52 }
 0x8f9   : > { %25562 = vmatmul.mubr.msk.f32.gmra.mrb[156].mxu1 %vm12944_vm3, %v32087_v13  ;;  %v26274_v13 = vpack.c.bf16 %v21494_v36, %v21493_v32 }
 0x8fa   : > { %25564 = vmatprep.mubr.msk.f32.mxu1 %vm12944_vm3, %v32340_v12 }
 0x8fd   : > { %25565 = vmatmul.mubr.msk.f32.gmra.mrb[158].mxu1 %vm12944_vm3, %v32344_v25 }
 0x8fe   : > { %25571 = vmatprep.mubr.msk.f32.mxu1 %vm12944_vm3, %v31847_v22  ;;  %v33846_v22 = vld [vmem:[#allocation11_spill] sm:$0xff] }
 0x901   : > { %25572 = vmatmul.mubr.msk.f32.vlgmr.msra.gmra.mrb[128].mxu1 %vm12944_vm3, %v31851_v42  ;;  %v33847_v42 = vld [vmem:[#allocation12_spill] sm:$0xff] }
 0x902   : > { %26273 = vmatpush3.bf16.msra.mxu1 %v26270_v53  ;;  %25574 = vmatprep.mubr.msk.f32.mxu1 %vm12944_vm3, %v31855_v47  ;;  %v33848_v47 = vld [vmem:[#allocation13_spill] sm:$0xff] }
 0x903   : > { %26275 = vmatprep.subr.bf16.mxu1 %v26274_v13 }
 0x905   : > { %25575 = vmatmul.mubr.msk.f32.gmra.mrb[130].mxu1 %vm12944_vm3, %v31859_v15  ;;  %v33849_v15 = vld [vmem:[#allocation26_spill] sm:$0xff] }
 0x906   : > { %25577 = vmatprep.mubr.msk.f32.mxu1 %vm12944_vm3, %v31863_v38  ;;  %v15806_v38 = vld [vmem:[#allocation4 + $0x198] sm:$0xff] }
 0x909   : > { %25578 = vmatmul.mubr.msk.f32.gmra.mrb[132].mxu1 %vm12944_vm3, %v31867_v7  ;;  %v33850_v7 = vld [vmem:[#allocation27_spill] sm:$0xff] }
 0x90a   : > { %25580 = vmatprep.mubr.msk.f32.mxu1 %vm12944_vm3, %v31871_v40  ;;  %v15807_v40 = vld [vmem:[#allocation4 + $0x1a0] sm:$0xff] }
 0x90d   : > { %25581 = vmatmul.mubr.msk.f32.gmra.mrb[134].mxu1 %vm12944_vm3, %v31875_v6  ;;  %v33851_v6 = vld [vmem:[#allocation28_spill] sm:$0xff] }
 0x90e   : > { %25583 = vmatprep.mubr.msk.f32.mxu1 %vm12944_vm3, %v31879_v48  ;;  %v33852_v48 = vld [vmem:[#allocation29_spill] sm:$0xff] }
 0x911   : > { %25584 = vmatmul.mubr.msk.f32.gmra.mrb[136].mxu1 %vm12944_vm3, %v31883_v51  ;;  %v33853_v51 = vld [vmem:[#allocation30_spill] sm:$0xff] }
 0x912   : > { %25586 = vmatprep.mubr.msk.f32.mxu1 %vm12944_vm3, %v31887_v17  ;;  %v33854_v17 = vld [vmem:[#allocation31_spill] sm:$0xff] }
 0x915   : > { %25587 = vmatmul.mubr.msk.f32.gmra.mrb[138].mxu1 %vm12944_vm3, %v31891_v30  ;;  %v33855_v30 = vld [vmem:[#allocation32_spill] sm:$0xff] }
 0x916   : > { %25589 = vmatprep.mubr.msk.f32.mxu1 %vm12944_vm3, %v31895_v0  ;;  %v33856_v0 = vld [vmem:[#allocation33_spill] sm:$0xff] }
 0x919   : > { %25590 = vmatmul.mubr.msk.f32.gmra.mrb[140].mxu1 %vm12944_vm3, %v31899_v23  ;;  %v33857_v23 = vld [vmem:[#allocation34_spill] sm:$0xff] }
 0x91a   : > { %25592 = vmatprep.mubr.msk.f32.mxu1 %vm12944_vm3, %v31903_v63  ;;  %v33858_v63 = vld [vmem:[#allocation35_spill] sm:$0xff] }
 0x91d   : > { %25593 = vmatmul.mubr.msk.f32.gmra.mrb[142].mxu1 %vm12944_vm3, %v31907_v8  ;;  %v33859_v8 = vld [vmem:[#allocation36_spill] sm:$0xff] }
 0x91e   : > { %25595 = vmatprep.mubr.msk.f32.mxu1 %vm12944_vm3, %v31911_v54  ;;  %v33860_v54 = vld [vmem:[#allocation37_spill] sm:$0xff] }
 0x921   : > { %25596 = vmatmul.mubr.msk.f32.gmra.mrb[144].mxu1 %vm12944_vm3, %v31915_v18  ;;  %v16182_v18 = vld [vmem:[#allocation4 + $0x109] sm:$0xff] }
 0x922   : > { %25598 = vmatprep.mubr.msk.f32.mxu1 %vm12944_vm3, %v31919_v31  ;;  %v16183_v31 = vld [vmem:[#allocation4 + $0x111] sm:$0xff] }
 0x925   : > { %25599 = vmatmul.mubr.msk.f32.gmra.mrb[146].mxu1 %vm12944_vm3, %v31923_v56  ;;  %v16184_v56 = vld [vmem:[#allocation4 + $0x121] sm:$0xff] }
 0x926   : > { %25601 = vmatprep.mubr.msk.f32.mxu1 %vm12944_vm3, %v31927_v5  ;;  %v16185_v5 = vld [vmem:[#allocation4 + $0x129] sm:$0xff] }
 0x929   : > { %25602 = vmatmul.mubr.msk.f32.gmra.mrb[148].mxu1 %vm12944_vm3, %v31931_v50  ;;  %v16186_v50 = vld [vmem:[#allocation4 + $0x139] sm:$0xff] }
 0x92a   : > { %25604 = vmatprep.mubr.msk.f32.mxu1 %vm12944_vm3, %v31935_v55  ;;  %v16187_v55 = vld [vmem:[#allocation4 + $0x141] sm:$0xff] }
 0x92d   : > { %25605 = vmatmul.mubr.msk.f32.gmra.mrb[150].mxu1 %vm12944_vm3, %v31939_v41  ;;  %v16188_v41 = vld [vmem:[#allocation4 + $0x151] sm:$0xff] }
 0x92e   : > { %25607 = vmatprep.mubr.msk.f32.mxu1 %vm12944_vm3, %v31943_v37  ;;  %v16194_v37 = vld [vmem:[#allocation4 + $0x199] sm:$0xff] }
 0x931   : > { %25608 = vmatmul.mubr.msk.f32.gmra.mrb[152].mxu1 %vm12944_vm3, %v33846_v22 }
 0x932   : > { %25610 = vmatprep.mubr.msk.f32.mxu1 %vm12944_vm3, %v33847_v42 }
 0x935   : > { %25611 = vmatmul.mubr.msk.f32.gmra.mrb[154].mxu1 %vm12944_vm3, %v33848_v47 }
 0x936   : > { %25613 = vmatprep.mubr.msk.f32.mxu1 %vm12944_vm3, %v33849_v15 }
 0x939   : > { %25614 = vmatmul.mubr.msk.f32.gmra.mrb[156].mxu1 %vm12944_vm3, %v33850_v7 }
 0x93a   : > { %25616 = vmatprep.mubr.msk.f32.mxu1 %vm12944_vm3, %v15806_v38 }
 0x93d   : > { %25617 = vmatmul.mubr.msk.f32.gmra.mrb[158].mxu1 %vm12944_vm3, %v15807_v40 }
 0x93e   : > { %25623 = vmatprep.mubr.msk.f32.mxu1 %vm12944_vm3, %v32174_v29  ;;  %v32588_v29 = vld [vmem:[%s33568_s4] ss:$0 sm:$0xff] }
 0x941   : > { %25624 = vmatmul.mubr.msk.f32.vlgmr.msra.gmra.mrb[128].mxu1 %vm12944_vm3, %v32178_v46  ;;  %v16195_v46 = vld [vmem:[#allocation4 + $0x1a1] sm:$0xff] }
 0x942   : > { %26277 = vmatpush3.bf16.msra.mxu1 %v26274_v13  ;;  %25626 = vmatprep.mubr.msk.f32.mxu1 %vm12944_vm3, %v32182_v28 }
 0x945   : > { %25627 = vmatmul.mubr.msk.f32.gmra.mrb[130].mxu1 %vm12944_vm3, %v33851_v6 }
 0x946   : > { %25629 = vmatprep.mubr.msk.f32.mxu1 %vm12944_vm3, %v33852_v48 }
 0x949   : > { %25630 = vmatmul.mubr.msk.f32.gmra.mrb[132].mxu1 %vm12944_vm3, %v33853_v51 }
 0x94a   : > { %25632 = vmatprep.mubr.msk.f32.mxu1 %vm12944_vm3, %v33854_v17 }
 0x94d   : > { %25633 = vmatmul.mubr.msk.f32.gmra.mrb[134].mxu1 %vm12944_vm3, %v33855_v30 }
 0x94e   : > { %25635 = vmatprep.mubr.msk.f32.mxu1 %vm12944_vm3, %v33856_v0 }
 0x951   : > { %25636 = vmatmul.mubr.msk.f32.gmra.mrb[136].mxu1 %vm12944_vm3, %v33857_v23 }
 0x952   : > { %25638 = vmatprep.mubr.msk.f32.mxu1 %vm12944_vm3, %v33858_v63 }
 0x955   : > { %25639 = vmatmul.mubr.msk.f32.gmra.mrb[138].mxu1 %vm12944_vm3, %v33859_v8 }
 0x956   : > { %25641 = vmatprep.mubr.msk.f32.mxu1 %vm12944_vm3, %v33860_v54 }
 0x959   : > { %25642 = vmatmul.mubr.msk.f32.gmra.mrb[140].mxu1 %vm12944_vm3, %v32226_v14 }
 0x95a   : > { %25644 = vmatprep.mubr.msk.f32.mxu1 %vm12944_vm3, %v32230_v44 }
 0x95d   : > { %25645 = vmatmul.mubr.msk.f32.gmra.mrb[142].mxu1 %vm12944_vm3, %v32234_v9 }
 0x95e   : > { %25647 = vmatprep.mubr.msk.f32.mxu1 %vm12944_vm3, %v32238_v19 }
 0x961   : > { %25648 = vmatmul.mubr.msk.f32.gmra.mrb[144].mxu1 %vm12944_vm3, %v32242_v26 }
 0x962   : > { %25650 = vmatprep.mubr.msk.f32.mxu1 %vm12944_vm3, %v16182_v18 }
 0x965   : > { %25651 = vmatmul.mubr.msk.f32.gmra.mrb[146].mxu1 %vm12944_vm3, %v16183_v31 }
 0x966   : > { %25653 = vmatprep.mubr.msk.f32.mxu1 %vm12944_vm3, %v16184_v56 }
 0x969   : > { %25654 = vmatmul.mubr.msk.f32.gmra.mrb[148].mxu1 %vm12944_vm3, %v16185_v5 }
 0x96a   : > { %25656 = vmatprep.mubr.msk.f32.mxu1 %vm12944_vm3, %v16186_v50 }
 0x96d   : > { %25657 = vmatmul.mubr.msk.f32.gmra.mrb[150].mxu1 %vm12944_vm3, %v16187_v55 }
 0x96e   : > { %25659 = vmatprep.mubr.msk.f32.mxu1 %vm12944_vm3, %v16188_v41 }
 0x971   : > { %25660 = vmatmul.mubr.msk.f32.gmra.mrb[152].mxu1 %vm12944_vm3, %v31795_v20  ;;  %v33861_v20 = vld [vmem:[#allocation14_spill] sm:$0xff] }
 0x972   : > { %25662 = vmatprep.mubr.msk.f32.mxu1 %vm12944_vm3, %v31816_v49  ;;  %v33862_v49 = vld [vmem:[#allocation15_spill] sm:$0xff] }
 0x975   : > { %25663 = vmatmul.mubr.msk.f32.gmra.mrb[154].mxu1 %vm12944_vm3, %v31827_v2  ;;  %v33863_v2 = vld [vmem:[#allocation16_spill] sm:$0xff] }
 0x976   : > { %25665 = vmatprep.mubr.msk.f32.mxu1 %vm12944_vm3, %v32266_v59 }
 0x979   : > { %25666 = vmatmul.mubr.msk.f32.gmra.mrb[156].mxu1 %vm12944_vm3, %v32270_v24 }
 0x97a   : > { %25668 = vmatprep.mubr.msk.f32.mxu1 %vm12944_vm3, %v16194_v37 }
 0x97d   : > { %25669 = vmatmul.mubr.msk.f32.gmra.mrb[158].mxu1 %vm12944_vm3, %v16195_v46 }
 0x97e   : > { %25675 = vmatprep.mubr.msk.f32.mxu1 %vm12944_vm3, %v31979_v57  ;;  %v33864_v57 = vld [vmem:[#allocation19_spill] sm:$0xff] }
 0x981   : > { %25676 = vmatmul.mubr.msk.f32.vlgmr.msra.gmra.mrb[128].mxu1 %vm12944_vm3, %v31983_v34  ;;  %v33865_v34 = vld [vmem:[#allocation21_spill] sm:$0xff] }
 0x982   : > { %25678 = vmatprep.mubr.msk.f32.mxu1 %vm12944_vm3, %v31987_v11  ;;  %v33866_v11 = vld [vmem:[#allocation23_spill] sm:$0xff] }
 0x985   : > { %25679 = vmatmul.mubr.msk.f32.gmra.mrb[130].mxu1 %vm12944_vm3, %v31991_v35  ;;  %v33867_v35 = vld [vmem:[#allocation24_spill] sm:$0xff] }
 0x986   : > { %25681 = vmatprep.mubr.msk.f32.mxu1 %vm12944_vm3, %v31995_v4  ;;  %v33868_v4 = vld [vmem:[#allocation25_spill] sm:$0xff] }
 0x989   : > { %25682 = vmatmul.mubr.msk.f32.gmra.mrb[132].mxu1 %vm12944_vm3, %v31999_v58  ;;  %v16582_v58 = vld [vmem:[#allocation4 + $0x19a] sm:$0xff] }
 0x98a   : > { %25684 = vmatprep.mubr.msk.f32.mxu1 %vm12944_vm3, %v32003_v1  ;;  %v16583_v1 = vld [vmem:[#allocation4 + $0x1a2] sm:$0xff] }
 0x98d   : > { %25685 = vmatmul.mubr.msk.f32.gmra.mrb[134].mxu1 %vm12944_vm3, %v32007_v3  ;;  %v33869_v3 = vmov 0.0  }
 0x98e   : > { %25687 = vmatprep.mubr.msk.f32.mxu1 %vm12944_vm3, %v32011_v45  ;;  %17131 = vst.msk [vmem:[#allocation6] sm:$0xff] %vm17011_vm5, %v33869_v3  ;;  %17134 = vst.msk [vmem:[#allocation6 + $0x10] sm:$0xff] %vm17011_vm5, %v33869_v3  ;;  %v21528_v45 = vld [vmem:[%s33569_s5 + $0x20] sm:$0xff] }
 0x98f   : > { %17136 = vst.msk [vmem:[#allocation6 + $0x20] sm:$0xff] %vm17011_vm5, %v33869_v3  ;;  %17138 = vst.msk [vmem:[#allocation6 + $0x30] sm:$0xff] %vm17011_vm5, %v33869_v3 }
 0x990   : > { %17140 = vst.msk [vmem:[#allocation6 + $0x40] sm:$0xff] %vm17011_vm5, %v33869_v3  ;;  %17142 = vst.msk [vmem:[#allocation6 + $0x50] sm:$0xff] %vm17011_vm5, %v33869_v3 }
 0x991   : > { %25688 = vmatmul.mubr.msk.f32.gmra.mrb[136].mxu1 %vm12944_vm3, %v32015_v16  ;;  %17144 = vst.msk [vmem:[#allocation6 + $0x60] sm:$0xff] %vm17011_vm5, %v33869_v3  ;;  %17146 = vst.msk [vmem:[#allocation6 + $0x70] sm:$0xff] %vm17011_vm5, %v33869_v3  ;;  %v21529_v16 = vld [vmem:[%s33569_s5 + $0x28] sm:$0xff] }
 0x992   : > { %25690 = vmatprep.mubr.msk.f32.mxu1 %vm12944_vm3, %v32019_v39  ;;  %17148 = vst.msk [vmem:[#allocation6 + $0x80] sm:$0xff] %vm17011_vm5, %v33869_v3  ;;  %17150 = vst.msk [vmem:[#allocation6 + $0x90] sm:$0xff] %vm17011_vm5, %v33869_v3  ;;  %v26278_v39 = vpack.c.bf16 %v21529_v16, %v21528_v45 }
 0x993   : > { %17133 = vst.msk [vmem:[#allocation6 + $0x8] sm:$0x3] %vm17132_vm6, %v33869_v3  ;;  %17135 = vst.msk [vmem:[#allocation6 + $0x18] sm:$0x3] %vm17132_vm6, %v33869_v3 }
 0x994   : > { %26279 = vmatprep.subr.bf16.mxu1 %v26278_v39  ;;  %17137 = vst.msk [vmem:[#allocation6 + $0x28] sm:$0x3] %vm17132_vm6, %v33869_v3  ;;  %17139 = vst.msk [vmem:[#allocation6 + $0x38] sm:$0x3] %vm17132_vm6, %v33869_v3 }
 0x995   : > { %25691 = vmatmul.mubr.msk.f32.gmra.mrb[138].mxu1 %vm12944_vm3, %v32023_v61  ;;  %17141 = vst.msk [vmem:[#allocation6 + $0x48] sm:$0x3] %vm17132_vm6, %v33869_v3  ;;  %17143 = vst.msk [vmem:[#allocation6 + $0x58] sm:$0x3] %vm17132_vm6, %v33869_v3  ;;  %v21530_v61 = vld [vmem:[%s33569_s5 + $0x30] sm:$0xff] }
 0x996   : > { %25693 = vmatprep.mubr.msk.f32.mxu1 %vm12944_vm3, %v32027_v21  ;;  %26281 = vmatpush3.bf16.msra.mxu1 %v26278_v39  ;;  %17145 = vst.msk [vmem:[#allocation6 + $0x68] sm:$0x3] %vm17132_vm6, %v33869_v3  ;;  %17147 = vst.msk [vmem:[#allocation6 + $0x78] sm:$0x3] %vm17132_vm6, %v33869_v3  ;;  %v21531_v21 = vld [vmem:[%s33569_s5 + $0x38] sm:$0xff] }
 0x997   : > { %17149 = vst.msk [vmem:[#allocation6 + $0x88] sm:$0x3] %vm17132_vm6, %v33869_v3  ;;  %17151 = vst.msk [vmem:[#allocation6 + $0x98] sm:$0x3] %vm17132_vm6, %v33869_v3 }
 0x999   : > { %25694 = vmatmul.mubr.msk.f32.gmra.mrb[140].mxu1 %vm12944_vm3, %v32031_v43  ;;  %v26282_v43 = vpack.c.bf16 %v21531_v21, %v21530_v61 }
 0x99a   : > { %25696 = vmatprep.mubr.msk.f32.mxu1 %vm12944_vm3, %v32035_v10  ;;  %v17173_v10 = vld [vmem:[#allocation6 + $0x1] sm:$0xff] }
 0x99b   : > { %26283 = vmatprep.subr.bf16.mxu1 %v26282_v43 }
 0x99c   : > { %26285 = vmatpush3.bf16.msra.mxu1 %v26282_v43 }
 0x99d   : > { %25697 = vmatmul.mubr.msk.f32.gmra.mrb[142].mxu1 %vm12944_vm3, %v33861_v20 }
 0x99e   : > { %25699 = vmatprep.mubr.msk.f32.mxu1 %vm12944_vm3, %v33862_v49 }
 0x9a1   : > { %25700 = vmatmul.mubr.msk.f32.gmra.mrb[144].mxu1 %vm12944_vm3, %v33863_v2 }
 0x9a2   : > { %25702 = vmatprep.mubr.msk.f32.mxu1 %vm12944_vm3, %v33838_v62 }
 0x9a5   : > { %25703 = vmatmul.mubr.msk.f32.gmra.mrb[146].mxu1 %vm12944_vm3, %v33839_v33 }
 0x9a6   : > { %25705 = vmatprep.mubr.msk.f32.mxu1 %vm12944_vm3, %v33864_v57 }
 0x9a9   : > { %25706 = vmatmul.mubr.msk.f32.gmra.mrb[148].mxu1 %vm12944_vm3, %v33841_v60 }
 0x9aa   : > { %25708 = vmatprep.mubr.msk.f32.mxu1 %vm12944_vm3, %v33865_v34  ;;  %v17171_v34 = vld [vmem:[%s33569_s5 + $0x10] sm:$0xff] }
 0x9ad   : > { %25709 = vmatmul.mubr.msk.f32.gmra.mrb[150].mxu1 %vm12944_vm3, %v33843_v27  ;;  %v17169_v27 = vld [vmem:[%s33569_s5] sm:$0xff] }
 0x9ae   : > { %25711 = vmatprep.mubr.msk.f32.mxu1 %vm12944_vm3, %v33866_v11 }
 0x9b1   : > { %25712 = vmatmul.mubr.msk.f32.gmra.mrb[152].mxu1 %vm12944_vm3, %v33867_v35 }
 0x9b2   : > { %25714 = vmatprep.mubr.msk.f32.mxu1 %vm12944_vm3, %v32083_v52  ;;  %v17170_v52 = vld [vmem:[%s33569_s5 + $0x8] sm:$0xff] }
 0x9b3   : > { %v32582_v13 = vpack.c.bf16 %v17170_v52, %v17169_v27 }
 0x9b5   : > { %25715 = vmatmul.mubr.msk.f32.gmra.mrb[154].mxu1 %vm12944_vm3, %v33868_v4  ;;  %26287 = vmatprep.subr.bf16.mxu1 %v32582_v13 }
 0x9b6   : > { %25717 = vmatprep.mubr.msk.f32.mxu1 %vm12944_vm3, %v32340_v12 }
 0x9b9   : > { %25718 = vmatmul.mubr.msk.f32.gmra.mrb[156].mxu1 %vm12944_vm3, %v32344_v25 }
 0x9ba   : > { %25720 = vmatprep.mubr.msk.f32.mxu1 %vm12944_vm3, %v16582_v58 }
 0x9bd   : > { %25721 = vmatmul.mubr.msk.f32.gmra.mrb[158].mxu1 %vm12944_vm3, %v16583_v1  ;;  %v17172_v1 = vld [vmem:[%s33569_s5 + $0x18] sm:$0xff] }
 0x9be   : > { %25731 = vmatprep.mubr.msk.f32.mxu1 %vm17011_vm5, %v17173_v10  ;;  %v26290_v27 = vpack.c.bf16 %v17172_v1, %v17171_v34 }
 0xa54   : > { %v25677_v28 = vpop.f32.mrb[128].mxu1 }
 0xa55   : > { %v16948_v14 = vadd.f32 %v25677_v28, %v32588_v29  ;;  %v16749_v44 = vpop.f32.mrb[129].mxu1 }
 0xa56   : > { %v16947_v9 = vadd.f32 %v32588_v29, %v16749_v44  ;;  %v21548_v44 = vld [vmem:[%s33569_s5 + $0x40] sm:$0xff] }
 0xa57   : > { %v16980_v19 = vmax.f32 %v16948_v14, 0.0 }
 0xa58   : > { %v16979_v26 = vmax.f32 %v16947_v9, 0.0  ;;  %v25680_v59 = vpop.f32.mrb[130].mxu1  ;;  %v21549_v9 = vld [vmem:[%s33569_s5 + $0x48] sm:$0xff] }
 0xa59   : > { %17013 = vst.msk [vmem:[#allocation5 + $0x8] sm:$0xff] %vm17011_vm5, %v16980_v19  ;;  %v16950_v24 = vadd.f32 %v25680_v59, %v32588_v29  ;;  %v16759_v53 = vpop.f32.mrb[131].mxu1 }
 0xa5a   : > { %17012 = vst.msk [vmem:[#allocation5] sm:$0xff] %vm17011_vm5, %v16979_v26  ;;  %v16949_v32 = vadd.f32 %v32588_v29, %v16759_v53 }
 0xa5b   : > { %v16982_v36 = vmax.f32 %v16950_v24, 0.0 }
 0xa5c   : > { %v16981_v62 = vmax.f32 %v16949_v32, 0.0  ;;  %v25683_v33 = vpop.f32.mrb[132].mxu1 }
 0xa5d   : > { %17015 = vst.msk [vmem:[#allocation5 + $0x18] sm:$0xff] %vm17011_vm5, %v16982_v36  ;;  %v16952_v12 = vadd.f32 %v25683_v33, %v32588_v29  ;;  %v16769_v60 = vpop.f32.mrb[133].mxu1  ;;  %v32639_v36 = vpack.c.bf16 %v21549_v9, %v21548_v44 }
 0xa5e   : > { %17014 = vst.msk [vmem:[#allocation5 + $0x10] sm:$0xff] %vm17011_vm5, %v16981_v62  ;;  %v16951_v25 = vadd.f32 %v32588_v29, %v16769_v60 }
 0xa5f   : > { %v16984_v22 = vmax.f32 %v16952_v12, 0.0 }
 0xa60   : > { %v16983_v42 = vmax.f32 %v16951_v25, 0.0  ;;  %v25686_v47 = vpop.f32.mrb[134].mxu1 }
 0xa61   : > { %17017 = vst.msk [vmem:[#allocation5 + $0x28] sm:$0xff] %vm17011_vm5, %v16984_v22  ;;  %v16954_v15 = vadd.f32 %v25686_v47, %v32588_v29  ;;  %v16779_v38 = vpop.f32.mrb[135].mxu1  ;;  %v17044_v40 = vld [vmem:[#allocation5] ss:$2 sm:$0xff]  ;;  %v17076_v6 = vld [vmem:[#allocation5 + $0x1] ss:$2 sm:$0xff] }
 0xa62   : > { %17016 = vst.msk [vmem:[#allocation5 + $0x20] sm:$0xff] %vm17011_vm5, %v16983_v42  ;;  %v16953_v7 = vadd.f32 %v32588_v29, %v16779_v38  ;;  %v17107_v8 = vmax.f32 %v17044_v40, %v17076_v6 }
 0xa63   : > { %v16986_v48 = vmax.f32 %v16954_v15, 0.0 }
 0xa64   : > { %v16985_v51 = vmax.f32 %v16953_v7, 0.0  ;;  %v25689_v17 = vpop.f32.mrb[136].mxu1 }
 0xa65   : > { %v17046_v30 = vld [vmem:[#allocation5 + $0x10] ss:$2 sm:$0xff]  ;;  %v17078_v0 = vld [vmem:[#allocation5 + $0x11] ss:$2 sm:$0xff]  ;;  %17019 = vst.msk [vmem:[#allocation5 + $0x38] sm:$0xff] %vm17011_vm5, %v16986_v48  ;;  %v16956_v23 = vadd.f32 %v25689_v17, %v32588_v29  ;;  %v16789_v63 = vpop.f32.mrb[137].mxu1 }
 0xa66   : > { %v17108_v54 = vmax.f32 %v17046_v30, %v17078_v0  ;;  %17018 = vst.msk [vmem:[#allocation5 + $0x30] sm:$0xff] %vm17011_vm5, %v16985_v51  ;;  %v16955_v18 = vadd.f32 %v32588_v29, %v16789_v63 }
 0xa67   : > { %v16988_v31 = vmax.f32 %v16956_v23, 0.0 }
 0xa68   : > { %v17123_v56 = vmax.f32 %v17107_v8, %v17108_v54  ;;  %v16987_v5 = vmax.f32 %v16955_v18, 0.0  ;;  %v25692_v50 = vpop.f32.mrb[138].mxu1 }
 0xa69   : > { %17021 = vst.msk [vmem:[#allocation5 + $0x48] sm:$0xff] %vm17011_vm5, %v16988_v31  ;;  %v16958_v55 = vadd.f32 %v25692_v50, %v32588_v29  ;;  %v16799_v41 = vpop.f32.mrb[139].mxu1  ;;  %v17048_v46 = vld [vmem:[#allocation5 + $0x20] ss:$2 sm:$0xff]  ;;  %v17080_v20 = vld [vmem:[#allocation5 + $0x21] ss:$2 sm:$0xff] }
 0xa6a   : > { %17020 = vst.msk [vmem:[#allocation5 + $0x40] sm:$0xff] %vm17011_vm5, %v16987_v5  ;;  %v16957_v37 = vadd.f32 %v32588_v29, %v16799_v41  ;;  %17153 = vst.msk [vmem:[#allocation6 + $0x11] sm:$0xff] %vm17011_vm5, %v17123_v56  ;;  %v17109_v45 = vmax.f32 %v17048_v46, %v17080_v20 }
 0xa6b   : > { %v16990_v49 = vmax.f32 %v16958_v55, 0.0 }
 0xa6c   : > { %v16989_v2 = vmax.f32 %v16957_v37, 0.0  ;;  %v25695_v57 = vpop.f32.mrb[140].mxu1 }
 0xa6d   : > { %v17050_v11 = vld [vmem:[#allocation5 + $0x30] ss:$2 sm:$0xff]  ;;  %v17082_v35 = vld [vmem:[#allocation5 + $0x31] ss:$2 sm:$0xff]  ;;  %17023 = vst.msk [vmem:[#allocation5 + $0x58] sm:$0xff] %vm17011_vm5, %v16990_v49  ;;  %v16960_v4 = vadd.f32 %v25695_v57, %v32588_v29  ;;  %v16809_v58 = vpop.f32.mrb[141].mxu1 }
 0xa6e   : > { %v17110_v16 = vmax.f32 %v17050_v11, %v17082_v35  ;;  %17022 = vst.msk [vmem:[#allocation5 + $0x50] sm:$0xff] %vm17011_vm5, %v16989_v2  ;;  %v16959_v39 = vadd.f32 %v32588_v29, %v16809_v58 }
 0xa6f   : > { %v16992_v61 = vmax.f32 %v16960_v4, 0.0 }
 0xa70   : > { %v17124_v21 = vmax.f32 %v17109_v45, %v17110_v16  ;;  %v16991_v43 = vmax.f32 %v16959_v39, 0.0  ;;  %v25698_v10 = vpop.f32.mrb[142].mxu1 }
 0xa71   : > { %17025 = vst.msk [vmem:[#allocation5 + $0x68] sm:$0xff] %vm17011_vm5, %v16992_v61  ;;  %v16962_v52 = vadd.f32 %v25698_v10, %v32588_v29  ;;  %v16819_v28 = vpop.f32.mrb[143].mxu1  ;;  %v32625_v14 = vld [vmem:[#allocation6 + $0x11] sm:$0xff]  ;;  %v17052_v26 = vld [vmem:[#allocation5 + $0x40] ss:$2 sm:$0xff] }
 0xa72   : > { %17024 = vst.msk [vmem:[#allocation5 + $0x60] sm:$0xff] %vm17011_vm5, %v16991_v43  ;;  %v16961_v19 = vadd.f32 %v32588_v29, %v16819_v28  ;;  %25732 = vmatmul.mubr.msk.f32.vlgmr.msra.gmra.mrb[160].mxu1 %vm17011_vm5, %v32625_v14  ;;  %17154 = vst.msk [vmem:[#allocation6 + $0x21] sm:$0xff] %vm17011_vm5, %v17124_v21  ;;  %v17084_v59 = vld [vmem:[#allocation5 + $0x41] ss:$2 sm:$0xff] }
 0xa73   : > { %v16994_v24 = vmax.f32 %v16962_v52, 0.0  ;;  %26289 = vmatpush3.bf16.msra.mxu1 %v32582_v13  ;;  %v17111_v25 = vmax.f32 %v17052_v26, %v17084_v59 }
 0xa74   : > { %v16993_v53 = vmax.f32 %v16961_v19, 0.0  ;;  %v25701_v32 = vpop.f32.mrb[144].mxu1  ;;  %26291 = vmatprep.subr.bf16.mxu1 %v26290_v27 }
 0xa75   : > { %v17054_v62 = vld [vmem:[#allocation5 + $0x50] ss:$2 sm:$0xff]  ;;  %v17086_v33 = vld [vmem:[#allocation5 + $0x51] ss:$2 sm:$0xff]  ;;  %17027 = vst.msk [vmem:[#allocation5 + $0x78] sm:$0xff] %vm17011_vm5, %v16994_v24  ;;  %v16964_v12 = vadd.f32 %v25701_v32, %v32588_v29  ;;  %v16829_v60 = vpop.f32.mrb[145].mxu1 }
 0xa76   : > { %v17112_v22 = vmax.f32 %v17054_v62, %v17086_v33  ;;  %17026 = vst.msk [vmem:[#allocation5 + $0x70] sm:$0xff] %vm17011_vm5, %v16993_v53  ;;  %v16963_v42 = vadd.f32 %v32588_v29, %v16829_v60 }
 0xa77   : > { %v16996_v47 = vmax.f32 %v16964_v12, 0.0  ;;  %26293 = vmatpush3.bf16.msra.mxu1 %v26290_v27 }
 0xa78   : > { %v17125_v13 = vmax.f32 %v17111_v25, %v17112_v22  ;;  %v16995_v15 = vmax.f32 %v16963_v42, 0.0  ;;  %v25704_v38 = vpop.f32.mrb[146].mxu1  ;;  %26295 = vmatprep.subr.bf16.mxu1 %v32639_v36 }
 0xa79   : > { %17029 = vst.msk [vmem:[#allocation5 + $0x88] sm:$0xff] %vm17011_vm5, %v16996_v47  ;;  %v16966_v7 = vadd.f32 %v25704_v38, %v32588_v29  ;;  %v16839_v40 = vpop.f32.mrb[147].mxu1  ;;  %v32648_v6 = vld [vmem:[#allocation6 + $0x21] sm:$0xff] }
 0xa7a   : > { %17155 = vst.msk [vmem:[#allocation6 + $0x31] sm:$0xff] %vm17011_vm5, %v17125_v13  ;;  %17028 = vst.msk [vmem:[#allocation5 + $0x80] sm:$0xff] %vm17011_vm5, %v16995_v15  ;;  %v16965_v48 = vadd.f32 %v32588_v29, %v16839_v40  ;;  %25734 = vmatprep.mubr.msk.f32.mxu1 %vm17011_vm5, %v32648_v6  ;;  %v17056_v51 = vld [vmem:[#allocation5 + $0x60] ss:$2 sm:$0xff]  ;;  %v17088_v17 = vld [vmem:[#allocation5 + $0x61] ss:$2 sm:$0xff] }
 0xa7b   : > { %v16998_v30 = vmax.f32 %v16966_v7, 0.0  ;;  %v17113_v31 = vmax.f32 %v17056_v51, %v17088_v17 }
 0xa7c   : > { %v16997_v0 = vmax.f32 %v16965_v48, 0.0  ;;  %v25707_v23 = vpop.f32.mrb[148].mxu1 }
 0xa7d   : > { %v17058_v63 = vld [vmem:[#allocation5 + $0x70] ss:$2 sm:$0xff]  ;;  %v17090_v8 = vld [vmem:[#allocation5 + $0x71] ss:$2 sm:$0xff]  ;;  %17031 = vst.msk [vmem:[#allocation5 + $0x98] sm:$0xff] %vm17011_vm5, %v16998_v30  ;;  %v16968_v54 = vadd.f32 %v25707_v23, %v32588_v29  ;;  %v16849_v18 = vpop.f32.mrb[149].mxu1 }
 0xa7e   : > { %v17114_v56 = vmax.f32 %v17058_v63, %v17090_v8  ;;  %17030 = vst.msk [vmem:[#allocation5 + $0x90] sm:$0xff] %vm17011_vm5, %v16997_v0  ;;  %v16967_v5 = vadd.f32 %v32588_v29, %v16849_v18 }
 0xa7f   : > { %v17000_v50 = vmax.f32 %v16968_v54, 0.0 }
 0xa80   : > { %v17126_v55 = vmax.f32 %v17113_v31, %v17114_v56  ;;  %v16999_v41 = vmax.f32 %v16967_v5, 0.0  ;;  %v25710_v37 = vpop.f32.mrb[150].mxu1 }
 0xa81   : > { %17033 = vst.msk [vmem:[#allocation5 + $0xa8] sm:$0xff] %vm17011_vm5, %v17000_v50  ;;  %v16970_v46 = vadd.f32 %v25710_v37, %v32588_v29  ;;  %v16859_v20 = vpop.f32.mrb[151].mxu1  ;;  %v32661_v49 = vld [vmem:[#allocation6 + $0x31] sm:$0xff]  ;;  %v17060_v57 = vld [vmem:[#allocation5 + $0x80] ss:$2 sm:$0xff] }
 0xa82   : > { %17156 = vst.msk [vmem:[#allocation6 + $0x41] sm:$0xff] %vm17011_vm5, %v17126_v55  ;;  %17032 = vst.msk [vmem:[#allocation5 + $0xa0] sm:$0xff] %vm17011_vm5, %v16999_v41  ;;  %v16969_v2 = vadd.f32 %v32588_v29, %v16859_v20  ;;  %25735 = vmatmul.mubr.msk.f32.gmra.mrb[162].mxu1 %vm17011_vm5, %v32661_v49  ;;  %v17092_v34 = vld [vmem:[#allocation5 + $0x81] ss:$2 sm:$0xff] }
 0xa83   : > { %v17002_v11 = vmax.f32 %v16970_v46, 0.0  ;;  %v17115_v39 = vmax.f32 %v17060_v57, %v17092_v34  ;;  %v17161_v20 = vld [vmem:[#allocation6] sm:$0xff]  ;;  %v21550_v57 = vld [vmem:[%s33569_s5 + $0x50] sm:$0xff]  ;;  %v21551_v34 = vld [vmem:[%s33569_s5 + $0x58] sm:$0xff] }
 0xa84   : > { %v17001_v35 = vmax.f32 %v16969_v2, 0.0  ;;  %v25713_v4 = vpop.f32.mrb[152].mxu1 }
 0xa85   : > { %v17062_v58 = vld [vmem:[#allocation5 + $0x90] ss:$2 sm:$0xff]  ;;  %v17094_v1 = vld [vmem:[#allocation5 + $0x91] ss:$2 sm:$0xff]  ;;  %17035 = vst.msk [vmem:[#allocation5 + $0xb8] sm:$0xff] %vm17011_vm5, %v17002_v11  ;;  %v16972_v45 = vadd.f32 %v25713_v4, %v32588_v29  ;;  %v16869_v16 = vpop.f32.mrb[153].mxu1  ;;  %v26298_v11 = vpack.c.bf16 %v21551_v34, %v21550_v57 }
 0xa86   : > { %v17116_v61 = vmax.f32 %v17062_v58, %v17094_v1  ;;  %17034 = vst.msk [vmem:[#allocation5 + $0xb0] sm:$0xff] %vm17011_vm5, %v17001_v35  ;;  %v16971_v21 = vadd.f32 %v32588_v29, %v16869_v16  ;;  %v17162_v35 = vld [vmem:[#allocation6 + $0x10] sm:$0xff]  ;;  %v21560_v4 = vld [vmem:[%s33569_s5 + $0x60] sm:$0xff]  ;;  %v21561_v58 = vld [vmem:[%s33569_s5 + $0x68] sm:$0xff] }
 0xa87   : > { %v17004_v43 = vmax.f32 %v16972_v45, 0.0  ;;  %v32720_v1 = vld [vmem:[#allocation6 + $0x20] sm:$0xff]  ;;  %v26302_v45 = vpack.c.bf16 %v21561_v58, %v21560_v4  ;;  %v32725_v16 = vld [vmem:[#allocation6 + $0x30] sm:$0xff]  ;;  %v18576_v58 = vld [vmem:[%s33571_s7 + $0x28] sm:$0xff] }
 0xa88   : > { %v17127_v10 = vmax.f32 %v17115_v39, %v17116_v61  ;;  %v17003_v27 = vmax.f32 %v16971_v21, 0.0  ;;  %v25716_v52 = vpop.f32.mrb[154].mxu1  ;;  %v17444_v21 = vld [vmem:[#allocation6 + $0x2] sm:$0xff]  ;;  %v18573_v34 = vld [vmem:[%s33571_s7 + $0x10] sm:$0xff] }
 0xa89   : > { %17037 = vst.msk [vmem:[#allocation5 + $0xc8] sm:$0xff] %vm17011_vm5, %v17004_v43  ;;  %v16974_v28 = vadd.f32 %v25716_v52, %v32588_v29  ;;  %v16879_v44 = vpop.f32.mrb[155].mxu1  ;;  %v32674_v9 = vld [vmem:[#allocation6 + $0x41] sm:$0xff] }
 0xa8a   : > { %17157 = vst.msk [vmem:[#allocation6 + $0x51] sm:$0xff] %vm17011_vm5, %v17127_v10  ;;  %17036 = vst.msk [vmem:[#allocation5 + $0xc0] sm:$0xff] %vm17011_vm5, %v17003_v27  ;;  %v16973_v19 = vadd.f32 %v32588_v29, %v16879_v44  ;;  %25737 = vmatprep.mubr.msk.f32.mxu1 %vm17011_vm5, %v32674_v9  ;;  %v17064_v26 = vld [vmem:[#allocation5 + $0xa0] ss:$2 sm:$0xff]  ;;  %v17096_v59 = vld [vmem:[#allocation5 + $0xa1] ss:$2 sm:$0xff] }
 0xa8b   : > { %v17006_v24 = vmax.f32 %v16974_v28, 0.0  ;;  %v17117_v25 = vmax.f32 %v17064_v26, %v17096_v59  ;;  %v32729_v39 = vld [vmem:[#allocation6 + $0x40] sm:$0xff]  ;;  %v21562_v10 = vld [vmem:[%s33569_s5 + $0x70] sm:$0xff]  ;;  %v21563_v27 = vld [vmem:[%s33569_s5 + $0x78] sm:$0xff] }
 0xa8c   : > { %v17005_v53 = vmax.f32 %v16973_v19, 0.0  ;;  %v25719_v32 = vpop.f32.mrb[156].mxu1  ;;  %v26306_v52 = vpack.c.bf16 %v21563_v27, %v21562_v10  ;;  %v17445_v28 = vld [vmem:[#allocation6 + $0x12] sm:$0xff]  ;;  %v21572_v44 = vld [vmem:[%s33569_s5 + $0x80] sm:$0xff]  ;;  %v21573_v19 = vld [vmem:[%s33569_s5 + $0x88] sm:$0xff] }
 0xa8d   : > { %v17066_v62 = vld [vmem:[#allocation5 + $0xb0] ss:$2 sm:$0xff]  ;;  %v17098_v33 = vld [vmem:[#allocation5 + $0xb1] ss:$2 sm:$0xff]  ;;  %17039 = vst.msk [vmem:[#allocation5 + $0xd8] sm:$0xff] %vm17011_vm5, %v17006_v24  ;;  %v16976_v12 = vadd.f32 %v25719_v32, %v32588_v29  ;;  %v16889_v60 = vpop.f32.mrb[157].mxu1  ;;  %v26310_v59 = vpack.c.bf16 %v21573_v19, %v21572_v44 }
 0xa8e   : > { %v17118_v22 = vmax.f32 %v17066_v62, %v17098_v33  ;;  %17038 = vst.msk [vmem:[#allocation5 + $0xd0] sm:$0xff] %vm17011_vm5, %v17005_v53  ;;  %v16975_v42 = vadd.f32 %v32588_v29, %v16889_v60  ;;  %v32759_v26 = vld [vmem:[#allocation6 + $0x22] sm:$0xff]  ;;  %v32763_v24 = vld [vmem:[#allocation6 + $0x32] sm:$0xff] }
 0xa8f   : > { %v17008_v47 = vmax.f32 %v16976_v12, 0.0  ;;  %v32767_v53 = vld [vmem:[#allocation6 + $0x42] sm:$0xff]  ;;  %v21574_v12 = vld [vmem:[%s33569_s5 + $0x90] sm:$0xff]  ;;  %v21575_v60 = vld [vmem:[%s33569_s5 + $0x98] sm:$0xff] }
 0xa90   : > { %v17128_v13 = vmax.f32 %v17117_v25, %v17118_v22  ;;  %v17007_v15 = vmax.f32 %v16975_v42, 0.0  ;;  %v25722_v38 = vpop.f32.mrb[158].mxu1  ;;  %v26314_v25 = vpack.c.bf16 %v21575_v60, %v21574_v12  ;;  %v21584_v22 = vld [vmem:[%s33569_s5 + $0xa0] sm:$0xff]  ;;  %v21585_v42 = vld [vmem:[%s33569_s5 + $0xa8] sm:$0xff] }
 0xa91   : > { %17041 = vst.msk [vmem:[#allocation5 + $0xe8] sm:$0xff] %vm17011_vm5, %v17008_v47  ;;  %v16978_v7 = vadd.f32 %v25722_v38, %v32588_v29  ;;  %v16899_v40 = vpop.f32.mrb[159].mxu1  ;;  %v32687_v48 = vld [vmem:[#allocation6 + $0x51] sm:$0xff]  ;;  %v17068_v17 = vld [vmem:[#allocation5 + $0xc0] ss:$2 sm:$0xff]  ;;  %v26318_v47 = vpack.c.bf16 %v21585_v42, %v21584_v22 }
 0xa92   : > { %17158 = vst.msk [vmem:[#allocation6 + $0x61] sm:$0xff] %vm17011_vm5, %v17128_v13  ;;  %17040 = vst.msk [vmem:[#allocation5 + $0xe0] sm:$0xff] %vm17011_vm5, %v17007_v15  ;;  %v16977_v51 = vadd.f32 %v32588_v29, %v16899_v40  ;;  %25738 = vmatmul.mubr.msk.f32.gmra.mrb[164].mxu1 %vm17011_vm5, %v32687_v48  ;;  %v17100_v30 = vld [vmem:[#allocation5 + $0xc1] ss:$2 sm:$0xff]  ;;  %v32733_v61 = vld [vmem:[#allocation6 + $0x50] sm:$0xff] }
 0xa93   : > { %v17010_v0 = vmax.f32 %v16978_v7, 0.0  ;;  %v17119_v54 = vmax.f32 %v17068_v17, %v17100_v30  ;;  %v32771_v32 = vld [vmem:[#allocation6 + $0x52] sm:$0xff]  ;;  %v21596_v40 = vld [vmem:[%s33569_s5 + $0xc0] sm:$0xff] }
 0xa94   : > { %v17009_v23 = vmax.f32 %v16977_v51, 0.0  ;;  %v21586_v15 = vld [vmem:[%s33569_s5 + $0xb0] sm:$0xff]  ;;  %v21587_v38 = vld [vmem:[%s33569_s5 + $0xb8] sm:$0xff]  ;;  %v21597_v51 = vld [vmem:[%s33569_s5 + $0xc8] sm:$0xff] }
 0xa95   : > { %v17070_v63 = vld [vmem:[#allocation5 + $0xd0] ss:$2 sm:$0xff]  ;;  %v17102_v8 = vld [vmem:[#allocation5 + $0xd1] ss:$2 sm:$0xff]  ;;  %17043 = vst.msk [vmem:[#allocation5 + $0xf8] sm:$0xff] %vm17011_vm5, %v17010_v0  ;;  %v26322_v7 = vpack.c.bf16 %v21587_v38, %v21586_v15  ;;  %v26326_v17 = vpack.c.bf16 %v21597_v51, %v21596_v40  ;;  %v18575_v4 = vld [vmem:[%s33571_s7 + $0x20] sm:$0xff] }
 0xa96   : > { %v17120_v18 = vmax.f32 %v17070_v63, %v17102_v8  ;;  %17042 = vst.msk [vmem:[#allocation5 + $0xf0] sm:$0xff] %vm17011_vm5, %v17009_v23  ;;  %v21598_v30 = vld [vmem:[%s33569_s5 + $0xd0] sm:$0xff]  ;;  %v21599_v0 = vld [vmem:[%s33569_s5 + $0xd8] sm:$0xff]  ;;  %v21608_v63 = vld [vmem:[%s33569_s5 + $0xe0] sm:$0xff] }
 0xa97   : > { %v26330_v23 = vpack.c.bf16 %v21599_v0, %v21598_v30  ;;  %v21609_v8 = vld [vmem:[%s33569_s5 + $0xe8] sm:$0xff]  ;;  %v21634_v15 = vld [vmem:[%s33571_s7 + $0x40] sm:$0xff] }
 0xa98   : > { %v17129_v31 = vmax.f32 %v17119_v54, %v17120_v18  ;;  %v26334_v54 = vpack.c.bf16 %v21609_v8, %v21608_v63  ;;  %v21635_v38 = vld [vmem:[%s33571_s7 + $0x48] sm:$0xff]  ;;  %v21636_v8 = vld [vmem:[%s33571_s7 + $0x50] sm:$0xff] }
 0xa99   : > { %v32696_v56 = vld [vmem:[#allocation6 + $0x61] sm:$0xff] }
 0xa9a   : > { %17159 = vst.msk [vmem:[#allocation6 + $0x71] sm:$0xff] %vm17011_vm5, %v17129_v31  ;;  %25740 = vmatprep.mubr.msk.f32.mxu1 %vm17011_vm5, %v32696_v56  ;;  %v17072_v29 = vld [vmem:[#allocation5 + $0xe0] ss:$2 sm:$0xff]  ;;  %v17104_v5 = vld [vmem:[#allocation5 + $0xe1] ss:$2 sm:$0xff]  ;;  %v21610_v31 = vld [vmem:[%s33569_s5 + $0xf0] sm:$0xff] }
 0xa9b   : > { %v17121_v41 = vmax.f32 %v17072_v29, %v17104_v5  ;;  %v32775_v62 = vld [vmem:[#allocation6 + $0x62] sm:$0xff]  ;;  %v21611_v29 = vld [vmem:[%s33569_s5 + $0xf8] sm:$0xff] }
 0xa9c   : > { %v26338_v5 = vpack.c.bf16 %v21611_v29, %v21610_v31  ;;  %v21638_v31 = vld [vmem:[%s33571_s7 + $0x60] sm:$0xff]  ;;  %v21639_v29 = vld [vmem:[%s33571_s7 + $0x68] sm:$0xff] }
 0xa9d   : > { %v17074_v50 = vld [vmem:[#allocation5 + $0xf0] ss:$2 sm:$0xff]  ;;  %v17106_v55 = vld [vmem:[#allocation5 + $0xf1] ss:$2 sm:$0xff] }
 0xa9e   : > { %v17122_v37 = vmax.f32 %v17074_v50, %v17106_v55  ;;  %v21620_v50 = vld [vmem:[%s33569_s5 + $0x100] sm:$0xff]  ;;  %v21621_v55 = vld [vmem:[%s33569_s5 + $0x108] sm:$0xff] }
 0xaa0   : > { %v17130_v46 = vmax.f32 %v17121_v41, %v17122_v37  ;;  %v26342_v41 = vpack.c.bf16 %v21621_v55, %v21620_v50  ;;  %v18052_v37 = vld [vmem:[#allocation6 + $0x90] sm:$0xff]  ;;  %v21641_v55 = vld [vmem:[%s33571_s7 + $0x78] sm:$0xff] }
 0xaa1   : > { %v32701_v2 = vld [vmem:[#allocation6 + $0x71] sm:$0xff] }
 0xaa2   : > { %17160 = vst.msk [vmem:[#allocation6 + $0x81] sm:$0xff] %vm17011_vm5, %v17130_v46  ;;  %25741 = vmatmul.mubr.msk.f32.gmra.mrb[166].mxu1 %vm17011_vm5, %v32701_v2  ;;  %v32741_v43 = vld [vmem:[#allocation6 + $0x70] sm:$0xff] }
 0xaa3   : > { %25751 = vmatprep.mubr.msk.f32.mxu1 %vm17011_vm5, %v17161_v20  ;;  %v32779_v33 = vld [vmem:[#allocation6 + $0x72] sm:$0xff] }
 0xaa4   : > { %v21622_v46 = vld [vmem:[%s33569_s5 + $0x110] sm:$0xff]  ;;  %v21623_v20 = vld [vmem:[%s33569_s5 + $0x118] sm:$0xff] }
 0xaa5   : > { %v26346_v57 = vpack.c.bf16 %v21623_v20, %v21622_v46  ;;  %v21640_v50 = vld [vmem:[%s33571_s7 + $0x70] sm:$0xff]  ;;  %v21644_v46 = vld [vmem:[%s33571_s7 + $0x88] sm:$0xff] }
 0xaa6   : > { %25752 = vmatmul.mubr.msk.f32.vlgmr.msra.gmra.mrb[160].mxu1 %vm17011_vm5, %v17162_v35 }
 0xaa7   : > { %26297 = vmatpush3.bf16.msra.mxu1 %v32639_v36  ;;  %25754 = vmatprep.mubr.msk.f32.mxu1 %vm17011_vm5, %v32720_v1  ;;  %v32737_v36 = vld [vmem:[#allocation6 + $0x60] sm:$0xff] }
 0xaa8   : > { %26299 = vmatprep.subr.bf16.mxu1 %v26298_v11 }
 0xaa9   : > { %v17601_v13 = vld [vmem:[#allocation6 + $0x80] sm:$0xff] }
 0xaaa   : > { %25755 = vmatmul.mubr.msk.f32.gmra.mrb[162].mxu1 %vm17011_vm5, %v32725_v16  ;;  %v17901_v18 = vld [vmem:[#allocation6 + $0x82] sm:$0xff] }
 0xaab   : > { %25757 = vmatprep.mubr.msk.f32.mxu1 %vm17011_vm5, %v32729_v39  ;;  %26301 = vmatpush3.bf16.msra.mxu1 %v26298_v11  ;;  %v18574_v11 = vld [vmem:[%s33571_s7 + $0x18] sm:$0xff] }
 0xaac   : > { %26303 = vmatprep.subr.bf16.mxu1 %v26302_v45 }
 0xaae   : > { %25758 = vmatmul.mubr.msk.f32.gmra.mrb[164].mxu1 %vm17011_vm5, %v32733_v61 }
 0xaaf   : > { %25760 = vmatprep.mubr.msk.f32.mxu1 %vm17011_vm5, %v32737_v36 }
 0xab2   : > { %25761 = vmatmul.mubr.msk.f32.gmra.mrb[166].mxu1 %vm17011_vm5, %v32741_v43 }
 0xab3   : > { %25771 = vmatprep.mubr.msk.f32.mxu1 %vm17011_vm5, %v17444_v21 }
 0xab6   : > { %25772 = vmatmul.mubr.msk.f32.vlgmr.msra.gmra.mrb[160].mxu1 %vm17011_vm5, %v17445_v28 }
 0xab7   : > { %26305 = vmatpush3.bf16.msra.mxu1 %v26302_v45  ;;  %25774 = vmatprep.mubr.msk.f32.mxu1 %vm17011_vm5, %v32759_v26  ;;  %v18577_v45 = vld [vmem:[%s33571_s7 + $0x30] sm:$0xff] }
 0xab8   : > { %26307 = vmatprep.subr.bf16.mxu1 %v26306_v52 }
 0xaba   : > { %25775 = vmatmul.mubr.msk.f32.gmra.mrb[162].mxu1 %vm17011_vm5, %v32763_v24 }
 0xabb   : > { %25777 = vmatprep.mubr.msk.f32.mxu1 %vm17011_vm5, %v32767_v53  ;;  %26309 = vmatpush3.bf16.msra.mxu1 %v26306_v52 }
 0xabc   : > { %26311 = vmatprep.subr.bf16.mxu1 %v26310_v59 }
 0xabe   : > { %25778 = vmatmul.mubr.msk.f32.gmra.mrb[164].mxu1 %vm17011_vm5, %v32771_v32 }
 0xabf   : > { %25780 = vmatprep.mubr.msk.f32.mxu1 %vm17011_vm5, %v32775_v62 }
 0xac2   : > { %25781 = vmatmul.mubr.msk.f32.gmra.mrb[166].mxu1 %vm17011_vm5, %v32779_v33 }
 0xac3   : > { %25791 = vmatprep.mubr.msk.f32.mxu1 %vm17011_vm5, %v17162_v35  ;;  %v26354_v35 = vpack.c.bf16 %v18574_v11, %v18573_v34  ;;  %v21649_v11 = vld [vmem:[%s33571_s7 + $0xb0] sm:$0xff] }
 0xac6   : > { %25792 = vmatmul.mubr.msk.f32.vlgmr.msra.gmra.mrb[160].mxu1 %vm17011_vm5, %v32720_v1 }
 0xac7   : > { %26313 = vmatpush3.bf16.msra.mxu1 %v26310_v59  ;;  %25794 = vmatprep.mubr.msk.f32.mxu1 %vm17011_vm5, %v32725_v16 }
 0xac8   : > { %26315 = vmatprep.subr.bf16.mxu1 %v26314_v25 }
 0xaca   : > { %25795 = vmatmul.mubr.msk.f32.gmra.mrb[162].mxu1 %vm17011_vm5, %v32729_v39 }
 0xacb   : > { %25797 = vmatprep.mubr.msk.f32.mxu1 %vm17011_vm5, %v32733_v61  ;;  %26317 = vmatpush3.bf16.msra.mxu1 %v26314_v25 }
 0xacc   : > { %26319 = vmatprep.subr.bf16.mxu1 %v26318_v47 }
 0xace   : > { %25798 = vmatmul.mubr.msk.f32.gmra.mrb[164].mxu1 %vm17011_vm5, %v32737_v36 }
 0xacf   : > { %25800 = vmatprep.mubr.msk.f32.mxu1 %vm17011_vm5, %v32741_v43 }
 0xad2   : > { %25801 = vmatmul.mubr.msk.f32.gmra.mrb[166].mxu1 %vm17011_vm5, %v17601_v13 }
 0xad3   : > { %25811 = vmatprep.mubr.msk.f32.mxu1 %vm17011_vm5, %v32625_v14  ;;  %v17751_v14 = vld [vmem:[#allocation6 + $0x81] sm:$0xff] }
 0xad6   : > { %25812 = vmatmul.mubr.msk.f32.vlgmr.msra.gmra.mrb[160].mxu1 %vm17011_vm5, %v32648_v6 }
 0xad7   : > { %26321 = vmatpush3.bf16.msra.mxu1 %v26318_v47  ;;  %25814 = vmatprep.mubr.msk.f32.mxu1 %vm17011_vm5, %v32661_v49 }
 0xad8   : > { %26323 = vmatprep.subr.bf16.mxu1 %v26322_v7 }
 0xada   : > { %25815 = vmatmul.mubr.msk.f32.gmra.mrb[162].mxu1 %vm17011_vm5, %v32674_v9 }
 0xadb   : > { %25817 = vmatprep.mubr.msk.f32.mxu1 %vm17011_vm5, %v32687_v48  ;;  %26325 = vmatpush3.bf16.msra.mxu1 %v26322_v7 }
 0xadc   : > { %26327 = vmatprep.subr.bf16.mxu1 %v26326_v17 }
 0xade   : > { %25818 = vmatmul.mubr.msk.f32.gmra.mrb[164].mxu1 %vm17011_vm5, %v32696_v56 }
 0xadf   : > { %25820 = vmatprep.mubr.msk.f32.mxu1 %vm17011_vm5, %v32701_v2 }
 0xae2   : > { %25821 = vmatmul.mubr.msk.f32.gmra.mrb[166].mxu1 %vm17011_vm5, %v17751_v14 }
 0xae3   : > { %25831 = vmatprep.mubr.msk.f32.mxu1 %vm17011_vm5, %v17445_v28 }
 0xae6   : > { %25832 = vmatmul.mubr.msk.f32.vlgmr.msra.gmra.mrb[160].mxu1 %vm17011_vm5, %v32759_v26 }
 0xae7   : > { %26329 = vmatpush3.bf16.msra.mxu1 %v26326_v17  ;;  %25834 = vmatprep.mubr.msk.f32.mxu1 %vm17011_vm5, %v32763_v24 }
 0xae8   : > { %26331 = vmatprep.subr.bf16.mxu1 %v26330_v23 }
 0xaea   : > { %25835 = vmatmul.mubr.msk.f32.gmra.mrb[162].mxu1 %vm17011_vm5, %v32767_v53 }
 0xaeb   : > { %25837 = vmatprep.mubr.msk.f32.mxu1 %vm17011_vm5, %v32771_v32  ;;  %26333 = vmatpush3.bf16.msra.mxu1 %v26330_v23  ;;  %v26363_v23 = vpack.c.bf16 %v21635_v38, %v21634_v15 }
 0xaec   : > { %26335 = vmatprep.subr.bf16.mxu1 %v26334_v54 }
 0xaee   : > { %25838 = vmatmul.mubr.msk.f32.gmra.mrb[164].mxu1 %vm17011_vm5, %v32775_v62 }
 0xaef   : > { %25840 = vmatprep.mubr.msk.f32.mxu1 %vm17011_vm5, %v32779_v33 }
 0xaf2   : > { %25841 = vmatmul.mubr.msk.f32.gmra.mrb[166].mxu1 %vm17011_vm5, %v17901_v18 }
 0xaf3   : > { %25851 = vmatprep.mubr.msk.f32.mxu1 %vm17011_vm5, %v32720_v1  ;;  %v26357_v1 = vpack.c.bf16 %v18576_v58, %v18575_v4  ;;  %v21652_v58 = vld [vmem:[%s33571_s7 + $0xc0] sm:$0xff] }
 0xaf6   : > { %25852 = vmatmul.mubr.msk.f32.vlgmr.msra.gmra.mrb[160].mxu1 %vm17011_vm5, %v32725_v16  ;;  %v18578_v16 = vld [vmem:[%s33571_s7 + $0x38] sm:$0xff] }
 0xaf7   : > { %26337 = vmatpush3.bf16.msra.mxu1 %v26334_v54  ;;  %25854 = vmatprep.mubr.msk.f32.mxu1 %vm17011_vm5, %v32729_v39  ;;  %v26360_v39 = vpack.c.bf16 %v18578_v16, %v18577_v45  ;;  %v21637_v54 = vld [vmem:[%s33571_s7 + $0x58] sm:$0xff] }
 0xaf8   : > { %26339 = vmatprep.subr.bf16.mxu1 %v26338_v5 }
 0xafa   : > { %25855 = vmatmul.mubr.msk.f32.gmra.mrb[162].mxu1 %vm17011_vm5, %v32733_v61  ;;  %v21632_v61 = vld [vmem:[%s33570_s6] ss:$0 sm:$0xff] }
 0xafb   : > { %25857 = vmatprep.mubr.msk.f32.mxu1 %vm17011_vm5, %v32737_v36  ;;  %26341 = vmatpush3.bf16.msra.mxu1 %v26338_v5  ;;  %v26369_v5 = vpack.c.bf16 %v21639_v29, %v21638_v31  ;;  %v21677_v31 = vld [vmem:[%s33571_s7 + $0x178] sm:$0xff] }
 0xafc   : > { %26343 = vmatprep.subr.bf16.mxu1 %v26342_v41 }
 0xafe   : > { %25858 = vmatmul.mubr.msk.f32.gmra.mrb[164].mxu1 %vm17011_vm5, %v32741_v43 }
 0xaff   : > { %25860 = vmatprep.mubr.msk.f32.mxu1 %vm17011_vm5, %v17601_v13 }
 0xb02   : > { %25861 = vmatmul.mubr.msk.f32.gmra.mrb[166].mxu1 %vm17011_vm5, %v18052_v37  ;;  %v21643_v37 = vld [vmem:[%s33571_s7 + $0x80] sm:$0xff] }
 0xb03   : > { %25871 = vmatprep.mubr.msk.f32.mxu1 %vm17011_vm5, %v32648_v6  ;;  %v18202_v6 = vld [vmem:[#allocation6 + $0x91] sm:$0xff]  ;;  %v26375_v20 = vpack.c.bf16 %v21644_v46, %v21643_v37 }
 0xb04   : > { %v21681_v37 = vld [vmem:[%s33571_s7 + $0x190] sm:$0xff]  ;;  %v21682_v46 = vld [vmem:[%s33571_s7 + $0x198] sm:$0xff] }
 0xb06   : > { %25872 = vmatmul.mubr.msk.f32.vlgmr.msra.gmra.mrb[160].mxu1 %vm17011_vm5, %v32661_v49  ;;  %v18352_v49 = vld [vmem:[#allocation6 + $0x92] sm:$0xff] }
 0xb07   : > { %26345 = vmatpush3.bf16.msra.mxu1 %v26342_v41  ;;  %25874 = vmatprep.mubr.msk.f32.mxu1 %vm17011_vm5, %v32674_v9  ;;  %v18571_v9 = vld [vmem:[%s33571_s7] sm:$0xff]  ;;  %v26372_v41 = vpack.c.bf16 %v21641_v55, %v21640_v50  ;;  %v21680_v50 = vld [vmem:[%s33571_s7 + $0x188] sm:$0xff] }
 0xb08   : > { %26347 = vmatprep.subr.bf16.mxu1 %v26346_v57 }
 0xb0a   : > { %25875 = vmatmul.mubr.msk.f32.gmra.mrb[162].mxu1 %vm17011_vm5, %v32687_v48  ;;  %v18572_v48 = vld [vmem:[%s33571_s7 + $0x8] sm:$0xff] }
 0xb0b   : > { %25877 = vmatprep.mubr.msk.f32.mxu1 %vm17011_vm5, %v32696_v56  ;;  %26349 = vmatpush3.bf16.msra.mxu1 %v26346_v57  ;;  %v26351_v56 = vpack.c.bf16 %v18572_v48, %v18571_v9  ;;  %v21647_v48 = vld [vmem:[%s33571_s7 + $0xa0] sm:$0xff] }
 0xb0e   : > { %25878 = vmatmul.mubr.msk.f32.gmra.mrb[164].mxu1 %vm17011_vm5, %v32701_v2  ;;  %v28052_v2 = vmov 0.0|0.0  }
 0xb0f   : > { %25880 = vmatprep.mubr.msk.f32.mxu1 %vm17011_vm5, %v17751_v14  ;;  %26350 = vmatprep.subr.bf16.mxu1 %v28052_v2 }
 0xb12   : > { %25881 = vmatmul.mubr.msk.f32.gmra.mrb[166].mxu1 %vm17011_vm5, %v18202_v6  ;;  %v21645_v6 = vld [vmem:[%s33571_s7 + $0x90] sm:$0xff] }
 0xb13   : > { %25891 = vmatprep.mubr.msk.f32.mxu1 %vm17011_vm5, %v32759_v26 }
 0xb16   : > { %25892 = vmatmul.mubr.msk.f32.vlgmr.msra.gmra.mrb[160].mxu1 %vm17011_vm5, %v32763_v24 }
 0xb17   : > { %25894 = vmatprep.mubr.msk.f32.mxu1 %vm17011_vm5, %v32767_v53  ;;  %26352 = vmatpush3.bf16.msra.mxu1 %v26351_v56  ;;  %v21648_v56 = vld [vmem:[%s33571_s7 + $0xa8] sm:$0xff] }
 0xb18   : > { %26353 = vmatprep.subr.bf16.mxu1 %v28052_v2  ;;  %v26381_v34 = vpack.c.bf16 %v21648_v56, %v21647_v48  ;;  %v21686_v48 = vld [vmem:[%s33571_s7 + $0x1b8] sm:$0xff] }
 0xb1a   : > { %25895 = vmatmul.mubr.msk.f32.gmra.mrb[162].mxu1 %vm17011_vm5, %v32771_v32 }
 0xb1b   : > { %25897 = vmatprep.mubr.msk.f32.mxu1 %vm17011_vm5, %v32775_v62  ;;  %26355 = vmatpush3.bf16.msra.mxu1 %v26354_v35  ;;  %v21650_v35 = vld [vmem:[%s33571_s7 + $0xb8] sm:$0xff] }
 0xb1c   : > { %26356 = vmatprep.subr.bf16.mxu1 %v28052_v2  ;;  %v26384_v4 = vpack.c.bf16 %v21650_v35, %v21649_v11  ;;  %v21689_v11 = vld [vmem:[%s33571_s7 + $0x1c8] sm:$0xff] }
 0xb1e   : > { %25898 = vmatmul.mubr.msk.f32.gmra.mrb[164].mxu1 %vm17011_vm5, %v32779_v33 }
 0xb1f   : > { %25900 = vmatprep.mubr.msk.f32.mxu1 %vm17011_vm5, %v17901_v18  ;;  %26358 = vmatpush3.bf16.msra.mxu1 %v26357_v1  ;;  %v26366_v18 = vpack.c.bf16 %v21637_v54, %v21636_v8  ;;  %v21653_v1 = vld [vmem:[%s33571_s7 + $0xc8] sm:$0xff] }
 0xb20   : > { %26359 = vmatprep.subr.bf16.mxu1 %v28052_v2  ;;  %v26387_v45 = vpack.c.bf16 %v21653_v1, %v21652_v58  ;;  %v21675_v8 = vld [vmem:[%s33571_s7 + $0x168] sm:$0xff]  ;;  %v21690_v58 = vld [vmem:[%s33571_s7 + $0x1d0] sm:$0xff]  ;;  %v21691_v1 = vld [vmem:[%s33571_s7 + $0x1d8] sm:$0xff] }
 0xb22   : > { %25901 = vmatmul.mubr.msk.f32.gmra.mrb[166].mxu1 %vm17011_vm5, %v18352_v49  ;;  %v21646_v49 = vld [vmem:[%s33571_s7 + $0x98] sm:$0xff] }
 0xb23   : > { %26361 = vmatpush3.bf16.msra.mxu1 %v26360_v39  ;;  %25919 = vmatprep.mubr.msk.f32.mxu1 %vm28053_vm7, %v33869_v3  ;;  %v26378_v9 = vpack.c.bf16 %v21646_v49, %v21645_v6  ;;  %v21654_v39 = vld [vmem:[%s33571_s7 + $0xd0] sm:$0xff]  ;;  %v21684_v6 = vld [vmem:[%s33571_s7 + $0x1a8] sm:$0xff] }
 0xb24   : > { %26362 = vmatprep.subr.bf16.mxu1 %v28052_v2 }
 0xbe9   : > { %v25893_v36 = vpop.f32.mrb[160].mxu1 }
 0xbea   : > { %v18503_v21 = vadd.f32 %v25893_v36, %v21632_v61  ;;  %v18448_v43 = vpop.f32.mrb[161].mxu1 }
 0xbeb   : > { %v18502_v10 = vadd.f32 %v21632_v61, %v18448_v43  ;;  %v21657_v43 = vld [vmem:[%s33571_s7 + $0xe8] sm:$0xff] }
 0xbec   : > { %v18511_v27 = vmax.f32 %v18503_v21, 0.0  ;;  %v21656_v21 = vld [vmem:[%s33571_s7 + $0xe0] sm:$0xff] }
 0xbed   : > { %v18510_v52 = vmax.f32 %v18502_v10, 0.0  ;;  %v25896_v28 = vpop.f32.mrb[162].mxu1  ;;  %v26393_v10 = vpack.c.bf16 %v21657_v43, %v21656_v21  ;;  %v21695_v21 = vld [vmem:[%s33571_s7 + $0x1f8] sm:$0xff] }
 0xbee   : > { %18520 = vst.msk [vmem:[#allocation7 + $0x8] sm:$0xff] %vm18518_vm8, %v18511_v27  ;;  %v18505_v44 = vadd.f32 %v25896_v28, %v21632_v61  ;;  %v18458_v19 = vpop.f32.mrb[163].mxu1  ;;  %v21658_v27 = vld [vmem:[%s33571_s7 + $0xf0] sm:$0xff] }
 0xbef   : > { %18519 = vst.msk [vmem:[#allocation7] sm:$0xff] %vm18518_vm8, %v18510_v52  ;;  %v18504_v26 = vadd.f32 %v21632_v61, %v18458_v19  ;;  %v21659_v52 = vld [vmem:[%s33571_s7 + $0xf8] sm:$0xff]  ;;  %v21662_v19 = vld [vmem:[%s33571_s7 + $0x108] sm:$0xff] }
 0xbf0   : > { %v18513_v59 = vmax.f32 %v18505_v44, 0.0  ;;  %v26396_v28 = vpack.c.bf16 %v21659_v52, %v21658_v27  ;;  %v21661_v44 = vld [vmem:[%s33571_s7 + $0x100] sm:$0xff]  ;;  %v21698_v27 = vld [vmem:[%s33571_s7 + $0x208] sm:$0xff] }
 0xbf1   : > { %v18512_v24 = vmax.f32 %v18504_v26, 0.0  ;;  %v25899_v53 = vpop.f32.mrb[164].mxu1  ;;  %v26399_v26 = vpack.c.bf16 %v21662_v19, %v21661_v44  ;;  %v21699_v44 = vld [vmem:[%s33571_s7 + $0x210] sm:$0xff]  ;;  %v21700_v19 = vld [vmem:[%s33571_s7 + $0x218] sm:$0xff] }
 0xbf2   : > { %18522 = vst.msk [vmem:[#allocation7 + $0x18] sm:$0xff] %vm18518_vm8, %v18513_v59  ;;  %v18507_v32 = vadd.f32 %v25899_v53, %v21632_v61  ;;  %v18468_v62 = vpop.f32.mrb[165].mxu1  ;;  %v21664_v53 = vld [vmem:[%s33571_s7 + $0x118] sm:$0xff] }
 0xbf3   : > { %18521 = vst.msk [vmem:[#allocation7 + $0x10] sm:$0xff] %vm18518_vm8, %v18512_v24  ;;  %v18506_v33 = vadd.f32 %v21632_v61, %v18468_v62  ;;  %v21663_v24 = vld [vmem:[%s33571_s7 + $0x110] sm:$0xff]  ;;  %v21665_v62 = vld [vmem:[%s33571_s7 + $0x120] sm:$0xff] }
 0xbf4   : > { %v18515_v12 = vmax.f32 %v18507_v32, 0.0  ;;  %v26402_v32 = vpack.c.bf16 %v21664_v53, %v21663_v24  ;;  %v21702_v24 = vld [vmem:[%s33571_s7 + $0x228] sm:$0xff] }
 0xbf5   : > { %v18514_v60 = vmax.f32 %v18506_v33, 0.0  ;;  %v25902_v25 = vpop.f32.mrb[166].mxu1  ;;  %v18529_v22 = vld [vmem:[#allocation7 + $0x8] ss:$2 sm:$0xf] }
 0xbf6   : > { %18524 = vst.msk [vmem:[#allocation7 + $0x28] sm:$0xff] %vm18518_vm8, %v18515_v12  ;;  %v18509_v42 = vadd.f32 %v25902_v25, %v21632_v61  ;;  %v18478_v47 = vpop.f32.mrb[167].mxu1  ;;  %v18527_v13 = vld [vmem:[#allocation7] ss:$2 sm:$0xf]  ;;  %v21666_v33 = vld [vmem:[%s33571_s7 + $0x128] sm:$0xff] }
 0xbf7   : > { %18523 = vst.msk [vmem:[#allocation7 + $0x20] sm:$0xff] %vm18518_vm8, %v18514_v60  ;;  %v18508_v7 = vadd.f32 %v21632_v61, %v18478_v47  ;;  %v18543_v40 = vld [vmem:[#allocation7 + $0x1] ss:$2 sm:$0xf]  ;;  %v21655_v61 = vld [vmem:[%s33571_s7 + $0xd8] sm:$0xff]  ;;  %v26405_v12 = vpack.c.bf16 %v21666_v33, %v21665_v62  ;;  %v21667_v60 = vld [vmem:[%s33571_s7 + $0x130] sm:$0xff] }
 0xbf8   : > { %v18545_v51 = vld [vmem:[#allocation7 + $0x9] ss:$2 sm:$0xf]  ;;  %v18517_v17 = vmax.f32 %v18509_v42, 0.0  ;;  %v18558_v14 = vmax.f32 %v18527_v13, %v18543_v40  ;;  %v26390_v36 = vpack.c.bf16 %v21655_v61, %v21654_v39  ;;  %v21668_v25 = vld [vmem:[%s33571_s7 + $0x138] sm:$0xff]  ;;  %v21670_v40 = vld [vmem:[%s33571_s7 + $0x140] sm:$0xff] }
 0xbf9   : > { %v18559_v30 = vmax.f32 %v18529_v22, %v18545_v51  ;;  %v18516_v0 = vmax.f32 %v18508_v7, 0.0  ;;  %v18533_v42 = vld [vmem:[#allocation7 + $0x18] ss:$2 sm:$0xf]  ;;  %v26408_v15 = vpack.c.bf16 %v21668_v25, %v21667_v60  ;;  %v21671_v51 = vld [vmem:[%s33571_s7 + $0x148] sm:$0xff] }
 0xbfa   : > { %18526 = vst.msk [vmem:[#allocation7 + $0x38] sm:$0xff] %vm18518_vm8, %v18517_v17  ;;  %v18531_v22 = vld [vmem:[#allocation7 + $0x10] ss:$2 sm:$0xf]  ;;  %v26411_v17 = vpack.c.bf16 %v21671_v51, %v21670_v40  ;;  %v21693_v39 = vld [vmem:[%s33571_s7 + $0x1e8] sm:$0xff]  ;;  %v21704_v62 = vld [vmem:[%s33571_s7 + $0x238] sm:$0xff] }
 0xbfb   : > { %v32969_v63 = vmax.f32 %v18558_v14, %v18559_v30  ;;  %18525 = vst.msk [vmem:[#allocation7 + $0x30] sm:$0xff] %vm18518_vm8, %v18516_v0  ;;  %v18547_v47 = vld [vmem:[#allocation7 + $0x11] ss:$2 sm:$0xf]  ;;  %v21673_v0 = vld [vmem:[%s33571_s7 + $0x158] sm:$0xff] }
 0xbfc   : > { %v18549_v13 = vld [vmem:[#allocation7 + $0x19] ss:$2 sm:$0xf]  ;;  %v18560_v38 = vmax.f32 %v18531_v22, %v18547_v47  ;;  %v21672_v30 = vld [vmem:[%s33571_s7 + $0x150] sm:$0xff] }
 0xbfd   : > { %25920 = vmatmul.mubr.msk.f32.vlgmr.msra.gmra.mrb[168].mxu1 %vm18518_vm8, %v32969_v63  ;;  %v18662_v57 = vrot.slane %v32969_v63, 1  ;;  %v18745_v16 = vrot.slane %v32969_v63, 2  ;;  %v18828_v59 = vrot.slane %v32969_v63, 3  ;;  %v18561_v7 = vmax.f32 %v18533_v42, %v18549_v13  ;;  %v21674_v63 = vld [vmem:[%s33571_s7 + $0x160] sm:$0xff]  ;;  %v21708_v40 = vld [vmem:[%s33571_s7 + $0x250] sm:$0xff]  ;;  %v21709_v51 = vld [vmem:[%s33571_s7 + $0x258] sm:$0xff] }
 0xbfe   : > { %26364 = vmatpush3.bf16.msra.mxu1 %v26363_v23  ;;  %25938 = vmatprep.mubr.msk.f32.mxu1 %vm28053_vm7, %v33869_v3  ;;  %v26414_v23 = vpack.c.bf16 %v21673_v0, %v21672_v30  ;;  %v26417_v54 = vpack.c.bf16 %v21675_v8, %v21674_v63  ;;  %v18537_v33 = vld [vmem:[#allocation7 + $0x28] ss:$2 sm:$0xf]  ;;  %v18535_v60 = vld [vmem:[#allocation7 + $0x20] ss:$2 sm:$0xf] }
 0xbff   : > { %26365 = vmatprep.subr.bf16.mxu1 %v28052_v2  ;;  %v33099_v14 = vmax.f32 %v18560_v38, %v18561_v7  ;;  %v18551_v25 = vld [vmem:[#allocation7 + $0x21] ss:$2 sm:$0xf]  ;;  %v21711_v30 = vld [vmem:[%s33571_s7 + $0x268] sm:$0xff]  ;;  %v21713_v63 = vld [vmem:[%s33571_s7 + $0x278] sm:$0xff] }
 0xc00   : > { %v18562_v42 = vmax.f32 %v18535_v60, %v18551_v25  ;;  %v21706_v13 = vld [vmem:[%s33571_s7 + $0x240] sm:$0xff] }
 0xc01   : > { %v21742_v25 = vld [vmem:[%s33571_s7 + $0x340] sm:$0xff] }
 0xc02   : > { %26367 = vmatpush3.bf16.msra.mxu1 %v26366_v18  ;;  %v21676_v18 = vld [vmem:[%s33571_s7 + $0x170] sm:$0xff] }
 0xc03   : > { %26368 = vmatprep.subr.bf16.mxu1 %v28052_v2  ;;  %v26420_v29 = vpack.c.bf16 %v21677_v31, %v21676_v18  ;;  %v21716_v18 = vld [vmem:[%s33571_s7 + $0x288] sm:$0xff] }
 0xc06   : > { %26370 = vmatpush3.bf16.msra.mxu1 %v26369_v5  ;;  %v21679_v5 = vld [vmem:[%s33571_s7 + $0x180] sm:$0xff] }
 0xc07   : > { %26371 = vmatprep.subr.bf16.mxu1 %v28052_v2  ;;  %v26423_v55 = vpack.c.bf16 %v21680_v50, %v21679_v5  ;;  %v21717_v5 = vld [vmem:[%s33571_s7 + $0x290] sm:$0xff]  ;;  %v21718_v50 = vld [vmem:[%s33571_s7 + $0x298] sm:$0xff] }
 0xc0a   : > { %26373 = vmatpush3.bf16.msra.mxu1 %v26372_v41  ;;  %v18994_v41 = vrot.slane %v33099_v14, 1 }
 0xc0b   : > { %26374 = vmatprep.subr.bf16.mxu1 %v28052_v2 }
 0xc0d   : > { %25939 = vmatmul.mubr.msk.f32.vlgmr.msra.gmra.mrb[168].mxu1 %vm18518_vm8, %v18662_v57  ;;  %v21683_v57 = vld [vmem:[%s33571_s7 + $0x1a0] sm:$0xff] }
 0xc0e   : > { %26376 = vmatpush3.bf16.msra.mxu1 %v26375_v20  ;;  %25957 = vmatprep.mubr.msk.f32.mxu1 %vm28053_vm7, %v33869_v3  ;;  %v26426_v20 = vpack.c.bf16 %v21682_v46, %v21681_v37  ;;  %v26429_v49 = vpack.c.bf16 %v21684_v6, %v21683_v57  ;;  %v21720_v37 = vld [vmem:[%s33571_s7 + $0x2a8] sm:$0xff]  ;;  %v21722_v57 = vld [vmem:[%s33571_s7 + $0x2b8] sm:$0xff] }
 0xc0f   : > { %26377 = vmatprep.subr.bf16.mxu1 %v28052_v2 }
 0xc12   : > { %26379 = vmatpush3.bf16.msra.mxu1 %v26378_v9  ;;  %v21685_v9 = vld [vmem:[%s33571_s7 + $0x1b0] sm:$0xff] }
 0xc13   : > { %26380 = vmatprep.subr.bf16.mxu1 %v28052_v2  ;;  %v26432_v56 = vpack.c.bf16 %v21686_v48, %v21685_v9  ;;  %v21725_v9 = vld [vmem:[%s33571_s7 + $0x2c8] sm:$0xff] }
 0xc16   : > { %26382 = vmatpush3.bf16.msra.mxu1 %v26381_v34  ;;  %v21688_v34 = vld [vmem:[%s33571_s7 + $0x1c0] sm:$0xff] }
 0xc17   : > { %26383 = vmatprep.subr.bf16.mxu1 %v28052_v2  ;;  %v26435_v35 = vpack.c.bf16 %v21689_v11, %v21688_v34  ;;  %v21726_v34 = vld [vmem:[%s33571_s7 + $0x2d0] sm:$0xff]  ;;  %v21727_v11 = vld [vmem:[%s33571_s7 + $0x2d8] sm:$0xff] }
 0xc1a   : > { %26385 = vmatpush3.bf16.msra.mxu1 %v26384_v4  ;;  %v19077_v4 = vrot.slane %v33099_v14, 2 }
 0xc1b   : > { %26386 = vmatprep.subr.bf16.mxu1 %v28052_v2 }
 0xc1d   : > { %25958 = vmatmul.mubr.msk.f32.vlgmr.msra.gmra.mrb[168].mxu1 %vm18518_vm8, %v18745_v16  ;;  %v21692_v16 = vld [vmem:[%s33571_s7 + $0x1e0] sm:$0xff] }
 0xc1e   : > { %26388 = vmatpush3.bf16.msra.mxu1 %v26387_v45  ;;  %25976 = vmatprep.mubr.msk.f32.mxu1 %vm28053_vm7, %v33869_v3  ;;  %v26438_v45 = vpack.c.bf16 %v21691_v1, %v21690_v58  ;;  %v26441_v61 = vpack.c.bf16 %v21693_v39, %v21692_v16  ;;  %v21729_v58 = vld [vmem:[%s33571_s7 + $0x2e8] sm:$0xff]  ;;  %v21731_v16 = vld [vmem:[%s33571_s7 + $0x2f8] sm:$0xff] }
 0xc1f   : > { %26389 = vmatprep.subr.bf16.mxu1 %v28052_v2 }
 0xc22   : > { %26391 = vmatpush3.bf16.msra.mxu1 %v26390_v36  ;;  %v21694_v36 = vld [vmem:[%s33571_s7 + $0x1f0] sm:$0xff] }
 0xc23   : > { %26392 = vmatprep.subr.bf16.mxu1 %v28052_v2  ;;  %v26444_v43 = vpack.c.bf16 %v21695_v21, %v21694_v36  ;;  %v21734_v36 = vld [vmem:[%s33571_s7 + $0x308] sm:$0xff] }
 0xc26   : > { %26394 = vmatpush3.bf16.msra.mxu1 %v26393_v10  ;;  %v21697_v10 = vld [vmem:[%s33571_s7 + $0x200] sm:$0xff] }
 0xc27   : > { %26395 = vmatprep.subr.bf16.mxu1 %v28052_v2  ;;  %v26447_v52 = vpack.c.bf16 %v21698_v27, %v21697_v10  ;;  %v21735_v10 = vld [vmem:[%s33571_s7 + $0x310] sm:$0xff]  ;;  %v21736_v27 = vld [vmem:[%s33571_s7 + $0x318] sm:$0xff] }
 0xc2a   : > { %26397 = vmatpush3.bf16.msra.mxu1 %v26396_v28  ;;  %v19160_v28 = vrot.slane %v33099_v14, 3 }
 0xc2b   : > { %26398 = vmatprep.subr.bf16.mxu1 %v28052_v2 }
 0xc2d   : > { %25977 = vmatmul.mubr.msk.f32.vlgmr.msra.gmra.mrb[168].mxu1 %vm18518_vm8, %v18828_v59  ;;  %v21701_v59 = vld [vmem:[%s33571_s7 + $0x220] sm:$0xff] }
 0xc2e   : > { %26400 = vmatpush3.bf16.msra.mxu1 %v26399_v26  ;;  %25995 = vmatprep.mubr.msk.f32.mxu1 %vm28053_vm7, %v33869_v3  ;;  %v26450_v26 = vpack.c.bf16 %v21700_v19, %v21699_v44  ;;  %v26453_v53 = vpack.c.bf16 %v21702_v24, %v21701_v59  ;;  %v21738_v44 = vld [vmem:[%s33571_s7 + $0x328] sm:$0xff]  ;;  %v21739_v59 = vld [vmem:[%s33571_s7 + $0x330] sm:$0xff]  ;;  %v21740_v24 = vld [vmem:[%s33571_s7 + $0x338] sm:$0xff] }
 0xc2f   : > { %26401 = vmatprep.subr.bf16.mxu1 %v28052_v2 }
 0xc32   : > { %26403 = vmatpush3.bf16.msra.mxu1 %v26402_v32  ;;  %v21703_v32 = vld [vmem:[%s33571_s7 + $0x230] sm:$0xff] }
 0xc33   : > { %26404 = vmatprep.subr.bf16.mxu1 %v28052_v2  ;;  %v26456_v22 = vpack.c.bf16 %v21704_v62, %v21703_v32  ;;  %v18539_v32 = vld [vmem:[#allocation7 + $0x30] ss:$2 sm:$0xf]  ;;  %v18555_v62 = vld [vmem:[#allocation7 + $0x31] ss:$2 sm:$0xf] }
 0xc36   : > { %26406 = vmatpush3.bf16.msra.mxu1 %v26405_v12  ;;  %v18553_v12 = vld [vmem:[#allocation7 + $0x29] ss:$2 sm:$0xf] }
 0xc37   : > { %26407 = vmatprep.subr.bf16.mxu1 %v28052_v2  ;;  %v18563_v47 = vmax.f32 %v18537_v33, %v18553_v12  ;;  %v26504_v33 = vpack.c.bf16 %v21740_v24, %v21739_v59  ;;  %v18564_v12 = vmax.f32 %v18539_v32, %v18555_v62  ;;  %v19909_v59 = vld [vmem:[%s33573_s9 + $0x50] sm:$0xff]  ;;  %v19910_v24 = vld [vmem:[%s33573_s9 + $0x58] sm:$0xff]  ;;  %v19911_v32 = vld [vmem:[%s33573_s9 + $0x60] sm:$0xff] }
 0xc38   : > { %v19912_v62 = vld [vmem:[%s33573_s9 + $0x68] sm:$0xff] }
 0xc39   : > { %v33229_v7 = vmax.f32 %v18562_v42, %v18563_v47 }
 0xc3a   : > { %26409 = vmatpush3.bf16.msra.mxu1 %v26408_v15  ;;  %v21707_v15 = vld [vmem:[%s33571_s7 + $0x248] sm:$0xff] }
 0xc3b   : > { %26410 = vmatprep.subr.bf16.mxu1 %v28052_v2  ;;  %v26459_v38 = vpack.c.bf16 %v21707_v15, %v21706_v13  ;;  %v21744_v13 = vld [vmem:[%s33571_s7 + $0x350] sm:$0xff]  ;;  %v21745_v15 = vld [vmem:[%s33571_s7 + $0x358] sm:$0xff] }
 0xc3d   : > { %25996 = vmatmul.mubr.msk.f32.vlgmr.msra.gmra.mrb[168].mxu1 %vm18518_vm8, %v33099_v14  ;;  %v21710_v14 = vld [vmem:[%s33571_s7 + $0x260] sm:$0xff] }
 0xc3e   : > { %26412 = vmatpush3.bf16.msra.mxu1 %v26411_v17  ;;  %26014 = vmatprep.mubr.msk.f32.mxu1 %vm28053_vm7, %v33869_v3  ;;  %v26462_v17 = vpack.c.bf16 %v21709_v51, %v21708_v40  ;;  %v26465_v0 = vpack.c.bf16 %v21711_v30, %v21710_v14  ;;  %v21747_v40 = vld [vmem:[%s33571_s7 + $0x368] sm:$0xff]  ;;  %v21749_v14 = vld [vmem:[%s33571_s7 + $0x378] sm:$0xff] }
 0xc3f   : > { %26413 = vmatprep.subr.bf16.mxu1 %v28052_v2 }
 0xc42   : > { %26415 = vmatpush3.bf16.msra.mxu1 %v26414_v23  ;;  %v21712_v23 = vld [vmem:[%s33571_s7 + $0x270] sm:$0xff] }
 0xc43   : > { %26416 = vmatprep.subr.bf16.mxu1 %v28052_v2  ;;  %v26468_v8 = vpack.c.bf16 %v21713_v63, %v21712_v23  ;;  %v21752_v23 = vld [vmem:[%s33571_s7 + $0x388] sm:$0xff] }
 0xc46   : > { %26418 = vmatpush3.bf16.msra.mxu1 %v26417_v54  ;;  %v21715_v54 = vld [vmem:[%s33571_s7 + $0x280] sm:$0xff] }
 0xc47   : > { %26419 = vmatprep.subr.bf16.mxu1 %v28052_v2  ;;  %v26471_v31 = vpack.c.bf16 %v21716_v18, %v21715_v54  ;;  %v21753_v54 = vld [vmem:[%s33571_s7 + $0x390] sm:$0xff]  ;;  %v21754_v18 = vld [vmem:[%s33571_s7 + $0x398] sm:$0xff] }
 0xc4a   : > { %26421 = vmatpush3.bf16.msra.mxu1 %v26420_v29  ;;  %v19326_v29 = vrot.slane %v33229_v7, 1 }
 0xc4b   : > { %26422 = vmatprep.subr.bf16.mxu1 %v28052_v2 }
 0xc4d   : > { %26015 = vmatmul.mubr.msk.f32.vlgmr.msra.gmra.mrb[168].mxu1 %vm18518_vm8, %v18994_v41  ;;  %v21719_v41 = vld [vmem:[%s33571_s7 + $0x2a0] sm:$0xff] }
 0xc4e   : > { %26424 = vmatpush3.bf16.msra.mxu1 %v26423_v55  ;;  %26033 = vmatprep.mubr.msk.f32.mxu1 %vm28053_vm7, %v33869_v3  ;;  %v26474_v55 = vpack.c.bf16 %v21718_v50, %v21717_v5  ;;  %v26477_v46 = vpack.c.bf16 %v21720_v37, %v21719_v41  ;;  %v21756_v5 = vld [vmem:[%s33571_s7 + $0x3a8] sm:$0xff]  ;;  %v21758_v41 = vld [vmem:[%s33571_s7 + $0x3b8] sm:$0xff] }
 0xc4f   : > { %26425 = vmatprep.subr.bf16.mxu1 %v28052_v2 }
 0xc52   : > { %26427 = vmatpush3.bf16.msra.mxu1 %v26426_v20  ;;  %v21721_v20 = vld [vmem:[%s33571_s7 + $0x2b0] sm:$0xff] }
 0xc53   : > { %26428 = vmatprep.subr.bf16.mxu1 %v28052_v2  ;;  %v26480_v6 = vpack.c.bf16 %v21722_v57, %v21721_v20  ;;  %v21761_v20 = vld [vmem:[%s33571_s7 + $0x3c8] sm:$0xff] }
 0xc56   : > { %26430 = vmatpush3.bf16.msra.mxu1 %v26429_v49  ;;  %v21724_v49 = vld [vmem:[%s33571_s7 + $0x2c0] sm:$0xff] }
 0xc57   : > { %26431 = vmatprep.subr.bf16.mxu1 %v28052_v2  ;;  %v26483_v48 = vpack.c.bf16 %v21725_v9, %v21724_v49  ;;  %v21762_v49 = vld [vmem:[%s33571_s7 + $0x3d0] sm:$0xff]  ;;  %v21763_v9 = vld [vmem:[%s33571_s7 + $0x3d8] sm:$0xff] }
 0xc5a   : > { %26433 = vmatpush3.bf16.msra.mxu1 %v26432_v56  ;;  %v19409_v56 = vrot.slane %v33229_v7, 2 }
 0xc5b   : > { %26434 = vmatprep.subr.bf16.mxu1 %v28052_v2 }
 0xc5d   : > { %26034 = vmatmul.mubr.msk.f32.vlgmr.msra.gmra.mrb[168].mxu1 %vm18518_vm8, %v19077_v4  ;;  %v21728_v4 = vld [vmem:[%s33571_s7 + $0x2e0] sm:$0xff] }
 0xc5e   : > { %26436 = vmatpush3.bf16.msra.mxu1 %v26435_v35  ;;  %26052 = vmatprep.mubr.msk.f32.mxu1 %vm28053_vm7, %v33869_v3  ;;  %v26486_v35 = vpack.c.bf16 %v21727_v11, %v21726_v34  ;;  %v26489_v1 = vpack.c.bf16 %v21729_v58, %v21728_v4  ;;  %v21765_v34 = vld [vmem:[%s33571_s7 + $0x3e8] sm:$0xff]  ;;  %v21767_v4 = vld [vmem:[%s33571_s7 + $0x3f8] sm:$0xff] }
 0xc5f   : > { %26437 = vmatprep.subr.bf16.mxu1 %v28052_v2 }
 0xc62   : > { %26439 = vmatpush3.bf16.msra.mxu1 %v26438_v45  ;;  %v21730_v45 = vld [vmem:[%s33571_s7 + $0x2f0] sm:$0xff] }
 0xc63   : > { %26440 = vmatprep.subr.bf16.mxu1 %v28052_v2  ;;  %v26492_v39 = vpack.c.bf16 %v21731_v16, %v21730_v45  ;;  %v19900_v45 = vld [vmem:[%s33573_s9 + $0x8] sm:$0xff] }
 0xc66   : > { %26442 = vmatpush3.bf16.msra.mxu1 %v26441_v61  ;;  %v21733_v61 = vld [vmem:[%s33571_s7 + $0x300] sm:$0xff] }
 0xc67   : > { %26443 = vmatprep.subr.bf16.mxu1 %v28052_v2  ;;  %v26495_v21 = vpack.c.bf16 %v21734_v36, %v21733_v61  ;;  %v19901_v61 = vld [vmem:[%s33573_s9 + $0x10] sm:$0xff]  ;;  %v19902_v36 = vld [vmem:[%s33573_s9 + $0x18] sm:$0xff] }
 0xc6a   : > { %26445 = vmatpush3.bf16.msra.mxu1 %v26444_v43  ;;  %v19492_v43 = vrot.slane %v33229_v7, 3 }
 0xc6b   : > { %26446 = vmatprep.subr.bf16.mxu1 %v28052_v2 }
 0xc6d   : > { %26053 = vmatmul.mubr.msk.f32.vlgmr.msra.gmra.mrb[168].mxu1 %vm18518_vm8, %v19160_v28  ;;  %v21737_v28 = vld [vmem:[%s33571_s7 + $0x320] sm:$0xff] }
 0xc6e   : > { %26448 = vmatpush3.bf16.msra.mxu1 %v26447_v52  ;;  %26071 = vmatprep.mubr.msk.f32.mxu1 %vm28053_vm7, %v33869_v3  ;;  %v26498_v52 = vpack.c.bf16 %v21736_v27, %v21735_v10  ;;  %v26501_v19 = vpack.c.bf16 %v21738_v44, %v21737_v28  ;;  %v19904_v10 = vld [vmem:[%s33573_s9 + $0x28] sm:$0xff]  ;;  %v19907_v44 = vld [vmem:[%s33573_s9 + $0x40] sm:$0xff] }
 0xc6f   : > { %26449 = vmatprep.subr.bf16.mxu1 %v28052_v2 }
 0xc72   : > { %26451 = vmatpush3.bf16.msra.mxu1 %v26450_v26  ;;  %v18541_v26 = vld [vmem:[#allocation7 + $0x38] ss:$2 sm:$0xf] }
 0xc73   : > { %26452 = vmatprep.subr.bf16.mxu1 %v28052_v2 }
 0xc76   : > { %26454 = vmatpush3.bf16.msra.mxu1 %v26453_v53  ;;  %v18557_v53 = vld [vmem:[#allocation7 + $0x39] ss:$2 sm:$0xf] }
 0xc77   : > { %26455 = vmatprep.subr.bf16.mxu1 %v28052_v2  ;;  %v18565_v60 = vmax.f32 %v18541_v26, %v18557_v53  ;;  %v26558_v53 = vpack.c.bf16 %v19910_v24, %v19909_v59 }
 0xc79   : > { %v33359_v47 = vmax.f32 %v18564_v12, %v18565_v60  ;;  %v19913_v12 = vld [vmem:[%s33573_s9 + $0x70] sm:$0xff]  ;;  %v19914_v60 = vld [vmem:[%s33573_s9 + $0x78] sm:$0xff] }
 0xc7a   : > { %26457 = vmatpush3.bf16.msra.mxu1 %v26456_v22  ;;  %v21743_v22 = vld [vmem:[%s33571_s7 + $0x348] sm:$0xff] }
 0xc7b   : > { %26458 = vmatprep.subr.bf16.mxu1 %v28052_v2  ;;  %v26507_v42 = vpack.c.bf16 %v21743_v22, %v21742_v25  ;;  %v26564_v25 = vpack.c.bf16 %v19914_v60, %v19913_v12  ;;  %v18570_v22 = vld [vmem:[%s33572_s8] sm:$0x1] }
 0xc7d   : > { %26072 = vmatmul.mubr.msk.f32.vlgmr.msra.gmra.mrb[168].mxu1 %vm18518_vm8, %v33229_v7  ;;  %v21746_v7 = vld [vmem:[%s33571_s7 + $0x360] sm:$0xff] }
 0xc7e   : > { %26460 = vmatpush3.bf16.msra.mxu1 %v26459_v38  ;;  %26090 = vmatprep.mubr.msk.f32.mxu1 %vm28053_vm7, %v33869_v3  ;;  %v26510_v38 = vpack.c.bf16 %v21745_v15, %v21744_v13  ;;  %v26513_v51 = vpack.c.bf16 %v21747_v40, %v21746_v7 }
 0xc7f   : > { %26461 = vmatprep.subr.bf16.mxu1 %v28052_v2 }
 0xc82   : > { %26463 = vmatpush3.bf16.msra.mxu1 %v26462_v17  ;;  %v21748_v17 = vld [vmem:[%s33571_s7 + $0x370] sm:$0xff] }
 0xc83   : > { %26464 = vmatprep.subr.bf16.mxu1 %v28052_v2  ;;  %v26516_v30 = vpack.c.bf16 %v21749_v14, %v21748_v17 }
 0xc86   : > { %26466 = vmatpush3.bf16.msra.mxu1 %v26465_v0  ;;  %v21751_v0 = vld [vmem:[%s33571_s7 + $0x380] sm:$0xff] }
 0xc87   : > { %26467 = vmatprep.subr.bf16.mxu1 %v28052_v2  ;;  %v26519_v63 = vpack.c.bf16 %v21752_v23, %v21751_v0 }
 0xc8a   : > { %26469 = vmatpush3.bf16.msra.mxu1 %v26468_v8  ;;  %v19658_v8 = vrot.slane %v33359_v47, 1 }
 0xc8b   : > { %26470 = vmatprep.subr.bf16.mxu1 %v28052_v2 }
 0xc8d   : > { %26091 = vmatmul.mubr.msk.f32.vlgmr.msra.gmra.mrb[168].mxu1 %vm18518_vm8, %v19326_v29  ;;  %v21755_v29 = vld [vmem:[%s33571_s7 + $0x3a0] sm:$0xff] }
 0xc8e   : > { %26472 = vmatpush3.bf16.msra.mxu1 %v26471_v31  ;;  %26109 = vmatprep.mubr.msk.f32.mxu1 %vm28053_vm7, %v33869_v3  ;;  %v26522_v31 = vpack.c.bf16 %v21754_v18, %v21753_v54  ;;  %v26525_v50 = vpack.c.bf16 %v21756_v5, %v21755_v29 }
 0xc8f   : > { %26473 = vmatprep.subr.bf16.mxu1 %v28052_v2 }
 0xc92   : > { %26475 = vmatpush3.bf16.msra.mxu1 %v26474_v55  ;;  %v21757_v55 = vld [vmem:[%s33571_s7 + $0x3b0] sm:$0xff] }
 0xc93   : > { %26476 = vmatprep.subr.bf16.mxu1 %v28052_v2  ;;  %v26528_v37 = vpack.c.bf16 %v21758_v41, %v21757_v55 }
 0xc96   : > { %26478 = vmatpush3.bf16.msra.mxu1 %v26477_v46  ;;  %v21760_v46 = vld [vmem:[%s33571_s7 + $0x3c0] sm:$0xff] }
 0xc97   : > { %26479 = vmatprep.subr.bf16.mxu1 %v28052_v2  ;;  %v26531_v57 = vpack.c.bf16 %v21761_v20, %v21760_v46 }
 0xc9a   : > { %26481 = vmatpush3.bf16.msra.mxu1 %v26480_v6  ;;  %v19741_v6 = vrot.slane %v33359_v47, 2 }
 0xc9b   : > { %26482 = vmatprep.subr.bf16.mxu1 %v28052_v2 }
 0xc9d   : > { %26110 = vmatmul.mubr.msk.f32.vlgmr.msra.gmra.mrb[168].mxu1 %vm18518_vm8, %v19409_v56  ;;  %v21764_v56 = vld [vmem:[%s33571_s7 + $0x3e0] sm:$0xff] }
 0xc9e   : > { %26484 = vmatpush3.bf16.msra.mxu1 %v26483_v48  ;;  %26128 = vmatprep.mubr.msk.f32.mxu1 %vm28053_vm7, %v33869_v3  ;;  %v26534_v48 = vpack.c.bf16 %v21763_v9, %v21762_v49  ;;  %v26537_v11 = vpack.c.bf16 %v21765_v34, %v21764_v56 }
 0xc9f   : > { %26485 = vmatprep.subr.bf16.mxu1 %v28052_v2 }
 0xca2   : > { %26487 = vmatpush3.bf16.msra.mxu1 %v26486_v35  ;;  %v21766_v35 = vld [vmem:[%s33571_s7 + $0x3f0] sm:$0xff] }
 0xca3   : > { %26488 = vmatprep.subr.bf16.mxu1 %v28052_v2  ;;  %v26540_v58 = vpack.c.bf16 %v21767_v4, %v21766_v35 }
 0xca6   : > { %26490 = vmatpush3.bf16.msra.mxu1 %v26489_v1  ;;  %v19899_v1 = vld [vmem:[%s33573_s9] sm:$0xff] }
 0xca7   : > { %26491 = vmatprep.subr.bf16.mxu1 %v28052_v2  ;;  %v26543_v16 = vpack.c.bf16 %v19900_v45, %v19899_v1 }
 0xcaa   : > { %26493 = vmatpush3.bf16.msra.mxu1 %v26492_v39  ;;  %v19824_v39 = vrot.slane %v33359_v47, 3 }
 0xcab   : > { %26494 = vmatprep.subr.bf16.mxu1 %v28052_v2 }
 0xcad   : > { %26129 = vmatmul.mubr.msk.f32.vlgmr.msra.gmra.mrb[168].mxu1 %vm18518_vm8, %v19492_v43  ;;  %v19903_v43 = vld [vmem:[%s33573_s9 + $0x20] sm:$0xff] }
 0xcae   : > { %26496 = vmatpush3.bf16.msra.mxu1 %v26495_v21  ;;  %26147 = vmatprep.mubr.msk.f32.mxu1 %vm28053_vm7, %v33869_v3  ;;  %v26546_v21 = vpack.c.bf16 %v19902_v36, %v19901_v61  ;;  %v26549_v27 = vpack.c.bf16 %v19904_v10, %v19903_v43 }
 0xcaf   : > { %26497 = vmatprep.subr.bf16.mxu1 %v28052_v2 }
 0xcb2   : > { %26499 = vmatpush3.bf16.msra.mxu1 %v26498_v52  ;;  %v19905_v52 = vld [vmem:[%s33573_s9 + $0x30] sm:$0xff] }
 0xcb3   : > { %26500 = vmatprep.subr.bf16.mxu1 %v28052_v2 }
 0xcb6   : > { %26502 = vmatpush3.bf16.msra.mxu1 %v26501_v19  ;;  %v19908_v19 = vld [vmem:[%s33573_s9 + $0x48] sm:$0xff] }
 0xcb7   : > { %26503 = vmatprep.subr.bf16.mxu1 %v28052_v2  ;;  %v26555_v26 = vpack.c.bf16 %v19908_v19, %v19907_v44 }
 0xcba   : > { %26505 = vmatpush3.bf16.msra.mxu1 %v26504_v33  ;;  %v26561_v33 = vpack.c.bf16 %v19912_v62, %v19911_v32 }
 0xcbb   : > { %26506 = vmatprep.subr.bf16.mxu1 %v28052_v2 }
 0xcbd   : > { %26148 = vmatmul.mubr.msk.f32.vlgmr.msra.gmra.mrb[168].mxu1 %vm18518_vm8, %v33359_v47 }
 0xcbe   : > { %26508 = vmatpush3.bf16.msra.mxu1 %v26507_v42  ;;  %26166 = vmatprep.mubr.msk.f32.mxu1 %vm28053_vm7, %v33869_v3 }
 0xcbf   : > { %26509 = vmatprep.subr.bf16.mxu1 %v28052_v2 }
 0xcc2   : > { %26511 = vmatpush3.bf16.msra.mxu1 %v26510_v38 }
 0xcc3   : > { %26512 = vmatprep.subr.bf16.mxu1 %v28052_v2 }
 0xcc6   : > { %26514 = vmatpush3.bf16.msra.mxu1 %v26513_v51 }
 0xcc7   : > { %26515 = vmatprep.subr.bf16.mxu1 %v28052_v2 }
 0xcca   : > { %26517 = vmatpush3.bf16.msra.mxu1 %v26516_v30 }
 0xccb   : > { %26518 = vmatprep.subr.bf16.mxu1 %v28052_v2 }
 0xccd   : > { %26167 = vmatmul.mubr.msk.f32.vlgmr.msra.gmra.mrb[168].mxu1 %vm18518_vm8, %v19658_v8 }
 0xcce   : > { %26520 = vmatpush3.bf16.msra.mxu1 %v26519_v63  ;;  %26185 = vmatprep.mubr.msk.f32.mxu1 %vm28053_vm7, %v33869_v3 }
 0xccf   : > { %26521 = vmatprep.subr.bf16.mxu1 %v28052_v2 }
 0xcd2   : > { %26523 = vmatpush3.bf16.msra.mxu1 %v26522_v31 }
 0xcd3   : > { %26524 = vmatprep.subr.bf16.mxu1 %v28052_v2 }
 0xcd6   : > { %26526 = vmatpush3.bf16.msra.mxu1 %v26525_v50 }
 0xcd7   : > { %26527 = vmatprep.subr.bf16.mxu1 %v28052_v2 }
 0xcda   : > { %26529 = vmatpush3.bf16.msra.mxu1 %v26528_v37 }
 0xcdb   : > { %26530 = vmatprep.subr.bf16.mxu1 %v28052_v2 }
 0xcdd   : > { %26186 = vmatmul.mubr.msk.f32.vlgmr.msra.gmra.mrb[168].mxu1 %vm18518_vm8, %v19741_v6 }
 0xcde   : > { %26532 = vmatpush3.bf16.msra.mxu1 %v26531_v57  ;;  %26204 = vmatprep.mubr.msk.f32.mxu1 %vm28053_vm7, %v33869_v3 }
 0xcdf   : > { %26533 = vmatprep.subr.bf16.mxu1 %v28052_v2 }
 0xce2   : > { %26535 = vmatpush3.bf16.msra.mxu1 %v26534_v48 }
 0xce3   : > { %26536 = vmatprep.subr.bf16.mxu1 %v28052_v2 }
 0xce6   : > { %26538 = vmatpush3.bf16.msra.mxu1 %v26537_v11 }
 0xce7   : > { %26539 = vmatprep.subr.bf16.mxu1 %v28052_v2 }
 0xcea   : > { %26541 = vmatpush3.bf16.msra.mxu1 %v26540_v58 }
 0xceb   : > { %26542 = vmatprep.subr.bf16.mxu1 %v28052_v2 }
 0xced   : > { %26205 = vmatmul.mubr.msk.f32.vlgmr.msra.gmra.mrb[168].mxu1 %vm18518_vm8, %v19824_v39 }
 0xcee   : > { %26544 = vmatpush3.bf16.msra.mxu1 %v26543_v16  ;;  %26239 = vmatprep.mubr.msk.f32.mxu1 %vm28053_vm7, %v33869_v3  ;;  %v19906_v3 = vld [vmem:[%s33573_s9 + $0x38] sm:$0xff] }
 0xcef   : > { %26545 = vmatprep.subr.bf16.mxu1 %v28052_v2  ;;  %v26552_v28 = vpack.c.bf16 %v19906_v3, %v19905_v52 }
 0xcf2   : > { %26547 = vmatpush3.bf16.msra.mxu1 %v26546_v21 }
 0xcf3   : > { %26548 = vmatprep.subr.bf16.mxu1 %v28052_v2 }
 0xcf6   : > { %26550 = vmatpush3.bf16.msra.mxu1 %v26549_v27 }
 0xcf7   : > { %26551 = vmatprep.subr.bf16.mxu1 %v28052_v2 }
 0xcfa   : > { %26553 = vmatpush3.bf16.msra.mxu1 %v26552_v28 }
 0xcfb   : > { %26554 = vmatprep.subr.bf16.mxu1 %v28052_v2 }
 0xcfe   : > { %26556 = vmatpush3.bf16.msra.mxu1 %v26555_v26 }
 0xcff   : > { %26557 = vmatprep.subr.bf16.mxu1 %v28052_v2 }
 0xd02   : > { %26559 = vmatpush3.bf16.msra.mxu1 %v26558_v53 }
 0xd03   : > { %26560 = vmatprep.subr.bf16.mxu1 %v28052_v2 }
 0xd06   : > { %26562 = vmatpush3.bf16.msra.mxu1 %v26561_v33 }
 0xd07   : > { %26563 = vmatprep.subr.bf16.mxu1 %v28052_v2  ;;  %v19915_v2 = vld [vmem:[%s33574_s10] sm:$0x1] }
 0xd0a   : > { %26565 = vmatpush3.bf16.msra.mxu1 %v26564_v25 }
 0xdc0   : > { %v19893_v42 = vpop.f32.mrb[168].mxu1 }
 0xdc1   : > { %v26696_v47 = vadd.f32 %v19893_v42, %v18570_v22  ;;  %v26206_v13 = vpop.f32.mrb[169].mxu1 }
 0xdc3   : > { %v19898_v15 = vmax.f32 %v26696_v47, 0.0 }
 0xdc5   : > { %26240 = vmatmul.mubr.f32.vlgmr.msra.gmra.mrb[170].mxu1 %v19898_v15 }
 0xe98   : > { %v19982_v38 = vpop.f32.mrb[170].mxu1 }
 0xe99   : > { %v19983_v7 = vadd.f32 %v19982_v38, %v19915_v2  ;;  %v26241_v40 = vpop.f32.mrb[171].mxu1 }
 0xe9b   : > { %19987 = vst.msk [vmem:[%s378_s15] sm:$0x1] %vm19986_vm9, %v19983_v7 }
 0xe9c   : > { %28000 = shalt.err (!%p27997_p3)
}
 0xe9d   : > { %s28001_s30 = scalar_lea.hbm %s33522_s25, 16  ;;  %s28005_s22 = scalar_lea.hbm %s33575_s11, 32 }
 0xe9e   : > { %p28002_p4 = scmp.ne.s32.totalorder %s33522_s25, %s28001_s30  ;;  %p28006_p9 = scmp.lt.u32.totalorder %s33522_s25, %s33575_s11 }
 0xe9f   : > { %p28007_p10 = scmp.lt.u32.totalorder %s28005_s22, %s28001_s30  ;;  %p28009_p12 = scmp.lt.u32.totalorder %s28001_s30, %s33522_s25 }
 0xea0   : > { %p28003_p7 = pnand %p28002_p4, %p28153_p5 }
 0xea1   : > { %p28008_p11 = por %p28007_p10, %p28006_p9 }
 0xea2   : > { %p28004_p8 = pneg %p28003_p7 }
 0xea3   : > { %p28010_p13 = por %p28009_p12, %p28008_p11 }
 0xea5   : > { %p28011_p0 = pnand %p28010_p13, %p28004_p8 }
 0xea7   : > { %28014 = shalt.err (!%p28011_p0)
}
 0xea8   : > { %27943 = dma.vmem_to_hbm [thread:$0]  (%p28153_p5), %s33524_s16, 16, %s33522_s25, %s19989_s29  }
 0xea9 PF: > { %p27949_p1 = scmp.ge.s32.totalorder %s28049_s20, 2  ;;  %s20013_s0 = sand.u32 1, %s28037_s17  }
 0xeaa   : > { %s20014_s12 = scalar_lea.sflag [#allocation9], %s20013_s0 }
 0xeab   : > { %p27946_p2 = pnand %p27949_p1, %p28157_p6 }
 0xead   : > { %28032 = dma.done.wait (!%p27946_p2), %s20014_s12, 16  }
 0xeae   : > { %28034 = vsyncadd (!%p27946_p2), %s20014_s12, 4294967280  ;;  %p21_p3 = scmp.ge.s32.totalorder %s28140_s23, 4   ;;  %s33870_s17 = smov %s28041_s18 }
 0xeaf   : > { %s33871_s18 = smov %s28045_s19  ;;  %s33872_s19 = smov %s28151_s26 }
 0xeb0   : > { %s33873_s20 = smov %s28140_s23  ;;  %23 = sbr.rel (!%p21_p3) target bundleno = 5 (0x5), region = 317 }
 0xeb7   :  { %20018 = vsyncpa [#allocation9], 1 }
 0xeb8   :  { %20020 = vsyncpa [#allocation9 + $0x1], 1 }

</bundles_post_ra>
